<compile_context>
chip_gen: v5e
topology: v5e:2x2
jax: 0.10.0
libtpu: 0.0.40
codegen_flags: <defaults>
</compile_context>

<pallas_src>
import functools

import jax
import jax.numpy as jnp
from jax import lax
from jax.experimental import pallas as pl
from jax.experimental.pallas import tpu as pltpu

BN_EPS = 1e-5
LANE = 128

_COMPILER_PARAMS = pltpu.CompilerParams(
    dimension_semantics=("parallel",),
    vmem_limit_bytes=32 * 1024 * 1024,
)


def _round_up(x, m):
    return ((x + m - 1) // m) * m


# ---------------------------------------------------------------------------
# Pallas kernels
# ---------------------------------------------------------------------------
def _conv_mm_stats_kernel(x_ref, w_ref, b_ref, y_ref, sum_ref, sq_ref,
                          *, m_valid, tm, mask_rows):
    """y = x @ w + b (bf16 in, f32 acc); emits per-tile sum / sum-of-squares."""
    y = jnp.dot(x_ref[...], w_ref[...], preferred_element_type=jnp.float32)
    y = y + b_ref[...]
    y_ref[...] = y

    if mask_rows:  # exclude padded rows from the BN statistics
        rows = pl.program_id(0) * tm + lax.broadcasted_iota(jnp.int32, y.shape, 0)
        y = jnp.where(rows < m_valid, y, 0.0)

    cout = y.shape[1]
    csum = jnp.sum(y, axis=0, keepdims=True)          # (1, Cout)
    csq = jnp.sum(y * y, axis=0, keepdims=True)       # (1, Cout)
    sum_ref[...] = jnp.broadcast_to(csum[None], (1, 8, cout))
    sq_ref[...] = jnp.broadcast_to(csq[None], (1, 8, cout))


def _conv_mm_act_kernel(x_ref, w_ref, b_ref, y_ref, *, act):
    """y = act(x @ w + b) (bf16 in, f32 acc, fused activation epilogue)."""
    y = jnp.dot(x_ref[...], w_ref[...], preferred_element_type=jnp.float32)
    y = y + b_ref[...]
    if act == "tanh":
        y = jnp.tanh(y)
    elif act == "sigmoid":
        y = jax.nn.sigmoid(y)
    elif act == "relu":
        y = jnp.maximum(y, 0.0)
    y_ref[...] = y.astype(y_ref.dtype)


def _sanet_kernel(yc_ref, scc_ref, shc_ref, ys_ref, scs_ref, shs_ref,
                  wf_ref, bf_ref, wg_ref, bg_ref, wh_ref, bh_ref,
                  wk_ref, bk_ref, face_ref, land_ref):
    """Fused per-batch SANet block.

    Inputs (per batch block): raw conv1_1 / conv1_2 outputs (pre-BN) plus BN
    scale/shift -> BN affine + ReLU in-kernel, then 1x1 projections, softmax
    attention and both residual outputs, all held in VMEM.
    """
    content = jnp.maximum(yc_ref[...] * scc_ref[...] + shc_ref[...], 0.0)
    style = jnp.maximum(ys_ref[...] * scs_ref[...] + shs_ref[...], 0.0)
    c_bf = content.astype(jnp.bfloat16)
    s_bf = style.astype(jnp.bfloat16)

    def proj(x_bf, w_ref, b_ref):
        return jnp.dot(x_bf, w_ref[...],
                       preferred_element_type=jnp.float32) + b_ref[...]

    f_mat = proj(c_bf, wf_ref, bf_ref)   # (hw, 32)  F0
    h_mat = proj(c_bf, wh_ref, bh_ref)   # (hw, 32)  h(content)
    g_mat = proj(s_bf, wg_ref, bg_ref)   # (hw, 32)  G0
    k_mat = proj(s_bf, wk_ref, bk_ref)   # (hw, 32)  k(style)

    # attention logits: S_log[i, j] = <F[i, :], G[j, :]>
    logits = lax.dot_general(
        f_mat.astype(jnp.bfloat16), g_mat.astype(jnp.bfloat16),
        (((1,), (1,)), ((), ())), preferred_element_type=jnp.float32)

    m = jnp.max(logits, axis=-1, keepdims=True)
    p = jnp.exp(logits - m)
    denom = jnp.sum(p, axis=-1, keepdims=True)
    s_attn = p * pl.reciprocal(denom, approx=True)      # softmax over last dim
    s_bf16 = s_attn.astype(jnp.bfloat16)

    # enhanced_facefeatures (lr_face_en) = S @ k(style) + F0
    face_ref[...] = jnp.dot(
        s_bf16, k_mat.astype(jnp.bfloat16),
        preferred_element_type=jnp.float32) + f_mat
    # enhanced_landmarks (landmarks_en) = S^T @ h(content) + G0
    land_ref[...] = lax.dot_general(
        s_bf16, h_mat.astype(jnp.bfloat16),
        (((0,), (0,)), ((), ())), preferred_element_type=jnp.float32) + g_mat


# ---------------------------------------------------------------------------
# Conv3x3 (stride 1, pad 1) wrapper: im2col + Pallas matmul
# ---------------------------------------------------------------------------
def _im2col_3x3(x_nhwc):
    n, h, w, c = x_nhwc.shape
    xp = jnp.pad(x_nhwc, ((0, 0), (1, 1), (1, 1), (0, 0)))
    cols = []
    for kh in range(3):
        for kw in range(3):
            cols.append(xp[:, kh:kh + h, kw:kw + w, :])
    patches = jnp.concatenate(cols, axis=-1)              # (n,h,w,9c), (kh,kw,c)
    return patches.reshape(n * h * w, 9 * c)


def pallas_conv3x3(x_nhwc, w, b, *, act="none", with_stats=False):
    """3x3 / stride 1 / pad 1 conv. w: (Cout, Cin, 3, 3); b: (Cout,).

    Returns the flat (M, Cout) f32 output; if with_stats also returns
    (sum, sum_sq) per output channel (for training-mode BatchNorm).
    """
    n, h, wd, cin = x_nhwc.shape
    cout = w.shape[0]
    m = n * h * wd
    k = 9 * cin

    patches = _im2col_3x3(x_nhwc)

    kp = _round_up(k, LANE)
    cp = _round_up(cout, LANE)
    tm = min(256, _round_up(m, 8))
    mp = _round_up(m, tm)
    ntm = mp // tm

    if kp != k or mp != m:
        patches = jnp.pad(patches, ((0, mp - m), (0, kp - k)))
    x_bf = patches.astype(jnp.bfloat16)

    w_mat = jnp.transpose(w, (2, 3, 1, 0)).reshape(k, cout)   # (kh,kw,cin)->cout
    if kp != k or cp != cout:
        w_mat = jnp.pad(w_mat, ((0, kp - k), (0, cp - cout)))
    w_bf = w_mat.astype(jnp.bfloat16)
    b2 = jnp.pad(b, (0, cp - cout)).reshape(1, cp).astype(jnp.float32)

    in_specs = [
        pl.BlockSpec((tm, kp), lambda i: (i, 0)),
        pl.BlockSpec((kp, cp), lambda i: (0, 0)),
        pl.BlockSpec((1, cp), lambda i: (0, 0)),
    ]

    if with_stats:
        kern = functools.partial(_conv_mm_stats_kernel, m_valid=m, tm=tm,
                                 mask_rows=(mp != m))
        y, s, q = pl.pallas_call(
            kern,
            out_shape=(jax.ShapeDtypeStruct((mp, cp), jnp.float32),
                       jax.ShapeDtypeStruct((ntm, 8, cp), jnp.float32),
                       jax.ShapeDtypeStruct((ntm, 8, cp), jnp.float32)),
            grid=(ntm,),
            in_specs=in_specs,
            out_specs=(pl.BlockSpec((tm, cp), lambda i: (i, 0)),
                       pl.BlockSpec((1, 8, cp), lambda i: (i, 0, 0)),
                       pl.BlockSpec((1, 8, cp), lambda i: (i, 0, 0))),
            compiler_params=_COMPILER_PARAMS,
        )(x_bf, w_bf, b2)
        csum = jnp.sum(s[:, 0, :cout], axis=0)
        csq = jnp.sum(q[:, 0, :cout], axis=0)
        return y[:m, :cout], (csum, csq)

    kern = functools.partial(_conv_mm_act_kernel, act=act)
    y = pl.pallas_call(
        kern,
        out_shape=jax.ShapeDtypeStruct((mp, cp), jnp.float32),
        grid=(ntm,),
        in_specs=in_specs,
        out_specs=pl.BlockSpec((tm, cp), lambda i: (i, 0)),
        compiler_params=_COMPILER_PARAMS,
    )(x_bf, w_bf, b2)
    return y[:m, :cout]


# ---------------------------------------------------------------------------
# SANet (fused BN affine + ReLU + 1x1 convs + attention) wrapper
# ---------------------------------------------------------------------------
def pallas_sanet(yc, scale_c, shift_c, ys, scale_s, shift_s, sp, batch, hw):
    assert hw % 8 == 0, "spatial size H*W must be a multiple of 8"
    cmid = yc.shape[1]                      # 128
    planes = sp["wf"].shape[1]              # 32

    def row(v):
        return v.reshape(1, -1).astype(jnp.float32)

    act_spec = pl.BlockSpec((hw, cmid), lambda b: (b, 0))
    vec_c = pl.BlockSpec((1, cmid), lambda b: (0, 0))
    w_spec = pl.BlockSpec((cmid, planes), lambda b: (0, 0))
    vec_p = pl.BlockSpec((1, planes), lambda b: (0, 0))
    out_spec = pl.BlockSpec((hw, planes), lambda b: (b, 0))

    face, land = pl.pallas_call(
        _sanet_kernel,
        out_shape=(jax.ShapeDtypeStruct((batch * hw, planes), jnp.float32),
                   jax.ShapeDtypeStruct((batch * hw, planes), jnp.float32)),
        grid=(batch,),
        in_specs=[act_spec, vec_c, vec_c,
                  act_spec, vec_c, vec_c,
                  w_spec, vec_p, w_spec, vec_p, w_spec, vec_p, w_spec, vec_p],
        out_specs=(out_spec, out_spec),
        compiler_params=_COMPILER_PARAMS,
    )(yc, row(scale_c), row(shift_c), ys, row(scale_s), row(shift_s),
      sp["wf"].astype(jnp.bfloat16), row(sp["bf"]),
      sp["wg"].astype(jnp.bfloat16), row(sp["bg"]),
      sp["wh"].astype(jnp.bfloat16), row(sp["bh"]),
      sp["wk"].astype(jnp.bfloat16), row(sp["bk"]))
    return face, land


def _bn_scale_shift(csum, csq, count, gamma, beta):
    mean = csum / count
    var = jnp.maximum(csq / count - mean * mean, 0.0)   # biased variance
    scale = gamma * lax.rsqrt(var + BN_EPS)
    shift = beta - mean * scale
    return scale, shift


# ---------------------------------------------------------------------------
# Parameters + forward
# ---------------------------------------------------------------------------
def init_params(key):
    def conv(k, cin, cout, ksz=3):
        k1, k2 = jax.random.split(k)
        w = 0.05 * jax.random.normal(k1, (cout, cin, ksz, ksz), jnp.float32)
        b = 0.05 * jax.random.normal(k2, (cout,), jnp.float32)
        return w, b

    keys = jax.random.split(key, 8)
    p = {}
    w, b = conv(keys[0], 3, 128)
    p["conv1_1"] = dict(w=w, b=b, gamma=jnp.ones(128, jnp.float32),
                        beta=jnp.zeros(128, jnp.float32))
    w, b = conv(keys[1], 68, 128)
    p["conv1_2"] = dict(w=w, b=b, gamma=jnp.ones(128, jnp.float32),
                        beta=jnp.zeros(128, jnp.float32))

    sanet = {}
    for name, kk in zip(["f", "g", "h", "k"], keys[2:6]):
        w, b = conv(kk, 128, 32, ksz=1)
        sanet["w" + name] = jnp.transpose(w.reshape(32, 128))   # (Cin=128, Cout=32)
        sanet["b" + name] = b
    p["sanet"] = sanet

    w, b = conv(keys[6], 32, 3)
    p["conv_out11"] = dict(w=w, b=b)
    w, b = conv(keys[7], 32, 68)
    p["conv_out12"] = dict(w=w, b=b)
    return p


def crosslevel_net3_forward(lr_face, landmarks, params):
    """lr_face: (B,3,H,W), landmarks: (B,68,H,W)  (NCHW, like PyTorch).

    Returns (lr_face_out, landmarks_out) with shapes (B,3,H,W) / (B,68,H,W).
    """
    batch, _, h, w = lr_face.shape
    hw = h * w
    m = batch * hw

    x_face = jnp.transpose(lr_face.astype(jnp.float32), (0, 2, 3, 1))
    x_land = jnp.transpose(landmarks.astype(jnp.float32), (0, 2, 3, 1))

    # conv1_1 / conv1_2 with fused BN-statistics epilogue
    yc, (s1, q1) = pallas_conv3x3(x_face, params["conv1_1"]["w"],
                                  params["conv1_1"]["b"], with_stats=True)
    ys, (s2, q2) = pallas_conv3x3(x_land, params["conv1_2"]["w"],
                                  params["conv1_2"]["b"], with_stats=True)
    sc_c, sh_c = _bn_scale_shift(s1, q1, m, params["conv1_1"]["gamma"],
                                 params["conv1_1"]["beta"])
    sc_s, sh_s = _bn_scale_shift(s2, q2, m, params["conv1_2"]["gamma"],
                                 params["conv1_2"]["beta"])

    # fused SANet block (BN affine + ReLU applied in-kernel)
    face_en, land_en = pallas_sanet(yc, sc_c, sh_c, ys, sc_s, sh_s,
                                    params["sanet"], batch, hw)

    face_nhwc = face_en.reshape(batch, h, w, 32)
    land_nhwc = land_en.reshape(batch, h, w, 32)

    out_face = pallas_conv3x3(face_nhwc, params["conv_out11"]["w"],
                              params["conv_out11"]["b"], act="tanh")
    out_land = pallas_conv3x3(land_nhwc, params["conv_out12"]["w"],
                              params["conv_out12"]["b"], act="sigmoid")

    out_face = out_face.reshape(batch, h, w, 3).transpose(0, 3, 1, 2)
    out_land = out_land.reshape(batch, h, w, 68).transpose(0, 3, 1, 2)
    return out_face, out_land


# ---------------------------------------------------------------------------
if __name__ == "__main__":
    batch, hgt, wid = 2, 16, 16
    key = jax.random.PRNGKey(0)
    k_face, k_land, k_par = jax.random.split(key, 3)

    lr_face = jax.random.normal(k_face, (batch, 3, hgt, wid), jnp.float32)
    landmarks = jax.random.normal(k_land, (batch, 68, hgt, wid), jnp.float32)
    params = init_params(k_par)

    fwd = jax.jit(crosslevel_net3_forward)
    out_face, out_land = fwd(lr_face, landmarks, params)
    out_face = jax.block_until_ready(out_face)
    out_land = jax.block_until_ready(out_land)

    assert out_face.shape == (batch, 3, hgt, wid), out_face.shape
    assert out_land.shape == (batch, 68, hgt, wid), out_land.shape
    assert bool(jnp.all(jnp.isfinite(out_face)))
    assert bool(jnp.all(jnp.isfinite(out_land)))
    assert bool(jnp.all((out_face >= -1.0) & (out_face <= 1.0)))   # tanh range
    assert bool(jnp.all((out_land >= 0.0) & (out_land <= 1.0)))    # sigmoid range
    print("KERNEL_OK")
</pallas_src>

<mosaic_0001>
module attributes {stable_mosaic.version = 11 : i64} {
  func.func @_conv_mm_stats_kernel(%arg0: i32, %arg1: memref<256x640xbf16, #tpu.memory_space<vmem>>, %arg2: memref<640x128xbf16, #tpu.memory_space<vmem>>, %arg3: memref<1x128xf32, #tpu.memory_space<vmem>>, %arg4: memref<256x128xf32, #tpu.memory_space<vmem>>, %arg5: memref<1x8x128xf32, #tpu.memory_space<vmem>>, %arg6: memref<1x8x128xf32, #tpu.memory_space<vmem>>) attributes {dimension_semantics = [#tpu.dimension_semantics<parallel>], iteration_bounds = array<i64: 2>, scalar_prefetch = 0 : i64, scratch_operands = 0 : i64, tpu.core_type = #tpu.core_type<tc>, window_params = [{transform_indices = @transform_0, window_bounds = array<i64: 256, 640>}, {pipeline_mode = #tpu.pipeline_mode<synchronous>, transform_indices = @transform_1, window_bounds = array<i64: 640, 128>}, {pipeline_mode = #tpu.pipeline_mode<synchronous>, transform_indices = @transform_2, window_bounds = array<i64: 1, 128>}, {transform_indices = @transform_3, window_bounds = array<i64: 256, 128>}, {transform_indices = @transform_4, window_bounds = array<i64: 1, 8, 128>}, {transform_indices = @transform_5, window_bounds = array<i64: 1, 8, 128>}]} {
    %c0 = arith.constant 0 : index
    %c0_0 = arith.constant 0 : index
    %0 = vector.load %arg1[%c0, %c0_0] : memref<256x640xbf16, #tpu.memory_space<vmem>>, vector<256x640xbf16>
    %c0_1 = arith.constant 0 : index
    %c0_2 = arith.constant 0 : index
    %1 = vector.load %arg2[%c0_1, %c0_2] : memref<640x128xbf16, #tpu.memory_space<vmem>>, vector<640x128xbf16>
    %cst = arith.constant dense<0.000000e+00> : vector<256x128xf32>
    %2 = tpu.matmul %0, %1, %cst {dimension_numbers = #tpu.dot_dimension_numbers<[1], [0], [0], [1], [0, 0, 1, 1], [], []>} : vector<256x640xbf16>, vector<640x128xbf16>, vector<256x128xf32> -> vector<256x128xf32>
    %c0_3 = arith.constant 0 : index
    %c0_4 = arith.constant 0 : index
    %3 = vector.load %arg3[%c0_3, %c0_4] : memref<1x128xf32, #tpu.memory_space<vmem>>, vector<1x128xf32>
    %4 = vector.broadcast %3 : vector<1x128xf32> to vector<256x128xf32>
    %5 = arith.addf %2, %4 : vector<256x128xf32>
    %c0_5 = arith.constant 0 : index
    %c0_6 = arith.constant 0 : index
    %6 = vector.load %arg4[%c0_5, %c0_6] : memref<256x128xf32, #tpu.memory_space<vmem>>, vector<256x128xf32>
    tpu.vector_store %arg4[%c0_5, %c0_6], %5 {strides = array<i32>} : memref<256x128xf32, #tpu.memory_space<vmem>>, vector<256x128xf32>,
    %cst_7 = arith.constant dense<0.000000e+00> : vector<128xf32>
    %7 = vector.multi_reduction <add>, %5, %cst_7 [0] : vector<256x128xf32> to vector<128xf32>
    %8 = vector.shape_cast %7 : vector<128xf32> to vector<1x128xf32>
    %9 = arith.mulf %5, %5 : vector<256x128xf32>
    %cst_8 = arith.constant dense<0.000000e+00> : vector<128xf32>
    %10 = vector.multi_reduction <add>, %9, %cst_8 [0] : vector<256x128xf32> to vector<128xf32>
    %11 = vector.shape_cast %10 : vector<128xf32> to vector<1x128xf32>
    %12 = vector.shape_cast %8 : vector<1x128xf32> to vector<1x1x128xf32>
    %13 = vector.shape_cast %12 : vector<1x1x128xf32> to vector<1x1x128xf32>
    %14 = vector.broadcast %13 : vector<1x1x128xf32> to vector<1x8x128xf32>
    %c0_9 = arith.constant 0 : index
    %c0_10 = arith.constant 0 : index
    %c0_11 = arith.constant 0 : index
    %15 = vector.load %arg5[%c0_9, %c0_10, %c0_11] : memref<1x8x128xf32, #tpu.memory_space<vmem>>, vector<1x8x128xf32>
    tpu.vector_store %arg5[%c0_9, %c0_10, %c0_11], %14 {strides = array<i32>} : memref<1x8x128xf32, #tpu.memory_space<vmem>>, vector<1x8x128xf32>,
    %16 = vector.shape_cast %11 : vector<1x128xf32> to vector<1x1x128xf32>
    %17 = vector.shape_cast %16 : vector<1x1x128xf32> to vector<1x1x128xf32>
    %18 = vector.broadcast %17 : vector<1x1x128xf32> to vector<1x8x128xf32>
    %c0_12 = arith.constant 0 : index
    %c0_13 = arith.constant 0 : index
    %c0_14 = arith.constant 0 : index
    %19 = vector.load %arg6[%c0_12, %c0_13, %c0_14] : memref<1x8x128xf32, #tpu.memory_space<vmem>>, vector<1x8x128xf32>
    tpu.vector_store %arg6[%c0_12, %c0_13, %c0_14], %18 {strides = array<i32>} : memref<1x8x128xf32, #tpu.memory_space<vmem>>, vector<1x8x128xf32>,
    return
  }
  func.func @transform_0(%arg0: i32) -> (i32, i32) {
    %c0_i32 = arith.constant 0 : i32
    %c0_i32_0 = arith.constant 0 : i32
    return %arg0, %c0_i32 : i32, i32
  }
  func.func @transform_1(%arg0: i32) -> (i32, i32) {
    %c0_i32 = arith.constant 0 : i32
    %c0_i32_0 = arith.constant 0 : i32
    %c0_i32_1 = arith.constant 0 : i32
    return %c0_i32, %c0_i32_0 : i32, i32
  }
  func.func @transform_2(%arg0: i32) -> (i32, i32) {
    %c0_i32 = arith.constant 0 : i32
    %c0_i32_0 = arith.constant 0 : i32
    %c0_i32_1 = arith.constant 0 : i32
    return %c0_i32, %c0_i32_0 : i32, i32
  }
  func.func @transform_3(%arg0: i32) -> (i32, i32) {
    %c0_i32 = arith.constant 0 : i32
    %c0_i32_0 = arith.constant 0 : i32
    return %arg0, %c0_i32 : i32, i32
  }
  func.func @transform_4(%arg0: i32) -> (i32, i32, i32) {
    %c0_i32 = arith.constant 0 : i32
    %c0_i32_0 = arith.constant 0 : i32
    %c0_i32_1 = arith.constant 0 : i32
    return %arg0, %c0_i32, %c0_i32_0 : i32, i32, i32
  }
  func.func @transform_5(%arg0: i32) -> (i32, i32, i32) {
    %c0_i32 = arith.constant 0 : i32
    %c0_i32_0 = arith.constant 0 : i32
    %c0_i32_1 = arith.constant 0 : i32
    return %arg0, %c0_i32, %c0_i32_0 : i32, i32, i32
  }
}

module attributes {stable_mosaic.version = 11 : i64} {
  func.func @_sanet_kernel(%arg0: i32, %arg1: memref<256x128xf32, #tpu.memory_space<vmem>>, %arg2: memref<1x128xf32, #tpu.memory_space<vmem>>, %arg3: memref<1x128xf32, #tpu.memory_space<vmem>>, %arg4: memref<256x128xf32, #tpu.memory_space<vmem>>, %arg5: memref<1x128xf32, #tpu.memory_space<vmem>>, %arg6: memref<1x128xf32, #tpu.memory_space<vmem>>, %arg7: memref<128x32xbf16, #tpu.memory_space<vmem>>, %arg8: memref<1x32xf32, #tpu.memory_space<vmem>>, %arg9: memref<128x32xbf16, #tpu.memory_space<vmem>>, %arg10: memref<1x32xf32, #tpu.memory_space<vmem>>, %arg11: memref<128x32xbf16, #tpu.memory_space<vmem>>, %arg12: memref<1x32xf32, #tpu.memory_space<vmem>>, %arg13: memref<128x32xbf16, #tpu.memory_space<vmem>>, %arg14: memref<1x32xf32, #tpu.memory_space<vmem>>, %arg15: memref<256x32xf32, #tpu.memory_space<vmem>>, %arg16: memref<256x32xf32, #tpu.memory_space<vmem>>) attributes {dimension_semantics = [#tpu.dimension_semantics<parallel>], iteration_bounds = array<i64: 2>, scalar_prefetch = 0 : i64, scratch_operands = 0 : i64, tpu.core_type = #tpu.core_type<tc>, window_params = [{transform_indices = @transform_0, window_bounds = array<i64: 256, 128>}, {pipeline_mode = #tpu.pipeline_mode<synchronous>, transform_indices = @transform_1, window_bounds = array<i64: 1, 128>}, {pipeline_mode = #tpu.pipeline_mode<synchronous>, transform_indices = @transform_2, window_bounds = array<i64: 1, 128>}, {transform_indices = @transform_3, window_bounds = array<i64: 256, 128>}, {pipeline_mode = #tpu.pipeline_mode<synchronous>, transform_indices = @transform_4, window_bounds = array<i64: 1, 128>}, {pipeline_mode = #tpu.pipeline_mode<synchronous>, transform_indices = @transform_5, window_bounds = array<i64: 1, 128>}, {pipeline_mode = #tpu.pipeline_mode<synchronous>, transform_indices = @transform_6, window_bounds = array<i64: 128, 32>}, {pipeline_mode = #tpu.pipeline_mode<synchronous>, transform_indices = @transform_7, window_bounds = array<i64: 1, 32>}, {pipeline_mode = #tpu.pipeline_mode<synchronous>, transform_indices = @transform_8, window_bounds = array<i64: 128, 32>}, {pipeline_mode = #tpu.pipeline_mode<synchronous>, transform_indices = @transform_9, window_bounds = array<i64: 1, 32>}, {pipeline_mode = #tpu.pipeline_mode<synchronous>, transform_indices = @transform_10, window_bounds = array<i64: 128, 32>}, {pipeline_mode = #tpu.pipeline_mode<synchronous>, transform_indices = @transform_11, window_bounds = array<i64: 1, 32>}, {pipeline_mode = #tpu.pipeline_mode<synchronous>, transform_indices = @transform_12, window_bounds = array<i64: 128, 32>}, {pipeline_mode = #tpu.pipeline_mode<synchronous>, transform_indices = @transform_13, window_bounds = array<i64: 1, 32>}, {transform_indices = @transform_14, window_bounds = array<i64: 256, 32>}, {transform_indices = @transform_15, window_bounds = array<i64: 256, 32>}]} {
    %c0 = arith.constant 0 : index
    %c0_0 = arith.constant 0 : index
    %0 = vector.load %arg1[%c0, %c0_0] : memref<256x128xf32, #tpu.memory_space<vmem>>, vector<256x128xf32>
    %c0_1 = arith.constant 0 : index
    %c0_2 = arith.constant 0 : index
    %1 = vector.load %arg2[%c0_1, %c0_2] : memref<1x128xf32, #tpu.memory_space<vmem>>, vector<1x128xf32>
    %2 = vector.broadcast %1 : vector<1x128xf32> to vector<256x128xf32>
    %3 = arith.mulf %0, %2 : vector<256x128xf32>
    %c0_3 = arith.constant 0 : index
    %c0_4 = arith.constant 0 : index
    %4 = vector.load %arg3[%c0_3, %c0_4] : memref<1x128xf32, #tpu.memory_space<vmem>>, vector<1x128xf32>
    %5 = vector.broadcast %4 : vector<1x128xf32> to vector<256x128xf32>
    %6 = arith.addf %3, %5 : vector<256x128xf32>
    %cst = arith.constant 0.000000e+00 : f32
    %7 = vector.broadcast %cst : f32 to vector<256x128xf32>
    %8 = arith.maximumf %6, %7 : vector<256x128xf32>
    %c0_5 = arith.constant 0 : index
    %c0_6 = arith.constant 0 : index
    %9 = vector.load %arg4[%c0_5, %c0_6] : memref<256x128xf32, #tpu.memory_space<vmem>>, vector<256x128xf32>
    %c0_7 = arith.constant 0 : index
    %c0_8 = arith.constant 0 : index
    %10 = vector.load %arg5[%c0_7, %c0_8] : memref<1x128xf32, #tpu.memory_space<vmem>>, vector<1x128xf32>
    %11 = vector.broadcast %10 : vector<1x128xf32> to vector<256x128xf32>
    %12 = arith.mulf %9, %11 : vector<256x128xf32>
    %c0_9 = arith.constant 0 : index
    %c0_10 = arith.constant 0 : index
    %13 = vector.load %arg6[%c0_9, %c0_10] : memref<1x128xf32, #tpu.memory_space<vmem>>, vector<1x128xf32>
    %14 = vector.broadcast %13 : vector<1x128xf32> to vector<256x128xf32>
    %15 = arith.addf %12, %14 : vector<256x128xf32>
    %cst_11 = arith.constant 0.000000e+00 : f32
    %16 = vector.broadcast %cst_11 : f32 to vector<256x128xf32>
    %17 = arith.maximumf %15, %16 : vector<256x128xf32>
    %18 = arith.truncf %8 : vector<256x128xf32> to vector<256x128xbf16>
    %19 = arith.truncf %17 : vector<256x128xf32> to vector<256x128xbf16>
    %c0_12 = arith.constant 0 : index
    %c0_13 = arith.constant 0 : index
    %20 = vector.load %arg7[%c0_12, %c0_13] : memref<128x32xbf16, #tpu.memory_space<vmem>>, vector<128x32xbf16>
    %cst_14 = arith.constant dense<0.000000e+00> : vector<256x32xf32>
    %21 = tpu.matmul %18, %20, %cst_14 {dimension_numbers = #tpu.dot_dimension_numbers<[1], [0], [0], [1], [0, 0, 1, 1], [], []>} : vector<256x128xbf16>, vector<128x32xbf16>, vector<256x32xf32> -> vector<256x32xf32>
    %c0_15 = arith.constant 0 : index
    %c0_16 = arith.constant 0 : index
    %22 = vector.load %arg8[%c0_15, %c0_16] : memref<1x32xf32, #tpu.memory_space<vmem>>, vector<1x32xf32>
    %23 = vector.broadcast %22 : vector<1x32xf32> to vector<256x32xf32>
    %24 = arith.addf %21, %23 : vector<256x32xf32>
    %c0_17 = arith.constant 0 : index
    %c0_18 = arith.constant 0 : index
    %25 = vector.load %arg11[%c0_17, %c0_18] : memref<128x32xbf16, #tpu.memory_space<vmem>>, vector<128x32xbf16>
    %cst_19 = arith.constant dense<0.000000e+00> : vector<256x32xf32>
    %26 = tpu.matmul %18, %25, %cst_19 {dimension_numbers = #tpu.dot_dimension_numbers<[1], [0], [0], [1], [0, 0, 1, 1], [], []>} : vector<256x128xbf16>, vector<128x32xbf16>, vector<256x32xf32> -> vector<256x32xf32>
    %c0_20 = arith.constant 0 : index
    %c0_21 = arith.constant 0 : index
    %27 = vector.load %arg12[%c0_20, %c0_21] : memref<1x32xf32, #tpu.memory_space<vmem>>, vector<1x32xf32>
    %28 = vector.broadcast %27 : vector<1x32xf32> to vector<256x32xf32>
    %29 = arith.addf %26, %28 : vector<256x32xf32>
    %c0_22 = arith.constant 0 : index
    %c0_23 = arith.constant 0 : index
    %30 = vector.load %arg9[%c0_22, %c0_23] : memref<128x32xbf16, #tpu.memory_space<vmem>>, vector<128x32xbf16>
    %cst_24 = arith.constant dense<0.000000e+00> : vector<256x32xf32>
    %31 = tpu.matmul %19, %30, %cst_24 {dimension_numbers = #tpu.dot_dimension_numbers<[1], [0], [0], [1], [0, 0, 1, 1], [], []>} : vector<256x128xbf16>, vector<128x32xbf16>, vector<256x32xf32> -> vector<256x32xf32>
    %c0_25 = arith.constant 0 : index
    %c0_26 = arith.constant 0 : index
    %32 = vector.load %arg10[%c0_25, %c0_26] : memref<1x32xf32, #tpu.memory_space<vmem>>, vector<1x32xf32>
    %33 = vector.broadcast %32 : vector<1x32xf32> to vector<256x32xf32>
    %34 = arith.addf %31, %33 : vector<256x32xf32>
    %c0_27 = arith.constant 0 : index
    %c0_28 = arith.constant 0 : index
    %35 = vector.load %arg13[%c0_27, %c0_28] : memref<128x32xbf16, #tpu.memory_space<vmem>>, vector<128x32xbf16>
    %cst_29 = arith.constant dense<0.000000e+00> : vector<256x32xf32>
    %36 = tpu.matmul %19, %35, %cst_29 {dimension_numbers = #tpu.dot_dimension_numbers<[1], [0], [0], [1], [0, 0, 1, 1], [], []>} : vector<256x128xbf16>, vector<128x32xbf16>, vector<256x32xf32> -> vector<256x32xf32>
    %c0_30 = arith.constant 0 : index
    %c0_31 = arith.constant 0 : index
    %37 = vector.load %arg14[%c0_30, %c0_31] : memref<1x32xf32, #tpu.memory_space<vmem>>, vector<1x32xf32>
    %38 = vector.broadcast %37 : vector<1x32xf32> to vector<256x32xf32>
    %39 = arith.addf %36, %38 : vector<256x32xf32>
    %40 = arith.truncf %24 : vector<256x32xf32> to vector<256x32xbf16>
    %41 = arith.truncf %34 : vector<256x32xf32> to vector<256x32xbf16>
    %cst_32 = arith.constant dense<0.000000e+00> : vector<256x256xf32>
    %42 = tpu.matmul %40, %41, %cst_32 {dimension_numbers = #tpu.dot_dimension_numbers<[1], [1], [0], [0], [0, 0, 1, 0], [], []>} : vector<256x32xbf16>, vector<256x32xbf16>, vector<256x256xf32> -> vector<256x256xf32>
    %cst_33 = arith.constant dense<0xFF800000> : vector<256xf32>
    %43 = vector.multi_reduction <maximumf>, %42, %cst_33 [1] : vector<256x256xf32> to vector<256xf32>
    %44 = vector.shape_cast %43 : vector<256xf32> to vector<256x1xf32>
    %45 = vector.broadcast %44 : vector<256x1xf32> to vector<256x256xf32>
    %46 = arith.subf %42, %45 : vector<256x256xf32>
    %47 = math.exp %46 : vector<256x256xf32>
    %cst_34 = arith.constant dense<0.000000e+00> : vector<256xf32>
    %48 = vector.multi_reduction <add>, %47, %cst_34 [1] : vector<256x256xf32> to vector<256xf32>
    %49 = vector.shape_cast %48 : vector<256xf32> to vector<256x1xf32>
    %50 = tpu.reciprocal %49 {approx = true} : vector<256x1xf32> -> vector<256x1xf32>
    %51 = vector.broadcast %50 : vector<256x1xf32> to vector<256x256xf32>
    %52 = arith.mulf %47, %51 : vector<256x256xf32>
    %53 = arith.truncf %52 : vector<256x256xf32> to vector<256x256xbf16>
    %54 = arith.truncf %39 : vector<256x32xf32> to vector<256x32xbf16>
    %cst_35 = arith.constant dense<0.000000e+00> : vector<256x32xf32>
    %55 = tpu.matmul %53, %54, %cst_35 {dimension_numbers = #tpu.dot_dimension_numbers<[1], [0], [0], [1], [0, 0, 1, 1], [], []>} : vector<256x256xbf16>, vector<256x32xbf16>, vector<256x32xf32> -> vector<256x32xf32>
    %56 = arith.addf %55, %24 : vector<256x32xf32>
    %c0_36 = arith.constant 0 : index
    %c0_37 = arith.constant 0 : index
    %57 = vector.load %arg15[%c0_36, %c0_37] : memref<256x32xf32, #tpu.memory_space<vmem>>, vector<256x32xf32>
    tpu.vector_store %arg15[%c0_36, %c0_37], %56 {strides = array<i32>} : memref<256x32xf32, #tpu.memory_space<vmem>>, vector<256x32xf32>,
    %58 = arith.truncf %29 : vector<256x32xf32> to vector<256x32xbf16>
    %cst_38 = arith.constant dense<0.000000e+00> : vector<256x32xf32>
    %59 = tpu.matmul %53, %58, %cst_38 {dimension_numbers = #tpu.dot_dimension_numbers<[0], [0], [1], [1], [0, 1, 1, 1], [], []>} : vector<256x256xbf16>, vector<256x32xbf16>, vector<256x32xf32> -> vector<256x32xf32>
    %60 = arith.addf %59, %34 : vector<256x32xf32>
    %c0_39 = arith.constant 0 : index
    %c0_40 = arith.constant 0 : index
    %61 = vector.load %arg16[%c0_39, %c0_40] : memref<256x32xf32, #tpu.memory_space<vmem>>, vector<256x32xf32>
    tpu.vector_store %arg16[%c0_39, %c0_40], %60 {strides = array<i32>} : memref<256x32xf32, #tpu.memory_space<vmem>>, vector<256x32xf32>,
    return
  }
  func.func @transform_0(%arg0: i32) -> (i32, i32) {
    %c0_i32 = arith.constant 0 : i32
    %c0_i32_0 = arith.constant 0 : i32
    return %arg0, %c0_i32 : i32, i32
  }
  func.func @transform_1(%arg0: i32) -> (i32, i32) {
    %c0_i32 = arith.constant 0 : i32
    %c0_i32_0 = arith.constant 0 : i32
    %c0_i32_1 = arith.constant 0 : i32
    return %c0_i32, %c0_i32_0 : i32, i32
  }
  func.func @transform_2(%arg0: i32) -> (i32, i32) {
    %c0_i32 = arith.constant 0 : i32
    %c0_i32_0 = arith.constant 0 : i32
    %c0_i32_1 = arith.constant 0 : i32
    return %c0_i32, %c0_i32_0 : i32, i32
  }
  func.func @transform_3(%arg0: i32) -> (i32, i32) {
    %c0_i32 = arith.constant 0 : i32
    %c0_i32_0 = arith.constant 0 : i32
    return %arg0, %c0_i32 : i32, i32
  }
  func.func @transform_4(%arg0: i32) -> (i32, i32) {
    %c0_i32 = arith.constant 0 : i32
    %c0_i32_0 = arith.constant 0 : i32
    %c0_i32_1 = arith.constant 0 : i32
    return %c0_i32, %c0_i32_0 : i32, i32
  }
  func.func @transform_5(%arg0: i32) -> (i32, i32) {
    %c0_i32 = arith.constant 0 : i32
    %c0_i32_0 = arith.constant 0 : i32
    %c0_i32_1 = arith.constant 0 : i32
    return %c0_i32, %c0_i32_0 : i32, i32
  }
  func.func @transform_6(%arg0: i32) -> (i32, i32) {
    %c0_i32 = arith.constant 0 : i32
    %c0_i32_0 = arith.constant 0 : i32
    %c0_i32_1 = arith.constant 0 : i32
    return %c0_i32, %c0_i32_0 : i32, i32
  }
  func.func @transform_7(%arg0: i32) -> (i32, i32) {
    %c0_i32 = arith.constant 0 : i32
    %c0_i32_0 = arith.constant 0 : i32
    %c0_i32_1 = arith.constant 0 : i32
    return %c0_i32, %c0_i32_0 : i32, i32
  }
  func.func @transform_8(%arg0: i32) -> (i32, i32) {
    %c0_i32 = arith.constant 0 : i32
    %c0_i32_0 = arith.constant 0 : i32
    %c0_i32_1 = arith.constant 0 : i32
    return %c0_i32, %c0_i32_0 : i32, i32
  }
  func.func @transform_9(%arg0: i32) -> (i32, i32) {
    %c0_i32 = arith.constant 0 : i32
    %c0_i32_0 = arith.constant 0 : i32
    %c0_i32_1 = arith.constant 0 : i32
    return %c0_i32, %c0_i32_0 : i32, i32
  }
  func.func @transform_10(%arg0: i32) -> (i32, i32) {
    %c0_i32 = arith.constant 0 : i32
    %c0_i32_0 = arith.constant 0 : i32
    %c0_i32_1 = arith.constant 0 : i32
    return %c0_i32, %c0_i32_0 : i32, i32
  }
  func.func @transform_11(%arg0: i32) -> (i32, i32) {
    %c0_i32 = arith.constant 0 : i32
    %c0_i32_0 = arith.constant 0 : i32
    %c0_i32_1 = arith.constant 0 : i32
    return %c0_i32, %c0_i32_0 : i32, i32
  }
  func.func @transform_12(%arg0: i32) -> (i32, i32) {
    %c0_i32 = arith.constant 0 : i32
    %c0_i32_0 = arith.constant 0 : i32
    %c0_i32_1 = arith.constant 0 : i32
    return %c0_i32, %c0_i32_0 : i32, i32
  }
  func.func @transform_13(%arg0: i32) -> (i32, i32) {
    %c0_i32 = arith.constant 0 : i32
    %c0_i32_0 = arith.constant 0 : i32
    %c0_i32_1 = arith.constant 0 : i32
    return %c0_i32, %c0_i32_0 : i32, i32
  }
  func.func @transform_14(%arg0: i32) -> (i32, i32) {
    %c0_i32 = arith.constant 0 : i32
    %c0_i32_0 = arith.constant 0 : i32
    return %arg0, %c0_i32 : i32, i32
  }
  func.func @transform_15(%arg0: i32) -> (i32, i32) {
    %c0_i32 = arith.constant 0 : i32
    %c0_i32_0 = arith.constant 0 : i32
    return %arg0, %c0_i32 : i32, i32
  }
}

module attributes {stable_mosaic.version = 11 : i64} {
  func.func @_conv_mm_stats_kernel(%arg0: i32, %arg1: memref<256x128xbf16, #tpu.memory_space<vmem>>, %arg2: memref<128x128xbf16, #tpu.memory_space<vmem>>, %arg3: memref<1x128xf32, #tpu.memory_space<vmem>>, %arg4: memref<256x128xf32, #tpu.memory_space<vmem>>, %arg5: memref<1x8x128xf32, #tpu.memory_space<vmem>>, %arg6: memref<1x8x128xf32, #tpu.memory_space<vmem>>) attributes {dimension_semantics = [#tpu.dimension_semantics<parallel>], iteration_bounds = array<i64: 2>, scalar_prefetch = 0 : i64, scratch_operands = 0 : i64, tpu.core_type = #tpu.core_type<tc>, window_params = [{transform_indices = @transform_0, window_bounds = array<i64: 256, 128>}, {pipeline_mode = #tpu.pipeline_mode<synchronous>, transform_indices = @transform_1, window_bounds = array<i64: 128, 128>}, {pipeline_mode = #tpu.pipeline_mode<synchronous>, transform_indices = @transform_2, window_bounds = array<i64: 1, 128>}, {transform_indices = @transform_3, window_bounds = array<i64: 256, 128>}, {transform_indices = @transform_4, window_bounds = array<i64: 1, 8, 128>}, {transform_indices = @transform_5, window_bounds = array<i64: 1, 8, 128>}]} {
    %c0 = arith.constant 0 : index
    %c0_0 = arith.constant 0 : index
    %0 = vector.load %arg1[%c0, %c0_0] : memref<256x128xbf16, #tpu.memory_space<vmem>>, vector<256x128xbf16>
    %c0_1 = arith.constant 0 : index
    %c0_2 = arith.constant 0 : index
    %1 = vector.load %arg2[%c0_1, %c0_2] : memref<128x128xbf16, #tpu.memory_space<vmem>>, vector<128x128xbf16>
    %cst = arith.constant dense<0.000000e+00> : vector<256x128xf32>
    %2 = tpu.matmul %0, %1, %cst {dimension_numbers = #tpu.dot_dimension_numbers<[1], [0], [0], [1], [0, 0, 1, 1], [], []>} : vector<256x128xbf16>, vector<128x128xbf16>, vector<256x128xf32> -> vector<256x128xf32>
    %c0_3 = arith.constant 0 : index
    %c0_4 = arith.constant 0 : index
    %3 = vector.load %arg3[%c0_3, %c0_4] : memref<1x128xf32, #tpu.memory_space<vmem>>, vector<1x128xf32>
    %4 = vector.broadcast %3 : vector<1x128xf32> to vector<256x128xf32>
    %5 = arith.addf %2, %4 : vector<256x128xf32>
    %c0_5 = arith.constant 0 : index
    %c0_6 = arith.constant 0 : index
    %6 = vector.load %arg4[%c0_5, %c0_6] : memref<256x128xf32, #tpu.memory_space<vmem>>, vector<256x128xf32>
    tpu.vector_store %arg4[%c0_5, %c0_6], %5 {strides = array<i32>} : memref<256x128xf32, #tpu.memory_space<vmem>>, vector<256x128xf32>,
    %cst_7 = arith.constant dense<0.000000e+00> : vector<128xf32>
    %7 = vector.multi_reduction <add>, %5, %cst_7 [0] : vector<256x128xf32> to vector<128xf32>
    %8 = vector.shape_cast %7 : vector<128xf32> to vector<1x128xf32>
    %9 = arith.mulf %5, %5 : vector<256x128xf32>
    %cst_8 = arith.constant dense<0.000000e+00> : vector<128xf32>
    %10 = vector.multi_reduction <add>, %9, %cst_8 [0] : vector<256x128xf32> to vector<128xf32>
    %11 = vector.shape_cast %10 : vector<128xf32> to vector<1x128xf32>
    %12 = vector.shape_cast %8 : vector<1x128xf32> to vector<1x1x128xf32>
    %13 = vector.shape_cast %12 : vector<1x1x128xf32> to vector<1x1x128xf32>
    %14 = vector.broadcast %13 : vector<1x1x128xf32> to vector<1x8x128xf32>
    %c0_9 = arith.constant 0 : index
    %c0_10 = arith.constant 0 : index
    %c0_11 = arith.constant 0 : index
    %15 = vector.load %arg5[%c0_9, %c0_10, %c0_11] : memref<1x8x128xf32, #tpu.memory_space<vmem>>, vector<1x8x128xf32>
    tpu.vector_store %arg5[%c0_9, %c0_10, %c0_11], %14 {strides = array<i32>} : memref<1x8x128xf32, #tpu.memory_space<vmem>>, vector<1x8x128xf32>,
    %16 = vector.shape_cast %11 : vector<1x128xf32> to vector<1x1x128xf32>
    %17 = vector.shape_cast %16 : vector<1x1x128xf32> to vector<1x1x128xf32>
    %18 = vector.broadcast %17 : vector<1x1x128xf32> to vector<1x8x128xf32>
    %c0_12 = arith.constant 0 : index
    %c0_13 = arith.constant 0 : index
    %c0_14 = arith.constant 0 : index
    %19 = vector.load %arg6[%c0_12, %c0_13, %c0_14] : memref<1x8x128xf32, #tpu.memory_space<vmem>>, vector<1x8x128xf32>
    tpu.vector_store %arg6[%c0_12, %c0_13, %c0_14], %18 {strides = array<i32>} : memref<1x8x128xf32, #tpu.memory_space<vmem>>, vector<1x8x128xf32>,
    return
  }
  func.func @transform_0(%arg0: i32) -> (i32, i32) {
    %c0_i32 = arith.constant 0 : i32
    %c0_i32_0 = arith.constant 0 : i32
    return %arg0, %c0_i32 : i32, i32
  }
  func.func @transform_1(%arg0: i32) -> (i32, i32) {
    %c0_i32 = arith.constant 0 : i32
    %c0_i32_0 = arith.constant 0 : i32
    %c0_i32_1 = arith.constant 0 : i32
    return %c0_i32, %c0_i32_0 : i32, i32
  }
  func.func @transform_2(%arg0: i32) -> (i32, i32) {
    %c0_i32 = arith.constant 0 : i32
    %c0_i32_0 = arith.constant 0 : i32
    %c0_i32_1 = arith.constant 0 : i32
    return %c0_i32, %c0_i32_0 : i32, i32
  }
  func.func @transform_3(%arg0: i32) -> (i32, i32) {
    %c0_i32 = arith.constant 0 : i32
    %c0_i32_0 = arith.constant 0 : i32
    return %arg0, %c0_i32 : i32, i32
  }
  func.func @transform_4(%arg0: i32) -> (i32, i32, i32) {
    %c0_i32 = arith.constant 0 : i32
    %c0_i32_0 = arith.constant 0 : i32
    %c0_i32_1 = arith.constant 0 : i32
    return %arg0, %c0_i32, %c0_i32_0 : i32, i32, i32
  }
  func.func @transform_5(%arg0: i32) -> (i32, i32, i32) {
    %c0_i32 = arith.constant 0 : i32
    %c0_i32_0 = arith.constant 0 : i32
    %c0_i32_1 = arith.constant 0 : i32
    return %arg0, %c0_i32, %c0_i32_0 : i32, i32, i32
  }
}

module attributes {stable_mosaic.version = 11 : i64} {
  func.func @_conv_mm_act_kernel(%arg0: i32, %arg1: memref<256x384xbf16, #tpu.memory_space<vmem>>, %arg2: memref<384x128xbf16, #tpu.memory_space<vmem>>, %arg3: memref<1x128xf32, #tpu.memory_space<vmem>>, %arg4: memref<256x128xf32, #tpu.memory_space<vmem>>) attributes {dimension_semantics = [#tpu.dimension_semantics<parallel>], iteration_bounds = array<i64: 2>, scalar_prefetch = 0 : i64, scratch_operands = 0 : i64, tpu.core_type = #tpu.core_type<tc>, window_params = [{transform_indices = @transform_0, window_bounds = array<i64: 256, 384>}, {pipeline_mode = #tpu.pipeline_mode<synchronous>, transform_indices = @transform_1, window_bounds = array<i64: 384, 128>}, {pipeline_mode = #tpu.pipeline_mode<synchronous>, transform_indices = @transform_2, window_bounds = array<i64: 1, 128>}, {transform_indices = @transform_3, window_bounds = array<i64: 256, 128>}]} {
    %c0 = arith.constant 0 : index
    %c0_0 = arith.constant 0 : index
    %0 = vector.load %arg1[%c0, %c0_0] : memref<256x384xbf16, #tpu.memory_space<vmem>>, vector<256x384xbf16>
    %c0_1 = arith.constant 0 : index
    %c0_2 = arith.constant 0 : index
    %1 = vector.load %arg2[%c0_1, %c0_2] : memref<384x128xbf16, #tpu.memory_space<vmem>>, vector<384x128xbf16>
    %cst = arith.constant dense<0.000000e+00> : vector<256x128xf32>
    %2 = tpu.matmul %0, %1, %cst {dimension_numbers = #tpu.dot_dimension_numbers<[1], [0], [0], [1], [0, 0, 1, 1], [], []>} : vector<256x384xbf16>, vector<384x128xbf16>, vector<256x128xf32> -> vector<256x128xf32>
    %c0_3 = arith.constant 0 : index
    %c0_4 = arith.constant 0 : index
    %3 = vector.load %arg3[%c0_3, %c0_4] : memref<1x128xf32, #tpu.memory_space<vmem>>, vector<1x128xf32>
    %4 = vector.broadcast %3 : vector<1x128xf32> to vector<256x128xf32>
    %5 = arith.addf %2, %4 : vector<256x128xf32>
    %6 = arith.negf %5 : vector<256x128xf32>
    %7 = math.exp %6 : vector<256x128xf32>
    %cst_5 = arith.constant 1.000000e+00 : f32
    %8 = vector.broadcast %cst_5 : f32 to vector<256x128xf32>
    %9 = arith.addf %8, %7 : vector<256x128xf32>
    %10 = arith.divf %8, %9 : vector<256x128xf32>
    %c0_6 = arith.constant 0 : index
    %c0_7 = arith.constant 0 : index
    %11 = vector.load %arg4[%c0_6, %c0_7] : memref<256x128xf32, #tpu.memory_space<vmem>>, vector<256x128xf32>
    tpu.vector_store %arg4[%c0_6, %c0_7], %10 {strides = array<i32>} : memref<256x128xf32, #tpu.memory_space<vmem>>, vector<256x128xf32>,
    return
  }
  func.func @transform_0(%arg0: i32) -> (i32, i32) {
    %c0_i32 = arith.constant 0 : i32
    %c0_i32_0 = arith.constant 0 : i32
    return %arg0, %c0_i32 : i32, i32
  }
  func.func @transform_1(%arg0: i32) -> (i32, i32) {
    %c0_i32 = arith.constant 0 : i32
    %c0_i32_0 = arith.constant 0 : i32
    %c0_i32_1 = arith.constant 0 : i32
    return %c0_i32, %c0_i32_0 : i32, i32
  }
  func.func @transform_2(%arg0: i32) -> (i32, i32) {
    %c0_i32 = arith.constant 0 : i32
    %c0_i32_0 = arith.constant 0 : i32
    %c0_i32_1 = arith.constant 0 : i32
    return %c0_i32, %c0_i32_0 : i32, i32
  }
  func.func @transform_3(%arg0: i32) -> (i32, i32) {
    %c0_i32 = arith.constant 0 : i32
    %c0_i32_0 = arith.constant 0 : i32
    return %arg0, %c0_i32 : i32, i32
  }
}

module attributes {stable_mosaic.version = 11 : i64} {
  func.func @_conv_mm_act_kernel(%arg0: i32, %arg1: memref<256x384xbf16, #tpu.memory_space<vmem>>, %arg2: memref<384x128xbf16, #tpu.memory_space<vmem>>, %arg3: memref<1x128xf32, #tpu.memory_space<vmem>>, %arg4: memref<256x128xf32, #tpu.memory_space<vmem>>) attributes {dimension_semantics = [#tpu.dimension_semantics<parallel>], iteration_bounds = array<i64: 2>, scalar_prefetch = 0 : i64, scratch_operands = 0 : i64, tpu.core_type = #tpu.core_type<tc>, window_params = [{transform_indices = @transform_0, window_bounds = array<i64: 256, 384>}, {pipeline_mode = #tpu.pipeline_mode<synchronous>, transform_indices = @transform_1, window_bounds = array<i64: 384, 128>}, {pipeline_mode = #tpu.pipeline_mode<synchronous>, transform_indices = @transform_2, window_bounds = array<i64: 1, 128>}, {transform_indices = @transform_3, window_bounds = array<i64: 256, 128>}]} {
    %c0 = arith.constant 0 : index
    %c0_0 = arith.constant 0 : index
    %0 = vector.load %arg1[%c0, %c0_0] : memref<256x384xbf16, #tpu.memory_space<vmem>>, vector<256x384xbf16>
    %c0_1 = arith.constant 0 : index
    %c0_2 = arith.constant 0 : index
    %1 = vector.load %arg2[%c0_1, %c0_2] : memref<384x128xbf16, #tpu.memory_space<vmem>>, vector<384x128xbf16>
    %cst = arith.constant dense<0.000000e+00> : vector<256x128xf32>
    %2 = tpu.matmul %0, %1, %cst {dimension_numbers = #tpu.dot_dimension_numbers<[1], [0], [0], [1], [0, 0, 1, 1], [], []>} : vector<256x384xbf16>, vector<384x128xbf16>, vector<256x128xf32> -> vector<256x128xf32>
    %c0_3 = arith.constant 0 : index
    %c0_4 = arith.constant 0 : index
    %3 = vector.load %arg3[%c0_3, %c0_4] : memref<1x128xf32, #tpu.memory_space<vmem>>, vector<1x128xf32>
    %4 = vector.broadcast %3 : vector<1x128xf32> to vector<256x128xf32>
    %5 = arith.addf %2, %4 : vector<256x128xf32>
    %6 = math.tanh %5 : vector<256x128xf32>
    %c0_5 = arith.constant 0 : index
    %c0_6 = arith.constant 0 : index
    %7 = vector.load %arg4[%c0_5, %c0_6] : memref<256x128xf32, #tpu.memory_space<vmem>>, vector<256x128xf32>
    tpu.vector_store %arg4[%c0_5, %c0_6], %6 {strides = array<i32>} : memref<256x128xf32, #tpu.memory_space<vmem>>, vector<256x128xf32>,
    return
  }
  func.func @transform_0(%arg0: i32) -> (i32, i32) {
    %c0_i32 = arith.constant 0 : i32
    %c0_i32_0 = arith.constant 0 : i32
    return %arg0, %c0_i32 : i32, i32
  }
  func.func @transform_1(%arg0: i32) -> (i32, i32) {
    %c0_i32 = arith.constant 0 : i32
    %c0_i32_0 = arith.constant 0 : i32
    %c0_i32_1 = arith.constant 0 : i32
    return %c0_i32, %c0_i32_0 : i32, i32
  }
  func.func @transform_2(%arg0: i32) -> (i32, i32) {
    %c0_i32 = arith.constant 0 : i32
    %c0_i32_0 = arith.constant 0 : i32
    %c0_i32_1 = arith.constant 0 : i32
    return %c0_i32, %c0_i32_0 : i32, i32
  }
  func.func @transform_3(%arg0: i32) -> (i32, i32) {
    %c0_i32 = arith.constant 0 : i32
    %c0_i32_0 = arith.constant 0 : i32
    return %arg0, %c0_i32 : i32, i32
  }
}

</mosaic_0001>

<bundles_post_ra>
// kernel: crosslevel_net3_forward.6
= control target key start
LH: loop header
LB: loop body
LE: loop exit
PB: predicated region body
PF: predicated region fallthrough
CT: control target
= control target key end

     0   :  { %s2476_s18 = smov 0   ;;  %s2957_s0 = inlined_call_operand.vmem [shape: bf16[512,640], index: 0, kind: input, shape index: {}]   ;;  %s2958_s1 = inlined_call_operand.vmem [shape: bf16[640,128], index: 1, kind: input, shape index: {}]   ;;  %s2959_s2 = inlined_call_operand.vmem [shape: f32[1,128], index: 2, kind: input, shape index: {}]   ;;  %s2960_s3 = inlined_call_operand.vmem [shape: f32[512,128], index: 3, kind: output, shape index: {0}]   ;;  %s2961_s4 = inlined_call_operand.vmem [shape: f32[2,8,128], index: 4, kind: output, shape index: {1}]   ;;  %s2962_s5 = inlined_call_operand.vmem [shape: f32[2,8,128], index: 5, kind: output, shape index: {2}]  }
   0x1 LB: > { %s2482_s19 = sadd.s32 4294967295, %s2444_s18   ;;  %p1795_p0 = scmp.ge.s32.totalorder %s2444_s18, 1  ;;  %s2444_s18 = sphi %s2476_s18, %s16_s18  }
   0x2   : > { %p194_p1 = scmp.lt.s32.totalorder %s2444_s18, 3 }
   0x4   : > { %p195_p2 = pnand %p1795_p0, %p194_p1 }
   0x5   : > { %s1796_s26 = sshll.u32 (!%p195_p2), %s2482_s19, 5  ;;  %p244_p4 = scmp.lt.s32.totalorder (!%p195_p2), %s2482_s19, 1 }
   0x6   : > { %198 = sbr.rel (%p195_p2) target bundleno = 510 (0x1fe), region = 32  ;;  %p232_p3 = scmp.lt.s32.totalorder (!%p195_p2), %s1796_s26, 63 }
   0xb   : > { %v2371_v0 = vld [vmem:[%s2958_s1 + $0x38] sm:$0xff]  ;;  %v2370_v1 = vld [vmem:[%s2958_s1 + $0x30] sm:$0xff]  ;;  %v2369_v2 = vld [vmem:[%s2958_s1 + $0x28] sm:$0xff]  ;;  %s2964_s26 = smov (!%p232_p3, %s1796_s26), 63  ;;  %s2966_s19 = smov (!%p244_p4, %s2482_s19), 1 }
   0xc   : > { %2404 = vmatpush.bf16.msra.mxu1 %v2371_v0  ;;  %2405 = vmatpush.bf16.msra.mxu2 %v2371_v0  ;;  %v2368_v3 = vld [vmem:[%s2958_s1 + $0x20] sm:$0xff]  ;;  %v2367_v4 = vld [vmem:[%s2958_s1 + $0x18] sm:$0xff]  ;;  %v2366_v5 = vld [vmem:[%s2958_s1 + $0x10] sm:$0xff]  ;;  %s2428_s8 = smul.u32 20, %s2964_s26  ;;  %s1799_s21 = sshll.u32 %s2964_s26, 3 }
   0xd   : > { %2406 = vmatpush.bf16.msra.mxu3 %v2371_v0  ;;  %1088 = vmatpush.bf16.msra.mxu0 %v2371_v0  ;;  %v2365_v6 = vld [vmem:[%s2958_s1 + $0x8] sm:$0xff]  ;;  %v2364_v7 = vld [vmem:[%s2958_s1] sm:$0xff]  ;;  %v2387_v16 = vld [vmem:[%s2958_s1 + $0xb8] sm:$0xff]  ;;  %s2818_s24 = scalar_lea.vmem %s2960_s3, %s1799_s21  ;;  %s1800_s26 = sshll.u32 %s2966_s19, 3 }
   0xe   : > { %s2514_s13 = scalar_lea.vmem %s2957_s0, %s2428_s8  ;;  %v2395_v17 = vld [vmem:[%s2958_s1 + $0xf8] sm:$0xff]  ;;  %v2386_v24 = vld [vmem:[%s2958_s1 + $0xb0] sm:$0xff]  ;;  %v2385_v28 = vld [vmem:[%s2958_s1 + $0xa8] sm:$0xff]  ;;  %s247_s27 = scalar_lea.vmem %s2961_s4, %s1800_s26 }
   0xf   : > { %v1884_v8 = vld [vmem:[%s2514_s13 + $0xa0] sm:$0xf]  ;;  %v2306_v9 = vld [vmem:[%s2514_s13 + $0xb0] sm:$0xf0]  ;;  %v2379_v22 = vld [vmem:[%s2958_s1 + $0x78] sm:$0xff]  ;;  %s251_s30 = scalar_lea.vmem %s2962_s5, %s1800_s26 }
  0x10   : > { %2407 = vmatpush.bf16.msra.mxu1 %v2370_v1  ;;  %2408 = vmatpush.bf16.msra.mxu2 %v2370_v1  ;;  %v1964_v10 = vld [vmem:[%s2514_s13 + $0x140] sm:$0xf]  ;;  %v2326_v11 = vld [vmem:[%s2514_s13 + $0x150] sm:$0xf0]  ;;  %v1885_v18 = vor.u32 %v2306_v9, %v1884_v8  ;;  %v2403_v23 = vld [vmem:[%s2958_s1 + $0x138] sm:$0xff] }
  0x11   : > { %2409 = vmatpush.bf16.msra.mxu3 %v2370_v1  ;;  %1089 = vmatpush.bf16.msra.mxu0 %v2370_v1  ;;  %v2044_v12 = vld [vmem:[%s2514_s13 + $0x1e0] sm:$0xf]  ;;  %v2346_v13 = vld [vmem:[%s2514_s13 + $0x1f0] sm:$0xf0]  ;;  %v1965_v19 = vor.u32 %v2326_v11, %v1964_v10  ;;  %v2393_v29 = vld [vmem:[%s2958_s1 + $0xe8] sm:$0xff] }
  0x12   : > { %v1804_v14 = vld [vmem:[%s2514_s13] sm:$0xf]  ;;  %v2286_v15 = vld [vmem:[%s2514_s13 + $0x10] sm:$0xf0]  ;;  %v2045_v20 = vor.u32 %v2346_v13, %v2044_v12  ;;  %v2377_v30 = vld [vmem:[%s2958_s1 + $0x68] sm:$0xff] }
  0x13   : > { %v1805_v21 = vor.u32 %v2286_v15, %v1804_v14  ;;  %v2394_v25 = vld [vmem:[%s2958_s1 + $0xf0] sm:$0xff]  ;;  %v2401_v31 = vld [vmem:[%s2958_s1 + $0x128] sm:$0xff]  ;;  %v2384_v33 = vld [vmem:[%s2958_s1 + $0xa0] sm:$0xff] }
  0x14   : > { %2410 = vmatpush.bf16.msra.mxu1 %v2369_v2  ;;  %2411 = vmatpush.bf16.msra.mxu2 %v2369_v2  ;;  %v2378_v26 = vld [vmem:[%s2958_s1 + $0x70] sm:$0xff]  ;;  %v1904_v32 = vld [vmem:[%s2514_s13 + $0xc8] sm:$0xf]  ;;  %v2392_v34 = vld [vmem:[%s2958_s1 + $0xe0] sm:$0xff] }
  0x15   : > { %2412 = vmatpush.bf16.msra.mxu3 %v2369_v2  ;;  %1090 = vmatpush.bf16.msra.mxu0 %v2369_v2  ;;  %v2402_v27 = vld [vmem:[%s2958_s1 + $0x130] sm:$0xff]  ;;  %v2311_v35 = vld [vmem:[%s2514_s13 + $0xd8] sm:$0xf0]  ;;  %v1984_v36 = vld [vmem:[%s2514_s13 + $0x168] sm:$0xf] }
  0x16   : > { %v2331_v37 = vld [vmem:[%s2514_s13 + $0x178] sm:$0xf0]  ;;  %v2064_v38 = vld [vmem:[%s2514_s13 + $0x208] sm:$0xf]  ;;  %v2376_v42 = vld [vmem:[%s2958_s1 + $0x60] sm:$0xff]  ;;  %v1905_v46 = vor.u32 %v2311_v35, %v1904_v32 }
  0x17   : > { %v2351_v39 = vld [vmem:[%s2514_s13 + $0x218] sm:$0xf0]  ;;  %v1824_v40 = vld [vmem:[%s2514_s13 + $0x28] sm:$0xf]  ;;  %v2400_v43 = vld [vmem:[%s2958_s1 + $0x120] sm:$0xff]  ;;  %v1985_v47 = vor.u32 %v2331_v37, %v1984_v36 }
  0x18   : > { %2413 = vmatpush.bf16.msra.mxu1 %v2368_v3  ;;  %2414 = vmatpush.bf16.msra.mxu2 %v2368_v3  ;;  %v2291_v41 = vld [vmem:[%s2514_s13 + $0x38] sm:$0xf0]  ;;  %v2065_v48 = vor.u32 %v2351_v39, %v2064_v38  ;;  %v2382_v52 = vld [vmem:[%s2958_s1 + $0x90] sm:$0xff]  ;;  %v2381_v56 = vld [vmem:[%s2958_s1 + $0x88] sm:$0xff] }
  0x19   : > { %2415 = vmatpush.bf16.msra.mxu3 %v2368_v3  ;;  %1091 = vmatpush.bf16.msra.mxu0 %v2368_v3  ;;  %v2383_v44 = vld [vmem:[%s2958_s1 + $0x98] sm:$0xff]  ;;  %v1825_v49 = vor.u32 %v2291_v41, %v1824_v40  ;;  %v2390_v53 = vld [vmem:[%s2958_s1 + $0xd0] sm:$0xff]  ;;  %v2389_v57 = vld [vmem:[%s2958_s1 + $0xc8] sm:$0xff] }
  0x1a   : > { %v2391_v45 = vld [vmem:[%s2958_s1 + $0xd8] sm:$0xff]  ;;  %v2374_v54 = vld [vmem:[%s2958_s1 + $0x50] sm:$0xff]  ;;  %v2373_v58 = vld [vmem:[%s2958_s1 + $0x48] sm:$0xff] }
  0x1b   : > { %v2375_v50 = vld [vmem:[%s2958_s1 + $0x58] sm:$0xff]  ;;  %v2398_v55 = vld [vmem:[%s2958_s1 + $0x110] sm:$0xff]  ;;  %v2397_v59 = vld [vmem:[%s2958_s1 + $0x108] sm:$0xff] }
  0x1c   : > { %2416 = vmatpush.bf16.msra.mxu1 %v2367_v4  ;;  %2417 = vmatpush.bf16.msra.mxu2 %v2367_v4  ;;  %v2399_v51 = vld [vmem:[%s2958_s1 + $0x118] sm:$0xff]  ;;  %v1924_v60 = vld [vmem:[%s2514_s13 + $0xf0] sm:$0xf]  ;;  %v2380_v61 = vld [vmem:[%s2958_s1 + $0x80] sm:$0xff] }
  0x1d   : > { %2418 = vmatpush.bf16.msra.mxu3 %v2367_v4  ;;  %1092 = vmatpush.bf16.msra.mxu0 %v2367_v4  ;;  %v2388_v62 = vld [vmem:[%s2958_s1 + $0xc0] sm:$0xff]  ;;  %v2004_v0 = vld [vmem:[%s2514_s13 + $0x190] sm:$0xf]  ;;  %v1944_v12 = vld [vmem:[%s2514_s13 + $0x118] sm:$0xf] }
  0x1e   : > { %v2316_v63 = vld [vmem:[%s2514_s13 + $0x100] sm:$0xf0]  ;;  %v2084_v2 = vld [vmem:[%s2514_s13 + $0x230] sm:$0xf]  ;;  %v2321_v13 = vld [vmem:[%s2514_s13 + $0x128] sm:$0xf0] }
  0x1f   : > { %v2336_v1 = vld [vmem:[%s2514_s13 + $0x1a0] sm:$0xf0]  ;;  %v1844_v4 = vld [vmem:[%s2514_s13 + $0x50] sm:$0xf]  ;;  %v1925_v8 = vor.u32 %v2316_v63, %v1924_v60  ;;  %v2024_v14 = vld [vmem:[%s2514_s13 + $0x1b8] sm:$0xf] }
  0x20   : > { %2419 = vmatpush.bf16.msra.mxu1 %v2366_v5  ;;  %2420 = vmatpush.bf16.msra.mxu2 %v2366_v5  ;;  %v2356_v3 = vld [vmem:[%s2514_s13 + $0x240] sm:$0xf0]  ;;  %v2005_v9 = vor.u32 %v2336_v1, %v2004_v0  ;;  %v2341_v15 = vld [vmem:[%s2514_s13 + $0x1c8] sm:$0xf0]  ;;  %v1826_v37 = vld [vmem:[%s2514_s13 + $0x3c] sm:$0xf0] }
  0x21   : > { %2421 = vmatpush.bf16.msra.mxu3 %v2366_v5  ;;  %1093 = vmatpush.bf16.msra.mxu0 %v2366_v5  ;;  %v2296_v5 = vld [vmem:[%s2514_s13 + $0x60] sm:$0xf0]  ;;  %v2085_v10 = vor.u32 %v2356_v3, %v2084_v2  ;;  %v2289_v36 = vld [vmem:[%s2514_s13 + $0x2c] sm:$0xf]  ;;  %v1832_v38 = vld [vmem:[%s2514_s13 + $0x30] sm:$0xf] }
  0x22   : > { %v1845_v11 = vor.u32 %v2296_v5, %v1844_v4  ;;  %v2292_v39 = vld [vmem:[%s2514_s13 + $0x40] sm:$0xf0]  ;;  %v2290_v40 = vld [vmem:[%s2514_s13 + $0x34] sm:$0xf]  ;;  %v1834_v41 = vld [vmem:[%s2514_s13 + $0x44] sm:$0xf0] }
  0x23   : > { %v2299_v60 = vld [vmem:[%s2514_s13 + $0x7c] sm:$0xf]  ;;  %v2302_v63 = vld [vmem:[%s2514_s13 + $0x90] sm:$0xf0]  ;;  %v2300_v0 = vld [vmem:[%s2514_s13 + $0x84] sm:$0xf] }
  0x24   : > { %2422 = vmatpush.bf16.msra.mxu1 %v2365_v6  ;;  %2423 = vmatpush.bf16.msra.mxu2 %v2365_v6  ;;  %v1874_v1 = vld [vmem:[%s2514_s13 + $0x94] sm:$0xf0]  ;;  %v1880_v2 = vld [vmem:[%s2514_s13 + $0x88] sm:$0xf]  ;;  %v2303_v3 = vld [vmem:[%s2514_s13 + $0x98] sm:$0xf0] }
  0x25   : > { %2424 = vmatpush.bf16.msra.mxu3 %v2365_v6  ;;  %1094 = vmatpush.bf16.msra.mxu0 %v2365_v6  ;;  %v2372_v6 = vld [vmem:[%s2958_s1 + $0x40] sm:$0xff] }
  0x28   : > { %2425 = vmatpush.bf16.msra.mxu1 %v2364_v7  ;;  %2426 = vmatpush.bf16.msra.mxu2 %v2364_v7 }
  0x29   : > { %2427 = vmatpush.bf16.msra.mxu3 %v2364_v7  ;;  %1095 = vmatpush.bf16.msra.mxu0 %v2364_v7  ;;  %v2396_v7 = vld [vmem:[%s2958_s1 + $0x100] sm:$0xff] }
  0x2b   : > { %1116 = vmatmul.bf16.vlgmr.msra.gmra.mxu1 %v1885_v18  ;;  %1136 = vmatmul.bf16.vlgmr.msra.gmra.mxu2 %v1965_v19  ;;  %v1864_v18 = vld [vmem:[%s2514_s13 + $0x78] sm:$0xf]  ;;  %v2301_v19 = vld [vmem:[%s2514_s13 + $0x88] sm:$0xf0] }
  0x2c   : > { %1266 = vmatpush.bf16.msrb.mxu2 %v2387_v16  ;;  %1156 = vmatmul.bf16.vlgmr.msra.gmra.mxu3 %v2045_v20  ;;  %v2104_v16 = vld [vmem:[%s2514_s13 + $0x258] sm:$0xf]  ;;  %v1945_v20 = vor.u32 %v2321_v13, %v1944_v12  ;;  %v2307_v12 = vld [vmem:[%s2514_s13 + $0xb8] sm:$0xf0]  ;;  %v2305_v13 = vld [vmem:[%s2514_s13 + $0xac] sm:$0xf] }
  0x2d   : > { %1355 = vmatpush.bf16.msrb.mxu3 %v2395_v17  ;;  %1096 = vmatmul.bf16.vlgmr.msra.gmra.mxu0 %v1805_v21  ;;  %v2361_v17 = vld [vmem:[%s2514_s13 + $0x268] sm:$0xf0]  ;;  %v2025_v21 = vor.u32 %v2341_v15, %v2024_v14  ;;  %v1894_v14 = vld [vmem:[%s2514_s13 + $0xbc] sm:$0xf0]  ;;  %v1900_v15 = vld [vmem:[%s2514_s13 + $0xb0] sm:$0xf] }
  0x2e   : > { %1177 = vmatpush.bf16.msrb.mxu1 %v2379_v22  ;;  %1444 = vmatpush.bf16.msrb.mxu0 %v2403_v23  ;;  %v2105_v22 = vor.u32 %v2361_v17, %v2104_v16  ;;  %v1865_v23 = vor.u32 %v2301_v19, %v1864_v18  ;;  %v2308_v16 = vld [vmem:[%s2514_s13 + $0xc0] sm:$0xf0] }
  0x30   : > { %1267 = vmatpush.bf16.msrb.mxu2 %v2386_v24  ;;  %v2284_v24 = vld [vmem:[%s2514_s13 + $0x4] sm:$0xf] }
  0x31   : > { %1356 = vmatpush.bf16.msrb.mxu3 %v2394_v25  ;;  %v1806_v25 = vld [vmem:[%s2514_s13 + $0x14] sm:$0xf0] }
  0x32   : > { %1178 = vmatpush.bf16.msrb.mxu1 %v2378_v26  ;;  %1445 = vmatpush.bf16.msrb.mxu0 %v2402_v27  ;;  %v1812_v26 = vld [vmem:[%s2514_s13 + $0x8] sm:$0xf]  ;;  %v2287_v27 = vld [vmem:[%s2514_s13 + $0x18] sm:$0xf0]  ;;  %v1809_v32 = vor.u32 %v2284_v24, %v1806_v25 }
  0x34   : > { %1268 = vmatpush.bf16.msrb.mxu2 %v2385_v28  ;;  %v2285_v28 = vld [vmem:[%s2514_s13 + $0xc] sm:$0xf] }
  0x35   : > { %1357 = vmatpush.bf16.msrb.mxu3 %v2393_v29  ;;  %v1814_v29 = vld [vmem:[%s2514_s13 + $0x1c] sm:$0xf0] }
  0x36   : > { %1179 = vmatpush.bf16.msrb.mxu1 %v2377_v30  ;;  %1446 = vmatpush.bf16.msrb.mxu0 %v2401_v31  ;;  %v1820_v30 = vld [vmem:[%s2514_s13 + $0x10] sm:$0xf]  ;;  %v2288_v31 = vld [vmem:[%s2514_s13 + $0x20] sm:$0xf0] }
  0x37   : > { %v1821_v35 = vor.u32 %v2288_v31, %v1820_v30  ;;  %v2309_v31 = vld [vmem:[%s2514_s13 + $0xcc] sm:$0xf] }
  0x38   : > { %1269 = vmatpush.bf16.msrb.mxu2 %v2384_v33  ;;  %v1813_v33 = vor.u32 %v2287_v27, %v1812_v26 }
  0x39   : > { %1358 = vmatpush.bf16.msrb.mxu3 %v2392_v34  ;;  %v1817_v34 = vor.u32 %v2285_v28, %v1814_v29 }
  0x3a   : > { %1180 = vmatpush.bf16.msrb.mxu1 %v2376_v42  ;;  %1447 = vmatpush.bf16.msrb.mxu0 %v2400_v43  ;;  %v1840_v42 = vld [vmem:[%s2514_s13 + $0x38] sm:$0xf]  ;;  %v2293_v43 = vld [vmem:[%s2514_s13 + $0x48] sm:$0xf0] }
  0x3b   : > { %1121 = vmatmul.bf16.gmra.mxu1 %v1905_v46  ;;  %1141 = vmatmul.bf16.gmra.mxu2 %v1985_v47  ;;  %v1837_v46 = vor.u32 %v2290_v40, %v1834_v41  ;;  %v1841_v47 = vor.u32 %v2293_v43, %v1840_v42 }
  0x3c   : > { %1270 = vmatpush.bf16.msrb.mxu2 %v2383_v44  ;;  %1161 = vmatmul.bf16.gmra.mxu3 %v2065_v48  ;;  %v1829_v44 = vor.u32 %v2289_v36, %v1826_v37  ;;  %v2294_v48 = vld [vmem:[%s2514_s13 + $0x54] sm:$0xf]  ;;  %v1914_v36 = vld [vmem:[%s2514_s13 + $0xe4] sm:$0xf0]  ;;  %v1920_v37 = vld [vmem:[%s2514_s13 + $0xd8] sm:$0xf] }
  0x3d   : > { %1359 = vmatpush.bf16.msrb.mxu3 %v2391_v45  ;;  %1101 = vmatmul.bf16.gmra.mxu0 %v1825_v49  ;;  %v1833_v45 = vor.u32 %v2292_v39, %v1832_v38  ;;  %v1846_v49 = vld [vmem:[%s2514_s13 + $0x64] sm:$0xf0]  ;;  %v2313_v38 = vld [vmem:[%s2514_s13 + $0xe8] sm:$0xf0] }
  0x3e   : > { %1181 = vmatpush.bf16.msrb.mxu1 %v2375_v50  ;;  %1448 = vmatpush.bf16.msrb.mxu0 %v2399_v51  ;;  %v1852_v50 = vld [vmem:[%s2514_s13 + $0x58] sm:$0xf]  ;;  %v2297_v51 = vld [vmem:[%s2514_s13 + $0x68] sm:$0xf0] }
  0x40   : > { %1271 = vmatpush.bf16.msrb.mxu2 %v2382_v52  ;;  %v2295_v52 = vld [vmem:[%s2514_s13 + $0x5c] sm:$0xf] }
  0x41   : > { %1360 = vmatpush.bf16.msrb.mxu3 %v2390_v53  ;;  %v1854_v53 = vld [vmem:[%s2514_s13 + $0x6c] sm:$0xf0] }
  0x42   : > { %1182 = vmatpush.bf16.msrb.mxu1 %v2374_v54  ;;  %1449 = vmatpush.bf16.msrb.mxu0 %v2398_v55  ;;  %v1860_v54 = vld [vmem:[%s2514_s13 + $0x60] sm:$0xf]  ;;  %v2298_v55 = vld [vmem:[%s2514_s13 + $0x70] sm:$0xf0] }
  0x44   : > { %1272 = vmatpush.bf16.msrb.mxu2 %v2381_v56  ;;  %v1849_v56 = vor.u32 %v2294_v48, %v1846_v49 }
  0x45   : > { %1361 = vmatpush.bf16.msrb.mxu3 %v2389_v57  ;;  %v1853_v57 = vor.u32 %v2297_v51, %v1852_v50 }
  0x46   : > { %1183 = vmatpush.bf16.msrb.mxu1 %v2373_v58  ;;  %1450 = vmatpush.bf16.msrb.mxu0 %v2397_v59  ;;  %v1857_v58 = vor.u32 %v2295_v52, %v1854_v53  ;;  %v1861_v59 = vor.u32 %v2298_v55, %v1860_v54 }
  0x48   : > { %1273 = vmatpush.bf16.msrb.mxu2 %v2380_v61  ;;  %v1866_v61 = vld [vmem:[%s2514_s13 + $0x8c] sm:$0xf0] }
  0x49   : > { %1362 = vmatpush.bf16.msrb.mxu3 %v2388_v62  ;;  %v1872_v62 = vld [vmem:[%s2514_s13 + $0x80] sm:$0xf]  ;;  %v1869_v4 = vor.u32 %v2299_v60, %v1866_v61  ;;  %v2317_v60 = vld [vmem:[%s2514_s13 + $0x108] sm:$0xf0]  ;;  %v2315_v61 = vld [vmem:[%s2514_s13 + $0xfc] sm:$0xf] }
  0x4a   : > { %1184 = vmatpush.bf16.msrb.mxu1 %v2372_v6  ;;  %1451 = vmatpush.bf16.msrb.mxu0 %v2396_v7  ;;  %v1873_v5 = vor.u32 %v2302_v63, %v1872_v62  ;;  %v1877_v6 = vor.u32 %v2300_v0, %v1874_v1  ;;  %v1881_v7 = vor.u32 %v2303_v3, %v1880_v2  ;;  %v1934_v62 = vld [vmem:[%s2514_s13 + $0x10c] sm:$0xf0]  ;;  %v1940_v63 = vld [vmem:[%s2514_s13 + $0x100] sm:$0xf]  ;;  %v2318_v0 = vld [vmem:[%s2514_s13 + $0x110] sm:$0xf0] }
  0x4b   : > { %1126 = vmatmul.bf16.gmra.mxu1 %v1925_v8  ;;  %1146 = vmatmul.bf16.gmra.mxu2 %v2005_v9  ;;  %v2682_v8 = vld [vmem:[%s2959_s2] ss:$0 sm:$0xff]  ;;  %v2304_v9 = vld [vmem:[%s2514_s13 + $0xa4] sm:$0xf] }
  0x4c   : > { %1166 = vmatmul.bf16.gmra.mxu3 %v2085_v10  ;;  %v1886_v10 = vld [vmem:[%s2514_s13 + $0xb4] sm:$0xf0] }
  0x4d   : > { %1106 = vmatmul.bf16.gmra.mxu0 %v1845_v11  ;;  %v1892_v11 = vld [vmem:[%s2514_s13 + $0xa8] sm:$0xf]  ;;  %v1889_v17 = vor.u32 %v2304_v9, %v1886_v10  ;;  %v1937_v9 = vor.u32 %v2315_v61, %v1934_v62  ;;  %v1941_v10 = vor.u32 %v2318_v0, %v1940_v63  ;;  %v1966_v61 = vld [vmem:[%s2514_s13 + $0x154] sm:$0xf0]  ;;  %v2327_v63 = vld [vmem:[%s2514_s13 + $0x158] sm:$0xf0] }
  0x4e   : > { %v1893_v18 = vor.u32 %v2307_v12, %v1892_v11  ;;  %v1972_v62 = vld [vmem:[%s2514_s13 + $0x148] sm:$0xf]  ;;  %v2325_v0 = vld [vmem:[%s2514_s13 + $0x14c] sm:$0xf] }
  0x5b   : > { %1131 = vmatmul.bf16.gmra.mxu1 %v1945_v20  ;;  %1151 = vmatmul.bf16.gmra.mxu2 %v2025_v21  ;;  %v1897_v20 = vor.u32 %v2305_v13, %v1894_v14  ;;  %v1901_v21 = vor.u32 %v2308_v16, %v1900_v15 }
  0x5c   : > { %1171 = vmatmul.bf16.gmra.mxu3 %v2105_v22 }
  0x5d   : > { %1111 = vmatmul.bf16.gmra.mxu0 %v1865_v23 }
  0x6b   : > { %1185 = vmatmul.bf16.vlgmr.msrb.gmra.mxu1 %v1809_v32  ;;  %1274 = vmatmul.bf16.vlgmr.msrb.gmra.mxu2 %v1813_v33  ;;  %v1906_v32 = vld [vmem:[%s2514_s13 + $0xdc] sm:$0xf0]  ;;  %v1912_v33 = vld [vmem:[%s2514_s13 + $0xd0] sm:$0xf] }
  0x6c   : > { %1363 = vmatmul.bf16.vlgmr.msrb.gmra.mxu3 %v1817_v34  ;;  %v2312_v34 = vld [vmem:[%s2514_s13 + $0xe0] sm:$0xf0]  ;;  %v1909_v42 = vor.u32 %v2309_v31, %v1906_v32  ;;  %v1954_v31 = vld [vmem:[%s2514_s13 + $0x134] sm:$0xf0]  ;;  %v1960_v32 = vld [vmem:[%s2514_s13 + $0x128] sm:$0xf] }
  0x6d   : > { %1452 = vmatmul.bf16.vlgmr.msrb.gmra.mxu0 %v1821_v35  ;;  %v2310_v35 = vld [vmem:[%s2514_s13 + $0xd4] sm:$0xf]  ;;  %v1913_v43 = vor.u32 %v2312_v34, %v1912_v33  ;;  %v2323_v33 = vld [vmem:[%s2514_s13 + $0x138] sm:$0xf0] }
  0x7b   : > { %1190 = vmatmul.bf16.gmra.mxu1 %v1829_v44  ;;  %1279 = vmatmul.bf16.gmra.mxu2 %v1833_v45 }
  0x7c   : > { %1368 = vmatmul.bf16.gmra.mxu3 %v1837_v46  ;;  %v1917_v46 = vor.u32 %v2310_v35, %v1914_v36 }
  0x7d   : > { %1457 = vmatmul.bf16.gmra.mxu0 %v1841_v47  ;;  %v1921_v47 = vor.u32 %v2313_v38, %v1920_v37 }
  0x8b   : > { %1195 = vmatmul.bf16.gmra.mxu1 %v1849_v56  ;;  %1284 = vmatmul.bf16.gmra.mxu2 %v1853_v57  ;;  %v2314_v57 = vld [vmem:[%s2514_s13 + $0xf4] sm:$0xf] }
  0x8c   : > { %1373 = vmatmul.bf16.gmra.mxu3 %v1857_v58  ;;  %v1926_v58 = vld [vmem:[%s2514_s13 + $0x104] sm:$0xf0] }
  0x8d   : > { %1462 = vmatmul.bf16.gmra.mxu0 %v1861_v59  ;;  %v1932_v59 = vld [vmem:[%s2514_s13 + $0xf8] sm:$0xf] }
  0x9b   : > { %1200 = vmatmul.bf16.gmra.mxu1 %v1869_v4  ;;  %1289 = vmatmul.bf16.gmra.mxu2 %v1873_v5  ;;  %v1929_v4 = vor.u32 %v2314_v57, %v1926_v58  ;;  %v1933_v5 = vor.u32 %v2317_v60, %v1932_v59  ;;  %v2324_v60 = vld [vmem:[%s2514_s13 + $0x144] sm:$0xf] }
  0x9c   : > { %1378 = vmatmul.bf16.gmra.mxu3 %v1877_v6 }
  0x9d   : > { %1467 = vmatmul.bf16.gmra.mxu0 %v1881_v7 }
  0xa8   : > { %v1117_v19 = vpop.f32.mrf.mxu1 }
  0xa9   : > { %v2693_v22 = vadd.f32 %v2682_v8, %v1117_v19 }
  0xaa   : > { %v2695_v23 = vpop.f32.mrf.mxu0 }
  0xab   : > { %1205 = vmatmul.bf16.gmra.mxu1 %v1889_v17  ;;  %1294 = vmatmul.bf16.gmra.mxu2 %v1893_v18 }
  0xac   : > { %1383 = vmatmul.bf16.gmra.mxu3 %v1897_v20  ;;  %v2319_v20 = vld [vmem:[%s2514_s13 + $0x11c] sm:$0xf] }
  0xad   : > { %1472 = vmatmul.bf16.gmra.mxu0 %v1901_v21  ;;  %v1946_v21 = vld [vmem:[%s2514_s13 + $0x12c] sm:$0xf0] }
  0xae   : > { %v1137_v24 = vpop.f32.mrf.mxu2  ;;  %v1949_v37 = vor.u32 %v2319_v20, %v1946_v21 }
  0xaf   : > { %v2698_v25 = vadd.f32 %v2682_v8, %v1137_v24  ;;  %v1157_v26 = vpop.f32.mrf.mxu3  ;;  %v1952_v24 = vld [vmem:[%s2514_s13 + $0x120] sm:$0xf] }
  0xb0   : > { %v2701_v27 = vadd.f32 %v2682_v8, %v1157_v26  ;;  %v1119_v28 = vpop.f32.mrf.mxu1  ;;  %v2322_v26 = vld [vmem:[%s2514_s13 + $0x130] sm:$0xf0] }
  0xb1   : > { %v2704_v29 = vadd.f32 %v2682_v8, %v1119_v28  ;;  %v2320_v28 = vld [vmem:[%s2514_s13 + $0x124] sm:$0xf]  ;;  %v1953_v38 = vor.u32 %v2322_v26, %v1952_v24  ;;  %v1098_v26 = vadd.f32 %v2682_v8, %v2695_v23 }
  0xb2   : > { %v2706_v30 = vpop.f32.mrf.mxu0 }
  0xb6   : > { %v1139_v39 = vpop.f32.mrf.mxu2 }
  0xb7   : > { %v2717_v40 = vadd.f32 %v2682_v8, %v1139_v39  ;;  %v1159_v41 = vpop.f32.mrf.mxu3 }
  0xb8   : > { %v2720_v44 = vadd.f32 %v2682_v8, %v1159_v41  ;;  %v1122_v45 = vpop.f32.mrf.mxu1 }
  0xb9   : > { %v2723_v48 = vadd.f32 %v2682_v8, %v1122_v45 }
  0xba   : > { %v2725_v49 = vpop.f32.mrf.mxu0 }
  0xbb   : > { %1210 = vmatmul.bf16.gmra.mxu1 %v1909_v42  ;;  %1299 = vmatmul.bf16.gmra.mxu2 %v1913_v43  ;;  %v1957_v42 = vor.u32 %v2320_v28, %v1954_v31  ;;  %v1961_v43 = vor.u32 %v2323_v33, %v1960_v32 }
  0xbc   : > { %1388 = vmatmul.bf16.gmra.mxu3 %v1917_v46 }
  0xbd   : > { %1477 = vmatmul.bf16.gmra.mxu0 %v1921_v47 }
  0xbe   : > { %v1142_v50 = vpop.f32.mrf.mxu2 }
  0xbf   : > { %v2728_v51 = vadd.f32 %v2682_v8, %v1142_v50  ;;  %v1162_v52 = vpop.f32.mrf.mxu3 }
  0xc0   : > { %v2731_v53 = vadd.f32 %v2682_v8, %v1162_v52  ;;  %v1124_v54 = vpop.f32.mrf.mxu1 }
  0xc1   : > { %v2734_v55 = vadd.f32 %v2682_v8, %v1124_v54 }
  0xc2   : > { %v2736_v56 = vpop.f32.mrf.mxu0 }
  0xc6   : > { %v1144_v1 = vpop.f32.mrf.mxu2 }
  0xc7   : > { %v2747_v2 = vadd.f32 %v2682_v8, %v1144_v1  ;;  %v1164_v3 = vpop.f32.mrf.mxu3  ;;  %v1974_v1 = vld [vmem:[%s2514_s13 + $0x15c] sm:$0xf0] }
  0xc8   : > { %v2750_v6 = vadd.f32 %v2682_v8, %v1164_v3  ;;  %v1127_v7 = vpop.f32.mrf.mxu1  ;;  %v1980_v3 = vld [vmem:[%s2514_s13 + $0x150] sm:$0xf]  ;;  %v1977_v20 = vor.u32 %v2325_v0, %v1974_v1 }
  0xc9   : > { %v2753_v11 = vadd.f32 %v2682_v8, %v1127_v7 }
  0xca   : > { %v2755_v12 = vpop.f32.mrf.mxu0 }
  0xcb   : > { %1215 = vmatmul.bf16.gmra.mxu1 %v1929_v4  ;;  %1304 = vmatmul.bf16.gmra.mxu2 %v1933_v5  ;;  %v2328_v4 = vld [vmem:[%s2514_s13 + $0x160] sm:$0xf0] }
  0xcc   : > { %1393 = vmatmul.bf16.gmra.mxu3 %v1937_v9  ;;  %v1981_v21 = vor.u32 %v2328_v4, %v1980_v3 }
  0xcd   : > { %1482 = vmatmul.bf16.gmra.mxu0 %v1941_v10  ;;  %v1969_v10 = vor.u32 %v2324_v60, %v1966_v61  ;;  %v1994_v60 = vld [vmem:[%s2514_s13 + $0x184] sm:$0xf0]  ;;  %v2000_v61 = vld [vmem:[%s2514_s13 + $0x178] sm:$0xf] }
  0xce   : > { %v1147_v13 = vpop.f32.mrf.mxu2 }
  0xcf   : > { %v2758_v14 = vadd.f32 %v2682_v8, %v1147_v13  ;;  %v1167_v15 = vpop.f32.mrf.mxu3  ;;  %v1973_v13 = vor.u32 %v2327_v63, %v1972_v62  ;;  %v2333_v62 = vld [vmem:[%s2514_s13 + $0x188] sm:$0xf0] }
  0xd0   : > { %v2761_v16 = vadd.f32 %v2682_v8, %v1167_v15  ;;  %v1129_v17 = vpop.f32.mrf.mxu1 }
  0xd1   : > { %v2764_v18 = vadd.f32 %v2682_v8, %v1129_v17 }
  0xd2   : > { %v2766_v19 = vpop.f32.mrf.mxu0 }
  0xd6   : > { %v1149_v34 = vpop.f32.mrf.mxu2 }
  0xd7   : > { %v2777_v35 = vadd.f32 %v2682_v8, %v1149_v34  ;;  %v1169_v36 = vpop.f32.mrf.mxu3 }
  0xd8   : > { %v2780_v39 = vadd.f32 %v2682_v8, %v1169_v36  ;;  %v1132_v41 = vpop.f32.mrf.mxu1 }
  0xd9   : > { %v2783_v45 = vadd.f32 %v2682_v8, %v1132_v41  ;;  %v2329_v41 = vld [vmem:[%s2514_s13 + $0x16c] sm:$0xf] }
  0xda   : > { %v2785_v46 = vpop.f32.mrf.mxu0 }
  0xdb   : > { %1220 = vmatmul.bf16.gmra.mxu1 %v1949_v37  ;;  %1309 = vmatmul.bf16.gmra.mxu2 %v1953_v38  ;;  %v1100_v37 = vadd.f32 %v2682_v8, %v2706_v30  ;;  %v2001_v30 = vor.u32 %v2333_v62, %v2000_v61 }
  0xdc   : > { %1398 = vmatmul.bf16.gmra.mxu3 %v1957_v42  ;;  %v1986_v42 = vld [vmem:[%s2514_s13 + $0x17c] sm:$0xf0] }
  0xdd   : > { %1487 = vmatmul.bf16.gmra.mxu0 %v1961_v43  ;;  %v1992_v43 = vld [vmem:[%s2514_s13 + $0x170] sm:$0xf]  ;;  %v1989_v3 = vor.u32 %v2329_v41, %v1986_v42  ;;  %v2334_v42 = vld [vmem:[%s2514_s13 + $0x194] sm:$0xf] }
  0xde   : > { %v1152_v47 = vpop.f32.mrf.mxu2 }
  0xdf   : > { %v2788_v50 = vadd.f32 %v2682_v8, %v1152_v47  ;;  %v1172_v52 = vpop.f32.mrf.mxu3  ;;  %v2332_v47 = vld [vmem:[%s2514_s13 + $0x180] sm:$0xf0] }
  0xe0   : > { %v2791_v54 = vadd.f32 %v2682_v8, %v1172_v52  ;;  %v1134_v57 = vpop.f32.mrf.mxu1  ;;  %v2330_v52 = vld [vmem:[%s2514_s13 + $0x174] sm:$0xf]  ;;  %v1993_v4 = vor.u32 %v2332_v47, %v1992_v43  ;;  %v2012_v43 = vld [vmem:[%s2514_s13 + $0x198] sm:$0xf]  ;;  %v2337_v47 = vld [vmem:[%s2514_s13 + $0x1a8] sm:$0xf0] }
  0xe1   : > { %v2794_v58 = vadd.f32 %v2682_v8, %v1134_v57 }
  0xe2   : > { %v2796_v59 = vpop.f32.mrf.mxu0 }
  0xe6   : > { %v1154_v5 = vpop.f32.mrf.mxu2 }
  0xe7   : > { %v2807_v7 = vadd.f32 %v2682_v8, %v1154_v5  ;;  %v1174_v9 = vpop.f32.mrf.mxu3 }
  0xe8   : > { %v2810_v15 = vadd.f32 %v2682_v8, %v1174_v9  ;;  %v1186_v17 = vpop.f32.mrf.mxu1  ;;  %v1997_v9 = vor.u32 %v2330_v52, %v1994_v60  ;;  %v2335_v52 = vld [vmem:[%s2514_s13 + $0x19c] sm:$0xf] }
  0xe9   : > { %v1187_v28 = vadd.f32 %v1186_v17, %v1098_v26  ;;  %v1103_v17 = vadd.f32 %v2682_v8, %v2725_v49 }
  0xea   : > { %v1453_v24 = vpop.f32.mrf.mxu0 }
  0xeb   : > { %1225 = vmatmul.bf16.gmra.mxu1 %v1969_v10  ;;  %1314 = vmatmul.bf16.gmra.mxu2 %v1973_v13 }
  0xec   : > { %1403 = vmatmul.bf16.gmra.mxu3 %v1977_v20 }
  0xed   : > { %1492 = vmatmul.bf16.gmra.mxu0 %v1981_v21 }
  0xee   : > { %v1275_v31 = vpop.f32.mrf.mxu2 }
  0xef   : > { %v1276_v32 = vadd.f32 %v1275_v31, %v1187_v28  ;;  %v1364_v33 = vpop.f32.mrf.mxu3 }
  0xf0   : > { %v1188_v34 = vpop.f32.mrf.mxu1 }
  0xf1   : > { %v1365_v36 = vadd.f32 %v1364_v33, %v1276_v32  ;;  %v1189_v57 = vadd.f32 %v1188_v34, %v1100_v37  ;;  %v1105_v37 = vadd.f32 %v2682_v8, %v2736_v56  ;;  %v2013_v56 = vor.u32 %v2337_v47, %v2012_v43  ;;  %v2032_v43 = vld [vmem:[%s2514_s13 + $0x1c0] sm:$0xf]  ;;  %v2342_v47 = vld [vmem:[%s2514_s13 + $0x1d0] sm:$0xf0] }
  0xf2   : > { %v1455_v23 = vpop.f32.mrf.mxu0 }
  0xf3   : > { %v1454_v38 = vadd.f32 %v1453_v24, %v1365_v36 }
  0xf5   : > { %1533 = vst [vmem:[%s2818_s24] sm:$0xff] %v1454_v38  ;;  %v1602_v21 = vmul.f32 %v1454_v38, %v1454_v38 }
  0xf6   : > { %v1277_v63 = vpop.f32.mrf.mxu2 }
  0xf7   : > { %v1278_v0 = vadd.f32 %v1277_v63, %v1189_v57  ;;  %v1366_v1 = vpop.f32.mrf.mxu3  ;;  %v2014_v57 = vld [vmem:[%s2514_s13 + $0x1ac] sm:$0xf0]  ;;  %v2020_v63 = vld [vmem:[%s2514_s13 + $0x1a0] sm:$0xf] }
  0xf8   : > { %v1191_v5 = vpop.f32.mrf.mxu1 }
  0xf9   : > { %v1367_v10 = vadd.f32 %v1366_v1, %v1278_v0  ;;  %v1192_v28 = vadd.f32 %v1191_v5, %v1103_v17  ;;  %v2338_v0 = vld [vmem:[%s2514_s13 + $0x1b0] sm:$0xf0] }
  0xfa   : > { %v1458_v13 = vpop.f32.mrf.mxu0 }
  0xfb   : > { %v1456_v20 = vadd.f32 %v1455_v23, %v1367_v10  ;;  %1230 = vmatmul.bf16.gmra.mxu1 %v1989_v3  ;;  %1319 = vmatmul.bf16.gmra.mxu2 %v1993_v4  ;;  %v2017_v10 = vor.u32 %v2335_v52, %v2014_v57  ;;  %v2340_v52 = vld [vmem:[%s2514_s13 + $0x1c4] sm:$0xf]  ;;  %v2034_v57 = vld [vmem:[%s2514_s13 + $0x1d4] sm:$0xf0] }
  0xfc   : > { %1408 = vmatmul.bf16.gmra.mxu3 %v1997_v9 }
  0xfd   : > { %1497 = vmatmul.bf16.gmra.mxu0 %v2001_v30  ;;  %1534 = vst [vmem:[%s2818_s24 + $0x8] sm:$0xff] %v1456_v20  ;;  %v1565_v24 = vadd.f32 %v1456_v20, %v1454_v38  ;;  %v1603_v26 = vmul.f32 %v1456_v20, %v1456_v20  ;;  %v2006_v38 = vld [vmem:[%s2514_s13 + $0x1a4] sm:$0xf0] }
  0xfe   : > { %v1280_v31 = vpop.f32.mrf.mxu2  ;;  %v2009_v9 = vor.u32 %v2334_v42, %v2006_v38  ;;  %v2339_v42 = vld [vmem:[%s2514_s13 + $0x1bc] sm:$0xf]  ;;  %v2026_v38 = vld [vmem:[%s2514_s13 + $0x1cc] sm:$0xf0] }
  0xff   : > { %v1634_v32 = vadd.f32 %v1603_v26, %v1602_v21  ;;  %v1281_v49 = vadd.f32 %v1280_v31, %v1192_v28  ;;  %v1369_v33 = vpop.f32.mrf.mxu3  ;;  %v1108_v21 = vadd.f32 %v2682_v8, %v2755_v12 }
 0x100   : > { %v1193_v34 = vpop.f32.mrf.mxu1 }
 0x101   : > { %v1370_v36 = vadd.f32 %v1369_v33, %v1281_v49  ;;  %v1194_v62 = vadd.f32 %v1193_v34, %v1105_v37  ;;  %v1110_v37 = vadd.f32 %v2682_v8, %v2766_v19  ;;  %v2033_v19 = vor.u32 %v2342_v47, %v2032_v43  ;;  %v2345_v43 = vld [vmem:[%s2514_s13 + $0x1ec] sm:$0xf]  ;;  %v2054_v47 = vld [vmem:[%s2514_s13 + $0x1fc] sm:$0xf0] }
 0x102   : > { %v1460_v23 = vpop.f32.mrf.mxu0 }
 0x103   : > { %v1459_v41 = vadd.f32 %v1458_v13, %v1370_v36  ;;  %v2021_v13 = vor.u32 %v2338_v0, %v2020_v63  ;;  %v2040_v63 = vld [vmem:[%s2514_s13 + $0x1c8] sm:$0xf]  ;;  %v2343_v0 = vld [vmem:[%s2514_s13 + $0x1d8] sm:$0xf0] }
 0x105   : > { %1535 = vst [vmem:[%s2818_s24 + $0x10] sm:$0xff] %v1459_v41  ;;  %v1566_v60 = vadd.f32 %v1565_v24, %v1459_v41  ;;  %v1604_v61 = vmul.f32 %v1459_v41, %v1459_v41 }
 0x106   : > { %v1282_v1 = vpop.f32.mrf.mxu2 }
 0x107   : > { %v1635_v3 = vadd.f32 %v1634_v32, %v1604_v61  ;;  %v1283_v4 = vadd.f32 %v1282_v1, %v1194_v62  ;;  %v1371_v5 = vpop.f32.mrf.mxu3 }
 0x108   : > { %v1196_v30 = vpop.f32.mrf.mxu1 }
 0x109   : > { %v1372_v17 = vadd.f32 %v1371_v5, %v1283_v4  ;;  %v1197_v31 = vadd.f32 %v1196_v30, %v1108_v21  ;;  %v2037_v30 = vor.u32 %v2340_v52, %v2034_v57 }
 0x10a   : > { %v1463_v20 = vpop.f32.mrf.mxu0 }
 0x10b   : > { %v1461_v24 = vadd.f32 %v1460_v23, %v1372_v17  ;;  %1235 = vmatmul.bf16.gmra.mxu1 %v2009_v9  ;;  %1324 = vmatmul.bf16.gmra.mxu2 %v2013_v56  ;;  %v2029_v9 = vor.u32 %v2339_v42, %v2026_v38  ;;  %v2052_v42 = vld [vmem:[%s2514_s13 + $0x1e8] sm:$0xf]  ;;  %v2347_v38 = vld [vmem:[%s2514_s13 + $0x1f8] sm:$0xf0] }
 0x10c   : > { %1413 = vmatmul.bf16.gmra.mxu3 %v2017_v10  ;;  %v2041_v10 = vor.u32 %v2343_v0, %v2040_v63 }
 0x10d   : > { %1502 = vmatmul.bf16.gmra.mxu0 %v2021_v13  ;;  %1536 = vst [vmem:[%s2818_s24 + $0x18] sm:$0xff] %v1461_v24  ;;  %v1567_v26 = vadd.f32 %v1566_v60, %v1461_v24  ;;  %v1605_v28 = vmul.f32 %v1461_v24, %v1461_v24 }
 0x10e   : > { %v1285_v32 = vpop.f32.mrf.mxu2 }
 0x10f   : > { %v1636_v49 = vadd.f32 %v1635_v3, %v1605_v28  ;;  %v1286_v33 = vadd.f32 %v1285_v32, %v1197_v31  ;;  %v1374_v12 = vpop.f32.mrf.mxu3 }
 0x110   : > { %v1198_v34 = vpop.f32.mrf.mxu1 }
 0x111   : > { %v1375_v36 = vadd.f32 %v1374_v12, %v1286_v33  ;;  %v1199_v62 = vadd.f32 %v1198_v34, %v1110_v37  ;;  %v2344_v37 = vld [vmem:[%s2514_s13 + $0x1e4] sm:$0xf] }
 0x112   : > { %v1465_v23 = vpop.f32.mrf.mxu0 }
 0x113   : > { %v1464_v41 = vadd.f32 %v1463_v20, %v1375_v36  ;;  %v1113_v20 = vadd.f32 %v2682_v8, %v2785_v46  ;;  %v1115_v36 = vadd.f32 %v2682_v8, %v2796_v59  ;;  %v2053_v8 = vor.u32 %v2347_v38, %v2052_v42  ;;  %v2080_v42 = vld [vmem:[%s2514_s13 + $0x218] sm:$0xf]  ;;  %v2353_v38 = vld [vmem:[%s2514_s13 + $0x228] sm:$0xf0] }
 0x115   : > { %1537 = vst [vmem:[%s2818_s24 + $0x20] sm:$0xff] %v1464_v41  ;;  %v1568_v60 = vadd.f32 %v1567_v26, %v1464_v41  ;;  %v1606_v61 = vmul.f32 %v1464_v41, %v1464_v41  ;;  %v2046_v41 = vld [vmem:[%s2514_s13 + $0x1f4] sm:$0xf0] }
 0x116   : > { %v1287_v1 = vpop.f32.mrf.mxu2 }
 0x117   : > { %v1637_v3 = vadd.f32 %v1636_v49, %v1606_v61  ;;  %v1288_v4 = vadd.f32 %v1287_v1, %v1199_v62  ;;  %v1376_v5 = vpop.f32.mrf.mxu3  ;;  %v2060_v61 = vld [vmem:[%s2514_s13 + $0x1f0] sm:$0xf]  ;;  %v2348_v62 = vld [vmem:[%s2514_s13 + $0x200] sm:$0xf0] }
 0x118   : > { %v1201_v56 = vpop.f32.mrf.mxu1 }
 0x119   : > { %v1377_v13 = vadd.f32 %v1376_v5, %v1288_v4  ;;  %v1202_v28 = vadd.f32 %v1201_v56, %v1113_v20  ;;  %v2049_v4 = vor.u32 %v2344_v37, %v2046_v41  ;;  %v2057_v5 = vor.u32 %v2345_v43, %v2054_v47 }
 0x11a   : > { %v1468_v17 = vpop.f32.mrf.mxu0 }
 0x11b   : > { %v1466_v21 = vadd.f32 %v1465_v23, %v1377_v13  ;;  %1240 = vmatmul.bf16.gmra.mxu1 %v2029_v9  ;;  %1329 = vmatmul.bf16.gmra.mxu2 %v2033_v19  ;;  %v2061_v9 = vor.u32 %v2348_v62, %v2060_v61 }
 0x11c   : > { %1418 = vmatmul.bf16.gmra.mxu3 %v2037_v30 }
 0x11d   : > { %1507 = vmatmul.bf16.gmra.mxu0 %v2041_v10  ;;  %1538 = vst [vmem:[%s2818_s24 + $0x28] sm:$0xff] %v1466_v21  ;;  %v1569_v24 = vadd.f32 %v1568_v60, %v1466_v21  ;;  %v1607_v26 = vmul.f32 %v1466_v21, %v1466_v21 }
 0x11e   : > { %v1290_v31 = vpop.f32.mrf.mxu2 }
 0x11f   : > { %v1638_v32 = vadd.f32 %v1637_v3, %v1607_v26  ;;  %v1291_v49 = vadd.f32 %v1290_v31, %v1202_v28  ;;  %v1379_v46 = vpop.f32.mrf.mxu3 }
 0x120   : > { %v1203_v33 = vpop.f32.mrf.mxu1 }
 0x121   : > { %v1380_v12 = vadd.f32 %v1379_v46, %v1291_v49  ;;  %v1204_v60 = vadd.f32 %v1203_v33, %v1115_v36  ;;  %v2349_v46 = vld [vmem:[%s2514_s13 + $0x20c] sm:$0xf]  ;;  %v2066_v33 = vld [vmem:[%s2514_s13 + $0x21c] sm:$0xf0]  ;;  %v2350_v36 = vld [vmem:[%s2514_s13 + $0x214] sm:$0xf] }
 0x122   : > { %v1470_v34 = vpop.f32.mrf.mxu0 }
 0x123   : > { %v1469_v23 = vadd.f32 %v1468_v17, %v1380_v12  ;;  %v2072_v12 = vld [vmem:[%s2514_s13 + $0x210] sm:$0xf] }
 0x125   : > { %1539 = vst [vmem:[%s2818_s24 + $0x30] sm:$0xff] %v1469_v23  ;;  %v1570_v52 = vadd.f32 %v1569_v24, %v1469_v23  ;;  %v1608_v57 = vmul.f32 %v1469_v23, %v1469_v23  ;;  %v2074_v23 = vld [vmem:[%s2514_s13 + $0x224] sm:$0xf0] }
 0x126   : > { %v1292_v63 = vpop.f32.mrf.mxu2 }
 0x127   : > { %v1639_v0 = vadd.f32 %v1638_v32, %v1608_v57  ;;  %v1293_v1 = vadd.f32 %v1292_v63, %v1204_v60  ;;  %v1381_v3 = vpop.f32.mrf.mxu3  ;;  %v2069_v60 = vor.u32 %v2349_v46, %v2066_v33  ;;  %v2077_v63 = vor.u32 %v2350_v36, %v2074_v23  ;;  %v2100_v46 = vld [vmem:[%s2514_s13 + $0x240] sm:$0xf]  ;;  %v2358_v33 = vld [vmem:[%s2514_s13 + $0x250] sm:$0xf0] }
 0x128   : > { %v1206_v59 = vpop.f32.mrf.mxu1 }
 0x129   : > { %v1382_v19 = vadd.f32 %v1381_v3, %v1293_v1  ;;  %v1207_v17 = vadd.f32 %v1206_v59, %v2693_v22 }
 0x12a   : > { %v1473_v56 = vpop.f32.mrf.mxu0 }
 0x12b   : > { %v1471_v30 = vadd.f32 %v1470_v34, %v1382_v19  ;;  %1245 = vmatmul.bf16.gmra.mxu1 %v2049_v4  ;;  %1334 = vmatmul.bf16.gmra.mxu2 %v2053_v8  ;;  %v2352_v34 = vld [vmem:[%s2514_s13 + $0x220] sm:$0xf0] }
 0x12c   : > { %1423 = vmatmul.bf16.gmra.mxu3 %v2057_v5  ;;  %v2073_v61 = vor.u32 %v2352_v34, %v2072_v12 }
 0x12d   : > { %1512 = vmatmul.bf16.gmra.mxu0 %v2061_v9  ;;  %1540 = vst [vmem:[%s2818_s24 + $0x38] sm:$0xff] %v1471_v30  ;;  %v1571_v10 = vadd.f32 %v1570_v52, %v1471_v30  ;;  %v1609_v13 = vmul.f32 %v1471_v30, %v1471_v30 }
 0x12e   : > { %v1295_v20 = vpop.f32.mrf.mxu2 }
 0x12f   : > { %v1640_v21 = vadd.f32 %v1639_v0, %v1609_v13  ;;  %v1296_v24 = vadd.f32 %v1295_v20, %v1207_v17  ;;  %v1384_v26 = vpop.f32.mrf.mxu3  ;;  %v2081_v0 = vor.u32 %v2353_v38, %v2080_v42  ;;  %v2354_v20 = vld [vmem:[%s2514_s13 + $0x234] sm:$0xf]  ;;  %v2101_v38 = vor.u32 %v2358_v33, %v2100_v46 }
 0x130   : > { %v1208_v28 = vpop.f32.mrf.mxu1 }
 0x131   : > { %v1385_v31 = vadd.f32 %v1384_v26, %v1296_v24  ;;  %v1209_v22 = vadd.f32 %v1208_v28, %v2704_v29  ;;  %v2092_v24 = vld [vmem:[%s2514_s13 + $0x238] sm:$0xf]  ;;  %v2357_v26 = vld [vmem:[%s2514_s13 + $0x248] sm:$0xf0]  ;;  %v2355_v28 = vld [vmem:[%s2514_s13 + $0x23c] sm:$0xf] }
 0x132   : > { %v1475_v32 = vpop.f32.mrf.mxu0 }
 0x133   : > { %v1474_v49 = vadd.f32 %v1473_v56, %v1385_v31  ;;  %v2094_v31 = vld [vmem:[%s2514_s13 + $0x24c] sm:$0xf0] }
 0x134   : > { %v2097_v42 = vor.u32 %v2355_v28, %v2094_v31 }
 0x135   : > { %1541 = vst [vmem:[%s2818_s24 + $0x40] sm:$0xff] %v1474_v49  ;;  %v1572_v37 = vadd.f32 %v1571_v10, %v1474_v49  ;;  %v1610_v41 = vmul.f32 %v1474_v49, %v1474_v49 }
 0x136   : > { %v1297_v43 = vpop.f32.mrf.mxu2 }
 0x137   : > { %v1641_v47 = vadd.f32 %v1640_v21, %v1610_v41  ;;  %v1298_v52 = vadd.f32 %v1297_v43, %v1209_v22  ;;  %v1386_v57 = vpop.f32.mrf.mxu3  ;;  %v2086_v21 = vld [vmem:[%s2514_s13 + $0x244] sm:$0xf0]  ;;  %v2093_v41 = vor.u32 %v2357_v26, %v2092_v24 }
 0x138   : > { %v1211_v62 = vpop.f32.mrf.mxu1 }
 0x139   : > { %v1387_v1 = vadd.f32 %v1386_v57, %v1298_v52  ;;  %v1212_v59 = vadd.f32 %v1211_v62, %v2723_v48 }
 0x13a   : > { %v1478_v3 = vpop.f32.mrf.mxu0 }
 0x13b   : > { %v1476_v4 = vadd.f32 %v1475_v32, %v1387_v1  ;;  %1250 = vmatmul.bf16.gmra.mxu1 %v2069_v60  ;;  %1339 = vmatmul.bf16.gmra.mxu2 %v2073_v61 }
 0x13c   : > { %1428 = vmatmul.bf16.gmra.mxu3 %v2077_v63 }
 0x13d   : > { %1517 = vmatmul.bf16.gmra.mxu0 %v2081_v0  ;;  %1542 = vst [vmem:[%s2818_s24 + $0x48] sm:$0xff] %v1476_v4  ;;  %v1573_v29 = vadd.f32 %v1572_v37, %v1476_v4  ;;  %v1611_v8 = vmul.f32 %v1476_v4, %v1476_v4  ;;  %v2089_v37 = vor.u32 %v2354_v20, %v2086_v21 }
 0x13e   : > { %v1300_v5 = vpop.f32.mrf.mxu2 }
 0x13f   : > { %v1642_v9 = vadd.f32 %v1641_v47, %v1611_v8  ;;  %v1301_v19 = vadd.f32 %v1300_v5, %v1212_v59  ;;  %v1389_v56 = vpop.f32.mrf.mxu3  ;;  %v2359_v8 = vld [vmem:[%s2514_s13 + $0x25c] sm:$0xf]  ;;  %v2106_v59 = vld [vmem:[%s2514_s13 + $0x26c] sm:$0xf0]  ;;  %v2112_v5 = vld [vmem:[%s2514_s13 + $0x260] sm:$0xf] }
 0x140   : > { %v1213_v30 = vpop.f32.mrf.mxu1  ;;  %v2109_v28 = vor.u32 %v2359_v8, %v2106_v59 }
 0x141   : > { %v1390_v10 = vadd.f32 %v1389_v56, %v1301_v19  ;;  %v1214_v48 = vadd.f32 %v1213_v30, %v2734_v55  ;;  %v2360_v19 = vld [vmem:[%s2514_s13 + $0x264] sm:$0xf]  ;;  %v2114_v56 = vld [vmem:[%s2514_s13 + $0x274] sm:$0xf0] }
 0x142   : > { %v1480_v13 = vpop.f32.mrf.mxu0 }
 0x143   : > { %v1479_v17 = vadd.f32 %v1478_v3, %v1390_v10 }
 0x145   : > { %1543 = vst [vmem:[%s2818_s24 + $0x50] sm:$0xff] %v1479_v17  ;;  %v1574_v32 = vadd.f32 %v1573_v29, %v1479_v17  ;;  %v1612_v49 = vmul.f32 %v1479_v17, %v1479_v17  ;;  %v2363_v17 = vld [vmem:[%s2514_s13 + $0x278] sm:$0xf0] }
 0x146   : > { %v1302_v12 = vpop.f32.mrf.mxu2 }
 0x147   : > { %v1643_v34 = vadd.f32 %v1642_v9, %v1612_v49  ;;  %v1303_v36 = vadd.f32 %v1302_v12, %v1214_v48  ;;  %v1391_v23 = vpop.f32.mrf.mxu3  ;;  %v2362_v9 = vld [vmem:[%s2514_s13 + $0x270] sm:$0xf0]  ;;  %v2117_v49 = vor.u32 %v2360_v19, %v2114_v56 }
 0x148   : > { %v1216_v22 = vpop.f32.mrf.mxu1  ;;  %v2113_v31 = vor.u32 %v2362_v9, %v2112_v5 }
 0x149   : > { %v1392_v43 = vadd.f32 %v1391_v23, %v1303_v36  ;;  %v1217_v60 = vadd.f32 %v1216_v22, %v2753_v11 }
 0x14a   : > { %v1483_v47 = vpop.f32.mrf.mxu0 }
 0x14b   : > { %v1481_v52 = vadd.f32 %v1480_v13, %v1392_v43  ;;  %1255 = vmatmul.bf16.gmra.mxu1 %v2089_v37  ;;  %1344 = vmatmul.bf16.gmra.mxu2 %v2093_v41  ;;  %v2120_v13 = vld [vmem:[%s2514_s13 + $0x268] sm:$0xf] }
 0x14c   : > { %1433 = vmatmul.bf16.gmra.mxu3 %v2097_v42  ;;  %v2121_v48 = vor.u32 %v2363_v17, %v2120_v13 }
 0x14d   : > { %1522 = vmatmul.bf16.gmra.mxu0 %v2101_v38  ;;  %1544 = vst [vmem:[%s2818_s24 + $0x58] sm:$0xff] %v1481_v52  ;;  %v1575_v55 = vadd.f32 %v1574_v32, %v1481_v52  ;;  %v1613_v57 = vmul.f32 %v1481_v52, %v1481_v52 }
 0x14e   : > { %v1305_v61 = vpop.f32.mrf.mxu2 }
 0x14f   : > { %v1644_v62 = vadd.f32 %v1643_v34, %v1613_v57  ;;  %v1306_v63 = vadd.f32 %v1305_v61, %v1217_v60  ;;  %v1394_v0 = vpop.f32.mrf.mxu3 }
 0x150   : > { %v1218_v1 = vpop.f32.mrf.mxu1 }
 0x151   : > { %v1395_v3 = vadd.f32 %v1394_v0, %v1306_v63  ;;  %v1219_v11 = vadd.f32 %v1218_v1, %v2764_v18 }
 0x152   : > { %v1485_v4 = vpop.f32.mrf.mxu0 }
 0x153   : > { %v1484_v29 = vadd.f32 %v1483_v47, %v1395_v3 }
 0x155   : > { %1545 = vst [vmem:[%s2818_s24 + $0x60] sm:$0xff] %v1484_v29  ;;  %v1576_v30 = vadd.f32 %v1575_v55, %v1484_v29  ;;  %v1614_v10 = vmul.f32 %v1484_v29, %v1484_v29 }
 0x156   : > { %v1307_v20 = vpop.f32.mrf.mxu2 }
 0x157   : > { %v1645_v21 = vadd.f32 %v1644_v62, %v1614_v10  ;;  %v1308_v24 = vadd.f32 %v1307_v20, %v1219_v11  ;;  %v1396_v26 = vpop.f32.mrf.mxu3 }
 0x158   : > { %v1221_v32 = vpop.f32.mrf.mxu1 }
 0x159   : > { %v1397_v46 = vadd.f32 %v1396_v26, %v1308_v24  ;;  %v1222_v36 = vadd.f32 %v1221_v32, %v2783_v45 }
 0x15a   : > { %v1488_v33 = vpop.f32.mrf.mxu0 }
 0x15b   : > { %v1486_v12 = vadd.f32 %v1485_v4, %v1397_v46  ;;  %1260 = vmatmul.bf16.gmra.mxu1 %v2109_v28  ;;  %1349 = vmatmul.bf16.gmra.mxu2 %v2113_v31 }
 0x15c   : > { %1438 = vmatmul.bf16.gmra.mxu3 %v2117_v49 }
 0x15d   : > { %1527 = vmatmul.bf16.gmra.mxu0 %v2121_v48  ;;  %1546 = vst [vmem:[%s2818_s24 + $0x68] sm:$0xff] %v1486_v12  ;;  %v1577_v18 = vadd.f32 %v1576_v30, %v1486_v12  ;;  %v1615_v34 = vmul.f32 %v1486_v12, %v1486_v12 }
 0x15e   : > { %v1310_v23 = vpop.f32.mrf.mxu2 }
 0x15f   : > { %v1646_v37 = vadd.f32 %v1645_v21, %v1615_v34  ;;  %v1311_v41 = vadd.f32 %v1310_v23, %v1222_v36  ;;  %v1399_v22 = vpop.f32.mrf.mxu3 }
 0x160   : > { %v1223_v42 = vpop.f32.mrf.mxu1 }
 0x161   : > { %v1400_v38 = vadd.f32 %v1399_v22, %v1311_v41  ;;  %v1224_v57 = vadd.f32 %v1223_v42, %v2794_v58 }
 0x162   : > { %v1490_v43 = vpop.f32.mrf.mxu0 }
 0x163   : > { %v1489_v47 = vadd.f32 %v1488_v33, %v1400_v38 }
 0x165   : > { %1547 = vst [vmem:[%s2818_s24 + $0x70] sm:$0xff] %v1489_v47  ;;  %v1578_v52 = vadd.f32 %v1577_v18, %v1489_v47  ;;  %v1616_v55 = vmul.f32 %v1489_v47, %v1489_v47 }
 0x166   : > { %v1312_v60 = vpop.f32.mrf.mxu2 }
 0x167   : > { %v1647_v61 = vadd.f32 %v1646_v37, %v1616_v55  ;;  %v1313_v62 = vadd.f32 %v1312_v60, %v1224_v57  ;;  %v1401_v63 = vpop.f32.mrf.mxu3 }
 0x168   : > { %v1226_v0 = vpop.f32.mrf.mxu1 }
 0x169   : > { %v1402_v45 = vadd.f32 %v1401_v63, %v1313_v62  ;;  %v1227_v8 = vadd.f32 %v1226_v0, %v2698_v25 }
 0x16a   : > { %v1493_v1 = vpop.f32.mrf.mxu0 }
 0x16b   : > { %v1491_v3 = vadd.f32 %v1490_v43, %v1402_v45 }
 0x16d   : > { %1548 = vst [vmem:[%s2818_s24 + $0x78] sm:$0xff] %v1491_v3  ;;  %v1579_v4 = vadd.f32 %v1578_v52, %v1491_v3  ;;  %v1617_v29 = vmul.f32 %v1491_v3, %v1491_v3 }
 0x16e   : > { %v1315_v59 = vpop.f32.mrf.mxu2 }
 0x16f   : > { %v1648_v5 = vadd.f32 %v1647_v61, %v1617_v29  ;;  %v1316_v9 = vadd.f32 %v1315_v59, %v1227_v8  ;;  %v1404_v19 = vpop.f32.mrf.mxu3 }
 0x170   : > { %v1228_v56 = vpop.f32.mrf.mxu1 }
 0x171   : > { %v1405_v58 = vadd.f32 %v1404_v19, %v1316_v9  ;;  %v1229_v17 = vadd.f32 %v1228_v56, %v2717_v40 }
 0x172   : > { %v1495_v30 = vpop.f32.mrf.mxu0 }
 0x173   : > { %v1494_v10 = vadd.f32 %v1493_v1, %v1405_v58 }
 0x175   : > { %1549 = vst [vmem:[%s2818_s24 + $0x80] sm:$0xff] %v1494_v10  ;;  %v1580_v11 = vadd.f32 %v1579_v4, %v1494_v10  ;;  %v1618_v13 = vmul.f32 %v1494_v10, %v1494_v10 }
 0x176   : > { %v1317_v20 = vpop.f32.mrf.mxu2 }
 0x177   : > { %v1649_v21 = vadd.f32 %v1648_v5, %v1618_v13  ;;  %v1318_v24 = vadd.f32 %v1317_v20, %v1229_v17  ;;  %v1406_v26 = vpop.f32.mrf.mxu3 }
 0x178   : > { %v1231_v28 = vpop.f32.mrf.mxu1 }
 0x179   : > { %v1407_v25 = vadd.f32 %v1406_v26, %v1318_v24  ;;  %v1232_v46 = vadd.f32 %v1231_v28, %v2728_v51 }
 0x17a   : > { %v1498_v31 = vpop.f32.mrf.mxu0 }
 0x17b   : > { %v1496_v32 = vadd.f32 %v1495_v30, %v1407_v25 }
 0x17d   : > { %1550 = vst [vmem:[%s2818_s24 + $0x88] sm:$0xff] %v1496_v32  ;;  %v1581_v49 = vadd.f32 %v1580_v11, %v1496_v32  ;;  %v1619_v48 = vmul.f32 %v1496_v32, %v1496_v32 }
 0x17e   : > { %v1320_v33 = vpop.f32.mrf.mxu2 }
 0x17f   : > { %v1650_v12 = vadd.f32 %v1649_v21, %v1619_v48  ;;  %v1321_v18 = vadd.f32 %v1320_v33, %v1232_v46  ;;  %v1409_v34 = vpop.f32.mrf.mxu3 }
 0x180   : > { %v1233_v36 = vpop.f32.mrf.mxu1 }
 0x181   : > { %v1410_v40 = vadd.f32 %v1409_v34, %v1321_v18  ;;  %v1234_v42 = vadd.f32 %v1233_v36, %v2747_v2 }
 0x182   : > { %v1500_v23 = vpop.f32.mrf.mxu0 }
 0x183   : > { %v1499_v37 = vadd.f32 %v1498_v31, %v1410_v40 }
 0x185   : > { %1551 = vst [vmem:[%s2818_s24 + $0x90] sm:$0xff] %v1499_v37  ;;  %v1582_v41 = vadd.f32 %v1581_v49, %v1499_v37  ;;  %v1620_v22 = vmul.f32 %v1499_v37, %v1499_v37 }
 0x186   : > { %v1322_v38 = vpop.f32.mrf.mxu2 }
 0x187   : > { %v1651_v43 = vadd.f32 %v1650_v12, %v1620_v22  ;;  %v1323_v47 = vadd.f32 %v1322_v38, %v1234_v42  ;;  %v1411_v52 = vpop.f32.mrf.mxu3 }
 0x188   : > { %v1236_v55 = vpop.f32.mrf.mxu1 }
 0x189   : > { %v1412_v51 = vadd.f32 %v1411_v52, %v1323_v47  ;;  %v1237_v63 = vadd.f32 %v1236_v55, %v2758_v14 }
 0x18a   : > { %v1503_v57 = vpop.f32.mrf.mxu0 }
 0x18b   : > { %v1501_v60 = vadd.f32 %v1500_v23, %v1412_v51 }
 0x18d   : > { %1552 = vst [vmem:[%s2818_s24 + $0x98] sm:$0xff] %v1501_v60  ;;  %v1583_v61 = vadd.f32 %v1582_v41, %v1501_v60  ;;  %v1621_v62 = vmul.f32 %v1501_v60, %v1501_v60 }
 0x18e   : > { %v1325_v0 = vpop.f32.mrf.mxu2 }
 0x18f   : > { %v1652_v45 = vadd.f32 %v1651_v43, %v1621_v62  ;;  %v1326_v1 = vadd.f32 %v1325_v0, %v1237_v63  ;;  %v1414_v3 = vpop.f32.mrf.mxu3 }
 0x190   : > { %v1238_v4 = vpop.f32.mrf.mxu1 }
 0x191   : > { %v1415_v2 = vadd.f32 %v1414_v3, %v1326_v1  ;;  %v1239_v9 = vadd.f32 %v1238_v4, %v2777_v35 }
 0x192   : > { %v1505_v29 = vpop.f32.mrf.mxu0 }
 0x193   : > { %v1504_v8 = vadd.f32 %v1503_v57, %v1415_v2 }
 0x195   : > { %1553 = vst [vmem:[%s2818_s24 + $0xa0] sm:$0xff] %v1504_v8  ;;  %v1584_v59 = vadd.f32 %v1583_v61, %v1504_v8  ;;  %v1622_v5 = vmul.f32 %v1504_v8, %v1504_v8 }
 0x196   : > { %v1327_v19 = vpop.f32.mrf.mxu2 }
 0x197   : > { %v1653_v56 = vadd.f32 %v1652_v45, %v1622_v5  ;;  %v1328_v58 = vadd.f32 %v1327_v19, %v1239_v9  ;;  %v1416_v30 = vpop.f32.mrf.mxu3 }
 0x198   : > { %v1241_v10 = vpop.f32.mrf.mxu1 }
 0x199   : > { %v1417_v14 = vadd.f32 %v1416_v30, %v1328_v58  ;;  %v1242_v21 = vadd.f32 %v1241_v10, %v2788_v50 }
 0x19a   : > { %v1508_v11 = vpop.f32.mrf.mxu0 }
 0x19b   : > { %v1506_v13 = vadd.f32 %v1505_v29, %v1417_v14 }
 0x19d   : > { %1554 = vst [vmem:[%s2818_s24 + $0xa8] sm:$0xff] %v1506_v13  ;;  %v1585_v17 = vadd.f32 %v1584_v59, %v1506_v13  ;;  %v1623_v20 = vmul.f32 %v1506_v13, %v1506_v13 }
 0x19e   : > { %v1330_v24 = vpop.f32.mrf.mxu2 }
 0x19f   : > { %v1654_v26 = vadd.f32 %v1653_v56, %v1623_v20  ;;  %v1331_v28 = vadd.f32 %v1330_v24, %v1242_v21  ;;  %v1419_v25 = vpop.f32.mrf.mxu3 }
 0x1a0   : > { %v1243_v31 = vpop.f32.mrf.mxu1 }
 0x1a1   : > { %v1420_v35 = vadd.f32 %v1419_v25, %v1331_v28  ;;  %v1244_v33 = vadd.f32 %v1243_v31, %v2807_v7 }
 0x1a2   : > { %v1510_v32 = vpop.f32.mrf.mxu0 }
 0x1a3   : > { %v1509_v49 = vadd.f32 %v1508_v11, %v1420_v35 }
 0x1a5   : > { %1555 = vst [vmem:[%s2818_s24 + $0xb0] sm:$0xff] %v1509_v49  ;;  %v1586_v48 = vadd.f32 %v1585_v17, %v1509_v49  ;;  %v1624_v46 = vmul.f32 %v1509_v49, %v1509_v49 }
 0x1a6   : > { %v1332_v12 = vpop.f32.mrf.mxu2 }
 0x1a7   : > { %v1655_v18 = vadd.f32 %v1654_v26, %v1624_v46  ;;  %v1333_v34 = vadd.f32 %v1332_v12, %v1244_v33  ;;  %v1421_v36 = vpop.f32.mrf.mxu3 }
 0x1a8   : > { %v1246_v40 = vpop.f32.mrf.mxu1 }
 0x1a9   : > { %v1422_v50 = vadd.f32 %v1421_v36, %v1333_v34  ;;  %v1247_v42 = vadd.f32 %v1246_v40, %v2701_v27 }
 0x1aa   : > { %v1513_v23 = vpop.f32.mrf.mxu0 }
 0x1ab   : > { %v1511_v37 = vadd.f32 %v1510_v32, %v1422_v50 }
 0x1ad   : > { %1556 = vst [vmem:[%s2818_s24 + $0xb8] sm:$0xff] %v1511_v37  ;;  %v1587_v41 = vadd.f32 %v1586_v48, %v1511_v37  ;;  %v1625_v22 = vmul.f32 %v1511_v37, %v1511_v37 }
 0x1ae   : > { %v1335_v38 = vpop.f32.mrf.mxu2 }
 0x1af   : > { %v1656_v43 = vadd.f32 %v1655_v18, %v1625_v22  ;;  %v1336_v47 = vadd.f32 %v1335_v38, %v1247_v42  ;;  %v1424_v52 = vpop.f32.mrf.mxu3 }
 0x1b0   : > { %v1248_v55 = vpop.f32.mrf.mxu1 }
 0x1b1   : > { %v1425_v7 = vadd.f32 %v1424_v52, %v1336_v47  ;;  %v1249_v62 = vadd.f32 %v1248_v55, %v2720_v44 }
 0x1b2   : > { %v1515_v51 = vpop.f32.mrf.mxu0 }
 0x1b3   : > { %v1514_v57 = vadd.f32 %v1513_v23, %v1425_v7 }
 0x1b5   : > { %1557 = vst [vmem:[%s2818_s24 + $0xc0] sm:$0xff] %v1514_v57  ;;  %v1588_v60 = vadd.f32 %v1587_v41, %v1514_v57  ;;  %v1626_v61 = vmul.f32 %v1514_v57, %v1514_v57 }
 0x1b6   : > { %v1337_v63 = vpop.f32.mrf.mxu2 }
 0x1b7   : > { %v1657_v0 = vadd.f32 %v1656_v43, %v1626_v61  ;;  %v1338_v45 = vadd.f32 %v1337_v63, %v1249_v62  ;;  %v1426_v1 = vpop.f32.mrf.mxu3 }
 0x1b8   : > { %v1251_v3 = vpop.f32.mrf.mxu1 }
 0x1b9   : > { %v1427_v27 = vadd.f32 %v1426_v1, %v1338_v45  ;;  %v1252_v59 = vadd.f32 %v1251_v3, %v2731_v53 }
 0x1ba   : > { %v1518_v4 = vpop.f32.mrf.mxu0 }
 0x1bb   : > { %v1516_v2 = vadd.f32 %v1515_v51, %v1427_v27 }
 0x1bd   : > { %1558 = vst [vmem:[%s2818_s24 + $0xc8] sm:$0xff] %v1516_v2  ;;  %v1589_v29 = vadd.f32 %v1588_v60, %v1516_v2  ;;  %v1627_v8 = vmul.f32 %v1516_v2, %v1516_v2 }
 0x1be   : > { %v1340_v5 = vpop.f32.mrf.mxu2 }
 0x1bf   : > { %v1658_v9 = vadd.f32 %v1657_v0, %v1627_v8  ;;  %v1341_v19 = vadd.f32 %v1340_v5, %v1252_v59  ;;  %v1429_v56 = vpop.f32.mrf.mxu3 }
 0x1c0   : > { %v1253_v58 = vpop.f32.mrf.mxu1 }
 0x1c1   : > { %v1430_v44 = vadd.f32 %v1429_v56, %v1341_v19  ;;  %v1254_v13 = vadd.f32 %v1253_v58, %v2750_v6 }
 0x1c2   : > { %v1520_v30 = vpop.f32.mrf.mxu0 }
 0x1c3   : > { %v1519_v10 = vadd.f32 %v1518_v4, %v1430_v44 }
 0x1c5   : > { %1559 = vst [vmem:[%s2818_s24 + $0xd0] sm:$0xff] %v1519_v10  ;;  %v1590_v14 = vadd.f32 %v1589_v29, %v1519_v10  ;;  %v1628_v11 = vmul.f32 %v1519_v10, %v1519_v10 }
 0x1c6   : > { %v1342_v17 = vpop.f32.mrf.mxu2 }
 0x1c7   : > { %v1659_v20 = vadd.f32 %v1658_v9, %v1628_v11  ;;  %v1343_v21 = vadd.f32 %v1342_v17, %v1254_v13  ;;  %v1431_v24 = vpop.f32.mrf.mxu3 }
 0x1c8   : > { %v1256_v53 = vpop.f32.mrf.mxu1 }
 0x1c9   : > { %v1432_v26 = vadd.f32 %v1431_v24, %v1343_v21  ;;  %v1257_v32 = vadd.f32 %v1256_v53, %v2761_v16 }
 0x1ca   : > { %v1523_v25 = vpop.f32.mrf.mxu0 }
 0x1cb   : > { %v1521_v28 = vadd.f32 %v1520_v30, %v1432_v26 }
 0x1cd   : > { %1560 = vst [vmem:[%s2818_s24 + $0xd8] sm:$0xff] %v1521_v28  ;;  %v1591_v31 = vadd.f32 %v1590_v14, %v1521_v28  ;;  %v1629_v35 = vmul.f32 %v1521_v28, %v1521_v28 }
 0x1ce   : > { %v1345_v49 = vpop.f32.mrf.mxu2 }
 0x1cf   : > { %v1660_v48 = vadd.f32 %v1659_v20, %v1629_v35  ;;  %v1346_v46 = vadd.f32 %v1345_v49, %v1257_v32  ;;  %v1434_v33 = vpop.f32.mrf.mxu3 }
 0x1d0   : > { %v1258_v6 = vpop.f32.mrf.mxu1 }
 0x1d1   : > { %v1435_v12 = vadd.f32 %v1434_v33, %v1346_v46  ;;  %v1259_v40 = vadd.f32 %v1258_v6, %v2780_v39 }
 0x1d2   : > { %v1525_v50 = vpop.f32.mrf.mxu0 }
 0x1d3   : > { %v1524_v18 = vadd.f32 %v1523_v25, %v1435_v12 }
 0x1d5   : > { %1561 = vst [vmem:[%s2818_s24 + $0xe0] sm:$0xff] %v1524_v18  ;;  %v1592_v34 = vadd.f32 %v1591_v31, %v1524_v18  ;;  %v1630_v36 = vmul.f32 %v1524_v18, %v1524_v18 }
 0x1d6   : > { %v1347_v23 = vpop.f32.mrf.mxu2 }
 0x1d7   : > { %v1661_v37 = vadd.f32 %v1660_v48, %v1630_v36  ;;  %v1348_v41 = vadd.f32 %v1347_v23, %v1259_v40  ;;  %v1436_v22 = vpop.f32.mrf.mxu3 }
 0x1d8   : > { %v1261_v16 = vpop.f32.mrf.mxu1 }
 0x1d9   : > { %v1437_v42 = vadd.f32 %v1436_v22, %v1348_v41  ;;  %v1262_v52 = vadd.f32 %v1261_v16, %v2791_v54 }
 0x1da   : > { %v1528_v39 = vpop.f32.mrf.mxu0 }
 0x1db   : > { %v1526_v38 = vadd.f32 %v1525_v50, %v1437_v42 }
 0x1dd   : > { %1562 = vst [vmem:[%s2818_s24 + $0xe8] sm:$0xff] %v1526_v38  ;;  %v1593_v43 = vadd.f32 %v1592_v34, %v1526_v38  ;;  %v1631_v47 = vmul.f32 %v1526_v38, %v1526_v38 }
 0x1de   : > { %v1350_v55 = vpop.f32.mrf.mxu2 }
 0x1df   : > { %v1662_v7 = vadd.f32 %v1661_v37, %v1631_v47  ;;  %v1351_v51 = vadd.f32 %v1350_v55, %v1262_v52  ;;  %v1439_v57 = vpop.f32.mrf.mxu3 }
 0x1e0   : > { %v1263_v61 = vpop.f32.mrf.mxu1 }
 0x1e1   : > { %v1440_v60 = vadd.f32 %v1439_v57, %v1351_v51  ;;  %v1264_v45 = vadd.f32 %v1263_v61, %v2810_v15 }
 0x1e2   : > { %v1530_v2 = vpop.f32.mrf.mxu0 }
 0x1e3   : > { %v1529_v62 = vadd.f32 %v1528_v39, %v1440_v60 }
 0x1e5   : > { %1563 = vst [vmem:[%s2818_s24 + $0xf0] sm:$0xff] %v1529_v62  ;;  %v1594_v63 = vadd.f32 %v1593_v43, %v1529_v62  ;;  %v1632_v0 = vmul.f32 %v1529_v62, %v1529_v62 }
 0x1e6   : > { %v1352_v1 = vpop.f32.mrf.mxu2 }
 0x1e7   : > { %v1663_v3 = vadd.f32 %v1662_v7, %v1632_v0  ;;  %v1353_v27 = vadd.f32 %v1352_v1, %v1264_v45  ;;  %v1441_v54 = vpop.f32.mrf.mxu3 }
 0x1e9   : > { %v1442_v4 = vadd.f32 %v1441_v54, %v1353_v27 }
 0x1eb   : > { %v1531_v29 = vadd.f32 %v1530_v2, %v1442_v4 }
 0x1ed   : > { %1564 = vst [vmem:[%s2818_s24 + $0xf8] sm:$0xff] %v1531_v29  ;;  %v1595_v8 = vadd.f32 %v1594_v63, %v1531_v29  ;;  %v1633_v59 = vmul.f32 %v1531_v29, %v1531_v29 }
 0x1ef   : > { %v1596_v5 = vrot.slane %v1595_v8, 4  ;;  %v1664_v9 = vadd.f32 %v1663_v3, %v1633_v59 }
 0x1f1   : > { %v1597_v19 = vadd.f32 %v1596_v5, %v1595_v8  ;;  %v1665_v56 = vrot.slane %v1664_v9, 4 }
 0x1f3   : > { %v1598_v58 = vrot.slane %v1597_v19, 2  ;;  %v1666_v44 = vadd.f32 %v1665_v56, %v1664_v9 }
 0x1f5   : > { %v1599_v15 = vadd.f32 %v1598_v58, %v1597_v19  ;;  %v1667_v30 = vrot.slane %v1666_v44, 2 }
 0x1f7   : > { %v1600_v10 = vrot.slane %v1599_v15, 1  ;;  %v1668_v14 = vadd.f32 %v1667_v30, %v1666_v44 }
 0x1f9   : > { %v1601_v11 = vadd.f32 %v1600_v10, %v1599_v15  ;;  %v1669_v13 = vrot.slane %v1668_v14, 1 }
 0x1fb   : > { %v1670_v17 = vadd.f32 %v1669_v13, %v1668_v14  ;;  %1671 = vst [vmem:[%s247_s27] sm:$0xff] %v1601_v11 }
 0x1fd   : > { %1672 = vst [vmem:[%s251_s30] sm:$0xff] %v1670_v17 }
 0x1fe PF: > { %s16_s18 = sadd.s32 1, %s2444_s18  }
 0x1ff   : > { %p13_p5 = scmp.ge.s32.totalorder %s16_s18, 4  }
 0x201   :  { %15 = sbr.rel (!%p13_p5) target bundleno = 1 (0x1), region = 86 }

// kernel: crosslevel_net3_forward.5
= control target key start
LH: loop header
LB: loop body
LE: loop exit
PB: predicated region body
PF: predicated region fallthrough
CT: control target
= control target key end

     0   :  { %s996_s18 = smov 0   ;;  %s1273_s0 = inlined_call_operand.vmem [shape: bf16[512,128], index: 0, kind: input, shape index: {}]   ;;  %s1274_s1 = inlined_call_operand.vmem [shape: bf16[128,128], index: 1, kind: input, shape index: {}]   ;;  %s1275_s2 = inlined_call_operand.vmem [shape: f32[1,128], index: 2, kind: input, shape index: {}]   ;;  %s1276_s3 = inlined_call_operand.vmem [shape: f32[512,128], index: 3, kind: output, shape index: {0}]   ;;  %s1277_s4 = inlined_call_operand.vmem [shape: f32[2,8,128], index: 4, kind: output, shape index: {1}]   ;;  %s1278_s5 = inlined_call_operand.vmem [shape: f32[2,8,128], index: 5, kind: output, shape index: {2}]  }
   0x1 LB: > { %s1002_s19 = sadd.s32 4294967295, %s964_s18   ;;  %p796_p0 = scmp.ge.s32.totalorder %s964_s18, 1  ;;  %s964_s18 = sphi %s996_s18, %s16_s18  }
   0x2   : > { %p193_p1 = scmp.lt.s32.totalorder %s964_s18, 3 }
   0x4   : > { %p194_p2 = pnand %p796_p0, %p193_p1 }
   0x5   : > { %s797_s28 = sshll.u32 (!%p194_p2), %s1002_s19, 5  ;;  %p241_p4 = scmp.lt.s32.totalorder (!%p194_p2), %s1002_s19, 1 }
   0x6   : > { %197 = sbr.rel (%p194_p2) target bundleno = 292 (0x124), region = 32  ;;  %p230_p3 = scmp.lt.s32.totalorder (!%p194_p2), %s797_s28, 63 }
   0xb   : > { %v924_v0 = vld [vmem:[%s1274_s1 + $0x38] sm:$0xff]  ;;  %v923_v1 = vld [vmem:[%s1274_s1 + $0x30] sm:$0xff]  ;;  %v922_v2 = vld [vmem:[%s1274_s1 + $0x28] sm:$0xff]  ;;  %s1280_s28 = smov (!%p230_p3, %s797_s28), 63  ;;  %s1282_s19 = smov (!%p241_p4, %s1002_s19), 1 }
   0xc   : > { %445 = vmatpush.bf16.msra.mxu0 %v924_v0  ;;  %925 = vmatpush.bf16.msra.mxu1 %v924_v0  ;;  %v921_v3 = vld [vmem:[%s1274_s1 + $0x20] sm:$0xff]  ;;  %v920_v4 = vld [vmem:[%s1274_s1 + $0x18] sm:$0xff]  ;;  %v919_v5 = vld [vmem:[%s1274_s1 + $0x10] sm:$0xff]  ;;  %s798_s10 = sshll.u32 %s1280_s28, 2  ;;  %s800_s16 = sshll.u32 %s1280_s28, 3 }
   0xd   : > { %926 = vmatpush.bf16.msra.mxu2 %v924_v0  ;;  %927 = vmatpush.bf16.msra.mxu3 %v924_v0  ;;  %v918_v6 = vld [vmem:[%s1274_s1 + $0x8] sm:$0xff]  ;;  %v917_v7 = vld [vmem:[%s1274_s1] sm:$0xff]  ;;  %s1037_s15 = scalar_lea.vmem %s1273_s0, %s798_s10  ;;  %s1064_s23 = scalar_lea.vmem %s1276_s3, %s800_s16 }
   0xe   : > { %v901_v8 = vld [vmem:[%s1037_s15] sm:$0xff]  ;;  %v902_v12 = vld [vmem:[%s1037_s15 + $0x8] sm:$0xff]  ;;  %v903_v16 = vld [vmem:[%s1037_s15 + $0x10] sm:$0xff]  ;;  %s801_s24 = sshll.u32 %s1282_s19, 3 }
   0xf   : > { %v905_v9 = vld [vmem:[%s1037_s15 + $0x20] sm:$0xff]  ;;  %v906_v13 = vld [vmem:[%s1037_s15 + $0x28] sm:$0xff]  ;;  %v907_v17 = vld [vmem:[%s1037_s15 + $0x30] sm:$0xff]  ;;  %s244_s27 = scalar_lea.vmem %s1277_s4, %s801_s24  ;;  %s248_s30 = scalar_lea.vmem %s1278_s5, %s801_s24 }
  0x10   : > { %446 = vmatpush.bf16.msra.mxu0 %v923_v1  ;;  %928 = vmatpush.bf16.msra.mxu1 %v923_v1  ;;  %v909_v10 = vld [vmem:[%s1037_s15 + $0x40] sm:$0xff]  ;;  %v910_v14 = vld [vmem:[%s1037_s15 + $0x48] sm:$0xff]  ;;  %v911_v18 = vld [vmem:[%s1037_s15 + $0x50] sm:$0xff] }
  0x11   : > { %929 = vmatpush.bf16.msra.mxu2 %v923_v1  ;;  %930 = vmatpush.bf16.msra.mxu3 %v923_v1  ;;  %v913_v11 = vld [vmem:[%s1037_s15 + $0x60] sm:$0xff]  ;;  %v914_v15 = vld [vmem:[%s1037_s15 + $0x68] sm:$0xff]  ;;  %v915_v19 = vld [vmem:[%s1037_s15 + $0x70] sm:$0xff] }
  0x12   : > { %v904_v20 = vld [vmem:[%s1037_s15 + $0x18] sm:$0xff]  ;;  %v1059_v24 = vld [vmem:[%s1275_s2] ss:$0 sm:$0xff] }
  0x13   : > { %v908_v21 = vld [vmem:[%s1037_s15 + $0x38] sm:$0xff] }
  0x14   : > { %447 = vmatpush.bf16.msra.mxu0 %v922_v2  ;;  %931 = vmatpush.bf16.msra.mxu1 %v922_v2  ;;  %v912_v22 = vld [vmem:[%s1037_s15 + $0x58] sm:$0xff] }
  0x15   : > { %932 = vmatpush.bf16.msra.mxu2 %v922_v2  ;;  %933 = vmatpush.bf16.msra.mxu3 %v922_v2  ;;  %v916_v23 = vld [vmem:[%s1037_s15 + $0x78] sm:$0xff] }
  0x18   : > { %448 = vmatpush.bf16.msra.mxu0 %v921_v3  ;;  %934 = vmatpush.bf16.msra.mxu1 %v921_v3 }
  0x19   : > { %935 = vmatpush.bf16.msra.mxu2 %v921_v3  ;;  %936 = vmatpush.bf16.msra.mxu3 %v921_v3 }
  0x1c   : > { %449 = vmatpush.bf16.msra.mxu0 %v920_v4  ;;  %937 = vmatpush.bf16.msra.mxu1 %v920_v4 }
  0x1d   : > { %938 = vmatpush.bf16.msra.mxu2 %v920_v4  ;;  %939 = vmatpush.bf16.msra.mxu3 %v920_v4 }
  0x20   : > { %450 = vmatpush.bf16.msra.mxu0 %v919_v5  ;;  %940 = vmatpush.bf16.msra.mxu1 %v919_v5 }
  0x21   : > { %941 = vmatpush.bf16.msra.mxu2 %v919_v5  ;;  %942 = vmatpush.bf16.msra.mxu3 %v919_v5 }
  0x24   : > { %451 = vmatpush.bf16.msra.mxu0 %v918_v6  ;;  %943 = vmatpush.bf16.msra.mxu1 %v918_v6 }
  0x25   : > { %944 = vmatpush.bf16.msra.mxu2 %v918_v6  ;;  %945 = vmatpush.bf16.msra.mxu3 %v918_v6 }
  0x28   : > { %452 = vmatpush.bf16.msra.mxu0 %v917_v7  ;;  %946 = vmatpush.bf16.msra.mxu1 %v917_v7 }
  0x29   : > { %947 = vmatpush.bf16.msra.mxu2 %v917_v7  ;;  %948 = vmatpush.bf16.msra.mxu3 %v917_v7 }
  0x2b   : > { %453 = vmatmul.bf16.vlgmr.msra.gmra.mxu0 %v901_v8  ;;  %473 = vmatmul.bf16.vlgmr.msra.gmra.mxu1 %v905_v9 }
  0x2c   : > { %493 = vmatmul.bf16.vlgmr.msra.gmra.mxu2 %v909_v10  ;;  %513 = vmatmul.bf16.vlgmr.msra.gmra.mxu3 %v913_v11 }
  0x3b   : > { %458 = vmatmul.bf16.gmra.mxu0 %v902_v12  ;;  %478 = vmatmul.bf16.gmra.mxu1 %v906_v13 }
  0x3c   : > { %498 = vmatmul.bf16.gmra.mxu2 %v910_v14  ;;  %518 = vmatmul.bf16.gmra.mxu3 %v914_v15 }
  0x4b   : > { %463 = vmatmul.bf16.gmra.mxu0 %v903_v16  ;;  %483 = vmatmul.bf16.gmra.mxu1 %v907_v17 }
  0x4c   : > { %503 = vmatmul.bf16.gmra.mxu2 %v911_v18  ;;  %523 = vmatmul.bf16.gmra.mxu3 %v915_v19 }
  0x5b   : > { %468 = vmatmul.bf16.gmra.mxu0 %v904_v20  ;;  %488 = vmatmul.bf16.gmra.mxu1 %v908_v21 }
  0x5c   : > { %508 = vmatmul.bf16.gmra.mxu2 %v912_v22  ;;  %528 = vmatmul.bf16.gmra.mxu3 %v916_v23 }
  0xa8   : > { %v454_v25 = vpop.f32.mrf.mxu0  ;;  %v474_v26 = vpop.f32.mrf.mxu1 }
  0xa9   : > { %v1067_v27 = vadd.f32 %v1059_v24, %v454_v25  ;;  %v1070_v28 = vadd.f32 %v1059_v24, %v474_v26 }
  0xab   : > { %534 = vst [vmem:[%s1064_s23] sm:$0xff] %v1067_v27  ;;  %v603_v5 = vmul.f32 %v1067_v27, %v1067_v27 }
  0xac   : > { %542 = vst [vmem:[%s1064_s23 + $0x40] sm:$0xff] %v1070_v28 }
  0xaf   : > { %v494_v29 = vpop.f32.mrf.mxu2  ;;  %v514_v35 = vpop.f32.mrf.mxu3 }
  0xb0   : > { %v456_v30 = vpop.f32.mrf.mxu0  ;;  %v476_v31 = vpop.f32.mrf.mxu1  ;;  %v1077_v32 = vadd.f32 %v1059_v24, %v494_v29  ;;  %v1089_v36 = vadd.f32 %v1059_v24, %v514_v35 }
  0xb1   : > { %v457_v33 = vadd.f32 %v1059_v24, %v456_v30  ;;  %v1081_v34 = vadd.f32 %v1059_v24, %v476_v31 }
  0xb2   : > { %550 = vst [vmem:[%s1064_s23 + $0x80] sm:$0xff] %v1077_v32 }
  0xb3   : > { %535 = vst [vmem:[%s1064_s23 + $0x8] sm:$0xff] %v457_v33  ;;  %v604_v4 = vmul.f32 %v457_v33, %v457_v33  ;;  %v566_v6 = vadd.f32 %v457_v33, %v1067_v27 }
  0xb4   : > { %543 = vst [vmem:[%s1064_s23 + $0x48] sm:$0xff] %v1081_v34 }
  0xb5   : > { %558 = vst [vmem:[%s1064_s23 + $0xc0] sm:$0xff] %v1089_v36  ;;  %v635_v9 = vadd.f32 %v604_v4, %v603_v5 }
  0xb7   : > { %v496_v37 = vpop.f32.mrf.mxu2  ;;  %v516_v43 = vpop.f32.mrf.mxu3 }
  0xb8   : > { %v459_v38 = vpop.f32.mrf.mxu0  ;;  %v479_v39 = vpop.f32.mrf.mxu1  ;;  %v1094_v40 = vadd.f32 %v1059_v24, %v496_v37  ;;  %v1103_v44 = vadd.f32 %v1059_v24, %v516_v43 }
  0xb9   : > { %v460_v41 = vadd.f32 %v1059_v24, %v459_v38  ;;  %v1098_v42 = vadd.f32 %v1059_v24, %v479_v39 }
  0xba   : > { %551 = vst [vmem:[%s1064_s23 + $0x88] sm:$0xff] %v1094_v40 }
  0xbb   : > { %536 = vst [vmem:[%s1064_s23 + $0x10] sm:$0xff] %v460_v41  ;;  %v605_v7 = vmul.f32 %v460_v41, %v460_v41  ;;  %v567_v10 = vadd.f32 %v566_v6, %v460_v41 }
  0xbc   : > { %544 = vst [vmem:[%s1064_s23 + $0x50] sm:$0xff] %v1098_v42 }
  0xbd   : > { %559 = vst [vmem:[%s1064_s23 + $0xc8] sm:$0xff] %v1103_v44  ;;  %v636_v20 = vadd.f32 %v635_v9, %v605_v7 }
  0xbf   : > { %v499_v45 = vpop.f32.mrf.mxu2  ;;  %v519_v51 = vpop.f32.mrf.mxu3 }
  0xc0   : > { %v461_v46 = vpop.f32.mrf.mxu0  ;;  %v481_v47 = vpop.f32.mrf.mxu1  ;;  %v1111_v48 = vadd.f32 %v1059_v24, %v499_v45  ;;  %v1130_v58 = vadd.f32 %v1059_v24, %v519_v51  ;;  %v611_v51 = vmul.f32 %v1070_v28, %v1070_v28 }
  0xc1   : > { %v462_v49 = vadd.f32 %v1059_v24, %v461_v46  ;;  %v1115_v50 = vadd.f32 %v1059_v24, %v481_v47 }
  0xc2   : > { %552 = vst [vmem:[%s1064_s23 + $0x90] sm:$0xff] %v1111_v48 }
  0xc3   : > { %537 = vst [vmem:[%s1064_s23 + $0x18] sm:$0xff] %v462_v49  ;;  %v606_v14 = vmul.f32 %v462_v49, %v462_v49  ;;  %v568_v21 = vadd.f32 %v567_v10, %v462_v49 }
  0xc4   : > { %545 = vst [vmem:[%s1064_s23 + $0x58] sm:$0xff] %v1115_v50 }
  0xc5   : > { %560 = vst [vmem:[%s1064_s23 + $0xd0] sm:$0xff] %v1130_v58  ;;  %v637_v23 = vadd.f32 %v636_v20, %v606_v14 }
  0xc7   : > { %v501_v52 = vpop.f32.mrf.mxu2  ;;  %v521_v59 = vpop.f32.mrf.mxu3 }
  0xc8   : > { %v464_v53 = vpop.f32.mrf.mxu0  ;;  %v484_v54 = vpop.f32.mrf.mxu1  ;;  %v1123_v55 = vadd.f32 %v1059_v24, %v501_v52  ;;  %v1135_v60 = vadd.f32 %v1059_v24, %v521_v59 }
  0xc9   : > { %v465_v56 = vadd.f32 %v1059_v24, %v464_v53  ;;  %v1127_v57 = vadd.f32 %v1059_v24, %v484_v54  ;;  %v612_v54 = vmul.f32 %v1081_v34, %v1081_v34 }
  0xca   : > { %553 = vst [vmem:[%s1064_s23 + $0x98] sm:$0xff] %v1123_v55 }
  0xcb   : > { %538 = vst [vmem:[%s1064_s23 + $0x20] sm:$0xff] %v465_v56  ;;  %v607_v22 = vmul.f32 %v465_v56, %v465_v56  ;;  %v569_v25 = vadd.f32 %v568_v21, %v465_v56  ;;  %v619_v21 = vmul.f32 %v1077_v32, %v1077_v32 }
  0xcc   : > { %546 = vst [vmem:[%s1064_s23 + $0x60] sm:$0xff] %v1127_v57 }
  0xcd   : > { %561 = vst [vmem:[%s1064_s23 + $0xd8] sm:$0xff] %v1135_v60  ;;  %v638_v27 = vadd.f32 %v637_v23, %v607_v22 }
  0xcf   : > { %v504_v61 = vpop.f32.mrf.mxu2  ;;  %v524_v3 = vpop.f32.mrf.mxu3 }
  0xd0   : > { %v466_v62 = vpop.f32.mrf.mxu0  ;;  %v486_v63 = vpop.f32.mrf.mxu1  ;;  %v1145_v0 = vadd.f32 %v1059_v24, %v504_v61  ;;  %v1165_v17 = vadd.f32 %v1059_v24, %v524_v3 }
  0xd1   : > { %v467_v1 = vadd.f32 %v1059_v24, %v466_v62  ;;  %v1149_v2 = vadd.f32 %v1059_v24, %v486_v63  ;;  %v613_v63 = vmul.f32 %v1098_v42, %v1098_v42 }
  0xd2   : > { %554 = vst [vmem:[%s1064_s23 + $0xa0] sm:$0xff] %v1145_v0 }
  0xd3   : > { %539 = vst [vmem:[%s1064_s23 + $0x28] sm:$0xff] %v467_v1  ;;  %v608_v26 = vmul.f32 %v467_v1, %v467_v1  ;;  %v570_v29 = vadd.f32 %v569_v25, %v467_v1 }
  0xd4   : > { %547 = vst [vmem:[%s1064_s23 + $0x68] sm:$0xff] %v1149_v2 }
  0xd5   : > { %562 = vst [vmem:[%s1064_s23 + $0xe0] sm:$0xff] %v1165_v17  ;;  %v639_v38 = vadd.f32 %v638_v27, %v608_v26 }
  0xd7   : > { %v506_v8 = vpop.f32.mrf.mxu2  ;;  %v526_v18 = vpop.f32.mrf.mxu3 }
  0xd8   : > { %v469_v11 = vpop.f32.mrf.mxu0  ;;  %v489_v12 = vpop.f32.mrf.mxu1  ;;  %v1160_v13 = vadd.f32 %v1059_v24, %v506_v8  ;;  %v1170_v19 = vadd.f32 %v1059_v24, %v526_v18 }
  0xd9   : > { %v470_v15 = vadd.f32 %v1059_v24, %v469_v11  ;;  %v490_v16 = vadd.f32 %v1059_v24, %v489_v12 }
  0xda   : > { %555 = vst [vmem:[%s1064_s23 + $0xa8] sm:$0xff] %v1160_v13 }
  0xdb   : > { %540 = vst [vmem:[%s1064_s23 + $0x30] sm:$0xff] %v470_v15  ;;  %v609_v30 = vmul.f32 %v470_v15, %v470_v15  ;;  %v571_v39 = vadd.f32 %v570_v29, %v470_v15  ;;  %v617_v14 = vmul.f32 %v490_v16, %v490_v16  ;;  %v622_v29 = vmul.f32 %v1123_v55, %v1123_v55 }
  0xdc   : > { %548 = vst [vmem:[%s1064_s23 + $0x70] sm:$0xff] %v490_v16 }
  0xdd   : > { %563 = vst [vmem:[%s1064_s23 + $0xe8] sm:$0xff] %v1170_v19  ;;  %v640_v46 = vadd.f32 %v639_v38, %v609_v30  ;;  %v624_v38 = vmul.f32 %v1160_v13, %v1160_v13 }
  0xdf   : > { %v509_v31 = vpop.f32.mrf.mxu2  ;;  %v529_v45 = vpop.f32.mrf.mxu3 }
  0xe0   : > { %v471_v33 = vpop.f32.mrf.mxu0  ;;  %v491_v35 = vpop.f32.mrf.mxu1  ;;  %v1179_v37 = vadd.f32 %v1059_v24, %v509_v31 }
  0xe1   : > { %v472_v41 = vadd.f32 %v1059_v24, %v471_v33  ;;  %v492_v43 = vadd.f32 %v1059_v24, %v491_v35 }
  0xe2   : > { %556 = vst [vmem:[%s1064_s23 + $0xb0] sm:$0xff] %v1179_v37 }
  0xe3   : > { %541 = vst [vmem:[%s1064_s23 + $0x38] sm:$0xff] %v472_v41  ;;  %v572_v47 = vadd.f32 %v571_v39, %v472_v41  ;;  %v610_v49 = vmul.f32 %v472_v41, %v472_v41  ;;  %v618_v20 = vmul.f32 %v492_v43, %v492_v43 }
  0xe4   : > { %549 = vst [vmem:[%s1064_s23 + $0x78] sm:$0xff] %v492_v43 }
  0xe5   : > { %v573_v52 = vadd.f32 %v572_v47, %v1070_v28  ;;  %v641_v53 = vadd.f32 %v640_v46, %v610_v49  ;;  %v1198_v28 = vadd.f32 %v1059_v24, %v529_v45  ;;  %v627_v47 = vmul.f32 %v1089_v36, %v1089_v36 }
  0xe7   : > { %v574_v56 = vadd.f32 %v573_v52, %v1081_v34  ;;  %v642_v59 = vadd.f32 %v641_v53, %v611_v51  ;;  %v511_v61 = vpop.f32.mrf.mxu2  ;;  %v531_v4 = vpop.f32.mrf.mxu3  ;;  %v614_v34 = vmul.f32 %v1115_v50, %v1115_v50  ;;  %564 = vst [vmem:[%s1064_s23 + $0xf0] sm:$0xff] %v1198_v28  ;;  %v628_v51 = vmul.f32 %v1103_v44, %v1103_v44 }
  0xe8   : > { %v512_v62 = vadd.f32 %v1059_v24, %v511_v61  ;;  %v1202_v5 = vadd.f32 %v1059_v24, %v531_v4  ;;  %v616_v24 = vmul.f32 %v1149_v2, %v1149_v2  ;;  %v629_v53 = vmul.f32 %v1130_v58, %v1130_v58 }
  0xe9   : > { %v575_v1 = vadd.f32 %v574_v56, %v1098_v42  ;;  %v643_v3 = vadd.f32 %v642_v59, %v612_v54  ;;  %v615_v42 = vmul.f32 %v1127_v57, %v1127_v57  ;;  %v630_v56 = vmul.f32 %v1135_v60, %v1135_v60 }
  0xea   : > { %557 = vst [vmem:[%s1064_s23 + $0xb8] sm:$0xff] %v512_v62  ;;  %v626_v46 = vmul.f32 %v512_v62, %v512_v62  ;;  %v631_v61 = vmul.f32 %v1165_v17, %v1165_v17 }
  0xeb   : > { %v644_v6 = vadd.f32 %v643_v3, %v613_v63  ;;  %v576_v7 = vadd.f32 %v575_v1, %v1115_v50  ;;  %565 = vst [vmem:[%s1064_s23 + $0xf8] sm:$0xff] %v1202_v5  ;;  %v632_v1 = vmul.f32 %v1170_v19, %v1170_v19 }
  0xed   : > { %v577_v8 = vadd.f32 %v576_v7, %v1127_v57  ;;  %v645_v9 = vadd.f32 %v644_v6, %v614_v34  ;;  %v620_v57 = vmul.f32 %v1094_v40, %v1094_v40 }
  0xef   : > { %v578_v10 = vadd.f32 %v577_v8, %v1149_v2  ;;  %v646_v11 = vadd.f32 %v645_v9, %v615_v42  ;;  %v621_v2 = vmul.f32 %v1111_v48, %v1111_v48 }
  0xf1   : > { %v579_v12 = vadd.f32 %v578_v10, %v490_v16  ;;  %v647_v15 = vadd.f32 %v646_v11, %v616_v24 }
  0xf3   : > { %v648_v50 = vadd.f32 %v647_v15, %v617_v14  ;;  %v580_v18 = vadd.f32 %v579_v12, %v492_v43  ;;  %v625_v43 = vmul.f32 %v1179_v37, %v1179_v37 }
  0xf5   : > { %v581_v22 = vadd.f32 %v580_v18, %v1077_v32  ;;  %v649_v23 = vadd.f32 %v648_v50, %v618_v20  ;;  %v623_v32 = vmul.f32 %v1145_v0, %v1145_v0 }
  0xf7   : > { %v582_v25 = vadd.f32 %v581_v22, %v1094_v40  ;;  %v650_v26 = vadd.f32 %v649_v23, %v619_v21 }
  0xf9   : > { %v651_v16 = vadd.f32 %v650_v26, %v620_v57  ;;  %v583_v27 = vadd.f32 %v582_v25, %v1111_v48 }
  0xfb   : > { %v584_v30 = vadd.f32 %v583_v27, %v1123_v55  ;;  %v652_v31 = vadd.f32 %v651_v16, %v621_v2 }
  0xfd   : > { %v585_v33 = vadd.f32 %v584_v30, %v1145_v0  ;;  %v653_v35 = vadd.f32 %v652_v31, %v622_v29 }
  0xff   : > { %v586_v40 = vadd.f32 %v585_v33, %v1160_v13  ;;  %v654_v39 = vadd.f32 %v653_v35, %v623_v32 }
 0x101   : > { %v655_v41 = vadd.f32 %v654_v39, %v624_v38  ;;  %v587_v48 = vadd.f32 %v586_v40, %v1179_v37 }
 0x103   : > { %v656_v55 = vadd.f32 %v655_v41, %v625_v43  ;;  %v588_v45 = vadd.f32 %v587_v48, %v512_v62 }
 0x105   : > { %v589_v0 = vadd.f32 %v588_v45, %v1089_v36  ;;  %v657_v49 = vadd.f32 %v656_v55, %v626_v46 }
 0x107   : > { %v590_v13 = vadd.f32 %v589_v0, %v1103_v44  ;;  %v658_v52 = vadd.f32 %v657_v49, %v627_v47 }
 0x109   : > { %v659_v37 = vadd.f32 %v658_v52, %v628_v51  ;;  %v591_v54 = vadd.f32 %v590_v13, %v1130_v58 }
 0x10b   : > { %v592_v59 = vadd.f32 %v591_v54, %v1135_v60  ;;  %v660_v36 = vadd.f32 %v659_v37, %v629_v53  ;;  %v633_v60 = vmul.f32 %v1198_v28, %v1198_v28 }
 0x10d   : > { %v593_v44 = vadd.f32 %v592_v59, %v1165_v17  ;;  %v661_v62 = vadd.f32 %v660_v36, %v630_v56  ;;  %v634_v17 = vmul.f32 %v1202_v5, %v1202_v5 }
 0x10f   : > { %v594_v63 = vadd.f32 %v593_v44, %v1170_v19  ;;  %v662_v3 = vadd.f32 %v661_v62, %v631_v61 }
 0x111   : > { %v663_v58 = vadd.f32 %v662_v3, %v632_v1  ;;  %v595_v4 = vadd.f32 %v594_v63, %v1198_v28 }
 0x113   : > { %v664_v34 = vadd.f32 %v663_v58, %v633_v60  ;;  %v596_v6 = vadd.f32 %v595_v4, %v1202_v5 }
 0x115   : > { %v597_v7 = vrot.slane %v596_v6, 4  ;;  %v665_v42 = vadd.f32 %v664_v34, %v634_v17 }
 0x117   : > { %v598_v8 = vadd.f32 %v597_v7, %v596_v6  ;;  %v666_v9 = vrot.slane %v665_v42, 4 }
 0x119   : > { %v599_v19 = vrot.slane %v598_v8, 2  ;;  %v667_v24 = vadd.f32 %v666_v9, %v665_v42 }
 0x11b   : > { %v600_v10 = vadd.f32 %v599_v19, %v598_v8  ;;  %v668_v11 = vrot.slane %v667_v24, 2 }
 0x11d   : > { %v601_v12 = vrot.slane %v600_v10, 1  ;;  %v669_v14 = vadd.f32 %v668_v11, %v667_v24 }
 0x11f   : > { %v602_v28 = vadd.f32 %v601_v12, %v600_v10  ;;  %v670_v15 = vrot.slane %v669_v14, 1 }
 0x121   : > { %v671_v5 = vadd.f32 %v670_v15, %v669_v14  ;;  %672 = vst [vmem:[%s244_s27] sm:$0xff] %v602_v28 }
 0x123   : > { %673 = vst [vmem:[%s248_s30] sm:$0xff] %v671_v5 }
 0x124 PF: > { %s16_s18 = sadd.s32 1, %s964_s18  }
 0x125   : > { %p13_p5 = scmp.ge.s32.totalorder %s16_s18, 4  }
 0x127   :  { %15 = sbr.rel (!%p13_p5) target bundleno = 1 (0x1), region = 86 }

// kernel: crosslevel_net3_forward.7
= control target key start
LH: loop header
LB: loop body
LE: loop exit
PB: predicated region body
PF: predicated region fallthrough
CT: control target
= control target key end

     0   :  { %s3406_s18 = smov 0   ;;  %s5412_s0 = inlined_call_operand.vmem [shape: f32[512,128], index: 0, kind: input, shape index: {}]   ;;  %s5413_s1 = inlined_call_operand.vmem [shape: f32[1,128], index: 1, kind: input, shape index: {}]   ;;  %s5414_s2 = inlined_call_operand.vmem [shape: f32[1,128], index: 2, kind: input, shape index: {}]   ;;  %s5415_s3 = inlined_call_operand.vmem [shape: f32[512,128], index: 3, kind: input, shape index: {}]   ;;  %s5416_s4 = inlined_call_operand.vmem [shape: f32[1,128], index: 4, kind: input, shape index: {}]   ;;  %s5417_s5 = inlined_call_operand.vmem [shape: f32[1,128], index: 5, kind: input, shape index: {}]   ;;  %s5418_s6 = inlined_call_operand.vmem [shape: bf16[128,32], index: 6, kind: input, shape index: {}]   ;;  %s5419_s7 = inlined_call_operand.vmem [shape: f32[1,32], index: 7, kind: input, shape index: {}]   ;;  %s5420_s8 = inlined_call_operand.vmem [shape: bf16[128,32], index: 8, kind: input, shape index: {}]   ;;  %s5421_s9 = inlined_call_operand.vmem [shape: f32[1,32], index: 9, kind: input, shape index: {}]   ;;  %s5422_s10 = inlined_call_operand.vmem [shape: bf16[128,32], index: 10, kind: input, shape index: {}]   ;;  %s5423_s11 = inlined_call_operand.vmem [shape: f32[1,32], index: 11, kind: input, shape index: {}]   ;;  %s5424_s12 = inlined_call_operand.vmem [shape: bf16[128,32], index: 12, kind: input, shape index: {}]   ;;  %s5425_s13 = inlined_call_operand.vmem [shape: f32[1,32], index: 13, kind: input, shape index: {}]   ;;  %s5426_s14 = inlined_call_operand.vmem [shape: f32[512,32], index: 14, kind: output, shape index: {0}]   ;;  %s5427_s15 = inlined_call_operand.vmem [shape: f32[512,32], index: 15, kind: output, shape index: {1}]  }
   0x1 LB: > { %s2887_s19 = sadd.s32 4294967295, %s3324_s18   ;;  %p2891_p0 = scmp.ge.s32.totalorder %s3324_s18, 1  ;;  %s3324_s18 = sphi %s3406_s18, %s26_s18  }
   0x2   : > { %p452_p1 = scmp.lt.s32.totalorder %s3324_s18, 3 }
   0x4   : > { %p453_p2 = pnand %p2891_p0, %p452_p1 }
   0x6   : > { %456 = sbr.rel (%p453_p2) target bundleno = 1720 (0x6b8), region = 76 }
   0xb   : > { %v3069_v0 = vld [vmem:[%s5418_s6 + $0x38] sm:$0xff]  ;;  %s2892_s22 = sshll.u32 %s2887_s19, 5  ;;  %v3068_v1 = vld [vmem:[%s5418_s6 + $0x30] sm:$0xff]  ;;  %v3067_v2 = vld [vmem:[%s5418_s6 + $0x28] sm:$0xff]  ;;  %vm1498_vm0 = vcmask 261120  }
   0xc   : > { %p511_p3 = scmp.lt.s32.totalorder %s2892_s22, 63  ;;  %3094 = vmatpush.bf16.msra.mxu2 %v3069_v0  ;;  %906 = vmatpush.bf16.msra.mxu0 %v3069_v0  ;;  %v3066_v3 = vld [vmem:[%s5418_s6 + $0x20] sm:$0xff]  ;;  %v3065_v5 = vld [vmem:[%s5418_s6 + $0x18] sm:$0xff]  ;;  %v3064_v11 = vld [vmem:[%s5418_s6 + $0x10] sm:$0xff] }
   0xd   : > { %v3437_v4 = vld [vmem:[%s5413_s1] ss:$0 sm:$0xff]  ;;  %v3063_v14 = vld [vmem:[%s5418_s6 + $0x8] sm:$0xff]  ;;  %v3085_v41 = vld [vmem:[%s5420_s8 + $0x38] sm:$0xff] }
   0xe   : > { %s5747_s22 = smov (!%p511_p3, %s2892_s22), 63  ;;  %v3449_v10 = vld [vmem:[%s5414_s2] ss:$0 sm:$0xff]  ;;  %v3084_v51 = vld [vmem:[%s5420_s8 + $0x30] sm:$0xff]  ;;  %v3083_v61 = vld [vmem:[%s5420_s8 + $0x28] sm:$0xff] }
   0xf   : > { %s3423_s27 = sshll.u32 %s5747_s22, 3  ;;  %v3062_v17 = vld [vmem:[%s5418_s6] sm:$0xff] }
  0x10   : > { %3095 = vmatpush.bf16.msra.mxu2 %v3068_v1  ;;  %907 = vmatpush.bf16.msra.mxu0 %v3068_v1  ;;  %s3432_s17 = scalar_lea.vmem %s5412_s0, %s3423_s27  ;;  %v3082_v62 = vld [vmem:[%s5420_s8 + $0x20] sm:$0xff]  ;;  %s3553_s25 = scalar_lea.vmem %s5415_s3, %s3423_s27 }
  0x11   : > { %v550_v6 = vld [vmem:[%s3432_s17 + $0x80] sm:$0xff]  ;;  %v551_v7 = vld [vmem:[%s3432_s17 + $0x88] sm:$0xff]  ;;  %v552_v19 = vld [vmem:[%s3432_s17 + $0x90] sm:$0xff]  ;;  %s5288_s24 = scalar_lea.vmem %s5427_s15, %s3423_s27 }
  0x12   : > { %v586_v8 = vmul.f32 %v3437_v4, %v550_v6  ;;  %v587_v9 = vmul.f32 %v3437_v4, %v551_v7  ;;  %v553_v20 = vld [vmem:[%s3432_s17 + $0x98] sm:$0xff]  ;;  %v588_v21 = vmul.f32 %v3437_v4, %v552_v19  ;;  %v554_v28 = vld [vmem:[%s3432_s17 + $0xa0] sm:$0xff]  ;;  %v555_v29 = vld [vmem:[%s3432_s17 + $0xa8] sm:$0xff] }
  0x13   : > { %v589_v22 = vmul.f32 %v3437_v4, %v553_v20  ;;  %v590_v30 = vmul.f32 %v3437_v4, %v554_v28  ;;  %v591_v31 = vmul.f32 %v3437_v4, %v555_v29  ;;  %v556_v37 = vld [vmem:[%s3432_s17 + $0xb0] sm:$0xff]  ;;  %v557_v38 = vld [vmem:[%s3432_s17 + $0xb8] sm:$0xff]  ;;  %v558_v47 = vld [vmem:[%s3432_s17 + $0xc0] sm:$0xff] }
  0x14   : > { %3096 = vmatpush.bf16.msra.mxu2 %v3067_v2  ;;  %908 = vmatpush.bf16.msra.mxu0 %v3067_v2  ;;  %v622_v12 = vadd.f32 %v3449_v10, %v586_v8  ;;  %v623_v13 = vadd.f32 %v3449_v10, %v587_v9  ;;  %v624_v23 = vadd.f32 %v3449_v10, %v588_v21  ;;  %v559_v48 = vld [vmem:[%s3432_s17 + $0xc8] sm:$0xff]  ;;  %v560_v57 = vld [vmem:[%s3432_s17 + $0xd0] sm:$0xff]  ;;  %v561_v58 = vld [vmem:[%s3432_s17 + $0xd8] sm:$0xff] }
  0x15   : > { %v625_v24 = vadd.f32 %v3449_v10, %v589_v22  ;;  %v626_v32 = vadd.f32 %v3449_v10, %v590_v30  ;;  %v627_v33 = vadd.f32 %v3449_v10, %v591_v31  ;;  %v592_v39 = vmul.f32 %v3437_v4, %v556_v37  ;;  %v563_v6 = vld [vmem:[%s3432_s17 + $0xe8] sm:$0xff]  ;;  %v3081_v7 = vld [vmem:[%s5420_s8 + $0x18] sm:$0xff]  ;;  %v564_v20 = vld [vmem:[%s3432_s17 + $0xf0] sm:$0xff] }
  0x16   : > { %v654_v15 = vmax.f32 %v622_v12, 0.0  ;;  %v655_v16 = vmax.f32 %v623_v13, 0.0  ;;  %v656_v25 = vmax.f32 %v624_v23, 0.0  ;;  %v593_v40 = vmul.f32 %v3437_v4, %v557_v38  ;;  %v565_v21 = vld [vmem:[%s3432_s17 + $0xf8] sm:$0xff]  ;;  %v3560_v30 = vld [vmem:[%s5416_s4] ss:$0 sm:$0xff] }
  0x17   : > { %v657_v26 = vmax.f32 %v625_v24, 0.0  ;;  %v658_v34 = vmax.f32 %v626_v32, 0.0  ;;  %v659_v35 = vmax.f32 %v627_v33, 0.0  ;;  %v628_v42 = vadd.f32 %v3449_v10, %v592_v39  ;;  %v670_v31 = vld [vmem:[%s3553_s25] sm:$0xff]  ;;  %v671_v32 = vld [vmem:[%s3553_s25 + $0x8] sm:$0xff] }
  0x18   : > { %3097 = vmatpush.bf16.msra.mxu2 %v3066_v3  ;;  %909 = vmatpush.bf16.msra.mxu0 %v3066_v3  ;;  %v3462_v18 = vpack.c.bf16 %v655_v16, %v654_v15  ;;  %v629_v43 = vadd.f32 %v3449_v10, %v593_v40  ;;  %v594_v49 = vmul.f32 %v3437_v4, %v558_v47 }
  0x19   : > { %v3471_v27 = vpack.c.bf16 %v657_v26, %v656_v25  ;;  %v3480_v36 = vpack.c.bf16 %v659_v35, %v658_v34  ;;  %v660_v44 = vmax.f32 %v628_v42, 0.0  ;;  %v595_v50 = vmul.f32 %v3437_v4, %v559_v48  ;;  %v3570_v35 = vld [vmem:[%s5417_s5] ss:$0 sm:$0xff]  ;;  %v672_v42 = vld [vmem:[%s3553_s25 + $0x10] sm:$0xff] }
  0x1a   : > { %v661_v45 = vmax.f32 %v629_v43, 0.0  ;;  %v630_v52 = vadd.f32 %v3449_v10, %v594_v49  ;;  %v596_v59 = vmul.f32 %v3437_v4, %v560_v57  ;;  %v597_v60 = vmul.f32 %v3437_v4, %v561_v58  ;;  %v673_v43 = vld [vmem:[%s3553_s25 + $0x18] sm:$0xff] }
  0x1b   : > { %v631_v53 = vadd.f32 %v3449_v10, %v595_v50  ;;  %v599_v9 = vmul.f32 %v3437_v4, %v563_v6  ;;  %v600_v22 = vmul.f32 %v3437_v4, %v564_v20  ;;  %v601_v23 = vmul.f32 %v3437_v4, %v565_v21 }
  0x1c   : > { %3098 = vmatpush.bf16.msra.mxu2 %v3065_v5  ;;  %910 = vmatpush.bf16.msra.mxu0 %v3065_v5  ;;  %v3492_v46 = vpack.c.bf16 %v661_v45, %v660_v44  ;;  %v662_v54 = vmax.f32 %v630_v52, 0.0  ;;  %v632_v63 = vadd.f32 %v3449_v10, %v596_v59  ;;  %v633_v0 = vadd.f32 %v3449_v10, %v597_v60  ;;  %v562_v5 = vld [vmem:[%s3432_s17 + $0xe0] sm:$0xff] }
  0x1d   : > { %v663_v55 = vmax.f32 %v631_v53, 0.0  ;;  %v598_v8 = vmul.f32 %v3437_v4, %v562_v5  ;;  %v635_v13 = vadd.f32 %v3449_v10, %v599_v9  ;;  %v636_v24 = vadd.f32 %v3449_v10, %v600_v22  ;;  %v677_v5 = vld [vmem:[%s3553_s25 + $0x38] sm:$0xff] }
  0x1e   : > { %v664_v1 = vmax.f32 %v632_v63, 0.0  ;;  %v665_v2 = vmax.f32 %v633_v0, 0.0  ;;  %v637_v25 = vadd.f32 %v3449_v10, %v601_v23  ;;  %v706_v33 = vmul.f32 %v3560_v30, %v670_v31 }
  0x1f   : > { %v3504_v56 = vpack.c.bf16 %v663_v55, %v662_v54  ;;  %v634_v12 = vadd.f32 %v3449_v10, %v598_v8  ;;  %v667_v16 = vmax.f32 %v635_v13, 0.0  ;;  %v668_v26 = vmax.f32 %v636_v24, 0.0  ;;  %v674_v54 = vld [vmem:[%s3553_s25 + $0x20] sm:$0xff]  ;;  %v675_v55 = vld [vmem:[%s3553_s25 + $0x28] sm:$0xff] }
  0x20   : > { %3099 = vmatpush.bf16.msra.mxu2 %v3064_v11  ;;  %911 = vmatpush.bf16.msra.mxu0 %v3064_v11  ;;  %v3519_v3 = vpack.c.bf16 %v665_v2, %v664_v1  ;;  %v3080_v11 = vld [vmem:[%s5420_s8 + $0x10] sm:$0xff]  ;;  %v669_v28 = vmax.f32 %v637_v25, 0.0  ;;  %v707_v34 = vmul.f32 %v3560_v30, %v671_v32  ;;  %v742_v37 = vadd.f32 %v3570_v35, %v706_v33  ;;  %v681_v33 = vld [vmem:[%s3553_s25 + $0x58] sm:$0xff] }
  0x21   : > { %v666_v15 = vmax.f32 %v634_v12, 0.0  ;;  %v708_v44 = vmul.f32 %v3560_v30, %v672_v42  ;;  %v709_v45 = vmul.f32 %v3560_v30, %v673_v43  ;;  %v710_v57 = vmul.f32 %v3560_v30, %v674_v54  ;;  %v676_v2 = vld [vmem:[%s3553_s25 + $0x30] sm:$0xff] }
  0x22   : > { %v3555_v29 = vpack.c.bf16 %v669_v28, %v668_v26  ;;  %v743_v38 = vadd.f32 %v3570_v35, %v707_v34  ;;  %v774_v39 = vmax.f32 %v742_v37, 0.0  ;;  %v711_v58 = vmul.f32 %v3560_v30, %v675_v55  ;;  %v680_v32 = vld [vmem:[%s3553_s25 + $0x50] sm:$0xff] }
  0x23   : > { %v3540_v19 = vpack.c.bf16 %v667_v16, %v666_v15  ;;  %v744_v48 = vadd.f32 %v3570_v35, %v708_v44  ;;  %v745_v49 = vadd.f32 %v3570_v35, %v709_v45  ;;  %v746_v60 = vadd.f32 %v3570_v35, %v710_v57  ;;  %v678_v16 = vld [vmem:[%s3553_s25 + $0x40] sm:$0xff] }
  0x24   : > { %3100 = vmatpush.bf16.msra.mxu2 %v3063_v14  ;;  %912 = vmatpush.bf16.msra.mxu0 %v3063_v14  ;;  %v3079_v14 = vld [vmem:[%s5420_s8 + $0x8] sm:$0xff]  ;;  %v775_v40 = vmax.f32 %v743_v38, 0.0  ;;  %v712_v6 = vmul.f32 %v3560_v30, %v676_v2  ;;  %v714_v20 = vmul.f32 %v3560_v30, %v678_v16  ;;  %v716_v34 = vmul.f32 %v3560_v30, %v680_v32  ;;  %v685_v2 = vld [vmem:[%s3553_s25 + $0x78] sm:$0xff] }
  0x25   : > { %v776_v50 = vmax.f32 %v744_v48, 0.0  ;;  %v717_v37 = vmul.f32 %v3560_v30, %v681_v33  ;;  %v682_v48 = vld [vmem:[%s3553_s25 + $0x60] sm:$0xff]  ;;  %v3075_v33 = vld [vmem:[%s5422_s10 + $0x28] sm:$0xff] }
  0x26   : > { %v748_v9 = vadd.f32 %v3570_v35, %v712_v6  ;;  %v750_v23 = vadd.f32 %v3570_v35, %v714_v20  ;;  %v721_v6 = vmul.f32 %v3560_v30, %v685_v2  ;;  %v535_v2 = vld [vmem:[%s3432_s17 + $0x8] sm:$0xff] }
  0x28   : > { %3101 = vmatpush.bf16.msra.mxu2 %v3062_v17  ;;  %913 = vmatpush.bf16.msra.mxu0 %v3062_v17  ;;  %v3078_v17 = vld [vmem:[%s5420_s8] sm:$0xff]  ;;  %v780_v12 = vmax.f32 %v748_v9, 0.0  ;;  %v782_v25 = vmax.f32 %v750_v23, 0.0  ;;  %v687_v23 = vld [vmem:[%s3553_s25 + $0x88] sm:$0xff] }
  0x2b   : > { %954 = vmatmul.bf16.vlgmr.msra.gmra.mxu2 %v3462_v18 }
  0x2c   : > { %1220 = vmatpush.bf16.msrb.mxu2 %v3085_v41  ;;  %v3574_v41 = vpack.c.bf16 %v775_v40, %v774_v39  ;;  %v752_v39 = vadd.f32 %v3570_v35, %v716_v34  ;;  %v753_v40 = vadd.f32 %v3570_v35, %v717_v37 }
  0x2e   : > { %v784_v42 = vmax.f32 %v752_v39, 0.0  ;;  %v785_v43 = vmax.f32 %v753_v40, 0.0  ;;  %v3074_v39 = vld [vmem:[%s5422_s10 + $0x20] sm:$0xff] }
  0x30   : > { %1221 = vmatpush.bf16.msrb.mxu2 %v3084_v51  ;;  %v777_v51 = vmax.f32 %v745_v49, 0.0  ;;  %v3639_v45 = vpack.c.bf16 %v785_v43, %v784_v42  ;;  %v683_v49 = vld [vmem:[%s3553_s25 + $0x68] sm:$0xff] }
  0x32   : > { %v3587_v53 = vpack.c.bf16 %v777_v51, %v776_v50  ;;  %v718_v50 = vmul.f32 %v3560_v30, %v682_v48  ;;  %v719_v51 = vmul.f32 %v3560_v30, %v683_v49  ;;  %v3073_v48 = vld [vmem:[%s5422_s10 + $0x18] sm:$0xff] }
  0x34   : > { %1222 = vmatpush.bf16.msrb.mxu2 %v3083_v61  ;;  %v747_v61 = vadd.f32 %v3570_v35, %v711_v58  ;;  %v754_v55 = vadd.f32 %v3570_v35, %v718_v50  ;;  %v755_v57 = vadd.f32 %v3570_v35, %v719_v51  ;;  %v688_v50 = vld [vmem:[%s3553_s25 + $0x90] sm:$0xff]  ;;  %v689_v51 = vld [vmem:[%s3553_s25 + $0x98] sm:$0xff] }
  0x36   : > { %v779_v63 = vmax.f32 %v747_v61, 0.0  ;;  %v786_v58 = vmax.f32 %v754_v55, 0.0  ;;  %v3072_v55 = vld [vmem:[%s5422_s10 + $0x10] sm:$0xff] }
  0x38   : > { %1223 = vmatpush.bf16.msrb.mxu2 %v3082_v62  ;;  %v778_v62 = vmax.f32 %v746_v60, 0.0  ;;  %v787_v60 = vmax.f32 %v755_v57, 0.0  ;;  %v724_v57 = vmul.f32 %v3560_v30, %v688_v50 }
  0x3a   : > { %v3600_v1 = vpack.c.bf16 %v779_v63, %v778_v62  ;;  %v3652_v62 = vpack.c.bf16 %v787_v60, %v786_v58  ;;  %v684_v63 = vld [vmem:[%s3553_s25 + $0x70] sm:$0xff]  ;;  %v725_v58 = vmul.f32 %v3560_v30, %v689_v51 }
  0x3b   : > { %959 = vmatmul.bf16.gmra.mxu2 %v3471_v27  ;;  %v536_v51 = vld [vmem:[%s3432_s17 + $0x10] sm:$0xff] }
  0x3c   : > { %1224 = vmatpush.bf16.msrb.mxu2 %v3081_v7  ;;  %v713_v7 = vmul.f32 %v3560_v30, %v677_v5  ;;  %v720_v5 = vmul.f32 %v3560_v30, %v684_v63  ;;  %v534_v63 = vld [vmem:[%s3432_s17] sm:$0xff] }
  0x3e   : > { %v756_v9 = vadd.f32 %v3570_v35, %v720_v5  ;;  %v3071_v5 = vld [vmem:[%s5422_s10 + $0x8] sm:$0xff] }
  0x40   : > { %1225 = vmatpush.bf16.msrb.mxu2 %v3080_v11  ;;  %v749_v11 = vadd.f32 %v3570_v35, %v713_v7 }
  0x42   : > { %v781_v13 = vmax.f32 %v749_v11, 0.0  ;;  %v757_v11 = vadd.f32 %v3570_v35, %v721_v6  ;;  %v760_v6 = vadd.f32 %v3570_v35, %v724_v57 }
  0x44   : > { %1226 = vmatpush.bf16.msrb.mxu2 %v3079_v14  ;;  %v3613_v15 = vpack.c.bf16 %v781_v13, %v780_v12  ;;  %v788_v12 = vmax.f32 %v756_v9, 0.0  ;;  %v789_v13 = vmax.f32 %v757_v11, 0.0  ;;  %v761_v9 = vadd.f32 %v3570_v35, %v725_v58 }
  0x45   : > { %v570_v11 = vmul.f32 %v3437_v4, %v534_v63  ;;  %v572_v63 = vmul.f32 %v3437_v4, %v536_v51 }
  0x46   : > { %v3668_v20 = vpack.c.bf16 %v789_v13, %v788_v12  ;;  %v571_v12 = vmul.f32 %v3437_v4, %v535_v2 }
  0x47   : > { %v606_v13 = vadd.f32 %v3449_v10, %v570_v11  ;;  %v608_v2 = vadd.f32 %v3449_v10, %v572_v63 }
  0x48   : > { %1227 = vmatpush.bf16.msrb.mxu2 %v3078_v17  ;;  %v679_v17 = vld [vmem:[%s3553_s25 + $0x48] sm:$0xff]  ;;  %5532 = vst [vmem:[#allocation8_spill] sm:$0xff] %v3668_v20 }
  0x49   : > { %v715_v21 = vmul.f32 %v3560_v30, %v679_v17  ;;  %v3077_v17 = vld [vmem:[%s5422_s10 + $0x38] sm:$0xff]  ;;  %v640_v11 = vmax.f32 %v608_v2, 0.0 }
  0x4a   : > { %1063 = vmatpush.bf16.msra.mxu1 %v3077_v17  ;;  %3102 = vmatpush.bf16.msra.mxu3 %v3077_v17  ;;  %v607_v17 = vadd.f32 %v3449_v10, %v571_v12 }
  0x4b   : > { %964 = vmatmul.bf16.gmra.mxu2 %v3480_v36  ;;  %v751_v24 = vadd.f32 %v3570_v35, %v715_v21  ;;  %v686_v21 = vld [vmem:[%s3553_s25 + $0x80] sm:$0xff] }
  0x4d   : > { %v783_v26 = vmax.f32 %v751_v24, 0.0  ;;  %v3076_v24 = vld [vmem:[%s5422_s10 + $0x30] sm:$0xff] }
  0x4e   : > { %1064 = vmatpush.bf16.msra.mxu1 %v3076_v24  ;;  %3103 = vmatpush.bf16.msra.mxu3 %v3076_v24  ;;  %v793_v24 = vmax.f32 %v761_v9, 0.0 }
  0x4f   : > { %v3626_v31 = vpack.c.bf16 %v783_v26, %v782_v25  ;;  %v722_v25 = vmul.f32 %v3560_v30, %v686_v21  ;;  %v723_v26 = vmul.f32 %v3560_v30, %v687_v23  ;;  %v3070_v21 = vld [vmem:[%s5422_s10] sm:$0xff]  ;;  %v792_v23 = vmax.f32 %v760_v6, 0.0 }
  0x51   : > { %v758_v34 = vadd.f32 %v3570_v35, %v722_v25  ;;  %v759_v37 = vadd.f32 %v3570_v35, %v723_v26  ;;  %v638_v25 = vmax.f32 %v606_v13, 0.0  ;;  %v639_v26 = vmax.f32 %v607_v17, 0.0 }
  0x52   : > { %1065 = vmatpush.bf16.msra.mxu1 %v3075_v33  ;;  %3104 = vmatpush.bf16.msra.mxu3 %v3075_v33 }
  0x53   : > { %v790_v40 = vmax.f32 %v758_v34, 0.0  ;;  %v791_v42 = vmax.f32 %v759_v37, 0.0  ;;  %v806_v33 = vpack.c.bf16 %v639_v26, %v638_v25  ;;  %v3721_v37 = vpack.c.bf16 %v793_v24, %v792_v23  ;;  %v692_v23 = vld [vmem:[%s3553_s25 + $0xb0] sm:$0xff]  ;;  %v693_v24 = vld [vmem:[%s3553_s25 + $0xb8] sm:$0xff] }
  0x54   : > { %v728_v25 = vmul.f32 %v3560_v30, %v692_v23  ;;  %v729_v26 = vmul.f32 %v3560_v30, %v693_v24 }
  0x55   : > { %v3693_v49 = vpack.c.bf16 %v791_v42, %v790_v40  ;;  %5536 = vst [vmem:[#allocation12_spill] sm:$0xff] %v3721_v37  ;;  %914 = vmatmul.bf16.vlgmr.msra.gmra.mxu0 %v806_v33  ;;  %v691_v40 = vld [vmem:[%s3553_s25 + $0xa8] sm:$0xff] }
  0x56   : > { %1066 = vmatpush.bf16.msra.mxu1 %v3074_v39  ;;  %3105 = vmatpush.bf16.msra.mxu3 %v3074_v39  ;;  %v690_v39 = vld [vmem:[%s3553_s25 + $0xa0] sm:$0xff] }
  0x57   : > { %5535 = vst [vmem:[#allocation11_spill] sm:$0xff] %v3693_v49  ;;  %v726_v42 = vmul.f32 %v3560_v30, %v690_v39  ;;  %v538_v39 = vld [vmem:[%s3432_s17 + $0x20] sm:$0xff] }
  0x58   : > { %v574_v51 = vmul.f32 %v3437_v4, %v538_v39 }
  0x59   : > { %v762_v57 = vadd.f32 %v3570_v35, %v726_v42  ;;  %v764_v42 = vadd.f32 %v3570_v35, %v728_v25  ;;  %v540_v25 = vld [vmem:[%s3432_s17 + $0x30] sm:$0xff] }
  0x5a   : > { %1067 = vmatpush.bf16.msra.mxu1 %v3073_v48  ;;  %3106 = vmatpush.bf16.msra.mxu3 %v3073_v48  ;;  %v727_v48 = vmul.f32 %v3560_v30, %v691_v40  ;;  %v539_v40 = vld [vmem:[%s3432_s17 + $0x28] sm:$0xff] }
  0x5b   : > { %969 = vmatmul.bf16.gmra.mxu2 %v3492_v46  ;;  %v794_v6 = vmax.f32 %v762_v57, 0.0 }
  0x5c   : > { %v763_v58 = vadd.f32 %v3570_v35, %v727_v48  ;;  %v765_v48 = vadd.f32 %v3570_v35, %v729_v26  ;;  %v541_v26 = vld [vmem:[%s3432_s17 + $0x38] sm:$0xff] }
  0x5e   : > { %1068 = vmatpush.bf16.msra.mxu1 %v3072_v55  ;;  %3107 = vmatpush.bf16.msra.mxu3 %v3072_v55  ;;  %v537_v55 = vld [vmem:[%s3432_s17 + $0x18] sm:$0xff]  ;;  %v795_v9 = vmax.f32 %v763_v58, 0.0  ;;  %v796_v58 = vmax.f32 %v764_v42, 0.0  ;;  %v797_v63 = vmax.f32 %v765_v48, 0.0  ;;  %v576_v42 = vmul.f32 %v3437_v4, %v540_v25  ;;  %v542_v25 = vld [vmem:[%s3432_s17 + $0x40] sm:$0xff] }
  0x60   : > { %v612_v48 = vadd.f32 %v3449_v10, %v576_v42  ;;  %v578_v42 = vmul.f32 %v3437_v4, %v542_v25 }
  0x62   : > { %1069 = vmatpush.bf16.msra.mxu1 %v3071_v5  ;;  %3108 = vmatpush.bf16.msra.mxu3 %v3071_v5 }
  0x66   : > { %1070 = vmatpush.bf16.msra.mxu1 %v3070_v21  ;;  %3109 = vmatpush.bf16.msra.mxu3 %v3070_v21  ;;  %v3741_v21 = vpack.c.bf16 %v795_v9, %v794_v6  ;;  %v3761_v9 = vpack.c.bf16 %v797_v63, %v796_v58 }
  0x68   : > { %5537 = vst [vmem:[#allocation13_spill] sm:$0xff] %v3741_v21 }
  0x69   : > { %1071 = vmatmul.bf16.vlgmr.msra.gmra.mxu1 %v806_v33  ;;  %1111 = vmatmul.bf16.vlgmr.msra.gmra.mxu3 %v3462_v18  ;;  %v573_v18 = vmul.f32 %v3437_v4, %v537_v55  ;;  %v610_v55 = vadd.f32 %v3449_v10, %v574_v51  ;;  %5538 = vst [vmem:[#allocation14_spill] sm:$0xff] %v3761_v9 }
  0x6b   : > { %974 = vmatmul.bf16.gmra.mxu2 %v3504_v56  ;;  %v609_v5 = vadd.f32 %v3449_v10, %v573_v18  ;;  %v642_v18 = vmax.f32 %v610_v55, 0.0 }
  0x6d   : > { %v641_v12 = vmax.f32 %v609_v5, 0.0 }
  0x6f   : > { %v807_v13 = vpack.c.bf16 %v641_v12, %v640_v11  ;;  %v694_v11 = vld [vmem:[%s3553_s25 + $0xc0] sm:$0xff]  ;;  %v695_v12 = vld [vmem:[%s3553_s25 + $0xc8] sm:$0xff] }
  0x70   : > { %v731_v23 = vmul.f32 %v3560_v30, %v695_v12 }
  0x71   : > { %919 = vmatmul.bf16.gmra.mxu0 %v807_v13 }
  0x79   : > { %1076 = vmatmul.bf16.gmra.mxu1 %v807_v13  ;;  %1116 = vmatmul.bf16.gmra.mxu3 %v3471_v27  ;;  %v575_v27 = vmul.f32 %v3437_v4, %v539_v40  ;;  %v730_v13 = vmul.f32 %v3560_v30, %v694_v11  ;;  %v767_v40 = vadd.f32 %v3570_v35, %v731_v23  ;;  %v697_v11 = vld [vmem:[%s3553_s25 + $0xd8] sm:$0xff] }
  0x7b   : > { %979 = vmatmul.bf16.gmra.mxu2 %v3519_v3  ;;  %v611_v57 = vadd.f32 %v3449_v10, %v575_v27  ;;  %v766_v39 = vadd.f32 %v3570_v35, %v730_v13  ;;  %v799_v55 = vmax.f32 %v767_v40, 0.0  ;;  %v733_v13 = vmul.f32 %v3560_v30, %v697_v11  ;;  %v698_v11 = vld [vmem:[%s3553_s25 + $0xe0] sm:$0xff] }
  0x7d   : > { %v643_v2 = vmax.f32 %v611_v57, 0.0  ;;  %v798_v27 = vmax.f32 %v766_v39, 0.0  ;;  %v644_v57 = vmax.f32 %v612_v48, 0.0  ;;  %v769_v40 = vadd.f32 %v3570_v35, %v733_v13 }
  0x7e   : > { %v734_v13 = vmul.f32 %v3560_v30, %v698_v11 }
  0x7f   : > { %v808_v5 = vpack.c.bf16 %v643_v2, %v642_v18  ;;  %v3781_v2 = vpack.c.bf16 %v799_v55, %v798_v27  ;;  %v801_v27 = vmax.f32 %v769_v40, 0.0  ;;  %v545_v40 = vld [vmem:[%s3432_s17 + $0x58] sm:$0xff] }
  0x81   : > { %924 = vmatmul.bf16.gmra.mxu0 %v808_v5  ;;  %5539 = vst [vmem:[#allocation15_spill] sm:$0xff] %v3781_v2 }
  0x89   : > { %1081 = vmatmul.bf16.gmra.mxu1 %v808_v5  ;;  %1121 = vmatmul.bf16.gmra.mxu3 %v3480_v36  ;;  %v577_v36 = vmul.f32 %v3437_v4, %v541_v26  ;;  %v696_v5 = vld [vmem:[%s3553_s25 + $0xd0] sm:$0xff]  ;;  %v543_v26 = vld [vmem:[%s3432_s17 + $0x48] sm:$0xff] }
  0x8a   : > { %v732_v12 = vmul.f32 %v3560_v30, %v696_v5 }
  0x8b   : > { %984 = vmatmul.bf16.gmra.mxu2 %v3540_v19  ;;  %v613_v51 = vadd.f32 %v3449_v10, %v577_v36  ;;  %v614_v36 = vadd.f32 %v3449_v10, %v578_v42  ;;  %v770_v42 = vadd.f32 %v3570_v35, %v734_v13 }
  0x8c   : > { %v768_v39 = vadd.f32 %v3570_v35, %v732_v12  ;;  %v699_v12 = vld [vmem:[%s3553_s25 + $0xe8] sm:$0xff] }
  0x8d   : > { %v645_v58 = vmax.f32 %v613_v51, 0.0  ;;  %v646_v55 = vmax.f32 %v614_v36, 0.0  ;;  %v735_v25 = vmul.f32 %v3560_v30, %v699_v12 }
  0x8e   : > { %v800_v51 = vmax.f32 %v768_v39, 0.0  ;;  %v544_v39 = vld [vmem:[%s3432_s17 + $0x50] sm:$0xff] }
  0x8f   : > { %v809_v63 = vpack.c.bf16 %v645_v58, %v644_v57  ;;  %v580_v36 = vmul.f32 %v3437_v4, %v544_v39  ;;  %v701_v39 = vld [vmem:[%s3553_s25 + $0xf8] sm:$0xff] }
  0x90   : > { %v3801_v5 = vpack.c.bf16 %v801_v27, %v800_v51  ;;  %v802_v27 = vmax.f32 %v770_v42, 0.0  ;;  %v737_v42 = vmul.f32 %v3560_v30, %v701_v39 }
  0x91   : > { %929 = vmatmul.bf16.gmra.mxu0 %v809_v63 }
  0x92   : > { %5540 = vst [vmem:[#allocation16_spill] sm:$0xff] %v3801_v5 }
  0x99   : > { %1086 = vmatmul.bf16.gmra.mxu1 %v809_v63  ;;  %1126 = vmatmul.bf16.gmra.mxu3 %v3492_v46  ;;  %v579_v46 = vmul.f32 %v3437_v4, %v543_v26 }
  0x9b   : > { %989 = vmatmul.bf16.gmra.mxu2 %v3555_v29  ;;  %v615_v48 = vadd.f32 %v3449_v10, %v579_v46  ;;  %v771_v46 = vadd.f32 %v3570_v35, %v735_v25  ;;  %v700_v25 = vld [vmem:[%s3553_s25 + $0xf0] sm:$0xff]  ;;  %s5070_s25 = scalar_lea.vmem %s5426_s14, %s3423_s27 }
  0x9d   : > { %v647_v57 = vmax.f32 %v615_v48, 0.0  ;;  %v616_v48 = vadd.f32 %v3449_v10, %v580_v36  ;;  %v546_v36 = vld [vmem:[%s3432_s17 + $0x60] sm:$0xff] }
  0x9f   : > { %v810_v58 = vpack.c.bf16 %v647_v57, %v646_v55  ;;  %v803_v55 = vmax.f32 %v771_v46, 0.0  ;;  %v648_v57 = vmax.f32 %v616_v48, 0.0 }
  0xa1   : > { %934 = vmatmul.bf16.gmra.mxu0 %v810_v58  ;;  %v3819_v13 = vpack.c.bf16 %v803_v55, %v802_v27  ;;  %v582_v27 = vmul.f32 %v3437_v4, %v546_v36 }
  0xa3   : > { %5541 = vst [vmem:[#allocation17_spill] sm:$0xff] %v3819_v13 }
  0xa9   : > { %1091 = vmatmul.bf16.gmra.mxu1 %v810_v58  ;;  %1131 = vmatmul.bf16.gmra.mxu3 %v3504_v56  ;;  %v581_v56 = vmul.f32 %v3437_v4, %v545_v40  ;;  %v736_v40 = vmul.f32 %v3560_v30, %v700_v25 }
  0xab   : > { %1228 = vmatmul.bf16.vlgmr.msrb.gmra.mxu2 %v3574_v41  ;;  %v617_v51 = vadd.f32 %v3449_v10, %v581_v56  ;;  %v547_v56 = vld [vmem:[%s3432_s17 + $0x68] sm:$0xff]  ;;  %v772_v48 = vadd.f32 %v3570_v35, %v736_v40  ;;  %v548_v40 = vld [vmem:[%s3432_s17 + $0x70] sm:$0xff] }
  0xac   : > { %v583_v55 = vmul.f32 %v3437_v4, %v547_v56  ;;  %v584_v36 = vmul.f32 %v3437_v4, %v548_v40 }
  0xad   : > { %v649_v58 = vmax.f32 %v617_v51, 0.0  ;;  %v773_v51 = vadd.f32 %v3570_v35, %v737_v42  ;;  %v549_v42 = vld [vmem:[%s3432_s17 + $0x78] sm:$0xff] }
  0xae   : > { %v3581_v47 = vpop.f32.mrf.mxu2  ;;  %v585_v56 = vmul.f32 %v3437_v4, %v549_v42 }
  0xaf   : > { %v811_v11 = vpack.c.bf16 %v649_v58, %v648_v57  ;;  %v619_v57 = vadd.f32 %v3449_v10, %v583_v55  ;;  %v804_v58 = vmax.f32 %v772_v48, 0.0  ;;  %v620_v48 = vadd.f32 %v3449_v10, %v584_v36 }
  0xb1   : > { %939 = vmatmul.bf16.gmra.mxu0 %v811_v11  ;;  %v651_v25 = vmax.f32 %v619_v57, 0.0 }
  0xb6   : > { %v3585_v52 = vpop.f32.mrf.mxu2 }
  0xb9   : > { %1096 = vmatmul.bf16.gmra.mxu1 %v811_v11  ;;  %1136 = vmatmul.bf16.gmra.mxu3 %v3519_v3  ;;  %v618_v3 = vadd.f32 %v3449_v10, %v582_v27  ;;  %v805_v11 = vmax.f32 %v773_v51, 0.0  ;;  %v621_v51 = vadd.f32 %v3449_v10, %v585_v56  ;;  %v652_v27 = vmax.f32 %v620_v48, 0.0 }
  0xbb   : > { %1233 = vmatmul.bf16.gmra.mxu2 %v3587_v53  ;;  %v650_v30 = vmax.f32 %v618_v3, 0.0  ;;  %v653_v55 = vmax.f32 %v621_v51, 0.0  ;;  %v3848_v3 = vld [vmem:[%s5421_s9] ss:$0 sm:$0xff] }
  0xbd   : > { %v812_v39 = vpack.c.bf16 %v651_v25, %v650_v30 }
  0xbe   : > { %v3594_v59 = vpop.f32.mrf.mxu2 }
  0xc1   : > { %944 = vmatmul.bf16.gmra.mxu0 %v812_v39 }
  0xc6   : > { %v3598_v0 = vpop.f32.mrf.mxu2 }
  0xc9   : > { %1101 = vmatmul.bf16.gmra.mxu1 %v812_v39  ;;  %1141 = vmatmul.bf16.gmra.mxu3 %v3540_v19  ;;  %v813_v19 = vpack.c.bf16 %v653_v55, %v652_v27 }
  0xcb   : > { %1238 = vmatmul.bf16.gmra.mxu2 %v3600_v1 }
  0xce   : > { %v3607_v8 = vpop.f32.mrf.mxu2 }
  0xd1   : > { %949 = vmatmul.bf16.gmra.mxu0 %v813_v19 }
  0xd2   : > { %v915_v48 = vpop.f32.mrf.mxu0 }
  0xd6   : > { %v3611_v14 = vpop.f32.mrf.mxu2 }
  0xd9   : > { %1106 = vmatmul.bf16.gmra.mxu1 %v813_v19  ;;  %1146 = vmatmul.bf16.gmra.mxu3 %v3555_v29 }
  0xdb   : > { %1243 = vmatmul.bf16.gmra.mxu2 %v3613_v15 }
  0xde   : > { %v3620_v22 = vpop.f32.mrf.mxu2 }
  0xe6   : > { %v3624_v28 = vpop.f32.mrf.mxu2  ;;  %v3874_v42 = vpop.f32.mrf.mxu1 }
  0xeb   : > { %1248 = vmatmul.bf16.gmra.mxu2 %v3626_v31 }
  0xee   : > { %v3633_v38 = vpop.f32.mrf.mxu2  ;;  %v3889_v51 = vpop.f32.mrf.mxu1 }
  0xef   : > { %5526 = vst [vmem:[#allocation2_spill] sm:$0xff] %v3633_v38 }
  0xf6   : > { %v3637_v44 = vpop.f32.mrf.mxu2 }
  0xf7   : > { %5527 = vst [vmem:[#allocation3_spill] sm:$0xff] %v3637_v44 }
  0xfb   : > { %1253 = vmatmul.bf16.gmra.mxu2 %v3639_v45 }
  0xfe   : > { %v3646_v54 = vpop.f32.mrf.mxu2 }
  0xff   : > { %5528 = vst [vmem:[#allocation4_spill] sm:$0xff] %v3646_v54 }
 0x106   : > { %v3650_v61 = vpop.f32.mrf.mxu2 }
 0x107   : > { %5529 = vst [vmem:[#allocation5_spill] sm:$0xff] %v3650_v61 }
 0x10b   : > { %1258 = vmatmul.bf16.gmra.mxu2 %v3652_v62 }
 0x10e   : > { %v3659_v7 = vpop.f32.mrf.mxu2 }
 0x10f   : > { %5530 = vst [vmem:[#allocation6_spill] sm:$0xff] %v3659_v7 }
 0x116   : > { %v3663_v16 = vpop.f32.mrf.mxu2 }
 0x117   : > { %5531 = vst [vmem:[#allocation7_spill] sm:$0xff] %v3663_v16 }
 0x11b   : > { %1263 = vmatmul.bf16.gmra.mxu2 %v3668_v20 }
 0x11e   : > { %v3678_v32 = vpop.f32.mrf.mxu2 }
 0x11f   : > { %5533 = vst [vmem:[#allocation9_spill] sm:$0xff] %v3678_v32 }
 0x126   : > { %v3688_v43 = vpop.f32.mrf.mxu2 }
 0x127   : > { %5534 = vst [vmem:[#allocation10_spill] sm:$0xff] %v3688_v43 }
 0x12b   : > { %1268 = vmatmul.bf16.gmra.mxu2 %v3693_v49 }
 0x12e   : > { %v3703_v60 = vpop.f32.mrf.mxu2 }
 0x136   : > { %v3719_v34 = vpop.f32.mrf.mxu2 }
 0x13b   : > { %1273 = vmatmul.bf16.gmra.mxu2 %v3721_v37 }
 0x13e   : > { %v3729_v50 = vpop.f32.mrf.mxu2 }
 0x146   : > { %v3739_v17 = vpop.f32.mrf.mxu2 }
 0x14b   : > { %1278 = vmatmul.bf16.gmra.mxu2 %v3741_v21 }
 0x14e   : > { %v3749_v33 = vpop.f32.mrf.mxu2 }
 0x156   : > { %v3759_v6 = vpop.f32.mrf.mxu2 }
 0x15b   : > { %1283 = vmatmul.bf16.gmra.mxu2 %v3761_v9 }
 0x15e   : > { %v3769_v24 = vpop.f32.mrf.mxu2 }
 0x166   : > { %v3779_v18 = vpop.f32.mrf.mxu2 }
 0x167   : > { %v3901_v19 = vadd.f32 %v3848_v3, %v3779_v18 }
 0x169   : > { %5551 = vst [vmem:[#allocation27_spill] sm:$0xff] %v3901_v19 }
 0x16b   : > { %1288 = vmatmul.bf16.gmra.mxu2 %v3781_v2 }
 0x16e   : > { %v3789_v23 = vpop.f32.mrf.mxu2 }
 0x16f   : > { %v3893_v27 = vadd.f32 %v3848_v3, %v3789_v23 }
 0x171   : > { %5550 = vst [vmem:[#allocation26_spill] sm:$0xff] %v3893_v27 }
 0x176   : > { %v3799_v63 = vpop.f32.mrf.mxu2 }
 0x177   : > { %v3886_v56 = vadd.f32 %v3848_v3, %v3799_v63 }
 0x179   : > { %5549 = vst [vmem:[#allocation25_spill] sm:$0xff] %v3886_v56  ;;  %v1486_v55 = vpack.c.bf16 %v3886_v56, %v3893_v27 }
 0x17b   : > { %1293 = vmatmul.bf16.gmra.mxu2 %v3801_v5  ;;  %v3835_v5 = vpack.c.bf16 %v805_v11, %v804_v58  ;;  %v1560_v63 = vsel %vm1498_vm0, %v1486_v55, 0 }
 0x17d   : > { %5542 = vst [vmem:[#allocation18_spill] sm:$0xff] %v3835_v5 }
 0x17e   : > { %v3809_v26 = vpop.f32.mrf.mxu2 }
 0x186   : > { %v1256_v12 = vpop.f32.mrf.mxu2 }
 0x187   : > { %v3871_v29 = vadd.f32 %v3848_v3, %v1256_v12 }
 0x189   : > { %5547 = vst [vmem:[#allocation23_spill] sm:$0xff] %v3871_v29 }
 0x18b   : > { %1298 = vmatmul.bf16.gmra.mxu2 %v3819_v13 }
 0x18e   : > { %v1259_v46 = vpop.f32.mrf.mxu2 }
 0x18f   : > { %v3864_v25 = vadd.f32 %v3848_v3, %v1259_v46 }
 0x191   : > { %5546 = vst [vmem:[#allocation22_spill] sm:$0xff] %v3864_v25 }
 0x196   : > { %v1261_v13 = vpop.f32.mrf.mxu2 }
 0x197   : > { %v3860_v10 = vadd.f32 %v3848_v3, %v1261_v13  ;;  %v3878_v13 = vadd.f32 %v3848_v3, %v3809_v26 }
 0x199   : > { %5545 = vst [vmem:[#allocation21_spill] sm:$0xff] %v3860_v10  ;;  %v1487_v46 = vpack.c.bf16 %v3871_v29, %v3878_v13 }
 0x19a   : > { %5548 = vst [vmem:[#allocation24_spill] sm:$0xff] %v3878_v13  ;;  %v3962_v13 = vld [vmem:[%s5419_s7] ss:$0 sm:$0xff] }
 0x19b   : > { %1303 = vmatmul.bf16.gmra.mxu2 %v3835_v5  ;;  %v1563_v12 = vsel %vm1498_vm0, %v1487_v46, 0 }
 0x19e   : > { %v1264_v35 = vpop.f32.mrf.mxu2 }
 0x19f   : > { %v3851_v58 = vadd.f32 %v3848_v3, %v1264_v35  ;;  %v1488_v35 = vpack.c.bf16 %v3860_v10, %v3864_v25  ;;  %v3946_v25 = vadd.f32 %v3848_v3, %v3719_v34 }
 0x1a1   : > { %5543 = vst [vmem:[#allocation19_spill] sm:$0xff] %v3851_v58  ;;  %v1566_v40 = vsel %vm1498_vm0, %v1488_v35, 0 }
 0x1a2   : > { %5557 = vst [vmem:[#allocation33_spill] sm:$0xff] %v3946_v25 }
 0x1a6   : > { %v1266_v57 = vpop.f32.mrf.mxu2 }
 0x1a7   : > { %v3854_v11 = vadd.f32 %v3848_v3, %v1266_v57  ;;  %v917_v57 = vpop.f32.mrf.mxu0 }
 0x1a8   : > { %v3969_v56 = vadd.f32 %v3962_v13, %v917_v57 }
 0x1a9   : > { %5544 = vst [vmem:[#allocation20_spill] sm:$0xff] %v3854_v11  ;;  %v1489_v4 = vpack.c.bf16 %v3854_v11, %v3851_v58  ;;  %v3931_v11 = vadd.f32 %v3848_v3, %v3739_v17 }
 0x1aa   : > { %5560 = vst [vmem:[#allocation36_spill] sm:$0xff] %v3969_v56 }
 0x1ab   : > { %v1569_v30 = vsel %vm1498_vm0, %v1489_v4, 0  ;;  %v3904_v4 = vpop.f32.mrf.mxu1  ;;  %5555 = vst [vmem:[#allocation31_spill] sm:$0xff] %v3931_v11 }
 0x1ac   : > { %1595 = vmatpush.bf16.xpose.msrb.mxu0 %v1569_v30  ;;  %v3908_v30 = vadd.f32 %v3848_v3, %v3769_v24 }
 0x1ae   : > { %v3866_v39 = vpop.f32.mrf.mxu2  ;;  %5552 = vst [vmem:[#allocation28_spill] sm:$0xff] %v3908_v30  ;;  %v1485_v35 = vpack.c.bf16 %v3901_v19, %v3908_v30 }
 0x1af   : > { %v920_v55 = vpop.f32.mrf.mxu0 }
 0x1b0   : > { %v1557_v18 = vsel %vm1498_vm0, %v1485_v35, 0 }
 0x1b3   : > { %v3919_v46 = vpop.f32.mrf.mxu1 }
 0x1b4   : > { %1596 = vmatpush.bf16.xpose.msrb.mxu0 %v1566_v40  ;;  %v3916_v40 = vadd.f32 %v3848_v3, %v3759_v6 }
 0x1b6   : > { %v3880_v36 = vpop.f32.mrf.mxu2  ;;  %5553 = vst [vmem:[#allocation29_spill] sm:$0xff] %v3916_v40 }
 0x1b7   : > { %v922_v10 = vpop.f32.mrf.mxu0 }
 0x1b8   : > { %v3989_v57 = vadd.f32 %v3962_v13, %v922_v10 }
 0x1ba   : > { %5562 = vst [vmem:[#allocation38_spill] sm:$0xff] %v3989_v57 }
 0x1bb   : > { %v3934_v35 = vpop.f32.mrf.mxu1 }
 0x1bc   : > { %1597 = vmatpush.bf16.xpose.msrb.mxu0 %v1563_v12  ;;  %v3923_v12 = vadd.f32 %v3848_v3, %v3749_v33 }
 0x1be   : > { %v3895_v26 = vpop.f32.mrf.mxu2  ;;  %5554 = vst [vmem:[#allocation30_spill] sm:$0xff] %v3923_v12 }
 0x1bf   : > { %v925_v34 = vpop.f32.mrf.mxu0 }
 0x1c0   : > { %v4006_v10 = vadd.f32 %v3962_v13, %v925_v34 }
 0x1c2   : > { %5563 = vst [vmem:[#allocation39_spill] sm:$0xff] %v4006_v10 }
 0x1c4   : > { %1598 = vmatpush.bf16.xpose.msrb.mxu0 %v1560_v63  ;;  %v1484_v63 = vpack.c.bf16 %v3916_v40, %v3923_v12 }
 0x1c6   : > { %v3910_v23 = vpop.f32.mrf.mxu2  ;;  %v1554_v6 = vsel %vm1498_vm0, %v1484_v63, 0  ;;  %v3949_v63 = vpop.f32.mrf.mxu1 }
 0x1c7   : > { %v927_v30 = vpop.f32.mrf.mxu0 }
 0x1cc   : > { %1599 = vmatpush.bf16.xpose.msrb.mxu0 %v1557_v18  ;;  %v3938_v18 = vadd.f32 %v3848_v3, %v3729_v50 }
 0x1ce   : > { %v3925_v24 = vpop.f32.mrf.mxu2  ;;  %5556 = vst [vmem:[#allocation32_spill] sm:$0xff] %v3938_v18  ;;  %v1483_v58 = vpack.c.bf16 %v3931_v11, %v3938_v18 }
 0x1cf   : > { %v930_v11 = vpop.f32.mrf.mxu0 }
 0x1d0   : > { %v1551_v17 = vsel %vm1498_vm0, %v1483_v58, 0  ;;  %v3965_v58 = vadd.f32 %v3962_v13, %v915_v48  ;;  %v4020_v32 = vadd.f32 %v3962_v13, %v930_v11  ;;  %v3091_v11 = vld [vmem:[%s5424_s12 + $0x28] sm:$0xff] }
 0x1d2   : > { %5559 = vst [vmem:[#allocation35_spill] sm:$0xff] %v3965_v58  ;;  %v3977_v19 = vpack.c.bf16 %v3969_v56, %v3965_v58  ;;  %v4009_v56 = vadd.f32 %v3962_v13, %v927_v30  ;;  %v3093_v30 = vld [vmem:[%s5424_s12 + $0x38] sm:$0xff] }
 0x1d3   : > { %5565 = vst [vmem:[#allocation41_spill] sm:$0xff] %v4020_v32  ;;  %1377 = vmatpush.bf16.msrb.mxu3 %v3093_v30  ;;  %v3090_v30 = vld [vmem:[%s5424_s12 + $0x20] sm:$0xff] }
 0x1d4   : > { %1600 = vmatpush.bf16.xpose.msrb.mxu0 %v1554_v6  ;;  %v3953_v6 = vadd.f32 %v3848_v3, %v3703_v60  ;;  %v3971_v60 = vpop.f32.mrf.mxu1  ;;  %5564 = vst [vmem:[#allocation40_spill] sm:$0xff] %v4009_v56 }
 0x1d6   : > { %v3940_v33 = vpop.f32.mrf.mxu2  ;;  %5558 = vst [vmem:[#allocation34_spill] sm:$0xff] %v3953_v6  ;;  %v1482_v29 = vpack.c.bf16 %v3946_v25, %v3953_v6 }
 0x1dc   : > { %1601 = vmatpush.bf16.xpose.msrb.mxu0 %v1551_v17  ;;  %v1548_v17 = vsel %vm1498_vm0, %v1482_v29, 0  ;;  %v3981_v48 = vpop.f32.mrf.mxu1  ;;  %v3986_v29 = vadd.f32 %v3962_v13, %v920_v55  ;;  %v932_v55 = vpop.f32.mrf.mxu0 }
 0x1dd   : > { %v4023_v34 = vadd.f32 %v3962_v13, %v932_v55 }
 0x1de   : > { %v3955_v50 = vpop.f32.mrf.mxu2  ;;  %5561 = vst [vmem:[#allocation37_spill] sm:$0xff] %v3986_v29  ;;  %v3997_v18 = vpack.c.bf16 %v3989_v57, %v3986_v29  ;;  %v4015_v57 = vpack.c.bf16 %v4009_v56, %v4006_v10  ;;  %v3092_v56 = vld [vmem:[%s5424_s12 + $0x30] sm:$0xff] }
 0x1df   : > { %5566 = vst [vmem:[#allocation42_spill] sm:$0xff] %v4023_v34  ;;  %v4033_v7 = vpack.c.bf16 %v4023_v34, %v4020_v32  ;;  %1378 = vmatpush.bf16.msrb.mxu3 %v3092_v56  ;;  %v3089_v32 = vld [vmem:[%s5424_s12 + $0x18] sm:$0xff] }
 0x1e3   : > { %1379 = vmatpush.bf16.msrb.mxu3 %v3091_v11  ;;  %v3088_v11 = vld [vmem:[%s5424_s12 + $0x10] sm:$0xff] }
 0x1e4   : > { %1602 = vmatpush.bf16.xpose.msrb.mxu0 %v1548_v17  ;;  %v3991_v17 = vpop.f32.mrf.mxu1  ;;  %v935_v29 = vpop.f32.mrf.mxu0 }
 0x1e5   : > { %v4044_v34 = vadd.f32 %v3962_v13, %v935_v29 }
 0x1e6   : > { %v3973_v27 = vpop.f32.mrf.mxu2 }
 0x1e7   : > { %1380 = vmatpush.bf16.msrb.mxu3 %v3090_v30  ;;  %5567 = vst [vmem:[#allocation43_spill] sm:$0xff] %v4044_v34 }
 0x1eb   : > { %3028 = vmatmul.msk.bf16.vlgmr.msrb.gmra.mxu0 %vm1498_vm0, %v3977_v19  ;;  %1381 = vmatpush.bf16.msrb.mxu3 %v3089_v32  ;;  %v4068_v32 = vld [vmem:[%s5423_s11] ss:$0 sm:$0xff] }
 0x1ec   : > { %v4001_v25 = vpop.f32.mrf.mxu1  ;;  %v937_v43 = vpop.f32.mrf.mxu0 }
 0x1ed   : > { %v4047_v56 = vadd.f32 %v3962_v13, %v937_v43 }
 0x1ee   : > { %v3983_v40 = vpop.f32.mrf.mxu2 }
 0x1ef   : > { %5568 = vst [vmem:[#allocation44_spill] sm:$0xff] %v4047_v56  ;;  %v4060_v29 = vpack.c.bf16 %v4047_v56, %v4044_v34  ;;  %1382 = vmatpush.bf16.msrb.mxu3 %v3088_v11 }
 0x1f1   : > { %5570 = vst [vmem:[#allocation46_spill] sm:$0xff] %v4060_v29 }
 0x1f4   : > { %v4011_v58 = vpop.f32.mrf.mxu1  ;;  %v940_v37 = vpop.f32.mrf.mxu0 }
 0x1f5   : > { %v4097_v20 = vadd.f32 %v3962_v13, %v940_v37 }
 0x1f6   : > { %v3993_v12 = vpop.f32.mrf.mxu2 }
 0x1f7   : > { %5575 = vst [vmem:[#allocation51_spill] sm:$0xff] %v4097_v20 }
 0x1fb   : > { %3029 = vmatmul.msk.bf16.gmra.mxu0 %vm1498_vm0, %v3997_v18 }
 0x1fc   : > { %v1099_v2 = vpop.f32.mrf.mxu1  ;;  %v942_v30 = vpop.f32.mrf.mxu0 }
 0x1fd   : > { %v1100_v37 = vadd.f32 %v4068_v32, %v1099_v2  ;;  %v1095_v2 = vadd.f32 %v4068_v32, %v4001_v25 }
 0x1fe   : > { %v4003_v6 = vpop.f32.mrf.mxu2 }
 0x204   : > { %v1102_v21 = vpop.f32.mrf.mxu1 }
 0x206   : > { %v1296_v5 = vpop.f32.mrf.mxu2 }
 0x20b   : > { %3030 = vmatmul.msk.bf16.gmra.mxu0 %vm1498_vm0, %v4015_v57 }
 0x20c   : > { %v1104_v55 = vpop.f32.mrf.mxu1 }
 0x20e   : > { %v1299_v9 = vpop.f32.mrf.mxu2 }
 0x20f   : > { %v4082_v44 = vadd.f32 %v3848_v3, %v1299_v9  ;;  %v4094_v9 = vadd.f32 %v3848_v3, %v1296_v5  ;;  %v1098_v5 = vadd.f32 %v4068_v32, %v4011_v58  ;;  %v1090_v58 = vadd.f32 %v4068_v32, %v3981_v48 }
 0x210   : > { %v4137_v48 = vadd.f32 %v3848_v3, %v3983_v40 }
 0x211   : > { %5573 = vst [vmem:[#allocation49_spill] sm:$0xff] %v4082_v44 }
 0x212   : > { %5574 = vst [vmem:[#allocation50_spill] sm:$0xff] %v4094_v9 }
 0x213   : > { %5579 = vst [vmem:[#allocation55_spill] sm:$0xff] %v4137_v48 }
 0x214   : > { %v1107_v54 = vpop.f32.mrf.mxu1 }
 0x215   : > { %v1108_v11 = vadd.f32 %v4068_v32, %v1107_v54 }
 0x216   : > { %v1301_v10 = vpop.f32.mrf.mxu2 }
 0x21b   : > { %3031 = vmatmul.msk.bf16.gmra.mxu0 %vm1498_vm0, %v4033_v7 }
 0x21c   : > { %v1109_v34 = vpop.f32.mrf.mxu1 }
 0x21e   : > { %v1304_v16 = vpop.f32.mrf.mxu2 }
 0x21f   : > { %v4056_v49 = vadd.f32 %v3848_v3, %v1304_v16  ;;  %v4073_v16 = vadd.f32 %v3848_v3, %v1301_v10  ;;  %v3086_v10 = vld [vmem:[%s5424_s12] sm:$0xff] }
 0x221   : > { %5569 = vst [vmem:[#allocation45_spill] sm:$0xff] %v4056_v49 }
 0x222   : > { %5572 = vst [vmem:[#allocation48_spill] sm:$0xff] %v4073_v16 }
 0x226   : > { %v1306_v61 = vpop.f32.mrf.mxu2 }
 0x227   : > { %v4063_v43 = vadd.f32 %v3848_v3, %v1306_v61  ;;  %v3087_v61 = vld [vmem:[%s5424_s12 + $0x8] sm:$0xff] }
 0x228   : > { %1383 = vmatpush.bf16.msrb.mxu3 %v3087_v61  ;;  %v945_v61 = vpop.f32.mrf.mxu0 }
 0x229   : > { %5571 = vst [vmem:[#allocation47_spill] sm:$0xff] %v4063_v43  ;;  %v1497_v38 = vpack.c.bf16 %v4063_v43, %v4056_v49  ;;  %v1110_v43 = vadd.f32 %v4068_v32, %v1109_v34  ;;  %v4101_v34 = vadd.f32 %v3962_v13, %v942_v30  ;;  %v4127_v30 = vadd.f32 %v3848_v3, %v3993_v12 }
 0x22a   : > { %v1083_v12 = vadd.f32 %v4068_v32, %v3934_v35  ;;  %v1080_v35 = vadd.f32 %v4068_v32, %v3919_v46  ;;  %v4168_v46 = vadd.f32 %v3848_v3, %v3955_v50  ;;  %v4182_v50 = vadd.f32 %v3848_v3, %v3940_v33 }
 0x22b   : > { %3032 = vmatmul.msk.bf16.gmra.mxu0 %vm1498_vm0, %v4060_v29  ;;  %v1593_v56 = vsel %vm1498_vm0, %v1497_v38, 0  ;;  %v1496_v38 = vpack.c.bf16 %v4073_v16, %v4082_v44  ;;  %v2518_v49 = vpack.c.bf16 %v1110_v43, %v1108_v11  ;;  %v1105_v29 = vadd.f32 %v4068_v32, %v1104_v55  ;;  %5576 = vst [vmem:[#allocation52_spill] sm:$0xff] %v4101_v34 }
 0x22c   : > { %1684 = vmatpush.bf16.xpose.msrb.mxu1 %v1593_v56  ;;  %1384 = vmatpush.bf16.msrb.mxu3 %v3086_v10  ;;  %v1103_v56 = vadd.f32 %v4068_v32, %v1102_v21  ;;  %v1112_v21 = vpop.f32.mrf.mxu3  ;;  %v4113_v55 = vpack.c.bf16 %v4101_v34, %v4097_v20  ;;  %v2516_v43 = vpack.c.bf16 %v1100_v37, %v1098_v5 }
 0x22d   : > { %2575 = vmatpush.bf16.msra.mxu0 %v2518_v49  ;;  %v1590_v54 = vsel %vm1498_vm0, %v1496_v38, 0  ;;  %v4106_v49 = vadd.f32 %v3848_v3, %v4003_v6  ;;  %v1088_v6 = vadd.f32 %v4068_v32, %v3971_v60  ;;  %5578 = vst [vmem:[#allocation54_spill] sm:$0xff] %v4127_v30  ;;  %v1085_v11 = vadd.f32 %v4068_v32, %v3949_v63 }
 0x22e   : > { %v2517_v16 = vpack.c.bf16 %v1105_v29, %v1103_v56  ;;  %v4156_v63 = vadd.f32 %v3848_v3, %v3973_v27  ;;  %v4159_v37 = vadd.f32 %v3962_v13, %v945_v61  ;;  %5583 = vst [vmem:[#allocation59_spill] sm:$0xff] %v4168_v46  ;;  %v1073_v27 = vadd.f32 %v4068_v32, %v3874_v42 }
 0x22f   : > { %1385 = vmatmul.bf16.vlgmr.msrb.gmra.mxu3 %v3574_v41  ;;  %5577 = vst [vmem:[#allocation53_spill] sm:$0xff] %v4106_v49  ;;  %v1495_v29 = vpack.c.bf16 %v4094_v9, %v4106_v49  ;;  %v1093_v41 = vadd.f32 %v4068_v32, %v3991_v17  ;;  %v2514_v38 = vpack.c.bf16 %v1090_v58, %v1088_v6 }
 0x230   : > { %v947_v25 = vpop.f32.mrf.mxu0  ;;  %v2513_v5 = vpack.c.bf16 %v1085_v11, %v1083_v12  ;;  %5580 = vst [vmem:[#allocation56_spill] sm:$0xff] %v4156_v63  ;;  %v1075_v61 = vadd.f32 %v4068_v32, %v3889_v51  ;;  %v4203_v11 = vadd.f32 %v3848_v3, %v3910_v23 }
 0x231   : > { %2576 = vmatpush.bf16.msra.mxu0 %v2517_v16  ;;  %v1587_v17 = vsel %vm1498_vm0, %v1495_v29, 0  ;;  %v4133_v16 = vadd.f32 %v4068_v32, %v1112_v21  ;;  %v2515_v60 = vpack.c.bf16 %v1095_v2, %v1093_v41  ;;  %v1078_v21 = vadd.f32 %v4068_v32, %v3904_v4  ;;  %5581 = vst [vmem:[#allocation57_spill] sm:$0xff] %v4159_v37 }
 0x232   : > { %v4163_v41 = vadd.f32 %v3962_v13, %v947_v25  ;;  %v2511_v2 = vpack.c.bf16 %v1075_v61, %v1073_v27  ;;  %5584 = vst [vmem:[#allocation60_spill] sm:$0xff] %v4182_v50  ;;  %v4235_v27 = vadd.f32 %v3848_v3, %v3866_v39 }
 0x233   : > { %5586 = vst [vmem:[#allocation62_spill] sm:$0xff] %v4203_v11 }
 0x234   : > { %1685 = vmatpush.bf16.xpose.msrb.mxu1 %v1590_v54  ;;  %v1114_v10 = vpop.f32.mrf.mxu3  ;;  %v1494_v54 = vpack.c.bf16 %v4127_v30, %v4137_v48  ;;  %5582 = vst [vmem:[#allocation58_spill] sm:$0xff] %v4163_v41  ;;  %v4176_v58 = vpack.c.bf16 %v4163_v41, %v4159_v37  ;;  %v5606_v48 = vld [vmem:[#allocation11_spill] sm:$0xff] }
 0x235   : > { %2577 = vmatpush.bf16.msra.mxu0 %v2516_v43  ;;  %v4144_v56 = vadd.f32 %v4068_v32, %v1114_v10  ;;  %v2512_v43 = vpack.c.bf16 %v1080_v35, %v1078_v21  ;;  %v4215_v35 = vadd.f32 %v3848_v3, %v3895_v26  ;;  %5591 = vst [vmem:[#allocation67_spill] sm:$0xff] %v4235_v27 }
 0x236   : > { %v1584_v29 = vsel %vm1498_vm0, %v1494_v54, 0 }
 0x237   : > { %5589 = vst [vmem:[#allocation65_spill] sm:$0xff] %v4215_v35 }
 0x238   : > { %v950_v6 = vpop.f32.mrf.mxu0 }
 0x239   : > { %2578 = vmatpush.bf16.msra.mxu0 %v2515_v60  ;;  %v4192_v60 = vadd.f32 %v3848_v3, %v3925_v24 }
 0x23b   : > { %3033 = vmatmul.msk.bf16.gmra.mxu0 %vm1498_vm0, %v4113_v55  ;;  %5585 = vst [vmem:[#allocation61_spill] sm:$0xff] %v4192_v60  ;;  %v1492_v33 = vpack.c.bf16 %v4182_v50, %v4192_v60 }
 0x23c   : > { %1686 = vmatpush.bf16.xpose.msrb.mxu1 %v1587_v17  ;;  %v1117_v4 = vpop.f32.mrf.mxu3 }
 0x23d   : > { %2579 = vmatpush.bf16.msra.mxu0 %v2514_v38  ;;  %v4188_v51 = vadd.f32 %v4068_v32, %v1117_v4  ;;  %v4206_v38 = vadd.f32 %v3962_v13, %v950_v6  ;;  %v1578_v24 = vsel %vm1498_vm0, %v1492_v33, 0  ;;  %v4273_v33 = vadd.f32 %v3962_v13, %v3598_v0 }
 0x23e   : > { %v4290_v0 = vadd.f32 %v3962_v13, %v3611_v14  ;;  %v4307_v14 = vadd.f32 %v3962_v13, %v3624_v28  ;;  %v5600_v28 = vld [vmem:[#allocation8_spill] sm:$0xff] }
 0x23f   : > { %1390 = vmatmul.bf16.gmra.mxu3 %v3587_v53  ;;  %v1493_v53 = vpack.c.bf16 %v4156_v63, %v4168_v46  ;;  %5587 = vst [vmem:[#allocation63_spill] sm:$0xff] %v4206_v38 }
 0x240   : > { %v952_v12 = vpop.f32.mrf.mxu0  ;;  %5594 = vst [vmem:[#allocation70_spill] sm:$0xff] %v4273_v33 }
 0x241   : > { %2580 = vmatpush.bf16.msra.mxu0 %v2513_v5  ;;  %v1581_v42 = vsel %vm1498_vm0, %v1493_v53, 0  ;;  %v4210_v54 = vadd.f32 %v3962_v13, %v952_v12  ;;  %v1491_v5 = vpack.c.bf16 %v4203_v11, %v4215_v35  ;;  %5596 = vst [vmem:[#allocation72_spill] sm:$0xff] %v4290_v0 }
 0x242   : > { %5598 = vst [vmem:[#allocation74_spill] sm:$0xff] %v4307_v14 }
 0x243   : > { %5588 = vst [vmem:[#allocation64_spill] sm:$0xff] %v4210_v54  ;;  %v4219_v23 = vpack.c.bf16 %v4210_v54, %v4206_v38 }
 0x244   : > { %1687 = vmatpush.bf16.xpose.msrb.mxu1 %v1584_v29  ;;  %v1119_v17 = vpop.f32.mrf.mxu3  ;;  %v4225_v29 = vadd.f32 %v3848_v3, %v3880_v36  ;;  %v4252_v3 = vadd.f32 %v3962_v13, %v3581_v47 }
 0x245   : > { %2581 = vmatpush.bf16.msra.mxu0 %v2512_v43  ;;  %v4195_v25 = vadd.f32 %v4068_v32, %v1119_v17 }
 0x246   : > { %5590 = vst [vmem:[#allocation66_spill] sm:$0xff] %v4225_v29  ;;  %v1490_v36 = vpack.c.bf16 %v4225_v29, %v4235_v27 }
 0x247   : > { %5593 = vst [vmem:[#allocation69_spill] sm:$0xff] %v4252_v3 }
 0x248   : > { %v1572_v6 = vsel %vm1498_vm0, %v1490_v36, 0  ;;  %v5601_v36 = vld [vmem:[#allocation3_spill] sm:$0xff] }
 0x249   : > { %2582 = vmatpush.bf16.msra.mxu0 %v2511_v2  ;;  %v4248_v2 = vadd.f32 %v3962_v13, %v3585_v52 }
 0x24b   : > { %3034 = vmatmul.msk.bf16.gmra.mxu0 %vm1498_vm0, %v4176_v58  ;;  %5592 = vst [vmem:[#allocation68_spill] sm:$0xff] %v4248_v2  ;;  %v4256_v39 = vpack.c.bf16 %v4248_v2, %v4252_v3 }
 0x24c   : > { %1688 = vmatpush.bf16.xpose.msrb.mxu1 %v1581_v42  ;;  %v1122_v21 = vpop.f32.mrf.mxu3 }
 0x24d   : > { %v4231_v4 = vadd.f32 %v4068_v32, %v1122_v21 }
 0x24f   : > { %1395 = vmatmul.bf16.gmra.mxu3 %v3600_v1  ;;  %v1575_v1 = vsel %vm1498_vm0, %v1491_v5, 0  ;;  %v4313_v5 = vadd.f32 %v3962_v13, %v3620_v22  ;;  %v4328_v22 = vadd.f32 %v3962_v13, %v5601_v36 }
 0x251   : > { %5599 = vst [vmem:[#allocation75_spill] sm:$0xff] %v4313_v5 }
 0x252   : > { %5602 = vst [vmem:[#allocation8_spill] sm:$0xff] %v4328_v22 }
 0x254   : > { %1689 = vmatpush.bf16.xpose.msrb.mxu1 %v1578_v24  ;;  %v1124_v26 = vpop.f32.mrf.mxu3 }
 0x255   : > { %v4238_v61 = vadd.f32 %v4068_v32, %v1124_v26 }
 0x25b   : > { %3035 = vmatmul.msk.bf16.gmra.mxu0 %vm1498_vm0, %v4219_v23 }
 0x25c   : > { %1690 = vmatpush.bf16.xpose.msrb.mxu1 %v1575_v1  ;;  %v1127_v53 = vpop.f32.mrf.mxu3  ;;  %v4317_v1 = vpack.c.bf16 %v4307_v14, %v4313_v5 }
 0x25f   : > { %1400 = vmatmul.bf16.gmra.mxu3 %v3613_v15  ;;  %v4263_v15 = vadd.f32 %v4068_v32, %v1127_v53 }
 0x264   : > { %1691 = vmatpush.bf16.xpose.msrb.mxu1 %v1572_v6  ;;  %v1129_v42 = vpop.f32.mrf.mxu3  ;;  %v5603_v6 = vld [vmem:[#allocation2_spill] sm:$0xff] }
 0x265   : > { %v4266_v52 = vadd.f32 %v4068_v32, %v1129_v42  ;;  %v4332_v53 = vadd.f32 %v3962_v13, %v5603_v6 }
 0x267   : > { %5604 = vst [vmem:[#allocation3_spill] sm:$0xff] %v4332_v53  ;;  %v4336_v42 = vpack.c.bf16 %v4328_v22, %v4332_v53 }
 0x26b   : > { %3036 = vmatmul.msk.bf16.gmra.mxu0 %vm1498_vm0, %v4256_v39  ;;  %3044 = vmatmul.msk.bf16.vlgmr.msrb.gmra.mxu1 %vm1498_vm0, %v3977_v19  ;;  %v4277_v19 = vadd.f32 %v3962_v13, %v3594_v59  ;;  %v4294_v59 = vadd.f32 %v3962_v13, %v3607_v8  ;;  %v4309_v8 = vpop.f32.mrf.mxu0 }
 0x26c   : > { %v1132_v17 = vpop.f32.mrf.mxu3 }
 0x26d   : > { %5595 = vst [vmem:[#allocation71_spill] sm:$0xff] %v4277_v19  ;;  %v4281_v12 = vpack.c.bf16 %v4273_v33, %v4277_v19  ;;  %v4298_v21 = vpack.c.bf16 %v4290_v0, %v4294_v59 }
 0x26e   : > { %5597 = vst [vmem:[#allocation73_spill] sm:$0xff] %v4294_v59 }
 0x26f   : > { %1405 = vmatmul.bf16.gmra.mxu3 %v3626_v31 }
 0x274   : > { %v1134_v31 = vpop.f32.mrf.mxu3 }
 0x27b   : > { %3037 = vmatmul.msk.bf16.gmra.mxu0 %vm1498_vm0, %v4281_v12  ;;  %3045 = vmatmul.msk.bf16.gmra.mxu1 %vm1498_vm0, %v3997_v18 }
 0x27c   : > { %v1137_v24 = vpop.f32.mrf.mxu3 }
 0x27d   : > { %v1138_v44 = vadd.f32 %v4068_v32, %v1137_v24 }
 0x27f   : > { %1410 = vmatmul.bf16.gmra.mxu3 %v3639_v45 }
 0x284   : > { %v1139_v45 = vpop.f32.mrf.mxu3 }
 0x285   : > { %v1140_v9 = vadd.f32 %v4068_v32, %v1139_v45  ;;  %v5612_v45 = vld [vmem:[#allocation12_spill] sm:$0xff] }
 0x28b   : > { %3038 = vmatmul.msk.bf16.gmra.mxu0 %vm1498_vm0, %v4298_v21  ;;  %3046 = vmatmul.msk.bf16.gmra.mxu1 %vm1498_vm0, %v4015_v57  ;;  %v4323_v57 = vpop.f32.mrf.mxu0 }
 0x28c   : > { %v1142_v18 = vpop.f32.mrf.mxu3 }
 0x28d   : > { %v1143_v10 = vadd.f32 %v4068_v32, %v1142_v18  ;;  %v1133_v18 = vadd.f32 %v4068_v32, %v1132_v17 }
 0x28f   : > { %1415 = vmatmul.bf16.gmra.mxu3 %v3652_v62 }
 0x293   : > { %v4338_v40 = vpop.f32.mrf.mxu0 }
 0x294   : > { %v1144_v62 = vpop.f32.mrf.mxu3 }
 0x295   : > { %v1145_v6 = vadd.f32 %v4068_v32, %v1144_v62  ;;  %v1135_v62 = vadd.f32 %v4068_v32, %v1134_v31  ;;  %v5611_v31 = vpack.c.bf16 %v4266_v52, %v4263_v15 }
 0x297   : > { %v2525_v49 = vpack.c.bf16 %v1145_v6, %v1143_v10 }
 0x29b   : > { %3039 = vmatmul.msk.bf16.gmra.mxu0 %vm1498_vm0, %v4317_v1  ;;  %3047 = vmatmul.msk.bf16.gmra.mxu1 %vm1498_vm0, %v4033_v7  ;;  %v5605_v7 = vld [vmem:[#allocation46_spill] sm:$0xff]  ;;  %v4350_v30 = vpop.f32.mrf.mxu0 }
 0x29c   : > { %v1147_v26 = vpop.f32.mrf.mxu3 }
 0x29f   : > { %1420 = vmatmul.bf16.gmra.mxu3 %v5600_v28  ;;  %v1148_v28 = vadd.f32 %v4068_v32, %v1147_v26 }
 0x2a4   : > { %v1149_v36 = vpop.f32.mrf.mxu3 }
 0x2a5   : > { %v1150_v43 = vadd.f32 %v4068_v32, %v1149_v36  ;;  %v2524_v36 = vpack.c.bf16 %v1140_v9, %v1138_v44  ;;  %v4374_v44 = vld [vmem:[%s5425_s13] ss:$0 sm:$0xff]  ;;  %v4376_v32 = vpop.f32.mrf.mxu0 }
 0x2a7   : > { %v2526_v47 = vpack.c.bf16 %v1150_v43, %v1148_v28  ;;  %v5609_v43 = vld [vmem:[#allocation4_spill] sm:$0xff]  ;;  %v5613_v28 = vld [vmem:[#allocation7_spill] sm:$0xff] }
 0x2a8   : > { %v4361_v24 = vadd.f32 %v3962_v13, %v5609_v43  ;;  %v4392_v6 = vadd.f32 %v3962_v13, %v5613_v28  ;;  %v5618_v43 = vpack.c.bf16 %v4195_v25, %v4188_v51  ;;  %v5620_v25 = vld [vmem:[#allocation13_spill] sm:$0xff]  ;;  %v5626_v51 = vld [vmem:[#allocation15_spill] sm:$0xff] }
 0x2a9   : > { %2664 = vmatpush.bf16.msra.mxu1 %v2526_v47 }
 0x2aa   : > { %5610 = vst [vmem:[#allocation46_spill] sm:$0xff] %v4361_v24 }
 0x2ab   : > { %3040 = vmatmul.msk.bf16.gmra.mxu0 %vm1498_vm0, %v4336_v42  ;;  %3048 = vmatmul.msk.bf16.gmra.mxu1 %vm1498_vm0, %v5605_v7  ;;  %v5607_v7 = vld [vmem:[#allocation5_spill] sm:$0xff]  ;;  %5614 = vst [vmem:[#allocation11_spill] sm:$0xff] %v4392_v6 }
 0x2ac   : > { %v4355_v26 = vadd.f32 %v3962_v13, %v5607_v7  ;;  %v5615_v7 = vpack.c.bf16 %v4238_v61, %v4231_v4  ;;  %v5619_v4 = vpack.c.bf16 %v4144_v56, %v4133_v16  ;;  %v5623_v16 = vld [vmem:[#allocation9_spill] sm:$0xff] }
 0x2ad   : > { %2665 = vmatpush.bf16.msra.mxu1 %v2525_v49  ;;  %v4434_v56 = vadd.f32 %v3962_v13, %v5623_v16 }
 0x2ae   : > { %5608 = vst [vmem:[#allocation2_spill] sm:$0xff] %v4355_v26  ;;  %v4365_v47 = vpack.c.bf16 %v4355_v26, %v4361_v24 }
 0x2af   : > { %1425 = vmatmul.bf16.gmra.mxu3 %v5606_v48  ;;  %v2523_v48 = vpack.c.bf16 %v1135_v62, %v1133_v18  ;;  %v5616_v18 = vld [vmem:[#allocation6_spill] sm:$0xff]  ;;  %5624 = vst [vmem:[#allocation12_spill] sm:$0xff] %v4434_v56 }
 0x2b0   : > { %v4399_v62 = vadd.f32 %v3962_v13, %v5616_v18 }
 0x2b1   : > { %2666 = vmatpush.bf16.msra.mxu1 %v2524_v36  ;;  %v4401_v36 = vpop.f32.mrf.mxu0 }
 0x2b2   : > { %v1386_v10 = vpop.f32.mrf.mxu3  ;;  %5617 = vst [vmem:[#allocation5_spill] sm:$0xff] %v4399_v62  ;;  %v4405_v52 = vpack.c.bf16 %v4392_v6, %v4399_v62 }
 0x2b3   : > { %v4379_v9 = vadd.f32 %v4374_v44, %v1386_v10 }
 0x2b5   : > { %2667 = vmatpush.bf16.msra.mxu1 %v2523_v48 }
 0x2b9   : > { %2668 = vmatpush.bf16.msra.mxu1 %v5611_v31  ;;  %v5621_v31 = vld [vmem:[#allocation10_spill] sm:$0xff] }
 0x2ba   : > { %v1388_v49 = vpop.f32.mrf.mxu3 }
 0x2bb   : > { %3041 = vmatmul.msk.bf16.gmra.mxu0 %vm1498_vm0, %v4365_v47  ;;  %3049 = vmatmul.msk.bf16.gmra.mxu1 %vm1498_vm0, %v4113_v55  ;;  %v4382_v17 = vadd.f32 %v4374_v44, %v1388_v49  ;;  %v4423_v49 = vpop.f32.mrf.mxu0  ;;  %v5627_v55 = vld [vmem:[#allocation16_spill] sm:$0xff] }
 0x2bd   : > { %2669 = vmatpush.bf16.msra.mxu1 %v5615_v7 }
 0x2bf   : > { %1430 = vmatmul.bf16.gmra.mxu3 %v5612_v45 }
 0x2c1   : > { %2670 = vmatpush.bf16.msra.mxu1 %v5618_v43 }
 0x2c2   : > { %v1391_v15 = vpop.f32.mrf.mxu3 }
 0x2c3   : > { %v4418_v61 = vadd.f32 %v4374_v44, %v1391_v15  ;;  %v4440_v7 = vpop.f32.mrf.mxu0 }
 0x2c5   : > { %2671 = vmatpush.bf16.msra.mxu1 %v5619_v4  ;;  %v5625_v4 = vld [vmem:[#allocation14_spill] sm:$0xff] }
 0x2ca   : > { %v1393_v10 = vpop.f32.mrf.mxu3 }
 0x2cb   : > { %3042 = vmatmul.msk.bf16.gmra.mxu0 %vm1498_vm0, %v4405_v52  ;;  %3050 = vmatmul.msk.bf16.gmra.mxu1 %vm1498_vm0, %v4176_v58  ;;  %v4421_v48 = vadd.f32 %v4374_v44, %v1393_v10  ;;  %v4430_v58 = vadd.f32 %v3962_v13, %v5621_v31  ;;  %v4478_v43 = vpop.f32.mrf.mxu0 }
 0x2cd   : > { %5622 = vst [vmem:[#allocation4_spill] sm:$0xff] %v4430_v58  ;;  %v4438_v28 = vpack.c.bf16 %v4430_v58, %v4434_v56 }
 0x2cf   : > { %1435 = vmatmul.bf16.gmra.mxu3 %v5620_v25 }
 0x2d2   : > { %v1396_v45 = vpop.f32.mrf.mxu3 }
 0x2d3   : > { %v4447_v18 = vadd.f32 %v4374_v44, %v1396_v45 }
 0x2da   : > { %v1398_v15 = vpop.f32.mrf.mxu3 }
 0x2db   : > { %3043 = vmatmul.msk.bf16.gmra.mxu0 %vm1498_vm0, %v4438_v28  ;;  %3051 = vmatmul.msk.bf16.gmra.mxu1 %vm1498_vm0, %v4219_v23  ;;  %v4450_v13 = vadd.f32 %v4374_v44, %v1398_v15 }
 0x2df   : > { %1440 = vmatmul.bf16.gmra.mxu3 %v5625_v4 }
 0x2e2   : > { %v1401_v10 = vpop.f32.mrf.mxu3 }
 0x2e3   : > { %v4462_v23 = vadd.f32 %v4374_v44, %v1401_v10 }
 0x2e8   : > { %v4455_v25 = vpop.f32.mrf.mxu1 }
 0x2e9   : > { %v1773_v31 = vmax.f32 %v4309_v8, %v4455_v25 }
 0x2ea   : > { %v1403_v16 = vpop.f32.mrf.mxu3 }
 0x2eb   : > { %3052 = vmatmul.msk.bf16.gmra.mxu1 %vm1498_vm0, %v4256_v39  ;;  %1774 = vmax.xlane.f32.xlu0 %v1773_v31  ;;  %v4467_v15 = vadd.f32 %v4374_v44, %v1403_v16 }
 0x2ef   : > { %1445 = vmatmul.bf16.gmra.mxu3 %v5626_v51  ;;  %v4486_v51 = vpop.f32.mrf.mxu0 }
 0x2f0   : > { %v4464_v45 = vpop.f32.mrf.mxu1 }
 0x2f1   : > { %v1776_v4 = vmax.f32 %v4323_v57, %v4464_v45 }
 0x2f2   : > { %v1406_v39 = vpop.f32.mrf.mxu3 }
 0x2f3   : > { %1777 = vmax.xlane.f32.xlu0 %v1776_v4 }
 0x2f8   : > { %v4474_v31 = vpop.f32.mrf.mxu1 }
 0x2f9   : > { %v1779_v10 = vmax.f32 %v4338_v40, %v4474_v31 }
 0x2fa   : > { %v1408_v16 = vpop.f32.mrf.mxu3 }
 0x2fb   : > { %3053 = vmatmul.msk.bf16.gmra.mxu1 %vm1498_vm0, %v4281_v12  ;;  %1780 = vmax.xlane.f32.xlu2 %v1779_v10  ;;  %v4495_v12 = vpop.f32.mrf.mxu0 }
 0x2ff   : > { %1450 = vmatmul.bf16.gmra.mxu3 %v5627_v55  ;;  %v5628_v55 = vld [vmem:[#allocation17_spill] sm:$0xff] }
 0x300   : > { %v4482_v63 = vpop.f32.mrf.mxu1 }
 0x301   : > { %v1782_v4 = vmax.f32 %v4350_v30, %v4482_v63 }
 0x302   : > { %v1411_v46 = vpop.f32.mrf.mxu3 }
 0x303   : > { %1783 = vmax.xlane.f32.xlu2 %v1782_v4  ;;  %v4502_v29 = vpop.f32.mrf.mxu0 }
 0x308   : > { %v4489_v50 = vpop.f32.mrf.mxu1 }
 0x309   : > { %v1785_v60 = vmax.f32 %v4376_v32, %v4489_v50 }
 0x30a   : > { %v1413_v10 = vpop.f32.mrf.mxu3 }
 0x30b   : > { %3054 = vmatmul.msk.bf16.gmra.mxu1 %vm1498_vm0, %v4298_v21  ;;  %1786 = vmax.xlane.f32.xlu2 %v1785_v60  ;;  %v4514_v56 = vpop.f32.mrf.mxu0 }
 0x30f   : > { %1455 = vmatmul.bf16.gmra.mxu3 %v5628_v55  ;;  %v5629_v55 = vld [vmem:[#allocation18_spill] sm:$0xff] }
 0x310   : > { %v4497_v11 = vpop.f32.mrf.mxu1 }
 0x311   : > { %v1788_v4 = vmax.f32 %v4401_v36, %v4497_v11 }
 0x312   : > { %v1416_v35 = vpop.f32.mrf.mxu3 }
 0x313   : > { %1789 = vmax.xlane.f32.xlu0 %v1788_v4 }
 0x318   : > { %v4504_v27 = vpop.f32.mrf.mxu1 }
 0x319   : > { %v1791_v21 = vmax.f32 %v4423_v49, %v4504_v27 }
 0x31a   : > { %v1418_v60 = vpop.f32.mrf.mxu3 }
 0x31b   : > { %3055 = vmatmul.msk.bf16.gmra.mxu1 %vm1498_vm0, %v4317_v1  ;;  %1792 = vmax.xlane.f32.xlu0 %v1791_v21  ;;  %v4523_v1 = vpop.f32.mrf.mxu0 }
 0x31f   : > { %1460 = vmatmul.bf16.gmra.mxu3 %v5629_v55  ;;  %v1419_v55 = vadd.f32 %v4374_v44, %v1418_v60  ;;  %v1409_v60 = vadd.f32 %v4374_v44, %v1408_v16 }
 0x320   : > { %v4510_v58 = vpop.f32.mrf.mxu1 }
 0x321   : > { %v1794_v4 = vmax.f32 %v4440_v7, %v4510_v58 }
 0x322   : > { %v1421_v6 = vpop.f32.mrf.mxu3 }
 0x323   : > { %1795 = vmax.xlane.f32.xlu1 %v1794_v4  ;;  %v1422_v21 = vadd.f32 %v4374_v44, %v1421_v6  ;;  %v1417_v4 = vadd.f32 %v4374_v44, %v1416_v35  ;;  %v4535_v6 = vpop.f32.mrf.mxu0  ;;  %v1407_v35 = vadd.f32 %v4374_v44, %v1406_v39 }
 0x324   : > { %5630 = vst [vmem:[#allocation7_spill] sm:$0xff] %v4535_v6 }
 0x325   : > { %v2291_v0 = vpack.c.bf16 %v1419_v55, %v1417_v4 }
 0x328   : > { %v4517_v62 = vpop.f32.mrf.mxu1 }
 0x329   : > { %v1797_v26 = vmax.f32 %v4478_v43, %v4517_v62 }
 0x32a   : > { %v1423_v24 = vpop.f32.mrf.mxu3 }
 0x32b   : > { %3056 = vmatmul.msk.bf16.gmra.mxu1 %vm1498_vm0, %v4336_v42  ;;  %1798 = vmax.xlane.f32.xlu1 %v1797_v26  ;;  %v1424_v53 = vadd.f32 %v4374_v44, %v1423_v24  ;;  %v1412_v42 = vadd.f32 %v4374_v44, %v1411_v46  ;;  %v1414_v26 = vadd.f32 %v4374_v44, %v1413_v10 }
 0x32c   : > { %v2289_v46 = vpack.c.bf16 %v1409_v60, %v1407_v35 }
 0x32d   : > { %v2292_v5 = vpack.c.bf16 %v1424_v53, %v1422_v21  ;;  %v2290_v24 = vpack.c.bf16 %v1414_v26, %v1412_v42 }
 0x32f   : > { %2301 = vmatpush.bf16.msra.mxu2 %v2292_v5  ;;  %v4547_v5 = vpop.f32.mrf.mxu0 }
 0x330   : > { %v4526_v22 = vpop.f32.mrf.mxu1  ;;  %5631 = vst [vmem:[#allocation6_spill] sm:$0xff] %v4547_v5 }
 0x331   : > { %v1800_v14 = vmax.f32 %v4486_v51, %v4526_v22 }
 0x332   : > { %v4537_v59 = vpop.f32.mrf.mxu3 }
 0x333   : > { %1801 = vmax.xlane.f32.xlu2 %v1800_v14  ;;  %2302 = vmatpush.bf16.msra.mxu2 %v2291_v0  ;;  %v5632_v0 = vpack.c.bf16 %v4467_v15, %v4462_v23  ;;  %v5634_v23 = vpack.c.bf16 %v4421_v48, %v4418_v61 }
 0x337   : > { %2303 = vmatpush.bf16.msra.mxu2 %v2290_v24  ;;  %v4567_v55 = vpop.f32.mrf.mxu0 }
 0x338   : > { %v4541_v33 = vpop.f32.mrf.mxu1 }
 0x339   : > { %v1803_v14 = vmax.f32 %v4495_v12, %v4541_v33 }
 0x33a   : > { %v4553_v16 = vpop.f32.mrf.mxu3 }
 0x33b   : > { %3057 = vmatmul.msk.bf16.gmra.mxu1 %vm1498_vm0, %v4365_v47  ;;  %1804 = vmax.xlane.f32.xlu2 %v1803_v14  ;;  %v5633_v47 = vpack.c.bf16 %v4450_v13, %v4447_v18  ;;  %v5635_v18 = vpack.c.bf16 %v4382_v17, %v4379_v9 }
 0x33c   : > { %2304 = vmatpush.bf16.msra.mxu2 %v2289_v46 }
 0x33f   : > { %v4583_v26 = vpop.f32.mrf.mxu0 }
 0x340   : > { %v4549_v53 = vpop.f32.mrf.mxu1  ;;  %2305 = vmatpush.bf16.msra.mxu2 %v5632_v0 }
 0x341   : > { %v1806_v39 = vmax.f32 %v4502_v29, %v4549_v53 }
 0x342   : > { %v4565_v4 = vpop.f32.mrf.mxu3 }
 0x343   : > { %1807 = vmax.xlane.f32.xlu0 %v1806_v39 }
 0x344   : > { %2306 = vmatpush.bf16.msra.mxu2 %v5633_v47 }
 0x347   : > { %v4593_v9 = vpop.f32.mrf.mxu0 }
 0x348   : > { %v4558_v10 = vpop.f32.mrf.mxu1  ;;  %2307 = vmatpush.bf16.msra.mxu2 %v5634_v23 }
 0x349   : > { %v1809_v21 = vmax.f32 %v4514_v56, %v4558_v10 }
 0x34a   : > { %v4581_v42 = vpop.f32.mrf.mxu3 }
 0x34b   : > { %3058 = vmatmul.msk.bf16.gmra.mxu1 %vm1498_vm0, %v4405_v52  ;;  %1810 = vmax.xlane.f32.xlu0 %v1809_v21 }
 0x34c   : > { %2308 = vmatpush.bf16.msra.mxu2 %v5635_v18 }
 0x350   : > { %v4574_v15 = vpop.f32.mrf.mxu1 }
 0x351   : > { %v1812_v13 = vmax.f32 %v4523_v1, %v4574_v15 }
 0x352   : > { %v4589_v48 = vpop.f32.mrf.mxu3 }
 0x353   : > { %1813 = vmax.xlane.f32.xlu1 %v1812_v13 }
 0x358   : > { %v4585_v52 = vpop.f32.mrf.mxu1 }
 0x359   : > { %5636 = vst [vmem:[#allocation13_spill] sm:$0xff] %v4585_v52  ;;  %v1815_v61 = vmax.f32 %v4535_v6, %v4585_v52 }
 0x35a   : > { %v4601_v0 = vpop.f32.mrf.mxu3 }
 0x35b   : > { %3059 = vmatmul.msk.bf16.gmra.mxu1 %vm1498_vm0, %v4438_v28  ;;  %1816 = vmax.xlane.f32.xlu1 %v1815_v61 }
 0x35e   : > { %v1775_v17 = vpop.xlane.xlu0 %1774 }
 0x35f   : > { %v1869_v35 = vsub.f32 %v4309_v8, %v1775_v17  ;;  %v1870_v60 = vsub.f32 %v4455_v25, %v1775_v17  ;;  %v4605_v8 = vpop.f32.mrf.mxu0 }
 0x360   : > { %v4597_v24 = vpop.f32.mrf.mxu1 }
 0x361   : > { %5637 = vst [vmem:[#allocation10_spill] sm:$0xff] %v4597_v24  ;;  %v1933_v14 = vmul.f32 1.442695, %v1869_v35  ;;  %v1935_v46 = vmul.f32 1.442695, %v1870_v60  ;;  %v1818_v39 = vmax.f32 %v4547_v5, %v4597_v24 }
 0x362   : > { %v4613_v17 = vpop.f32.mrf.mxu3 }
 0x363   : > { %3126 = vpow2.f32 %v1933_v14  ;;  %1819 = vmax.xlane.f32.xlu2 %v1818_v39 }
 0x364   : > { %3128 = vpow2.f32 %v1935_v46 }
 0x366   : > { %v1778_v28 = vpop.xlane.xlu0 %1777 }
 0x367   : > { %v1871_v47 = vsub.f32 %v4323_v57, %v1778_v28  ;;  %v1872_v21 = vsub.f32 %v4464_v45, %v1778_v28 }
 0x368   : > { %v4607_v25 = vpop.f32.mrf.mxu1 }
 0x369   : > { %v4609_v23 = vpop.eup %3126  ;;  %v1937_v18 = vmul.f32 1.442695, %v1871_v47  ;;  %v1939_v13 = vmul.f32 1.442695, %v1872_v21  ;;  %v1821_v61 = vmax.f32 %v4567_v55, %v4607_v25  ;;  %v4630_v21 = vpop.f32.mrf.mxu0 }
 0x36a   : > { %v4615_v35 = vpop.eup %3128  ;;  %v4626_v28 = vpop.f32.mrf.mxu3  ;;  %5638 = vst [vmem:[#allocation9_spill] sm:$0xff] %v4630_v21 }
 0x36b   : > { %3130 = vpow2.f32 %v1937_v18  ;;  %1822 = vmax.xlane.f32.xlu1 %v1821_v61  ;;  %v2061_v57 = vadd.f32 %v4615_v35, %v4609_v23 }
 0x36c   : > { %3132 = vpow2.f32 %v1939_v13 }
 0x36d   : > { %2062 = vadd.xlane.f32.xlu2 %v2061_v57 }
 0x36e   : > { %v1781_v45 = vpop.xlane.xlu2 %1780 }
 0x36f   : > { %v1873_v46 = vsub.f32 %v4338_v40, %v1781_v45  ;;  %v1874_v18 = vsub.f32 %v4474_v31, %v1781_v45 }
 0x370   : > { %v4619_v60 = vpop.f32.mrf.mxu1 }
 0x371   : > { %v4621_v14 = vpop.eup %3130  ;;  %v1824_v39 = vmax.f32 %v4583_v26, %v4619_v60  ;;  %v1941_v61 = vmul.f32 1.442695, %v1873_v46  ;;  %v1943_v57 = vmul.f32 1.442695, %v1874_v18  ;;  %v4643_v45 = vpop.f32.mrf.mxu0 }
 0x372   : > { %v4628_v47 = vpop.eup %3132  ;;  %v4641_v38 = vpop.f32.mrf.mxu3  ;;  %5639 = vst [vmem:[#allocation14_spill] sm:$0xff] %v4643_v45 }
 0x373   : > { %1825 = vmax.xlane.f32.xlu1 %v1824_v39  ;;  %v2064_v13 = vadd.f32 %v4628_v47, %v4621_v14  ;;  %3134 = vpow2.f32 %v1941_v61 }
 0x374   : > { %3136 = vpow2.f32 %v1943_v57 }
 0x375   : > { %2065 = vadd.xlane.f32.xlu0 %v2064_v13 }
 0x376   : > { %v1784_v19 = vpop.xlane.xlu2 %1783 }
 0x377   : > { %v1875_v40 = vsub.f32 %v4350_v30, %v1784_v19  ;;  %v1876_v2 = vsub.f32 %v4482_v63, %v1784_v19 }
 0x378   : > { %v4637_v3 = vpop.f32.mrf.mxu1 }
 0x379   : > { %v1827_v54 = vmax.f32 %v4593_v9, %v4637_v3  ;;  %v1945_v31 = vmul.f32 1.442695, %v1875_v40  ;;  %v1947_v46 = vmul.f32 1.442695, %v1876_v2  ;;  %v4645_v39 = vpop.eup %3134  ;;  %v4662_v40 = vpop.f32.mrf.mxu0 }
 0x37a   : > { %v4647_v30 = vpop.eup %3136  ;;  %v4653_v18 = vpop.f32.mrf.mxu3 }
 0x37b   : > { %3138 = vpow2.f32 %v1945_v31  ;;  %v2067_v61 = vadd.f32 %v4647_v30, %v4645_v39 }
 0x37c   : > { %3140 = vpow2.f32 %v1947_v46 }
 0x37d   : > { %1828 = vmax.xlane.f32.xlu0 %v1827_v54 }
 0x37e   : > { %v1787_v13 = vpop.xlane.xlu2 %1786 }
 0x37f   : > { %v1877_v54 = vsub.f32 %v4376_v32, %v1787_v13  ;;  %v1878_v31 = vsub.f32 %v4489_v50, %v1787_v13 }
 0x380   : > { %v4649_v63 = vpop.f32.mrf.mxu1 }
 0x381   : > { %v1830_v19 = vmax.f32 %v4605_v8, %v4649_v63  ;;  %v4657_v2 = vpop.eup %3138  ;;  %v1949_v34 = vmul.f32 1.442695, %v1877_v54  ;;  %v1951_v32 = vmul.f32 1.442695, %v1878_v31  ;;  %v4673_v50 = vpop.f32.mrf.mxu0 }
 0x382   : > { %v4660_v57 = vpop.eup %3140  ;;  %v4671_v52 = vpop.f32.mrf.mxu3  ;;  %5641 = vst [vmem:[#allocation16_spill] sm:$0xff] %v4673_v50 }
 0x383   : > { %1831 = vmax.xlane.f32.xlu1 %v1830_v19  ;;  %v2070_v20 = vadd.f32 %v4660_v57, %v4657_v2  ;;  %3142 = vpow2.f32 %v1949_v34 }
 0x384   : > { %3144 = vpow2.f32 %v1951_v32 }
 0x385   : > { %2068 = vadd.xlane.f32.xlu0 %v2067_v61 }
 0x386   : > { %v1790_v46 = vpop.xlane.xlu0 %1789 }
 0x387   : > { %v1879_v41 = vsub.f32 %v4401_v36, %v1790_v46  ;;  %v1880_v37 = vsub.f32 %v4497_v11, %v1790_v46 }
 0x388   : > { %v4667_v19 = vpop.f32.mrf.mxu1 }
 0x389   : > { %5640 = vst [vmem:[#allocation15_spill] sm:$0xff] %v4667_v19  ;;  %v1953_v61 = vmul.f32 1.442695, %v1879_v41  ;;  %v1955_v6 = vmul.f32 1.442695, %v1880_v37  ;;  %v1833_v11 = vmax.f32 %v4630_v21, %v4667_v19  ;;  %v4683_v41 = vpop.eup %3142 }
 0x38a   : > { %v4681_v54 = vpop.f32.mrf.mxu3 }
 0x38b   : > { %2071 = vadd.xlane.f32.xlu1 %v2070_v20  ;;  %3146 = vpow2.f32 %v1953_v61  ;;  %v4685_v20 = vpop.eup %3144 }
 0x38c   : > { %3148 = vpow2.f32 %v1955_v6 }
 0x38e   : > { %v1793_v31 = vpop.xlane.xlu0 %1792 }
 0x38f   : > { %v1881_v37 = vsub.f32 %v4423_v49, %v1793_v31  ;;  %v1882_v46 = vsub.f32 %v4504_v27, %v1793_v31  ;;  %v4701_v49 = vpop.f32.mrf.mxu0 }
 0x390   : > { %v4675_v36 = vpop.f32.mrf.mxu1 }
 0x391   : > { %5642 = vst [vmem:[#allocation17_spill] sm:$0xff] %v4675_v36  ;;  %v1836_v13 = vmax.f32 %v4643_v45, %v4675_v36  ;;  %v4687_v34 = vpop.eup %3146  ;;  %v1957_v36 = vmul.f32 1.442695, %v1881_v37  ;;  %v1959_v19 = vmul.f32 1.442695, %v1882_v46 }
 0x392   : > { %5643 = vst [vmem:[#allocation18_spill] sm:$0xff] %v4687_v34  ;;  %v4690_v6 = vpop.eup %3148  ;;  %v1456_v45 = vpop.f32.mrf.mxu3 }
 0x393   : > { %1834 = vmax.xlane.f32.xlu1 %v1833_v11  ;;  %1837 = vmax.xlane.f32.xlu2 %v1836_v13  ;;  %5644 = vst [vmem:[#allocation76_spill] sm:$0xff] %v4690_v6  ;;  %v2073_v11 = vadd.f32 %v4685_v20, %v4683_v41  ;;  %v2076_v13 = vadd.f32 %v4690_v6, %v4687_v34  ;;  %3150 = vpow2.f32 %v1957_v36 }
 0x394   : > { %3152 = vpow2.f32 %v1959_v19 }
 0x396   : > { %v1796_v32 = vpop.xlane.xlu1 %1795 }
 0x397   : > { %v1883_v61 = vsub.f32 %v4440_v7, %v1796_v32  ;;  %v1884_v24 = vsub.f32 %v4510_v58, %v1796_v32 }
 0x398   : > { %v4695_v5 = vpop.f32.mrf.mxu1 }
 0x399   : > { %5645 = vst [vmem:[#allocation77_spill] sm:$0xff] %v4695_v5  ;;  %v1961_v21 = vmul.f32 1.442695, %v1883_v61  ;;  %v1963_v27 = vmul.f32 1.442695, %v1884_v24  ;;  %v1839_v7 = vmax.f32 %v4662_v40, %v4695_v5  ;;  %v4709_v6 = vpop.eup %3150  ;;  %v4713_v24 = vpop.f32.mrf.mxu0 }
 0x39a   : > { %v1458_v37 = vpop.f32.mrf.mxu3  ;;  %v4711_v46 = vpop.eup %3152 }
 0x39b   : > { %2074 = vadd.xlane.f32.xlu1 %v2073_v11  ;;  %2077 = vadd.xlane.f32.xlu2 %v2076_v13  ;;  %3154 = vpow2.f32 %v1961_v21 }
 0x39c   : > { %3156 = vpow2.f32 %v1963_v27 }
 0x39e   : > { %v1799_v32 = vpop.xlane.xlu1 %1798 }
 0x39f   : > { %v1885_v19 = vsub.f32 %v4478_v43, %v1799_v32  ;;  %v1886_v61 = vsub.f32 %v4517_v62, %v1799_v32 }
 0x3a0   : > { %v4703_v58 = vpop.f32.mrf.mxu1 }
 0x3a1   : > { %5646 = vst [vmem:[#allocation78_spill] sm:$0xff] %v4703_v58  ;;  %v1842_v31 = vmax.f32 %v4673_v50, %v4703_v58  ;;  %v4715_v21 = vpop.eup %3154  ;;  %v1967_v43 = vmul.f32 1.442695, %v1886_v61  ;;  %v4729_v32 = vpop.f32.mrf.mxu0 }
 0x3a2   : > { %5647 = vst [vmem:[#allocation79_spill] sm:$0xff] %v4715_v21  ;;  %v4718_v36 = vpop.eup %3156  ;;  %v1461_v50 = vpop.f32.mrf.mxu3 }
 0x3a3   : > { %1840 = vmax.xlane.f32.xlu2 %v1839_v7  ;;  %1843 = vmax.xlane.f32.xlu0 %v1842_v31  ;;  %5648 = vst [vmem:[#allocation80_spill] sm:$0xff] %v4718_v36  ;;  %v1965_v7 = vmul.f32 1.442695, %v1885_v19  ;;  %v2079_v31 = vadd.f32 %v4711_v46, %v4709_v6  ;;  %v2082_v58 = vadd.f32 %v4718_v36, %v4715_v21 }
 0x3a5   : > { %3158 = vpow2.f32 %v1965_v7 }
 0x3a6   : > { %v1802_v11 = vpop.xlane.xlu2 %1801  ;;  %3160 = vpow2.f32 %v1967_v43 }
 0x3a7   : > { %v1887_v13 = vsub.f32 %v4486_v51, %v1802_v11  ;;  %v1888_v27 = vsub.f32 %v4526_v22, %v1802_v11  ;;  %v1462_v51 = vadd.f32 %v4374_v44, %v1461_v50 }
 0x3a8   : > { %v4723_v34 = vpop.f32.mrf.mxu1 }
 0x3a9   : > { %v1969_v5 = vmul.f32 1.442695, %v1887_v13  ;;  %v1971_v62 = vmul.f32 1.442695, %v1888_v27  ;;  %v1845_v19 = vmax.f32 %v4701_v49, %v4723_v34  ;;  %v1459_v27 = vadd.f32 %v4374_v44, %v1458_v37 }
 0x3aa   : > { %v1463_v11 = vpop.f32.mrf.mxu3 }
 0x3ab   : > { %2080 = vadd.xlane.f32.xlu2 %v2079_v31  ;;  %2083 = vadd.xlane.f32.xlu0 %v2082_v58  ;;  %3162 = vpow2.f32 %v1969_v5  ;;  %v1457_v58 = vadd.f32 %v4374_v44, %v1456_v45  ;;  %v1464_v7 = vadd.f32 %v4374_v44, %v1463_v11  ;;  %v4741_v5 = vpop.eup %3158  ;;  %v1452_v45 = vadd.f32 %v4374_v44, %v4671_v52 }
 0x3ac   : > { %3164 = vpow2.f32 %v1971_v62  ;;  %v4743_v31 = vpop.eup %3160  ;;  %v1454_v11 = vadd.f32 %v4374_v44, %v4681_v54  ;;  %v1447_v54 = vadd.f32 %v4374_v44, %v4641_v38 }
 0x3ad   : > { %v2300_v50 = vpack.c.bf16 %v1464_v7, %v1462_v51  ;;  %v4756_v51 = vpop.f32.mrf.mxu0  ;;  %v2085_v52 = vadd.f32 %v4743_v31, %v4741_v5 }
 0x3ae   : > { %v1805_v13 = vpop.xlane.xlu2 %1804 }
 0x3af   : > { %v1889_v62 = vsub.f32 %v4495_v12, %v1805_v13  ;;  %v1890_v37 = vsub.f32 %v4541_v33, %v1805_v13  ;;  %2390 = vmatpush.bf16.msra.mxu3 %v2300_v50  ;;  %v1449_v13 = vadd.f32 %v4374_v44, %v4653_v18  ;;  %v1444_v50 = vadd.f32 %v4374_v44, %v4626_v28 }
 0x3b0   : > { %v4731_v22 = vpop.f32.mrf.mxu1  ;;  %v1439_v28 = vadd.f32 %v4374_v44, %v4601_v0 }
 0x3b1   : > { %5649 = vst [vmem:[#allocation81_spill] sm:$0xff] %v4731_v22  ;;  %v1848_v61 = vmax.f32 %v4713_v24, %v4731_v22  ;;  %v4745_v43 = vpop.eup %3162  ;;  %v1973_v22 = vmul.f32 1.442695, %v1889_v62  ;;  %v2297_v62 = vpack.c.bf16 %v1449_v13, %v1447_v54 }
 0x3b2   : > { %v4748_v36 = vpop.eup %3164 }
 0x3b3   : > { %1846 = vmax.xlane.f32.xlu0 %v1845_v19  ;;  %1849 = vmax.xlane.f32.xlu1 %v1848_v61  ;;  %v2299_v19 = vpack.c.bf16 %v1459_v27, %v1457_v58  ;;  %v2088_v33 = vadd.f32 %v4748_v36, %v4745_v43  ;;  %v2298_v58 = vpack.c.bf16 %v1454_v11, %v1452_v45  ;;  %3166 = vpow2.f32 %v1973_v22 }
 0x3b5   : > { %2391 = vmatpush.bf16.msra.mxu3 %v2299_v19  ;;  %v4779_v22 = vpop.f32.mrf.mxu0 }
 0x3b6   : > { %v1808_v21 = vpop.xlane.xlu0 %1807 }
 0x3b7   : > { %v1891_v61 = vsub.f32 %v4502_v29, %v1808_v21  ;;  %v1892_v7 = vsub.f32 %v4549_v53, %v1808_v21  ;;  %v1975_v29 = vmul.f32 1.442695, %v1890_v37  ;;  %v1442_v21 = vadd.f32 %v4374_v44, %v4613_v17 }
 0x3b8   : > { %v4759_v12 = vpop.f32.mrf.mxu1  ;;  %v1437_v17 = vadd.f32 %v4374_v44, %v4589_v48  ;;  %v1434_v48 = vadd.f32 %v4374_v44, %v4581_v42  ;;  %v1429_v42 = vadd.f32 %v4374_v44, %v4553_v16 }
 0x3b9   : > { %v1977_v27 = vmul.f32 1.442695, %v1891_v61  ;;  %v1979_v53 = vmul.f32 1.442695, %v1892_v7  ;;  %3168 = vpow2.f32 %v1975_v29  ;;  %2392 = vmatpush.bf16.msra.mxu3 %v2298_v58  ;;  %v1851_v18 = vmax.f32 %v4729_v32, %v4759_v12  ;;  %v4785_v11 = vpop.eup %3166 }
 0x3ba   : > { %v2296_v37 = vpack.c.bf16 %v1444_v50, %v1442_v21  ;;  %v2295_v0 = vpack.c.bf16 %v1439_v28, %v1437_v17 }
 0x3bb   : > { %2086 = vadd.xlane.f32.xlu0 %v2085_v52  ;;  %2089 = vadd.xlane.f32.xlu1 %v2088_v33  ;;  %3170 = vpow2.f32 %v1977_v27  ;;  %v1432_v33 = vadd.f32 %v4374_v44, %v4565_v4  ;;  %v1427_v4 = vadd.f32 %v4374_v44, %v4537_v59 }
 0x3bc   : > { %3172 = vpow2.f32 %v1979_v53 }
 0x3bd   : > { %2393 = vmatpush.bf16.msra.mxu3 %v2297_v62  ;;  %v2294_v53 = vpack.c.bf16 %v1434_v48, %v1432_v33  ;;  %v2293_v62 = vpack.c.bf16 %v1429_v42, %v1427_v4 }
 0x3be   : > { %v1811_v61 = vpop.xlane.xlu0 %1810 }
 0x3bf   : > { %v4787_v19 = vpop.eup %3168  ;;  %v1893_v54 = vsub.f32 %v4514_v56, %v1811_v61  ;;  %v1894_v13 = vsub.f32 %v4558_v10, %v1811_v61  ;;  %v4809_v56 = vpop.f32.mrf.mxu0 }
 0x3c0   : > { %v4773_v38 = vpop.f32.mrf.mxu1  ;;  %v2091_v58 = vadd.f32 %v4787_v19, %v4785_v11 }
 0x3c1   : > { %v1854_v45 = vmax.f32 %v4756_v51, %v4773_v38  ;;  %v4789_v7 = vpop.eup %3170  ;;  %2394 = vmatpush.bf16.msra.mxu3 %v2296_v37  ;;  %v1981_v21 = vmul.f32 1.442695, %v1893_v54  ;;  %v1983_v10 = vmul.f32 1.442695, %v1894_v13 }
 0x3c2   : > { %v4791_v52 = vpop.eup %3172 }
 0x3c3   : > { %1852 = vmax.xlane.f32.xlu1 %v1851_v18  ;;  %1855 = vmax.xlane.f32.xlu2 %v1854_v45  ;;  %v2094_v27 = vadd.f32 %v4791_v52, %v4789_v7  ;;  %3174 = vpow2.f32 %v1981_v21 }
 0x3c4   : > { %3176 = vpow2.f32 %v1983_v10 }
 0x3c5   : > { %2395 = vmatpush.bf16.msra.mxu3 %v2295_v0 }
 0x3c6   : > { %v1814_v50 = vpop.xlane.xlu1 %1813 }
 0x3c7   : > { %v1895_v18 = vsub.f32 %v4523_v1, %v1814_v50  ;;  %v1896_v59 = vsub.f32 %v4574_v15, %v1814_v50  ;;  %v4823_v1 = vpop.f32.mrf.mxu0 }
 0x3c8   : > { %v4799_v29 = vpop.f32.mrf.mxu1 }
 0x3c9   : > { %2396 = vmatpush.bf16.msra.mxu3 %v2294_v53  ;;  %v1857_v44 = vmax.f32 %v4779_v22, %v4799_v29  ;;  %v1985_v17 = vmul.f32 1.442695, %v1895_v18  ;;  %v1987_v28 = vmul.f32 1.442695, %v1896_v59  ;;  %v4819_v37 = vpop.eup %3174 }
 0x3ca   : > { %v4821_v61 = vpop.eup %3176 }
 0x3cb   : > { %2092 = vadd.xlane.f32.xlu1 %v2091_v58  ;;  %2095 = vadd.xlane.f32.xlu2 %v2094_v27  ;;  %3178 = vpow2.f32 %v1985_v17  ;;  %v2097_v48 = vadd.f32 %v4821_v61, %v4819_v37 }
 0x3cc   : > { %3180 = vpow2.f32 %v1987_v28 }
 0x3cd   : > { %2397 = vmatpush.bf16.msra.mxu3 %v2293_v62 }
 0x3ce   : > { %v4825_v15 = vpop.xlane.xlu1 %1816 }
 0x3cf   : > { %v4841_v53 = vpop.f32.mrf.mxu0 }
 0x3d0   : > { %v4813_v45 = vpop.f32.mrf.mxu1 }
 0x3d1   : > { %v1860_v16 = vmax.f32 %v4809_v56, %v4813_v45  ;;  %v4835_v13 = vpop.eup %3178 }
 0x3d2   : > { %v4837_v58 = vpop.eup %3180 }
 0x3d3   : > { %1858 = vmax.xlane.f32.xlu2 %v1857_v44  ;;  %1861 = vmax.xlane.f32.xlu0 %v1860_v16  ;;  %v2100_v62 = vadd.f32 %v4837_v58, %v4835_v13 }
 0x3d6   : > { %v4833_v54 = vpop.xlane.xlu2 %1819 }
 0x3d8   : > { %v4827_v33 = vpop.f32.mrf.mxu1 }
 0x3d9   : > { %v1863_v0 = vmax.f32 %v4823_v1, %v4827_v33 }
 0x3db   : > { %2098 = vadd.xlane.f32.xlu2 %v2097_v48  ;;  %1864 = vmax.xlane.f32.xlu0 %v1863_v0 }
 0x3de   : > { %v1823_v27 = vpop.xlane.xlu1 %1822 }
 0x3df   : > { %v1901_v4 = vsub.f32 %v4567_v55, %v1823_v27  ;;  %v1902_v42 = vsub.f32 %v4607_v25, %v1823_v27 }
 0x3e0   : > { %v4843_v21 = vpop.f32.mrf.mxu1  ;;  %v2063_v59 = vpop.xlane.xlu2 %2062 }
 0x3e1   : > { %v1997_v10 = vmul.f32 1.442695, %v1901_v4  ;;  %v1999_v50 = vmul.f32 1.442695, %v1902_v42  ;;  %v1866_v18 = vmax.f32 %v4841_v53, %v4843_v21 }
 0x3e3   : > { %3182 = vpow2.f32 %v1997_v10  ;;  %2101 = vadd.xlane.f32.xlu0 %v2100_v62  ;;  %1867 = vmax.xlane.f32.xlu1 %v1866_v18 }
 0x3e4   : > { %3184 = vpow2.f32 %v1999_v50 }
 0x3e5   : > { %3186 = vrcp.f32 %v2063_v59 }
 0x3e6   : > { %v1826_v55 = vpop.xlane.xlu1 %1825 }
 0x3e7   : > { %v1903_v25 = vsub.f32 %v4583_v26, %v1826_v55  ;;  %v1904_v44 = vsub.f32 %v4619_v60, %v1826_v55 }
 0x3e8   : > { %v2066_v16 = vpop.xlane.xlu0 %2065 }
 0x3e9   : > { %v4851_v17 = vpop.eup %3182  ;;  %v2001_v28 = vmul.f32 1.442695, %v1903_v25  ;;  %v2003_v48 = vmul.f32 1.442695, %v1904_v44  ;;  %3188 = vrcp.f32 %v2066_v16 }
 0x3ea   : > { %v4853_v0 = vpop.eup %3184 }
 0x3eb   : > { %3190 = vpow2.f32 %v2001_v28  ;;  %v2109_v27 = vadd.f32 %v4853_v0, %v4851_v17  ;;  %v3187_v4 = vpop.eup %3186 }
 0x3ec   : > { %3192 = vpow2.f32 %v2003_v48  ;;  %v2189_v26 = vmul.f32 %v3187_v4, %v4609_v23  ;;  %v2190_v60 = vmul.f32 %v3187_v4, %v4615_v35 }
 0x3ed   : > { %2110 = vadd.xlane.f32.xlu1 %v2109_v27 }
 0x3ef   : > { %v3189_v42 = vpop.eup %3188 }
 0x3f0   : > { %v2191_v10 = vmul.f32 %v3189_v42, %v4621_v14  ;;  %v2192_v50 = vmul.f32 %v3189_v42, %v4628_v47  ;;  %v1829_v62 = vpop.xlane.xlu0 %1828 }
 0x3f1   : > { %v4861_v18 = vpop.eup %3190  ;;  %v1905_v59 = vsub.f32 %v4593_v9, %v1829_v62  ;;  %v1906_v55 = vsub.f32 %v4637_v3, %v1829_v62 }
 0x3f2   : > { %v4865_v25 = vpop.eup %3192  ;;  %v4867_v44 = vpack.c.bf16 %v2191_v10, %v2189_v26  ;;  %v4869_v16 = vpack.c.bf16 %v2192_v50, %v2190_v60 }
 0x3f3   : > { %v2005_v23 = vmul.f32 1.442695, %v1905_v59  ;;  %v2007_v28 = vmul.f32 1.442695, %v1906_v55  ;;  %v2112_v35 = vadd.f32 %v4865_v25, %v4861_v18 }
 0x3f4   : > { %2309 = vmatmul.bf16.vlgmr.msra.gmra.mxu2 %v4867_v44  ;;  %2398 = vmatmul.bf16.vlgmr.msra.gmra.mxu3 %v4869_v16 }
 0x3f5   : > { %3194 = vpow2.f32 %v2005_v23  ;;  %2113 = vadd.xlane.f32.xlu2 %v2112_v35 }
 0x3f6   : > { %3196 = vpow2.f32 %v2007_v28  ;;  %v1832_v9 = vpop.xlane.xlu1 %1831 }
 0x3f7   : > { %v1907_v3 = vsub.f32 %v4605_v8, %v1832_v9  ;;  %v1908_v14 = vsub.f32 %v4649_v63, %v1832_v9 }
 0x3f8   : > { %v2069_v27 = vpop.xlane.xlu0 %2068 }
 0x3f9   : > { %v2009_v47 = vmul.f32 1.442695, %v1907_v3  ;;  %v2011_v48 = vmul.f32 1.442695, %v1908_v14  ;;  %v5654_v3 = vld [vmem:[#allocation9_spill] sm:$0xff] }
 0x3fb   : > { %v4877_v4 = vpop.eup %3194  ;;  %3198 = vpow2.f32 %v2009_v47  ;;  %v5655_v47 = vld [vmem:[#allocation15_spill] sm:$0xff] }
 0x3fc   : > { %5650 = vst [vmem:[#allocation82_spill] sm:$0xff] %v4877_v4  ;;  %v4879_v42 = vpop.eup %3196  ;;  %3200 = vpow2.f32 %v2011_v48 }
 0x3fd   : > { %5651 = vst [vmem:[#allocation83_spill] sm:$0xff] %v4879_v42  ;;  %3202 = vrcp.f32 %v2069_v27  ;;  %v2115_v26 = vadd.f32 %v4879_v42, %v4877_v4  ;;  %v5656_v27 = vld [vmem:[#allocation14_spill] sm:$0xff] }
 0x3fe   : > { %v2072_v60 = vpop.xlane.xlu1 %2071 }
 0x3ff   : > { %2116 = vadd.xlane.f32.xlu2 %v2115_v26  ;;  %3204 = vrcp.f32 %v2072_v60  ;;  %v5657_v60 = vld [vmem:[#allocation17_spill] sm:$0xff] }
 0x401   : > { %v4883_v10 = vpop.eup %3198 }
 0x402   : > { %5652 = vst [vmem:[#allocation84_spill] sm:$0xff] %v4883_v10  ;;  %v4885_v8 = vpop.eup %3200 }
 0x403   : > { %5653 = vst [vmem:[#allocation85_spill] sm:$0xff] %v4885_v8  ;;  %v3203_v63 = vpop.eup %3202  ;;  %v2118_v50 = vadd.f32 %v4885_v8, %v4883_v10 }
 0x404   : > { %v2193_v23 = vmul.f32 %v3203_v63, %v4645_v39  ;;  %v2194_v35 = vmul.f32 %v3203_v63, %v4647_v30 }
 0x405   : > { %v3205_v62 = vpop.eup %3204  ;;  %2119 = vadd.xlane.f32.xlu0 %v2118_v50 }
 0x406   : > { %v1835_v59 = vpop.xlane.xlu1 %1834  ;;  %v1838_v55 = vpop.xlane.xlu2 %1837  ;;  %v2195_v28 = vmul.f32 %v3205_v62, %v4657_v2  ;;  %v2196_v9 = vmul.f32 %v3205_v62, %v4660_v57 }
 0x407   : > { %v1909_v14 = vsub.f32 %v5654_v3, %v1835_v59  ;;  %v1910_v48 = vsub.f32 %v5655_v47, %v1835_v59  ;;  %v1911_v26 = vsub.f32 %v5656_v27, %v1838_v55  ;;  %v1912_v42 = vsub.f32 %v5657_v60, %v1838_v55  ;;  %v5662_v47 = vld [vmem:[#allocation77_spill] sm:$0xff]  ;;  %v5663_v27 = vld [vmem:[#allocation16_spill] sm:$0xff]  ;;  %v5664_v60 = vld [vmem:[#allocation78_spill] sm:$0xff] }
 0x408   : > { %v4897_v4 = vpack.c.bf16 %v2195_v28, %v2193_v23  ;;  %v4899_v50 = vpack.c.bf16 %v2196_v9, %v2194_v35 }
 0x409   : > { %v2013_v8 = vmul.f32 1.442695, %v1909_v14  ;;  %v2015_v39 = vmul.f32 1.442695, %v1910_v48  ;;  %v2017_v10 = vmul.f32 1.442695, %v1911_v26 }
 0x40a   : > { %v2019_v2 = vmul.f32 1.442695, %v1912_v42  ;;  %2314 = vmatmul.bf16.gmra.mxu2 %v4897_v4  ;;  %2403 = vmatmul.bf16.gmra.mxu3 %v4899_v50 }
 0x40b   : > { %3206 = vpow2.f32 %v2013_v8 }
 0x40c   : > { %3208 = vpow2.f32 %v2015_v39 }
 0x40d   : > { %3210 = vpow2.f32 %v2017_v10 }
 0x40e   : > { %3212 = vpow2.f32 %v2019_v2  ;;  %v2075_v30 = vpop.xlane.xlu1 %2074  ;;  %v2078_v57 = vpop.xlane.xlu2 %2077  ;;  %v5665_v2 = vld [vmem:[#allocation18_spill] sm:$0xff] }
 0x40f   : > { %3214 = vrcp.f32 %v2075_v30 }
 0x410   : > { %3216 = vrcp.f32 %v2078_v57  ;;  %v5666_v57 = vld [vmem:[#allocation76_spill] sm:$0xff] }
 0x411   : > { %v4903_v63 = vpop.eup %3206 }
 0x412   : > { %5658 = vst [vmem:[#allocation9_spill] sm:$0xff] %v4903_v63  ;;  %v4905_v62 = vpop.eup %3208 }
 0x413   : > { %5659 = vst [vmem:[#allocation15_spill] sm:$0xff] %v4905_v62  ;;  %v4907_v59 = vpop.eup %3210  ;;  %v2121_v42 = vadd.f32 %v4905_v62, %v4903_v63 }
 0x414   : > { %5660 = vst [vmem:[#allocation14_spill] sm:$0xff] %v4907_v59  ;;  %v4911_v55 = vpop.eup %3212 }
 0x415   : > { %5661 = vst [vmem:[#allocation17_spill] sm:$0xff] %v4911_v55  ;;  %v3215_v23 = vpop.eup %3214  ;;  %2122 = vadd.xlane.f32.xlu0 %v2121_v42  ;;  %v2124_v10 = vadd.f32 %v4911_v55, %v4907_v59  ;;  %v5667_v55 = vld [vmem:[#allocation6_spill] sm:$0xff] }
 0x416   : > { %v3217_v8 = vpop.eup %3216  ;;  %v1841_v28 = vpop.xlane.xlu2 %1840  ;;  %v2197_v9 = vmul.f32 %v3215_v23, %v4683_v41  ;;  %v2198_v3 = vmul.f32 %v3215_v23, %v4685_v20  ;;  %v1899_v59 = vsub.f32 %v5667_v55, %v4833_v54  ;;  %v5668_v20 = vld [vmem:[#allocation10_spill] sm:$0xff] }
 0x417   : > { %v1844_v35 = vpop.xlane.xlu0 %1843  ;;  %2125 = vadd.xlane.f32.xlu1 %v2124_v10  ;;  %v1913_v14 = vsub.f32 %v4662_v40, %v1841_v28  ;;  %v1914_v48 = vsub.f32 %v5662_v47, %v1841_v28  ;;  %v2199_v30 = vmul.f32 %v3217_v8, %v5665_v2  ;;  %v2200_v42 = vmul.f32 %v3217_v8, %v5666_v57 }
 0x418   : > { %v1915_v26 = vsub.f32 %v5663_v27, %v1844_v35  ;;  %v1916_v39 = vsub.f32 %v5664_v60, %v1844_v35  ;;  %v1900_v23 = vsub.f32 %v5668_v20, %v4833_v54  ;;  %v1993_v8 = vmul.f32 1.442695, %v1899_v59 }
 0x419   : > { %v2021_v62 = vmul.f32 1.442695, %v1913_v14  ;;  %v2023_v41 = vmul.f32 1.442695, %v1914_v48  ;;  %v4927_v10 = vpack.c.bf16 %v2199_v30, %v2197_v9  ;;  %v4929_v28 = vpack.c.bf16 %v2200_v42, %v2198_v3 }
 0x41a   : > { %v2025_v63 = vmul.f32 1.442695, %v1915_v26  ;;  %v2027_v40 = vmul.f32 1.442695, %v1916_v39  ;;  %v1995_v55 = vmul.f32 1.442695, %v1900_v23 }
 0x41b   : > { %3218 = vpow2.f32 %v2021_v62  ;;  %2319 = vmatmul.bf16.gmra.mxu2 %v4927_v10  ;;  %2408 = vmatmul.bf16.gmra.mxu3 %v4929_v28 }
 0x41c   : > { %3220 = vpow2.f32 %v2023_v41  ;;  %v5669_v41 = vld [vmem:[#allocation81_spill] sm:$0xff] }
 0x41d   : > { %3222 = vpow2.f32 %v2025_v63 }
 0x41e   : > { %3224 = vpow2.f32 %v2027_v40  ;;  %v2081_v35 = vpop.xlane.xlu2 %2080  ;;  %v5670_v40 = vld [vmem:[#allocation79_spill] sm:$0xff] }
 0x41f   : > { %v2084_v14 = vpop.xlane.xlu0 %2083  ;;  %3226 = vrcp.f32 %v2081_v35 }
 0x420   : > { %3228 = vrcp.f32 %v2084_v14 }
 0x421   : > { %v4933_v54 = vpop.eup %3218  ;;  %3230 = vpow2.f32 %v1993_v8 }
 0x422   : > { %v4935_v9 = vpop.eup %3220  ;;  %3232 = vpow2.f32 %v1995_v55  ;;  %v5671_v55 = vld [vmem:[#allocation80_spill] sm:$0xff] }
 0x423   : > { %v4937_v62 = vpop.eup %3222  ;;  %v2127_v3 = vadd.f32 %v4935_v9, %v4933_v54 }
 0x424   : > { %v4941_v47 = vpop.eup %3224 }
 0x425   : > { %v3227_v63 = vpop.eup %3226  ;;  %v2130_v59 = vadd.f32 %v4941_v47, %v4937_v62  ;;  %2128 = vadd.xlane.f32.xlu1 %v2127_v3 }
 0x426   : > { %v3229_v48 = vpop.eup %3228  ;;  %v1850_v26 = vpop.xlane.xlu1 %1849  ;;  %v2201_v60 = vmul.f32 %v3227_v63, %v4709_v6  ;;  %v2202_v39 = vmul.f32 %v3227_v63, %v4711_v46 }
 0x427   : > { %v1847_v27 = vpop.xlane.xlu0 %1846  ;;  %v4947_v2 = vpop.eup %3230  ;;  %2131 = vadd.xlane.f32.xlu2 %v2130_v59  ;;  %v1919_v42 = vsub.f32 %v4713_v24, %v1850_v26  ;;  %v1920_v20 = vsub.f32 %v5669_v41, %v1850_v26  ;;  %v2203_v8 = vmul.f32 %v3229_v48, %v5670_v40  ;;  %v2204_v35 = vmul.f32 %v3229_v48, %v5671_v55 }
 0x428   : > { %v1917_v30 = vsub.f32 %v4701_v49, %v1847_v27  ;;  %v1918_v57 = vsub.f32 %v4723_v34, %v1847_v27  ;;  %v4953_v23 = vpop.eup %3232 }
 0x429   : > { %v2033_v46 = vmul.f32 1.442695, %v1919_v42  ;;  %v2035_v3 = vmul.f32 1.442695, %v1920_v20  ;;  %v4957_v63 = vpack.c.bf16 %v2203_v8, %v2201_v60  ;;  %v4959_v59 = vpack.c.bf16 %v2204_v35, %v2202_v39 }
 0x42a   : > { %v2029_v6 = vmul.f32 1.442695, %v1917_v30  ;;  %v2031_v14 = vmul.f32 1.442695, %v1918_v57  ;;  %v2106_v34 = vadd.f32 %v4953_v23, %v4947_v2 }
 0x42b   : > { %2324 = vmatmul.bf16.gmra.mxu2 %v4957_v63  ;;  %2413 = vmatmul.bf16.gmra.mxu3 %v4959_v59 }
 0x42c   : > { %3234 = vpow2.f32 %v2029_v6 }
 0x42d   : > { %3236 = vpow2.f32 %v2031_v14  ;;  %2107 = vadd.xlane.f32.xlu1 %v2106_v34  ;;  %v5672_v34 = vld [vmem:[#allocation7_spill] sm:$0xff] }
 0x42e   : > { %3238 = vpow2.f32 %v2033_v46  ;;  %v2090_v24 = vpop.xlane.xlu1 %2089 }
 0x42f   : > { %3240 = vpow2.f32 %v2035_v3  ;;  %v2087_v49 = vpop.xlane.xlu0 %2086 }
 0x430   : > { %3242 = vrcp.f32 %v2087_v49  ;;  %v1897_v49 = vsub.f32 %v5672_v34, %v4825_v15 }
 0x431   : > { %3244 = vrcp.f32 %v2090_v24 }
 0x432   : > { %v4965_v48 = vpop.eup %3234 }
 0x433   : > { %v4967_v27 = vpop.eup %3236 }
 0x434   : > { %v4969_v26 = vpop.eup %3238  ;;  %v2133_v60 = vadd.f32 %v4967_v27, %v4965_v48 }
 0x435   : > { %v4973_v39 = vpop.eup %3240 }
 0x436   : > { %v3243_v30 = vpop.eup %3242  ;;  %2134 = vadd.xlane.f32.xlu2 %v2133_v60  ;;  %v2136_v57 = vadd.f32 %v4973_v39, %v4969_v26  ;;  %v1853_v41 = vpop.xlane.xlu1 %1852 }
 0x437   : > { %v3245_v42 = vpop.eup %3244  ;;  %v1856_v20 = vpop.xlane.xlu2 %1855  ;;  %v2205_v40 = vmul.f32 %v3243_v30, %v4741_v5  ;;  %v2206_v8 = vmul.f32 %v3243_v30, %v4743_v31  ;;  %v1921_v55 = vsub.f32 %v4729_v32, %v1853_v41  ;;  %v1922_v35 = vsub.f32 %v4759_v12, %v1853_v41  ;;  %v5673_v31 = vld [vmem:[#allocation13_spill] sm:$0xff] }
 0x438   : > { %2137 = vadd.xlane.f32.xlu0 %v2136_v57  ;;  %v1923_v6 = vsub.f32 %v4756_v51, %v1856_v20  ;;  %v1924_v14 = vsub.f32 %v4773_v38, %v1856_v20  ;;  %v2207_v46 = vmul.f32 %v3245_v42, %v4745_v43  ;;  %v2208_v3 = vmul.f32 %v3245_v42, %v4748_v36 }
 0x439   : > { %v2037_v24 = vmul.f32 1.442695, %v1921_v55  ;;  %v2039_v5 = vmul.f32 1.442695, %v1922_v35  ;;  %v1898_v30 = vsub.f32 %v5673_v31, %v4825_v15  ;;  %v1989_v36 = vmul.f32 1.442695, %v1897_v49 }
 0x43a   : > { %v2041_v60 = vmul.f32 1.442695, %v1923_v6  ;;  %v2043_v32 = vmul.f32 1.442695, %v1924_v14  ;;  %v4989_v57 = vpack.c.bf16 %v2207_v46, %v2205_v40  ;;  %v4991_v12 = vpack.c.bf16 %v2208_v3, %v2206_v8 }
 0x43b   : > { %3246 = vpow2.f32 %v2037_v24  ;;  %v1991_v43 = vmul.f32 1.442695, %v1898_v30 }
 0x43c   : > { %3248 = vpow2.f32 %v2039_v5  ;;  %2329 = vmatmul.bf16.gmra.mxu2 %v4989_v57  ;;  %2418 = vmatmul.bf16.gmra.mxu3 %v4991_v12 }
 0x43d   : > { %3250 = vpow2.f32 %v2041_v60 }
 0x43e   : > { %3252 = vpow2.f32 %v2043_v32  ;;  %v2093_v51 = vpop.xlane.xlu1 %2092 }
 0x43f   : > { %v2096_v38 = vpop.xlane.xlu2 %2095  ;;  %3254 = vrcp.f32 %v2093_v51 }
 0x440   : > { %3256 = vrcp.f32 %v2096_v38 }
 0x441   : > { %v4995_v15 = vpop.eup %3246  ;;  %3258 = vpow2.f32 %v1989_v36 }
 0x442   : > { %v4997_v42 = vpop.eup %3248  ;;  %3260 = vpow2.f32 %v1991_v43 }
 0x443   : > { %v4999_v41 = vpop.eup %3250  ;;  %v2139_v20 = vadd.f32 %v4997_v42, %v4995_v15 }
 0x444   : > { %v5003_v40 = vpop.eup %3252 }
 0x445   : > { %v3255_v8 = vpop.eup %3254  ;;  %2140 = vadd.xlane.f32.xlu0 %v2139_v20  ;;  %v2142_v55 = vadd.f32 %v5003_v40, %v4999_v41 }
 0x446   : > { %v3257_v35 = vpop.eup %3256  ;;  %v1862_v14 = vpop.xlane.xlu0 %1861  ;;  %v2209_v46 = vmul.f32 %v3255_v8, %v4785_v11  ;;  %v2210_v3 = vmul.f32 %v3255_v8, %v4787_v19 }
 0x447   : > { %v1859_v6 = vpop.xlane.xlu2 %1858  ;;  %v5009_v34 = vpop.eup %3258  ;;  %2143 = vadd.xlane.f32.xlu1 %v2142_v55  ;;  %v1927_v5 = vsub.f32 %v4809_v56, %v1862_v14  ;;  %v1928_v60 = vsub.f32 %v4813_v45, %v1862_v14  ;;  %v2211_v30 = vmul.f32 %v3257_v35, %v4789_v7  ;;  %v2212_v32 = vmul.f32 %v3257_v35, %v4791_v52 }
 0x448   : > { %v1925_v49 = vsub.f32 %v4779_v22, %v1859_v6  ;;  %v1926_v24 = vsub.f32 %v4799_v29, %v1859_v6  ;;  %v5015_v31 = vpop.eup %3260 }
 0x449   : > { %v2049_v19 = vmul.f32 1.442695, %v1927_v5  ;;  %v2051_v43 = vmul.f32 1.442695, %v1928_v60  ;;  %v5019_v51 = vpack.c.bf16 %v2211_v30, %v2209_v46  ;;  %v5021_v38 = vpack.c.bf16 %v2212_v32, %v2210_v3 }
 0x44a   : > { %v2045_v11 = vmul.f32 1.442695, %v1925_v49  ;;  %v2047_v36 = vmul.f32 1.442695, %v1926_v24  ;;  %v2103_v22 = vadd.f32 %v5015_v31, %v5009_v34 }
 0x44c   : > { %3262 = vpow2.f32 %v2045_v11  ;;  %2334 = vmatmul.bf16.gmra.mxu2 %v5019_v51  ;;  %2423 = vmatmul.bf16.gmra.mxu3 %v5021_v38 }
 0x44d   : > { %3264 = vpow2.f32 %v2047_v36  ;;  %2104 = vadd.xlane.f32.xlu0 %v2103_v22 }
 0x44e   : > { %3266 = vpow2.f32 %v2049_v19  ;;  %v1865_v7 = vpop.xlane.xlu0 %1864 }
 0x44f   : > { %3268 = vpow2.f32 %v2051_v43  ;;  %v1929_v52 = vsub.f32 %v4823_v1, %v1865_v7  ;;  %v1930_v29 = vsub.f32 %v4827_v33, %v1865_v7  ;;  %v2099_v55 = vpop.xlane.xlu2 %2098 }
 0x451   : > { %v2053_v45 = vmul.f32 1.442695, %v1929_v52  ;;  %v2055_v20 = vmul.f32 1.442695, %v1930_v29 }
 0x452   : > { %v5029_v56 = vpop.eup %3262 }
 0x453   : > { %v5031_v8 = vpop.eup %3264  ;;  %3270 = vpow2.f32 %v2053_v45 }
 0x454   : > { %v5033_v35 = vpop.eup %3266  ;;  %v2145_v6 = vadd.f32 %v5031_v8, %v5029_v56  ;;  %3272 = vpow2.f32 %v2055_v20  ;;  %v5674_v20 = vld [vmem:[#allocation35_spill] sm:$0xff] }
 0x455   : > { %v5037_v14 = vpop.eup %3268  ;;  %3274 = vrcp.f32 %v2099_v55 }
 0x456   : > { %v2148_v1 = vadd.f32 %v5037_v14, %v5033_v35  ;;  %2146 = vadd.xlane.f32.xlu1 %v2145_v6  ;;  %v2102_v33 = vpop.xlane.xlu0 %2101  ;;  %v1868_v46 = vpop.xlane.xlu1 %1867 }
 0x457   : > { %3276 = vrcp.f32 %v2102_v33  ;;  %v1931_v3 = vsub.f32 %v4841_v53, %v1868_v46  ;;  %v1932_v49 = vsub.f32 %v4843_v21, %v1868_v46  ;;  %v5675_v46 = vld [vmem:[#allocation36_spill] sm:$0xff] }
 0x458   : > { %2149 = vadd.xlane.f32.xlu2 %v2148_v1 }
 0x459   : > { %v5043_v24 = vpop.eup %3270  ;;  %v2057_v5 = vmul.f32 1.442695, %v1931_v3  ;;  %v2059_v60 = vmul.f32 1.442695, %v1932_v49 }
 0x45a   : > { %v5045_v30 = vpop.eup %3272 }
 0x45b   : > { %v3275_v32 = vpop.eup %3274  ;;  %3278 = vpow2.f32 %v2057_v5  ;;  %v2151_v11 = vadd.f32 %v5045_v30, %v5043_v24 }
 0x45c   : > { %3280 = vpow2.f32 %v2059_v60  ;;  %v2213_v19 = vmul.f32 %v3275_v32, %v4819_v37  ;;  %v2214_v53 = vmul.f32 %v3275_v32, %v4821_v61 }
 0x45d   : > { %v3277_v36 = vpop.eup %3276 }
 0x45e   : > { %v2215_v43 = vmul.f32 %v3277_v36, %v4835_v13  ;;  %v2216_v21 = vmul.f32 %v3277_v36, %v4837_v58 }
 0x460   : > { %2152 = vadd.xlane.f32.xlu2 %v2151_v11  ;;  %v5053_v22 = vpack.c.bf16 %v2215_v43, %v2213_v19  ;;  %v5055_v7 = vpack.c.bf16 %v2216_v21, %v2214_v53  ;;  %v2111_v45 = vpop.xlane.xlu1 %2110 }
 0x461   : > { %v5057_v52 = vpop.eup %3278 }
 0x462   : > { %v5059_v29 = vpop.eup %3280  ;;  %2339 = vmatmul.bf16.gmra.mxu2 %v5053_v22  ;;  %2428 = vmatmul.bf16.gmra.mxu3 %v5055_v7 }
 0x463   : > { %v2154_v37 = vadd.f32 %v5059_v29, %v5057_v52 }
 0x465   : > { %2155 = vadd.xlane.f32.xlu0 %v2154_v37 }
 0x468   : > { %v2114_v61 = vpop.xlane.xlu2 %2113 }
 0x469   : > { %3282 = vrcp.f32 %v2114_v61  ;;  %v5676_v61 = vld [vmem:[#allocation37_spill] sm:$0xff] }
 0x46a   : > { %3284 = vrcp.f32 %v2111_v45  ;;  %v5677_v45 = vld [vmem:[#allocation84_spill] sm:$0xff] }
 0x46f   : > { %v3283_v1 = vpop.eup %3282 }
 0x470   : > { %v3285_v49 = vpop.eup %3284  ;;  %v2223_v32 = vmul.f32 %v3283_v1, %v4861_v18  ;;  %v2224_v11 = vmul.f32 %v3283_v1, %v4865_v25  ;;  %v5679_v1 = vld [vmem:[#allocation82_spill] sm:$0xff] }
 0x471   : > { %v2221_v36 = vmul.f32 %v3285_v49, %v4851_v17  ;;  %v2222_v19 = vmul.f32 %v3285_v49, %v4853_v0 }
 0x472   : > { %v2117_v37 = vpop.xlane.xlu2 %2116 }
 0x473   : > { %v5081_v53 = vpack.c.bf16 %v2223_v32, %v2221_v36  ;;  %v5083_v21 = vpack.c.bf16 %v2224_v11, %v2222_v19  ;;  %v5681_v11 = vld [vmem:[#allocation38_spill] sm:$0xff] }
 0x477   : > { %v2310_v13 = vpop.f32.mrf.mxu2  ;;  %v2399_v58 = vpop.f32.mrf.mxu3 }
 0x478   : > { %v2311_v55 = vadd.f32 %v2310_v13, %v5674_v20  ;;  %v2120_v43 = vpop.xlane.xlu0 %2119 }
 0x479   : > { %3286 = vrcp.f32 %v2120_v43 }
 0x47a   : > { %v2400_v6 = vadd.f32 %v2399_v58, %v2311_v55  ;;  %3288 = vrcp.f32 %v2117_v37  ;;  %v5678_v55 = vld [vmem:[#allocation85_spill] sm:$0xff] }
 0x47c   : > { %2479 = vst.msk [vmem:[%s5070_s25] sm:$0xff] %vm1498_vm0, %v2400_v6 }
 0x47f   : > { %v2312_v33 = vpop.f32.mrf.mxu2  ;;  %v2401_v5 = vpop.f32.mrf.mxu3 }
 0x480   : > { %v2313_v3 = vadd.f32 %v2312_v33, %v5675_v46  ;;  %v3287_v58 = vpop.eup %3286  ;;  %v5680_v46 = vld [vmem:[#allocation83_spill] sm:$0xff] }
 0x481   : > { %v3289_v0 = vpop.eup %3288  ;;  %v2227_v20 = vmul.f32 %v3287_v58, %v5677_v45  ;;  %v2228_v6 = vmul.f32 %v3287_v58, %v5678_v55  ;;  %v5683_v58 = vld [vmem:[#allocation9_spill] sm:$0xff] }
 0x482   : > { %v2402_v60 = vadd.f32 %v2401_v5, %v2313_v3  ;;  %v2225_v33 = vmul.f32 %v3289_v0, %v5679_v1  ;;  %v2226_v3 = vmul.f32 %v3289_v0, %v5680_v46  ;;  %v5684_v0 = vld [vmem:[#allocation15_spill] sm:$0xff] }
 0x484   : > { %2480 = vst.msk [vmem:[%s5070_s25 + $0x8] sm:$0xff] %vm1498_vm0, %v2402_v60 }
 0x488   : > { %v2123_v49 = vpop.xlane.xlu0 %2122 }
 0x489   : > { %2551 = vxpose.binary.xlu2.c.b16.start [1/16] %v5083_v21, %v5081_v53, 128  ;;  %3290 = vrcp.f32 %v2123_v49 }
 0x48a   : > { %v2126_v32 = vpop.xlane.xlu1 %2125 }
 0x48b   : > { %3292 = vrcp.f32 %v2126_v32 }
 0x48d   : > { %v2315_v18 = vpop.f32.mrf.mxu2  ;;  %v2404_v25 = vpop.f32.mrf.mxu3 }
 0x48e   : > { %v2316_v13 = vadd.f32 %v2315_v18, %v5676_v61  ;;  %v5682_v61 = vld [vmem:[#allocation39_spill] sm:$0xff] }
 0x48f   : > { %v3291_v43 = vpop.eup %3290 }
 0x490   : > { %2527 = vxpose.binary.xlu1.c.b16.start [1/16] %v4869_v16, %v4867_v44, 128  ;;  %v2405_v17 = vadd.f32 %v2404_v25, %v2316_v13  ;;  %v5097_v44 = vpack.c.bf16 %v2227_v20, %v2225_v33  ;;  %v5099_v16 = vpack.c.bf16 %v2228_v6, %v2226_v3  ;;  %v5685_v20 = vld [vmem:[#allocation14_spill] sm:$0xff]  ;;  %v5686_v6 = vld [vmem:[#allocation17_spill] sm:$0xff] }
 0x491   : > { %v3293_v37 = vpop.eup %3292  ;;  %v2230_v45 = vmul.f32 %v3291_v43, %v5684_v0 }
 0x492   : > { %2481 = vst.msk [vmem:[%s5070_s25 + $0x10] sm:$0xff] %vm1498_vm0, %v2405_v17  ;;  %v2229_v17 = vmul.f32 %v3291_v43, %v5683_v58  ;;  %v2231_v55 = vmul.f32 %v3293_v37, %v5685_v20  ;;  %v2232_v1 = vmul.f32 %v3293_v37, %v5686_v6 }
 0x494   : > { %v5114_v49 = vpack.c.bf16 %v2231_v55, %v2229_v17 }
 0x495   : > { %v2317_v5 = vpop.f32.mrf.mxu2  ;;  %v2406_v60 = vpop.f32.mrf.mxu3 }
 0x496   : > { %v2318_v36 = vadd.f32 %v2317_v5, %v5681_v11  ;;  %v5116_v5 = vpack.c.bf16 %v2232_v1, %v2230_v45  ;;  %v5689_v1 = vld [vmem:[#allocation42_spill] sm:$0xff] }
 0x498   : > { %v2407_v19 = vadd.f32 %v2406_v60, %v2318_v36  ;;  %v2129_v46 = vpop.xlane.xlu1 %2128  ;;  %v5687_v60 = vld [vmem:[#allocation40_spill] sm:$0xff] }
 0x499   : > { %2552 = vxpose.binary.xlu2.c.b16.cont [2/16] %v5099_v16, %v5097_v44, 128  ;;  %3294 = vrcp.f32 %v2129_v46 }
 0x49a   : > { %2482 = vst.msk [vmem:[%s5070_s25 + $0x18] sm:$0xff] %vm1498_vm0, %v2407_v19  ;;  %v2132_v3 = vpop.xlane.xlu2 %2131 }
 0x49b   : > { %3296 = vrcp.f32 %v2132_v3 }
 0x49e   : > { %v2320_v18 = vpop.f32.mrf.mxu2  ;;  %v2409_v25 = vpop.f32.mrf.mxu3 }
 0x49f   : > { %v2321_v13 = vadd.f32 %v2320_v18, %v5682_v61  ;;  %v3295_v36 = vpop.eup %3294 }
 0x4a0   : > { %2528 = vxpose.binary.xlu1.c.b16.cont [2/16] %v4899_v50, %v4897_v4, 128  ;;  %v2234_v0 = vmul.f32 %v3295_v36, %v4935_v9  ;;  %v2108_v9 = vpop.xlane.xlu1 %2107 }
 0x4a1   : > { %v2410_v33 = vadd.f32 %v2409_v25, %v2321_v13  ;;  %v3297_v19 = vpop.eup %3296  ;;  %v5688_v25 = vld [vmem:[#allocation41_spill] sm:$0xff]  ;;  %v2233_v13 = vmul.f32 %v3295_v36, %v4933_v54 }
 0x4a2   : > { %v2235_v58 = vmul.f32 %v3297_v19, %v4937_v62  ;;  %v2236_v17 = vmul.f32 %v3297_v19, %v4941_v47 }
 0x4a3   : > { %2483 = vst.msk [vmem:[%s5070_s25 + $0x20] sm:$0xff] %vm1498_vm0, %v2410_v33 }
 0x4a4   : > { %v5132_v55 = vpack.c.bf16 %v2235_v58, %v2233_v13  ;;  %v5134_v6 = vpack.c.bf16 %v2236_v17, %v2234_v0 }
 0x4a6   : > { %v2322_v4 = vpop.f32.mrf.mxu2  ;;  %v2411_v50 = vpop.f32.mrf.mxu3 }
 0x4a7   : > { %v2323_v32 = vadd.f32 %v2322_v4, %v5687_v60 }
 0x4a9   : > { %2553 = vxpose.binary.xlu2.c.b16.cont [3/16] %v5116_v5, %v5114_v49, 128  ;;  %v2412_v11 = vadd.f32 %v2411_v50, %v2323_v32  ;;  %v2135_v20 = vpop.xlane.xlu2 %2134  ;;  %v5690_v50 = vld [vmem:[#allocation43_spill] sm:$0xff] }
 0x4aa   : > { %3298 = vrcp.f32 %v2135_v20 }
 0x4ab   : > { %2484 = vst.msk [vmem:[%s5070_s25 + $0x28] sm:$0xff] %vm1498_vm0, %v2412_v11  ;;  %v2138_v18 = vpop.xlane.xlu0 %2137 }
 0x4ac   : > { %3300 = vrcp.f32 %v2138_v18 }
 0x4ad   : > { %3302 = vrcp.f32 %v2108_v9 }
 0x4ae   : > { %v2325_v43 = vpop.f32.mrf.mxu2  ;;  %v2414_v37 = vpop.f32.mrf.mxu3 }
 0x4af   : > { %v2326_v61 = vadd.f32 %v2325_v43, %v5688_v25 }
 0x4b0   : > { %2529 = vxpose.binary.xlu1.c.b16.cont [3/16] %v4929_v28, %v4927_v10, 128  ;;  %v3299_v33 = vpop.eup %3298 }
 0x4b1   : > { %v2415_v45 = vadd.f32 %v2414_v37, %v2326_v61  ;;  %v2237_v11 = vmul.f32 %v3299_v33, %v4965_v48  ;;  %v2238_v36 = vmul.f32 %v3299_v33, %v4967_v27 }
 0x4b2   : > { %v3301_v46 = vpop.eup %3300 }
 0x4b3   : > { %2485 = vst.msk [vmem:[%s5070_s25 + $0x30] sm:$0xff] %vm1498_vm0, %v2415_v45  ;;  %v2239_v19 = vmul.f32 %v3301_v46, %v4969_v26  ;;  %v2240_v43 = vmul.f32 %v3301_v46, %v4973_v39  ;;  %v3303_v18 = vpop.eup %3302  ;;  %v5691_v26 = vld [vmem:[#allocation44_spill] sm:$0xff] }
 0x4b4   : > { %v2219_v58 = vmul.f32 %v3303_v18, %v4947_v2  ;;  %v2220_v27 = vmul.f32 %v3303_v18, %v4953_v23 }
 0x4b5   : > { %v5150_v61 = vpack.c.bf16 %v2239_v19, %v2237_v11 }
 0x4b6   : > { %v2327_v10 = vpop.f32.mrf.mxu2  ;;  %v2416_v28 = vpop.f32.mrf.mxu3 }
 0x4b7   : > { %v2328_v54 = vadd.f32 %v2327_v10, %v5689_v1 }
 0x4b8   : > { %v2141_v62 = vpop.xlane.xlu0 %2140 }
 0x4b9   : > { %2554 = vxpose.binary.xlu2.c.b16.cont [4/16] %v5134_v6, %v5132_v55, 128  ;;  %v2417_v47 = vadd.f32 %v2416_v28, %v2328_v54 }
 0x4ba   : > { %v2144_v25 = vpop.xlane.xlu1 %2143 }
 0x4bb   : > { %2486 = vst.msk [vmem:[%s5070_s25 + $0x38] sm:$0xff] %vm1498_vm0, %v2417_v47 }
 0x4bf   : > { %v2330_v3 = vpop.f32.mrf.mxu2  ;;  %v2419_v4 = vpop.f32.mrf.mxu3 }
 0x4c0   : > { %2530 = vxpose.binary.xlu1.c.b16.cont [4/16] %v4959_v59, %v4957_v63, 128  ;;  %v2331_v60 = vadd.f32 %v2330_v3, %v5690_v50  ;;  %v2105_v32 = vpop.xlane.xlu0 %2104  ;;  %v5152_v63 = vpack.c.bf16 %v2240_v43, %v2238_v36 }
 0x4c1   : > { %3304 = vrcp.f32 %v2105_v32 }
 0x4c2   : > { %v2420_v37 = vadd.f32 %v2419_v4, %v2331_v60  ;;  %3306 = vrcp.f32 %v2141_v62 }
 0x4c3   : > { %3308 = vrcp.f32 %v2144_v25 }
 0x4c4   : > { %2487 = vst.msk [vmem:[%s5070_s25 + $0x40] sm:$0xff] %vm1498_vm0, %v2420_v37 }
 0x4c7   : > { %v3305_v59 = vpop.eup %3304  ;;  %v2332_v13 = vpop.f32.mrf.mxu2 }
 0x4c8   : > { %v2421_v48 = vpop.f32.mrf.mxu3  ;;  %v2333_v39 = vadd.f32 %v2332_v13, %v5691_v26  ;;  %v2217_v17 = vmul.f32 %v3305_v59, %v5009_v34  ;;  %v2218_v0 = vmul.f32 %v3305_v59, %v5015_v31  ;;  %v3307_v2 = vpop.eup %3306  ;;  %v5692_v34 = vld [vmem:[#allocation51_spill] sm:$0xff] }
 0x4c9   : > { %2555 = vxpose.binary.xlu2.c.b16.cont [5/16] %v5152_v63, %v5150_v61, 128  ;;  %v3309_v23 = vpop.eup %3308  ;;  %v2241_v54 = vmul.f32 %v3307_v2, %v4995_v15  ;;  %v2242_v62 = vmul.f32 %v3307_v2, %v4997_v42  ;;  %v2147_v46 = vpop.xlane.xlu1 %2146 }
 0x4ca   : > { %v2422_v45 = vadd.f32 %v2421_v48, %v2333_v39  ;;  %v5161_v20 = vpack.c.bf16 %v2219_v58, %v2217_v17  ;;  %v5163_v10 = vpack.c.bf16 %v2220_v27, %v2218_v0  ;;  %v2243_v47 = vmul.f32 %v3309_v23, %v4999_v41 }
 0x4cb   : > { %v2244_v9 = vmul.f32 %v3309_v23, %v5003_v40  ;;  %v2150_v3 = vpop.xlane.xlu2 %2149  ;;  %3310 = vrcp.f32 %v2147_v46  ;;  %v5697_v23 = vld [vmem:[#allocation64_spill] sm:$0xff] }
 0x4cc   : > { %2488 = vst.msk [vmem:[%s5070_s25 + $0x48] sm:$0xff] %vm1498_vm0, %v2422_v45  ;;  %2344 = vmatmul.bf16.gmra.mxu2 %v5161_v20  ;;  %2433 = vmatmul.bf16.gmra.mxu3 %v5163_v10  ;;  %v2279_v4 = vpack.c.bf16 %v2243_v47, %v2241_v54  ;;  %3312 = vrcp.f32 %v2150_v3  ;;  %v5698_v47 = vld [vmem:[#allocation69_spill] sm:$0xff] }
 0x4cd   : > { %v2280_v50 = vpack.c.bf16 %v2244_v9, %v2242_v62 }
 0x4cf   : > { %v2335_v28 = vpop.f32.mrf.mxu2 }
 0x4d0   : > { %v2424_v1 = vpop.f32.mrf.mxu3  ;;  %2531 = vxpose.binary.xlu1.c.b16.cont [5/16] %v4991_v12, %v4989_v57, 128  ;;  %v2336_v31 = vadd.f32 %v2335_v28, %v5692_v34  ;;  %v5693_v57 = vld [vmem:[#allocation52_spill] sm:$0xff] }
 0x4d1   : > { %v3311_v41 = vpop.eup %3310 }
 0x4d2   : > { %v2425_v33 = vadd.f32 %v2424_v1, %v2336_v31  ;;  %v3313_v40 = vpop.eup %3312  ;;  %v2245_v36 = vmul.f32 %v3311_v41, %v5029_v56  ;;  %v2246_v19 = vmul.f32 %v3311_v41, %v5031_v8 }
 0x4d3   : > { %v2247_v32 = vmul.f32 %v3313_v40, %v5033_v35  ;;  %v2248_v11 = vmul.f32 %v3313_v40, %v5037_v14  ;;  %v2153_v13 = vpop.xlane.xlu2 %2152 }
 0x4d4   : > { %2489 = vst.msk [vmem:[%s5070_s25 + $0x50] sm:$0xff] %vm1498_vm0, %v2425_v33 }
 0x4d5   : > { %v2282_v59 = vpack.c.bf16 %v2248_v11, %v2246_v19 }
 0x4d7   : > { %v2337_v60 = vpop.f32.mrf.mxu2 }
 0x4d8   : > { %v2338_v12 = vadd.f32 %v2337_v60, %v5693_v57  ;;  %v2426_v15 = vpop.f32.mrf.mxu3  ;;  %v2156_v18 = vpop.xlane.xlu0 %2155  ;;  %v5699_v60 = vld [vmem:[#allocation68_spill] sm:$0xff] }
 0x4d9   : > { %2556 = vxpose.binary.xlu2.c.b16.cont [6/16] %v2280_v50, %v2279_v4, 128  ;;  %3314 = vrcp.f32 %v2156_v18 }
 0x4da   : > { %v2427_v42 = vadd.f32 %v2426_v15, %v2338_v12  ;;  %3316 = vrcp.f32 %v2153_v13 }
 0x4dc   : > { %2490 = vst.msk [vmem:[%s5070_s25 + $0x58] sm:$0xff] %vm1498_vm0, %v2427_v42  ;;  %2349 = vmatmul.bf16.gmra.mxu2 %v5081_v53  ;;  %2438 = vmatmul.bf16.gmra.mxu3 %v5083_v21  ;;  %v5694_v53 = vld [vmem:[#allocation57_spill] sm:$0xff]  ;;  %v2281_v21 = vpack.c.bf16 %v2247_v32, %v2245_v36  ;;  %v5700_v32 = vld [vmem:[#allocation71_spill] sm:$0xff] }
 0x4df   : > { %v3315_v8 = vpop.eup %3314 }
 0x4e0   : > { %2532 = vxpose.binary.xlu1.c.b16.cont [6/16] %v5021_v38, %v5019_v51, 128  ;;  %v5695_v38 = vld [vmem:[#allocation58_spill] sm:$0xff]  ;;  %v3317_v58 = vpop.eup %3316  ;;  %v2251_v27 = vmul.f32 %v3315_v8, %v5057_v52  ;;  %v2252_v26 = vmul.f32 %v3315_v8, %v5059_v29 }
 0x4e5   : > { %v2340_v43 = vpop.f32.mrf.mxu2  ;;  %v2429_v37 = vpop.f32.mrf.mxu3 }
 0x4e6   : > { %v2341_v25 = vadd.f32 %v2340_v43, %v5694_v53  ;;  %v5701_v53 = vld [vmem:[#allocation70_spill] sm:$0xff] }
 0x4e8   : > { %v2430_v48 = vadd.f32 %v2429_v37, %v2341_v25 }
 0x4e9   : > { %2557 = vxpose.binary.xlu2.c.b16.cont [7/16] %v2282_v59, %v2281_v21, 128 }
 0x4ea   : > { %2491 = vst.msk [vmem:[%s5070_s25 + $0x60] sm:$0xff] %vm1498_vm0, %v2430_v48 }
 0x4ec   : > { %2354 = vmatmul.bf16.gmra.mxu2 %v5097_v44  ;;  %2443 = vmatmul.bf16.gmra.mxu3 %v5099_v16  ;;  %v2249_v44 = vmul.f32 %v3317_v58, %v5043_v24  ;;  %v2250_v16 = vmul.f32 %v3317_v58, %v5045_v30 }
 0x4ed   : > { %v2342_v51 = vpop.f32.mrf.mxu2  ;;  %v2431_v35 = vpop.f32.mrf.mxu3 }
 0x4ee   : > { %v2343_v56 = vadd.f32 %v2342_v51, %v5695_v38  ;;  %v2283_v39 = vpack.c.bf16 %v2251_v27, %v2249_v44  ;;  %v2284_v17 = vpack.c.bf16 %v2252_v26, %v2250_v16  ;;  %v5702_v38 = vld [vmem:[#allocation73_spill] sm:$0xff]  ;;  %v5703_v26 = vld [vmem:[#allocation72_spill] sm:$0xff] }
 0x4f0   : > { %2533 = vxpose.binary.xlu1.c.b16.cont [7/16] %v5055_v7, %v5053_v22, 128  ;;  %v2432_v14 = vadd.f32 %v2431_v35, %v2343_v56 }
 0x4f2   : > { %2492 = vst.msk [vmem:[%s5070_s25 + $0x68] sm:$0xff] %vm1498_vm0, %v2432_v14 }
 0x4f9   : > { %2558 = vxpose.binary.xlu2.c.b16.end [8/16] %v2284_v17, %v2283_v39, 128 }
 0x4fc   : > { %2359 = vmatmul.bf16.gmra.mxu2 %v5114_v49  ;;  %2448 = vmatmul.bf16.gmra.mxu3 %v5116_v5 }
 0x500   : > { %2534 = vxpose.binary.xlu1.c.b16.end [8/16] %v5163_v10, %v5161_v20, 128 }
 0x50c   : > { %2364 = vmatmul.bf16.gmra.mxu2 %v5132_v55  ;;  %2453 = vmatmul.bf16.gmra.mxu3 %v5134_v6 }
 0x51c   : > { %2369 = vmatmul.bf16.gmra.mxu2 %v5150_v61  ;;  %2458 = vmatmul.bf16.gmra.mxu3 %v5152_v63  ;;  %v5696_v61 = vld [vmem:[#allocation63_spill] sm:$0xff] }
 0x52a   : > { %v2559_v24 = vpop.trf.xlu2 }
 0x52b   : > { %2672 = vmatmul.bf16.vlgmr.msra.gmra.mxu1 %v2559_v24 }
 0x52c   : > { %2374 = vmatmul.bf16.gmra.mxu2 %v2279_v4  ;;  %2463 = vmatmul.bf16.gmra.mxu3 %v2280_v50 }
 0x532   : > { %v5211_v30 = vpop.trf.xlu2 }
 0x53a   : > { %v2561_v22 = vpop.trf.xlu2 }
 0x53b   : > { %2677 = vmatmul.bf16.gmra.mxu1 %v2561_v22 }
 0x53c   : > { %v2535_v7 = vpop.trf.xlu1  ;;  %2379 = vmatmul.bf16.gmra.mxu2 %v2281_v21  ;;  %2468 = vmatmul.bf16.gmra.mxu3 %v2282_v59 }
 0x53d   : > { %2583 = vmatmul.bf16.vlgmr.msra.gmra.mxu0 %v2535_v7  ;;  %v5704_v7 = vld [vmem:[#allocation75_spill] sm:$0xff] }
 0x542   : > { %v5213_v52 = vpop.trf.xlu2 }
 0x544   : > { %v5215_v29 = vpop.trf.xlu1 }
 0x54a   : > { %v2563_v49 = vpop.trf.xlu2 }
 0x54b   : > { %2682 = vmatmul.bf16.gmra.mxu1 %v2563_v49 }
 0x54c   : > { %v2537_v5 = vpop.trf.xlu1  ;;  %2384 = vmatmul.bf16.gmra.mxu2 %v2283_v39  ;;  %2473 = vmatmul.bf16.gmra.mxu3 %v2284_v17 }
 0x54d   : > { %2588 = vmatmul.bf16.gmra.mxu0 %v2537_v5 }
 0x54f   : > { %v2345_v55 = vpop.f32.mrf.mxu2  ;;  %v2434_v6 = vpop.f32.mrf.mxu3 }
 0x550   : > { %v2346_v63 = vadd.f32 %v2345_v55, %v5696_v61 }
 0x552   : > { %v5218_v0 = vpop.trf.xlu2  ;;  %v2435_v45 = vadd.f32 %v2434_v6, %v2346_v63 }
 0x554   : > { %v5220_v20 = vpop.trf.xlu1  ;;  %2493 = vst.msk [vmem:[%s5070_s25 + $0x70] sm:$0xff] %vm1498_vm0, %v2435_v45  ;;  %v5705_v45 = vld [vmem:[#allocation74_spill] sm:$0xff] }
 0x557   : > { %v2347_v10 = vpop.f32.mrf.mxu2  ;;  %v2436_v2 = vpop.f32.mrf.mxu3 }
 0x558   : > { %v2348_v28 = vadd.f32 %v2347_v10, %v5697_v23 }
 0x55a   : > { %v2565_v1 = vpop.trf.xlu2  ;;  %v2437_v34 = vadd.f32 %v2436_v2, %v2348_v28 }
 0x55b   : > { %2687 = vmatmul.bf16.gmra.mxu1 %v2565_v1 }
 0x55c   : > { %v2539_v31 = vpop.trf.xlu1  ;;  %2494 = vst.msk [vmem:[%s5070_s25 + $0x78] sm:$0xff] %vm1498_vm0, %v2437_v34 }
 0x55d   : > { %2593 = vmatmul.bf16.gmra.mxu0 %v2539_v31  ;;  %v5706_v31 = vld [vmem:[#allocation3_spill] sm:$0xff] }
 0x55f   : > { %v2350_v54 = vpop.f32.mrf.mxu2  ;;  %v2439_v62 = vpop.f32.mrf.mxu3 }
 0x560   : > { %v2351_v9 = vadd.f32 %v2350_v54, %v5698_v47 }
 0x562   : > { %v5228_v33 = vpop.trf.xlu2  ;;  %v2440_v46 = vadd.f32 %v2439_v62, %v2351_v9 }
 0x564   : > { %v5230_v3 = vpop.trf.xlu1  ;;  %2495 = vst.msk [vmem:[%s5070_s25 + $0x80] sm:$0xff] %vm1498_vm0, %v2440_v46 }
 0x567   : > { %v2352_v4 = vpop.f32.mrf.mxu2  ;;  %v2441_v50 = vpop.f32.mrf.mxu3 }
 0x568   : > { %v2353_v57 = vadd.f32 %v2352_v4, %v5699_v60  ;;  %v5707_v4 = vld [vmem:[#allocation8_spill] sm:$0xff] }
 0x56a   : > { %v2567_v12 = vpop.trf.xlu2  ;;  %v2442_v15 = vadd.f32 %v2441_v50, %v2353_v57 }
 0x56b   : > { %2692 = vmatmul.bf16.gmra.mxu1 %v2567_v12 }
 0x56c   : > { %v2541_v42 = vpop.trf.xlu1  ;;  %2496 = vst.msk [vmem:[%s5070_s25 + $0x88] sm:$0xff] %vm1498_vm0, %v2442_v15 }
 0x56d   : > { %2598 = vmatmul.bf16.gmra.mxu0 %v2541_v42 }
 0x56f   : > { %v2355_v41 = vpop.f32.mrf.mxu2  ;;  %v2444_v40 = vpop.f32.mrf.mxu3 }
 0x570   : > { %v2356_v11 = vadd.f32 %v2355_v41, %v5700_v32  ;;  %v5708_v41 = vld [vmem:[#allocation46_spill] sm:$0xff] }
 0x572   : > { %v5238_v36 = vpop.trf.xlu2  ;;  %v2445_v19 = vadd.f32 %v2444_v40, %v2356_v11 }
 0x574   : > { %v5240_v43 = vpop.trf.xlu1  ;;  %2497 = vst.msk [vmem:[%s5070_s25 + $0x90] sm:$0xff] %vm1498_vm0, %v2445_v19 }
 0x577   : > { %v2357_v37 = vpop.f32.mrf.mxu2  ;;  %v2446_v18 = vpop.f32.mrf.mxu3 }
 0x578   : > { %v2358_v25 = vadd.f32 %v2357_v37, %v5701_v53 }
 0x57a   : > { %v2569_v21 = vpop.trf.xlu2  ;;  %v2447_v59 = vadd.f32 %v2446_v18, %v2358_v25  ;;  %v5709_v18 = vld [vmem:[#allocation2_spill] sm:$0xff] }
 0x57b   : > { %2697 = vmatmul.bf16.gmra.mxu1 %v2569_v21 }
 0x57c   : > { %v2543_v13 = vpop.trf.xlu1  ;;  %2498 = vst.msk [vmem:[%s5070_s25 + $0x98] sm:$0xff] %vm1498_vm0, %v2447_v59  ;;  %v5710_v59 = vld [vmem:[#allocation34_spill] sm:$0xff] }
 0x57d   : > { %2603 = vmatmul.bf16.gmra.mxu0 %v2543_v13 }
 0x57f   : > { %v2360_v48 = vpop.f32.mrf.mxu2  ;;  %v2449_v51 = vpop.f32.mrf.mxu3 }
 0x580   : > { %v2361_v56 = vadd.f32 %v2360_v48, %v5702_v38 }
 0x582   : > { %v5248_v8 = vpop.trf.xlu2  ;;  %v2450_v35 = vadd.f32 %v2449_v51, %v2361_v56 }
 0x584   : > { %v5250_v14 = vpop.trf.xlu1  ;;  %2499 = vst.msk [vmem:[%s5070_s25 + $0xa0] sm:$0xff] %vm1498_vm0, %v2450_v35 }
 0x587   : > { %v2362_v58 = vpop.f32.mrf.mxu2  ;;  %v2451_v27 = vpop.f32.mrf.mxu3 }
 0x588   : > { %v2363_v44 = vadd.f32 %v2362_v58, %v5703_v26  ;;  %v5712_v26 = vld [vmem:[#allocation33_spill] sm:$0xff] }
 0x58a   : > { %v2571_v16 = vpop.trf.xlu2  ;;  %v2452_v39 = vadd.f32 %v2451_v27, %v2363_v44 }
 0x58b   : > { %2702 = vmatmul.bf16.gmra.mxu1 %v2571_v16 }
 0x58c   : > { %v2545_v17 = vpop.trf.xlu1  ;;  %2500 = vst.msk [vmem:[%s5070_s25 + $0xa8] sm:$0xff] %vm1498_vm0, %v2452_v39 }
 0x58d   : > { %2608 = vmatmul.bf16.gmra.mxu0 %v2545_v17  ;;  %v5713_v17 = vld [vmem:[#allocation11_spill] sm:$0xff] }
 0x58f   : > { %v2365_v24 = vpop.f32.mrf.mxu2  ;;  %v2454_v22 = vpop.f32.mrf.mxu3 }
 0x590   : > { %v2366_v49 = vadd.f32 %v2365_v24, %v5704_v7 }
 0x592   : > { %v5258_v5 = vpop.trf.xlu2  ;;  %v2455_v55 = vadd.f32 %v2454_v22, %v2366_v49 }
 0x594   : > { %v5260_v6 = vpop.trf.xlu1  ;;  %2501 = vst.msk [vmem:[%s5070_s25 + $0xb0] sm:$0xff] %vm1498_vm0, %v2455_v55  ;;  %v5714_v55 = vld [vmem:[#allocation32_spill] sm:$0xff] }
 0x597   : > { %v2367_v61 = vpop.f32.mrf.mxu2  ;;  %v2456_v63 = vpop.f32.mrf.mxu3 }
 0x598   : > { %v2368_v10 = vadd.f32 %v2367_v61, %v5705_v45 }
 0x59a   : > { %v2573_v2 = vpop.trf.xlu2  ;;  %v2457_v23 = vadd.f32 %v2456_v63, %v2368_v10 }
 0x59b   : > { %2707 = vmatmul.bf16.gmra.mxu1 %v2573_v2  ;;  %v5715_v2 = vld [vmem:[#allocation12_spill] sm:$0xff] }
 0x59c   : > { %v2547_v28 = vpop.trf.xlu1  ;;  %2502 = vst.msk [vmem:[%s5070_s25 + $0xb8] sm:$0xff] %vm1498_vm0, %v2457_v23 }
 0x59d   : > { %2613 = vmatmul.bf16.gmra.mxu0 %v2547_v28 }
 0x59f   : > { %v2370_v1 = vpop.f32.mrf.mxu2  ;;  %v2459_v34 = vpop.f32.mrf.mxu3 }
 0x5a0   : > { %v2371_v54 = vadd.f32 %v2370_v1, %v5706_v31 }
 0x5a2   : > { %v2460_v62 = vadd.f32 %v2459_v34, %v2371_v54 }
 0x5a4   : > { %v5268_v47 = vpop.trf.xlu1  ;;  %2503 = vst.msk [vmem:[%s5070_s25 + $0xc0] sm:$0xff] %vm1498_vm0, %v2460_v62 }
 0x5a7   : > { %v2372_v46 = vpop.f32.mrf.mxu2  ;;  %v2461_v60 = vpop.f32.mrf.mxu3 }
 0x5a8   : > { %v2673_v9 = vpop.f32.mrf.mxu1  ;;  %v2373_v50 = vadd.f32 %v2372_v46, %v5707_v4 }
 0x5aa   : > { %v2462_v57 = vadd.f32 %v2461_v60, %v2373_v50 }
 0x5ab   : > { %2712 = vmatmul.bf16.gmra.mxu1 %v5211_v30 }
 0x5ac   : > { %v2549_v12 = vpop.trf.xlu1  ;;  %2504 = vst.msk [vmem:[%s5070_s25 + $0xc8] sm:$0xff] %vm1498_vm0, %v2462_v57  ;;  %v5718_v57 = vld [vmem:[#allocation30_spill] sm:$0xff] }
 0x5ad   : > { %2618 = vmatmul.bf16.gmra.mxu0 %v2549_v12 }
 0x5af   : > { %v2375_v42 = vpop.f32.mrf.mxu2  ;;  %v2464_v32 = vpop.f32.mrf.mxu3 }
 0x5b0   : > { %v2675_v15 = vpop.f32.mrf.mxu1  ;;  %v2376_v40 = vadd.f32 %v2375_v42, %v5708_v41 }
 0x5b2   : > { %v2465_v11 = vadd.f32 %v2464_v32, %v2376_v40  ;;  %v5719_v40 = vld [vmem:[#allocation29_spill] sm:$0xff] }
 0x5b4   : > { %2505 = vst.msk [vmem:[%s5070_s25 + $0xd0] sm:$0xff] %vm1498_vm0, %v2465_v11 }
 0x5b7   : > { %v2377_v37 = vpop.f32.mrf.mxu2  ;;  %v2466_v25 = vpop.f32.mrf.mxu3 }
 0x5b8   : > { %v2678_v19 = vpop.f32.mrf.mxu1  ;;  %v2378_v53 = vadd.f32 %v2377_v37, %v5709_v18  ;;  %v5720_v37 = vld [vmem:[#allocation28_spill] sm:$0xff] }
 0x5ba   : > { %v2467_v30 = vadd.f32 %v2466_v25, %v2378_v53  ;;  %v2584_v21 = vpop.f32.mrf.mxu0 }
 0x5bb   : > { %2717 = vmatmul.bf16.gmra.mxu1 %v5213_v52  ;;  %v2585_v13 = vadd.f32 %v2584_v21, %v5710_v59  ;;  %v5711_v52 = vld [vmem:[#allocation5_spill] sm:$0xff] }
 0x5bc   : > { %2506 = vst.msk [vmem:[%s5070_s25 + $0xd8] sm:$0xff] %vm1498_vm0, %v2467_v30  ;;  %v5721_v30 = vld [vmem:[#allocation27_spill] sm:$0xff] }
 0x5bd   : > { %v2674_v48 = vadd.f32 %v2673_v9, %v2585_v13  ;;  %2623 = vmatmul.bf16.gmra.mxu0 %v5215_v29  ;;  %v5717_v9 = vld [vmem:[#allocation4_spill] sm:$0xff] }
 0x5bf   : > { %2753 = vst.msk [vmem:[%s5288_s24] sm:$0xff] %vm1498_vm0, %v2674_v48  ;;  %v2380_v38 = vpop.f32.mrf.mxu2  ;;  %v2469_v35 = vpop.f32.mrf.mxu3  ;;  %v5722_v48 = vld [vmem:[#allocation26_spill] sm:$0xff] }
 0x5c0   : > { %v2680_v51 = vpop.f32.mrf.mxu1  ;;  %v2381_v56 = vadd.f32 %v2380_v38, %v5711_v52 }
 0x5c2   : > { %v2470_v58 = vadd.f32 %v2469_v35, %v2381_v56  ;;  %v2586_v27 = vpop.f32.mrf.mxu0  ;;  %v5723_v56 = vld [vmem:[#allocation25_spill] sm:$0xff] }
 0x5c3   : > { %v2587_v44 = vadd.f32 %v2586_v27, %v5712_v26  ;;  %v5724_v26 = vld [vmem:[#allocation24_spill] sm:$0xff] }
 0x5c4   : > { %2507 = vst.msk [vmem:[%s5070_s25 + $0xe0] sm:$0xff] %vm1498_vm0, %v2470_v58 }
 0x5c5   : > { %v2676_v16 = vadd.f32 %v2675_v15, %v2587_v44 }
 0x5c7   : > { %2754 = vst.msk [vmem:[%s5288_s24 + $0x8] sm:$0xff] %vm1498_vm0, %v2676_v16  ;;  %v2382_v29 = vpop.f32.mrf.mxu2  ;;  %v2471_v22 = vpop.f32.mrf.mxu3 }
 0x5c8   : > { %v2683_v39 = vpop.f32.mrf.mxu1  ;;  %v2383_v24 = vadd.f32 %v2382_v29, %v5713_v17  ;;  %v5725_v29 = vld [vmem:[#allocation23_spill] sm:$0xff] }
 0x5ca   : > { %v2472_v7 = vadd.f32 %v2471_v22, %v2383_v24  ;;  %v2589_v49 = vpop.f32.mrf.mxu0 }
 0x5cb   : > { %2722 = vmatmul.bf16.gmra.mxu1 %v5218_v0  ;;  %v2590_v61 = vadd.f32 %v2589_v49, %v5714_v55  ;;  %v5716_v0 = vld [vmem:[#allocation31_spill] sm:$0xff]  ;;  %v5726_v49 = vld [vmem:[#allocation22_spill] sm:$0xff] }
 0x5cc   : > { %2508 = vst.msk [vmem:[%s5070_s25 + $0xe8] sm:$0xff] %vm1498_vm0, %v2472_v7  ;;  %v2574_v7 = vpop.trf.xlu2 }
 0x5cd   : > { %v2679_v63 = vadd.f32 %v2678_v19, %v2590_v61  ;;  %2628 = vmatmul.bf16.gmra.mxu0 %v5220_v20 }
 0x5cf   : > { %2755 = vst.msk [vmem:[%s5288_s24 + $0x10] sm:$0xff] %vm1498_vm0, %v2679_v63  ;;  %v2385_v10 = vpop.f32.mrf.mxu2  ;;  %v2474_v28 = vpop.f32.mrf.mxu3 }
 0x5d0   : > { %v2685_v45 = vpop.f32.mrf.mxu1  ;;  %v2386_v23 = vadd.f32 %v2385_v10, %v5715_v2 }
 0x5d2   : > { %v2475_v1 = vadd.f32 %v2474_v28, %v2386_v23  ;;  %v2591_v34 = vpop.f32.mrf.mxu0 }
 0x5d3   : > { %v2592_v31 = vadd.f32 %v2591_v34, %v5716_v0  ;;  %v5728_v34 = vld [vmem:[#allocation19_spill] sm:$0xff] }
 0x5d4   : > { %2509 = vst.msk [vmem:[%s5070_s25 + $0xf0] sm:$0xff] %vm1498_vm0, %v2475_v1  ;;  %v2550_v1 = vpop.trf.xlu1 }
 0x5d5   : > { %v2681_v54 = vadd.f32 %v2680_v51, %v2592_v31 }
 0x5d7   : > { %2756 = vst.msk [vmem:[%s5288_s24 + $0x18] sm:$0xff] %vm1498_vm0, %v2681_v54  ;;  %v2387_v20 = vpop.f32.mrf.mxu2  ;;  %v2476_v4 = vpop.f32.mrf.mxu3 }
 0x5d8   : > { %v2688_v62 = vpop.f32.mrf.mxu1  ;;  %v2388_v46 = vadd.f32 %v2387_v20, %v5717_v9 }
 0x5da   : > { %v2477_v50 = vadd.f32 %v2476_v4, %v2388_v46  ;;  %v2594_v60 = vpop.f32.mrf.mxu0 }
 0x5db   : > { %2727 = vmatmul.bf16.gmra.mxu1 %v5228_v33  ;;  %v2595_v12 = vadd.f32 %v2594_v60, %v5718_v57 }
 0x5dc   : > { %2510 = vst.msk [vmem:[%s5070_s25 + $0xf8] sm:$0xff] %vm1498_vm0, %v2477_v50  ;;  %v5730_v50 = vld [vmem:[#allocation67_spill] sm:$0xff] }
 0x5dd   : > { %v2684_v15 = vadd.f32 %v2683_v39, %v2595_v12  ;;  %2633 = vmatmul.bf16.gmra.mxu0 %v5230_v3 }
 0x5df   : > { %2757 = vst.msk [vmem:[%s5288_s24 + $0x20] sm:$0xff] %vm1498_vm0, %v2684_v15 }
 0x5e0   : > { %v2690_v42 = vpop.f32.mrf.mxu1 }
 0x5e2   : > { %v2596_v41 = vpop.f32.mrf.mxu0 }
 0x5e3   : > { %v2597_v32 = vadd.f32 %v2596_v41, %v5719_v40 }
 0x5e5   : > { %v2686_v11 = vadd.f32 %v2685_v45, %v2597_v32  ;;  %v5727_v45 = vld [vmem:[#allocation21_spill] sm:$0xff] }
 0x5e7   : > { %2758 = vst.msk [vmem:[%s5288_s24 + $0x28] sm:$0xff] %vm1498_vm0, %v2686_v11 }
 0x5e8   : > { %v2693_v33 = vpop.f32.mrf.mxu1 }
 0x5ea   : > { %v2599_v19 = vpop.f32.mrf.mxu0 }
 0x5eb   : > { %2732 = vmatmul.bf16.gmra.mxu1 %v5238_v36  ;;  %v2600_v18 = vadd.f32 %v2599_v19, %v5720_v37 }
 0x5ed   : > { %v2689_v53 = vadd.f32 %v2688_v62, %v2600_v18  ;;  %2638 = vmatmul.bf16.gmra.mxu0 %v5240_v43  ;;  %v5729_v62 = vld [vmem:[#allocation20_spill] sm:$0xff] }
 0x5ef   : > { %2759 = vst.msk [vmem:[%s5288_s24 + $0x30] sm:$0xff] %vm1498_vm0, %v2689_v53 }
 0x5f0   : > { %v2695_v3 = vpop.f32.mrf.mxu1 }
 0x5f2   : > { %v2601_v25 = vpop.f32.mrf.mxu0 }
 0x5f3   : > { %v2602_v21 = vadd.f32 %v2601_v25, %v5721_v30 }
 0x5f5   : > { %v2691_v59 = vadd.f32 %v2690_v42, %v2602_v21  ;;  %v5731_v42 = vld [vmem:[#allocation66_spill] sm:$0xff] }
 0x5f7   : > { %2760 = vst.msk [vmem:[%s5288_s24 + $0x38] sm:$0xff] %vm1498_vm0, %v2691_v59  ;;  %v5734_v59 = vld [vmem:[#allocation61_spill] sm:$0xff] }
 0x5f8   : > { %v2698_v13 = vpop.f32.mrf.mxu1 }
 0x5fa   : > { %v2604_v36 = vpop.f32.mrf.mxu0 }
 0x5fb   : > { %2737 = vmatmul.bf16.gmra.mxu1 %v5248_v8  ;;  %v2605_v51 = vadd.f32 %v2604_v36, %v5722_v48 }
 0x5fd   : > { %v2694_v38 = vadd.f32 %v2693_v33, %v2605_v51  ;;  %2643 = vmatmul.bf16.gmra.mxu0 %v5250_v14  ;;  %v5732_v33 = vld [vmem:[#allocation65_spill] sm:$0xff] }
 0x5ff   : > { %2761 = vst.msk [vmem:[%s5288_s24 + $0x40] sm:$0xff] %vm1498_vm0, %v2694_v38  ;;  %v5735_v38 = vld [vmem:[#allocation60_spill] sm:$0xff] }
 0x600   : > { %v2700_v43 = vpop.f32.mrf.mxu1 }
 0x602   : > { %v2606_v52 = vpop.f32.mrf.mxu0 }
 0x603   : > { %v2607_v35 = vadd.f32 %v2606_v52, %v5723_v56 }
 0x605   : > { %v2696_v58 = vadd.f32 %v2695_v3, %v2607_v35  ;;  %v5733_v3 = vld [vmem:[#allocation62_spill] sm:$0xff] }
 0x607   : > { %2762 = vst.msk [vmem:[%s5288_s24 + $0x48] sm:$0xff] %vm1498_vm0, %v2696_v58  ;;  %v5736_v58 = vld [vmem:[#allocation59_spill] sm:$0xff] }
 0x608   : > { %v2703_v27 = vpop.f32.mrf.mxu1 }
 0x60a   : > { %v2609_v8 = vpop.f32.mrf.mxu0 }
 0x60b   : > { %2742 = vmatmul.bf16.gmra.mxu1 %v5258_v5  ;;  %v2610_v44 = vadd.f32 %v2609_v8, %v5724_v26 }
 0x60d   : > { %v2699_v16 = vadd.f32 %v2698_v13, %v2610_v44  ;;  %2648 = vmatmul.bf16.gmra.mxu0 %v5260_v6 }
 0x60f   : > { %2763 = vst.msk [vmem:[%s5288_s24 + $0x50] sm:$0xff] %vm1498_vm0, %v2699_v16  ;;  %v5737_v16 = vld [vmem:[#allocation56_spill] sm:$0xff] }
 0x610   : > { %v2705_v14 = vpop.f32.mrf.mxu1 }
 0x612   : > { %v2611_v39 = vpop.f32.mrf.mxu0 }
 0x613   : > { %v2612_v17 = vadd.f32 %v2611_v39, %v5725_v29 }
 0x615   : > { %v2701_v24 = vadd.f32 %v2700_v43, %v2612_v17 }
 0x617   : > { %2764 = vst.msk [vmem:[%s5288_s24 + $0x58] sm:$0xff] %vm1498_vm0, %v2701_v24  ;;  %v5738_v24 = vld [vmem:[#allocation55_spill] sm:$0xff] }
 0x618   : > { %v2708_v22 = vpop.f32.mrf.mxu1 }
 0x61a   : > { %v2614_v5 = vpop.f32.mrf.mxu0 }
 0x61b   : > { %2747 = vmatmul.bf16.gmra.mxu1 %v2574_v7  ;;  %v2615_v55 = vadd.f32 %v2614_v5, %v5726_v49  ;;  %v5739_v49 = vld [vmem:[#allocation54_spill] sm:$0xff] }
 0x61d   : > { %v2704_v61 = vadd.f32 %v2703_v27, %v2615_v55  ;;  %2653 = vmatmul.bf16.gmra.mxu0 %v5268_v47 }
 0x61f   : > { %2765 = vst.msk [vmem:[%s5288_s24 + $0x60] sm:$0xff] %vm1498_vm0, %v2704_v61 }
 0x620   : > { %v2710_v6 = vpop.f32.mrf.mxu1 }
 0x622   : > { %v2616_v63 = vpop.f32.mrf.mxu0 }
 0x623   : > { %v2617_v10 = vadd.f32 %v2616_v63, %v5727_v45  ;;  %v5740_v45 = vld [vmem:[#allocation53_spill] sm:$0xff] }
 0x625   : > { %v2706_v2 = vadd.f32 %v2705_v14, %v2617_v10 }
 0x627   : > { %2766 = vst.msk [vmem:[%s5288_s24 + $0x68] sm:$0xff] %vm1498_vm0, %v2706_v2 }
 0x628   : > { %v2713_v23 = vpop.f32.mrf.mxu1 }
 0x62a   : > { %v2619_v28 = vpop.f32.mrf.mxu0 }
 0x62b   : > { %v2620_v0 = vadd.f32 %v2619_v28, %v5728_v34 }
 0x62d   : > { %v2709_v31 = vadd.f32 %v2708_v22, %v2620_v0  ;;  %2658 = vmatmul.bf16.gmra.mxu0 %v2550_v1  ;;  %v5741_v1 = vld [vmem:[#allocation50_spill] sm:$0xff] }
 0x62f   : > { %2767 = vst.msk [vmem:[%s5288_s24 + $0x70] sm:$0xff] %vm1498_vm0, %v2709_v31 }
 0x630   : > { %v2715_v47 = vpop.f32.mrf.mxu1 }
 0x632   : > { %v2621_v54 = vpop.f32.mrf.mxu0 }
 0x633   : > { %v2622_v20 = vadd.f32 %v2621_v54, %v5729_v62  ;;  %v5742_v54 = vld [vmem:[#allocation49_spill] sm:$0xff] }
 0x635   : > { %v2711_v9 = vadd.f32 %v2710_v6, %v2622_v20 }
 0x637   : > { %2768 = vst.msk [vmem:[%s5288_s24 + $0x78] sm:$0xff] %vm1498_vm0, %v2711_v9 }
 0x638   : > { %v2718_v46 = vpop.f32.mrf.mxu1 }
 0x63a   : > { %v2624_v4 = vpop.f32.mrf.mxu0 }
 0x63b   : > { %v2625_v60 = vadd.f32 %v2624_v4, %v5730_v50  ;;  %v5743_v4 = vld [vmem:[#allocation48_spill] sm:$0xff] }
 0x63d   : > { %v2714_v57 = vadd.f32 %v2713_v23, %v2625_v60 }
 0x63f   : > { %2769 = vst.msk [vmem:[%s5288_s24 + $0x80] sm:$0xff] %vm1498_vm0, %v2714_v57 }
 0x640   : > { %v2720_v12 = vpop.f32.mrf.mxu1 }
 0x642   : > { %v2626_v15 = vpop.f32.mrf.mxu0 }
 0x643   : > { %v2627_v41 = vadd.f32 %v2626_v15, %v5731_v42  ;;  %v5744_v15 = vld [vmem:[#allocation45_spill] sm:$0xff] }
 0x645   : > { %v2716_v40 = vadd.f32 %v2715_v47, %v2627_v41 }
 0x647   : > { %2770 = vst.msk [vmem:[%s5288_s24 + $0x88] sm:$0xff] %vm1498_vm0, %v2716_v40 }
 0x648   : > { %v2723_v32 = vpop.f32.mrf.mxu1 }
 0x64a   : > { %v2629_v11 = vpop.f32.mrf.mxu0 }
 0x64b   : > { %v2630_v19 = vadd.f32 %v2629_v11, %v5732_v33 }
 0x64d   : > { %v2719_v37 = vadd.f32 %v2718_v46, %v2630_v19 }
 0x64f   : > { %2771 = vst.msk [vmem:[%s5288_s24 + $0x90] sm:$0xff] %vm1498_vm0, %v2719_v37 }
 0x650   : > { %v2725_v18 = vpop.f32.mrf.mxu1 }
 0x652   : > { %v2631_v53 = vpop.f32.mrf.mxu0 }
 0x653   : > { %v2632_v25 = vadd.f32 %v2631_v53, %v5733_v3 }
 0x655   : > { %v2721_v30 = vadd.f32 %v2720_v12, %v2632_v25 }
 0x657   : > { %2772 = vst.msk [vmem:[%s5288_s24 + $0x98] sm:$0xff] %vm1498_vm0, %v2721_v30 }
 0x658   : > { %v2728_v36 = vpop.f32.mrf.mxu1 }
 0x65a   : > { %v2634_v21 = vpop.f32.mrf.mxu0 }
 0x65b   : > { %v2635_v13 = vadd.f32 %v2634_v21, %v5734_v59 }
 0x65d   : > { %v2724_v48 = vadd.f32 %v2723_v32, %v2635_v13  ;;  %v5745_v32 = vld [vmem:[#allocation47_spill] sm:$0xff] }
 0x65f   : > { %2773 = vst.msk [vmem:[%s5288_s24 + $0xa0] sm:$0xff] %vm1498_vm0, %v2724_v48 }
 0x660   : > { %v2730_v56 = vpop.f32.mrf.mxu1 }
 0x662   : > { %v2636_v51 = vpop.f32.mrf.mxu0 }
 0x663   : > { %v2637_v43 = vadd.f32 %v2636_v51, %v5735_v38 }
 0x665   : > { %v2726_v52 = vadd.f32 %v2725_v18, %v2637_v43 }
 0x667   : > { %2774 = vst.msk [vmem:[%s5288_s24 + $0xa8] sm:$0xff] %vm1498_vm0, %v2726_v52 }
 0x668   : > { %v2733_v26 = vpop.f32.mrf.mxu1 }
 0x66a   : > { %v2639_v35 = vpop.f32.mrf.mxu0 }
 0x66b   : > { %v2640_v27 = vadd.f32 %v2639_v35, %v5736_v58 }
 0x66d   : > { %v2729_v8 = vadd.f32 %v2728_v36, %v2640_v27 }
 0x66f   : > { %2775 = vst.msk [vmem:[%s5288_s24 + $0xb0] sm:$0xff] %vm1498_vm0, %v2729_v8 }
 0x670   : > { %v2735_v29 = vpop.f32.mrf.mxu1 }
 0x672   : > { %v2641_v44 = vpop.f32.mrf.mxu0 }
 0x673   : > { %v2642_v14 = vadd.f32 %v2641_v44, %v5737_v16 }
 0x675   : > { %v2731_v39 = vadd.f32 %v2730_v56, %v2642_v14 }
 0x677   : > { %2776 = vst.msk [vmem:[%s5288_s24 + $0xb8] sm:$0xff] %vm1498_vm0, %v2731_v39 }
 0x678   : > { %v2738_v61 = vpop.f32.mrf.mxu1 }
 0x67a   : > { %v2644_v17 = vpop.f32.mrf.mxu0 }
 0x67b   : > { %v2645_v22 = vadd.f32 %v2644_v17, %v5738_v24 }
 0x67d   : > { %v2734_v7 = vadd.f32 %v2733_v26, %v2645_v22 }
 0x67f   : > { %2777 = vst.msk [vmem:[%s5288_s24 + $0xc0] sm:$0xff] %vm1498_vm0, %v2734_v7 }
 0x680   : > { %v2740_v23 = vpop.f32.mrf.mxu1 }
 0x682   : > { %v2646_v5 = vpop.f32.mrf.mxu0 }
 0x683   : > { %v2647_v55 = vadd.f32 %v2646_v5, %v5739_v49 }
 0x685   : > { %v2736_v6 = vadd.f32 %v2735_v29, %v2647_v55 }
 0x687   : > { %2778 = vst.msk [vmem:[%s5288_s24 + $0xc8] sm:$0xff] %vm1498_vm0, %v2736_v6 }
 0x688   : > { %v2743_v31 = vpop.f32.mrf.mxu1 }
 0x68a   : > { %v2649_v63 = vpop.f32.mrf.mxu0 }
 0x68b   : > { %v2650_v10 = vadd.f32 %v2649_v63, %v5740_v45 }
 0x68d   : > { %v2739_v2 = vadd.f32 %v2738_v61, %v2650_v10 }
 0x68f   : > { %2779 = vst.msk [vmem:[%s5288_s24 + $0xd0] sm:$0xff] %vm1498_vm0, %v2739_v2 }
 0x690   : > { %v2745_v9 = vpop.f32.mrf.mxu1 }
 0x692   : > { %v2651_v28 = vpop.f32.mrf.mxu0 }
 0x693   : > { %v2652_v34 = vadd.f32 %v2651_v28, %v5741_v1 }
 0x695   : > { %v2741_v0 = vadd.f32 %v2740_v23, %v2652_v34 }
 0x697   : > { %2780 = vst.msk [vmem:[%s5288_s24 + $0xd8] sm:$0xff] %vm1498_vm0, %v2741_v0 }
 0x698   : > { %v2748_v12 = vpop.f32.mrf.mxu1 }
 0x69a   : > { %v2654_v47 = vpop.f32.mrf.mxu0 }
 0x69b   : > { %v2655_v62 = vadd.f32 %v2654_v47, %v5742_v54 }
 0x69d   : > { %v2744_v20 = vadd.f32 %v2743_v31, %v2655_v62 }
 0x69f   : > { %2781 = vst.msk [vmem:[%s5288_s24 + $0xe0] sm:$0xff] %vm1498_vm0, %v2744_v20 }
 0x6a0   : > { %v2750_v33 = vpop.f32.mrf.mxu1 }
 0x6a2   : > { %v2656_v46 = vpop.f32.mrf.mxu0 }
 0x6a3   : > { %v2657_v50 = vadd.f32 %v2656_v46, %v5743_v4 }
 0x6a5   : > { %v2746_v60 = vadd.f32 %v2745_v9, %v2657_v50 }
 0x6a7   : > { %2782 = vst.msk [vmem:[%s5288_s24 + $0xe8] sm:$0xff] %vm1498_vm0, %v2746_v60 }
 0x6aa   : > { %v2659_v57 = vpop.f32.mrf.mxu0 }
 0x6ab   : > { %v2660_v42 = vadd.f32 %v2659_v57, %v5744_v15 }
 0x6ad   : > { %v2749_v41 = vadd.f32 %v2748_v12, %v2660_v42 }
 0x6af   : > { %2783 = vst.msk [vmem:[%s5288_s24 + $0xf0] sm:$0xff] %vm1498_vm0, %v2749_v41 }
 0x6b2   : > { %v2661_v40 = vpop.f32.mrf.mxu0 }
 0x6b3   : > { %v2662_v11 = vadd.f32 %v2661_v40, %v5745_v32 }
 0x6b5   : > { %v2751_v19 = vadd.f32 %v2750_v33, %v2662_v11 }
 0x6b7   : > { %2784 = vst.msk [vmem:[%s5288_s24 + $0xf8] sm:$0xff] %vm1498_vm0, %v2751_v19 }
 0x6b8 PF: > { %s26_s18 = sadd.s32 1, %s3324_s18  }
 0x6b9   : > { %p23_p4 = scmp.ge.s32.totalorder %s26_s18, 4  }
 0x6bb   :  { %25 = sbr.rel (!%p23_p4) target bundleno = 1 (0x1), region = 121 }

// kernel: crosslevel_net3_forward.9
= control target key start
LH: loop header
LB: loop body
LE: loop exit
PB: predicated region body
PF: predicated region fallthrough
CT: control target
= control target key end

     0   :  { %8 = vsyncpa [#allocation3], 0  ;;  %s2990_s0 = inlined_call_operand.vmem [shape: bf16[512,384], index: 0, kind: input, shape index: {}]   ;;  %s2991_s1 = inlined_call_operand.vmem [shape: bf16[384,128], index: 1, kind: input, shape index: {}]   ;;  %s2992_s2 = inlined_call_operand.vmem [shape: f32[1,128], index: 2, kind: input, shape index: {}]   ;;  %s2993_s3 = inlined_call_operand.hbm [shape: f32[512,128], index: 3, kind: output, shape index: {}]  }
   0x1   :  { %10 = vsyncpa [#allocation3 + $0x1], 0  ;;  %s2363_s12 = smov 0   ;;  %s2365_s13 = smov 0  }
   0x2   :  { %s2367_s14 = smov 0   ;;  %s2369_s15 = smov 0  }
   0x3 LB: > { %s2384_s16 = sadd.s32 4294967295, %s2339_s15   ;;  %s1676_s17 = sadd.s32 4294967294, %s2339_s15   ;;  %s2339_s15 = sphi %s2369_s15, %s3011_s15   ;;  %s2335_s14 = sphi %s2367_s14, %s3010_s14   ;;  %s2331_s13 = sphi %s2365_s13, %s3009_s13   ;;  %s2327_s12 = sphi %s2363_s12, %s3008_s12  }
   0x4   : > { %s2388_s18 = sadd.s32 1, %s2339_s15   ;;  %s91_s19 = sadd.s32 1, %s2335_s14 }
   0x5   : > { %s88_s20 = ssub.s32 %s2339_s15, %s2388_s18  ;;  %p101_p0 = scmp.ne.s32.totalorder %s2335_s14, %s2331_s13 }
   0x6   : > { %p89_p1 = scmp.eq.s32.totalorder %s88_s20, 0  ;;  %p102_p2 = scmp.eq.s32.totalorder %s2384_s16, 1 }
   0x7   : > { %p107_p3 = scmp.ne.s32.totalorder %s2331_s13, %s2327_s12  ;;  %p108_p4 = scmp.eq.s32.totalorder %s1676_s17, 1 }
   0x8   : > { %s2399_s21 = scalar_select %p89_p1, %s2335_s14, %s91_s19  }
   0x9   : > { %p2401_p5 = por %p102_p2, %p101_p0  ;;  %p2405_p6 = por %p108_p4, %p107_p3 }
   0xa   : > { %p1679_p7 = scmp.ge.s32.totalorder %s2339_s15, 1  ;;  %p142_p8 = scmp.lt.s32.totalorder %s2339_s15, 3 }
   0xc   : > { %p143_p9 = pnand %p1679_p7, %p142_p8 }
   0xd   : > { %s1681_s24 = sshll.u32 (!%p143_p9), %s2384_s16, 5  ;;  %s164_s26 = sand.u32 (!%p143_p9), 1, %s2331_s13  }
   0xe   : > { %146 = sbr.rel (%p143_p9) target bundleno = 404 (0x194), region = 32  ;;  %p168_p10 = scmp.lt.s32.totalorder (!%p143_p9), %s1681_s24, 63 }
   0xf   : > { %s1680_s27 = sshll.u32 (!%p143_p9), %s164_s26, 8  ;;  %s1599_s8 = scalar_lea.sflag (!%p143_p9), [#allocation3], %s164_s26 }
  0x10   : > { %s2653_s28 = scalar_lea.vmem (!%p143_p9), [#allocation2], %s1680_s27  ;;  %s2297_s19 = scalar_lea.hbm (!%p143_p9), %s2993_s3, 512 }
  0x11   : > { %s1611_s6 = sshll.u32 (!%p143_p9), %s2653_s28, 4  ;;  %s1612_s6 = int_to_ptr.vmem [resolvable:$true] %s1611_s6 }
  0x13   : > { %v2063_v0 = vld [vmem:[%s2991_s1 + $0x38] sm:$0xff]  ;;  %v2062_v3 = vld [vmem:[%s2991_s1 + $0x30] sm:$0xff]  ;;  %v2061_v6 = vld [vmem:[%s2991_s1 + $0x28] sm:$0xff]  ;;  %s3013_s24 = smov (!%p168_p10, %s1681_s24), 63 }
  0x14   : > { %v2417_v1 = vld [vmem:[%s2991_s1 + $0x78] sm:$0xff]  ;;  %691 = vmatpush.bf16.msra.mxu0 %v2063_v0  ;;  %2081 = vmatpush.bf16.msra.mxu3 %v2063_v0  ;;  %v2432_v4 = vld [vmem:[%s2991_s1 + $0x70] sm:$0xff]  ;;  %v2447_v7 = vld [vmem:[%s2991_s1 + $0x68] sm:$0xff]  ;;  %s2105_s17 = smul.u32 12, %s3013_s24 }
  0x15   : > { %v2422_v2 = vld [vmem:[%s2991_s1 + $0xb8] sm:$0xff]  ;;  %780 = vmatpush.bf16.msra.mxu1 %v2417_v1  ;;  %v2437_v5 = vld [vmem:[%s2991_s1 + $0xb0] sm:$0xff]  ;;  %v2452_v8 = vld [vmem:[%s2991_s1 + $0xa8] sm:$0xff] }
  0x16   : > { %869 = vmatpush.bf16.msra.mxu2 %v2422_v2  ;;  %v2060_v9 = vld [vmem:[%s2991_s1 + $0x20] sm:$0xff]  ;;  %v2059_v12 = vld [vmem:[%s2991_s1 + $0x18] sm:$0xff]  ;;  %v2058_v15 = vld [vmem:[%s2991_s1 + $0x10] sm:$0xff]  ;;  %s2501_s30 = scalar_lea.vmem %s2990_s0, %s2105_s17 }
  0x17   : > { %v2463_v10 = vld [vmem:[%s2991_s1 + $0x60] sm:$0xff]  ;;  %v2067_v13 = vld [vmem:[%s2991_s1 + $0x58] sm:$0xff]  ;;  %v2066_v16 = vld [vmem:[%s2991_s1 + $0x50] sm:$0xff] }
  0x18   : > { %692 = vmatpush.bf16.msra.mxu0 %v2062_v3  ;;  %2082 = vmatpush.bf16.msra.mxu3 %v2062_v3  ;;  %v2468_v11 = vld [vmem:[%s2991_s1 + $0xa0] sm:$0xff]  ;;  %v2481_v14 = vld [vmem:[%s2991_s1 + $0x98] sm:$0xff]  ;;  %v2493_v17 = vld [vmem:[%s2991_s1 + $0x90] sm:$0xff] }
  0x19   : > { %781 = vmatpush.bf16.msra.mxu1 %v2432_v4  ;;  %v2057_v18 = vld [vmem:[%s2991_s1 + $0x8] sm:$0xff]  ;;  %v2056_v21 = vld [vmem:[%s2991_s1] sm:$0xff]  ;;  %v1687_v29 = vld [vmem:[%s2501_s30 + $0xc] sm:$0xf0] }
  0x1a   : > { %870 = vmatpush.bf16.msra.mxu2 %v2437_v5  ;;  %v2065_v19 = vld [vmem:[%s2991_s1 + $0x48] sm:$0xff]  ;;  %v2064_v22 = vld [vmem:[%s2991_s1 + $0x40] sm:$0xff]  ;;  %v2010_v31 = vld [vmem:[%s2501_s30 + $0x10] sm:$0xf0] }
  0x1b   : > { %v2510_v20 = vld [vmem:[%s2991_s1 + $0x88] sm:$0xff]  ;;  %v2521_v23 = vld [vmem:[%s2991_s1 + $0x80] sm:$0xff]  ;;  %v1697_v36 = vld [vmem:[%s2501_s30 + $0x18] sm:$0xf] }
  0x1c   : > { %693 = vmatpush.bf16.msra.mxu0 %v2061_v6  ;;  %2083 = vmatpush.bf16.msra.mxu3 %v2061_v6  ;;  %v1685_v24 = vld [vmem:[%s2501_s30] sm:$0xf]  ;;  %v2009_v25 = vld [vmem:[%s2501_s30 + $0x8] sm:$0xf0]  ;;  %v2008_v28 = vld [vmem:[%s2501_s30 + $0x4] sm:$0xf] }
  0x1d   : > { %782 = vmatpush.bf16.msra.mxu1 %v2447_v7  ;;  %v1829_v26 = vld [vmem:[%s2501_s30 + $0x120] sm:$0xf]  ;;  %v2045_v27 = vld [vmem:[%s2501_s30 + $0x128] sm:$0xf0]  ;;  %v1693_v30 = vld [vmem:[%s2501_s30 + $0x8] sm:$0xf]  ;;  %v1686_v32 = vor.u32 %v2009_v25, %v1685_v24  ;;  %v1690_v34 = vor.u32 %v2008_v28, %v1687_v29 }
  0x1e   : > { %871 = vmatpush.bf16.msra.mxu2 %v2452_v8  ;;  %v1830_v33 = vor.u32 %v2045_v27, %v1829_v26  ;;  %v1694_v35 = vor.u32 %v2010_v31, %v1693_v30  ;;  %v2012_v37 = vld [vmem:[%s2501_s30 + $0x20] sm:$0xf0]  ;;  %v1841_v38 = vld [vmem:[%s2501_s30 + $0x138] sm:$0xf]  ;;  %v2011_v40 = vld [vmem:[%s2501_s30 + $0x1c] sm:$0xf] }
  0x1f   : > { %v2048_v39 = vld [vmem:[%s2501_s30 + $0x140] sm:$0xf0]  ;;  %v1699_v41 = vld [vmem:[%s2501_s30 + $0x24] sm:$0xf0]  ;;  %v1705_v42 = vld [vmem:[%s2501_s30 + $0x20] sm:$0xf]  ;;  %v1698_v44 = vor.u32 %v2012_v37, %v1697_v36 }
  0x20   : > { %694 = vmatpush.bf16.msra.mxu0 %v2060_v9  ;;  %2084 = vmatpush.bf16.msra.mxu3 %v2060_v9  ;;  %v2013_v43 = vld [vmem:[%s2501_s30 + $0x28] sm:$0xf0]  ;;  %v1842_v45 = vor.u32 %v2048_v39, %v1841_v38  ;;  %v1702_v46 = vor.u32 %v2011_v40, %v1699_v41  ;;  %v1709_v48 = vld [vmem:[%s2501_s30 + $0x30] sm:$0xf]  ;;  %v2015_v49 = vld [vmem:[%s2501_s30 + $0x38] sm:$0xf0] }
  0x21   : > { %783 = vmatpush.bf16.msra.mxu1 %v2463_v10  ;;  %v1706_v47 = vor.u32 %v2013_v43, %v1705_v42  ;;  %v1853_v50 = vld [vmem:[%s2501_s30 + $0x150] sm:$0xf]  ;;  %v2051_v51 = vld [vmem:[%s2501_s30 + $0x158] sm:$0xf0]  ;;  %v2014_v52 = vld [vmem:[%s2501_s30 + $0x34] sm:$0xf]  ;;  %v1710_v56 = vor.u32 %v2015_v49, %v1709_v48 }
  0x22   : > { %872 = vmatpush.bf16.msra.mxu2 %v2468_v11  ;;  %v1711_v53 = vld [vmem:[%s2501_s30 + $0x3c] sm:$0xf0]  ;;  %v1717_v54 = vld [vmem:[%s2501_s30 + $0x38] sm:$0xf]  ;;  %v2016_v55 = vld [vmem:[%s2501_s30 + $0x40] sm:$0xf0]  ;;  %v1854_v57 = vor.u32 %v2051_v51, %v1853_v50 }
  0x23   : > { %v1714_v58 = vor.u32 %v2014_v52, %v1711_v53  ;;  %v1718_v59 = vor.u32 %v2016_v55, %v1717_v54  ;;  %v1721_v60 = vld [vmem:[%s2501_s30 + $0x48] sm:$0xf]  ;;  %v2018_v61 = vld [vmem:[%s2501_s30 + $0x50] sm:$0xf0]  ;;  %v2017_v0 = vld [vmem:[%s2501_s30 + $0x4c] sm:$0xf] }
  0x24   : > { %695 = vmatpush.bf16.msra.mxu0 %v2059_v12  ;;  %2085 = vmatpush.bf16.msra.mxu3 %v2059_v12  ;;  %v1865_v62 = vld [vmem:[%s2501_s30 + $0x168] sm:$0xf]  ;;  %v2054_v63 = vld [vmem:[%s2501_s30 + $0x170] sm:$0xf0]  ;;  %v2019_v3 = vld [vmem:[%s2501_s30 + $0x58] sm:$0xf0] }
  0x25   : > { %784 = vmatpush.bf16.msra.mxu1 %v2067_v13  ;;  %v2021_v9 = vld [vmem:[%s2501_s30 + $0x68] sm:$0xf0]  ;;  %v1831_v12 = vld [vmem:[%s2501_s30 + $0x12c] sm:$0xf0]  ;;  %v2047_v24 = vld [vmem:[%s2501_s30 + $0x13c] sm:$0xf] }
  0x26   : > { %873 = vmatpush.bf16.msra.mxu2 %v2481_v14  ;;  %v1843_v25 = vld [vmem:[%s2501_s30 + $0x144] sm:$0xf0]  ;;  %v1753_v26 = vld [vmem:[%s2501_s30 + $0x80] sm:$0xf]  ;;  %v2025_v27 = vld [vmem:[%s2501_s30 + $0x88] sm:$0xf0] }
  0x27   : > { %v1846_v29 = vor.u32 %v2047_v24, %v1843_v25  ;;  %v1754_v31 = vor.u32 %v2025_v27, %v1753_v26  ;;  %v1855_v36 = vld [vmem:[%s2501_s30 + $0x15c] sm:$0xf0]  ;;  %v1765_v38 = vld [vmem:[%s2501_s30 + $0x98] sm:$0xf]  ;;  %v2028_v39 = vld [vmem:[%s2501_s30 + $0xa0] sm:$0xf0] }
  0x28   : > { %696 = vmatpush.bf16.msra.mxu0 %v2058_v15  ;;  %2086 = vmatpush.bf16.msra.mxu3 %v2058_v15  ;;  %v2022_v15 = vld [vmem:[%s2501_s30 + $0x70] sm:$0xf0]  ;;  %v1759_v37 = vld [vmem:[%s2501_s30 + $0x9c] sm:$0xf0]  ;;  %v1766_v43 = vor.u32 %v2028_v39, %v1765_v38  ;;  %v1867_v48 = vld [vmem:[%s2501_s30 + $0x174] sm:$0xf0] }
  0x29   : > { %785 = vmatpush.bf16.msra.mxu1 %v2066_v16  ;;  %v1771_v49 = vld [vmem:[%s2501_s30 + $0xb4] sm:$0xf0]  ;;  %v1777_v50 = vld [vmem:[%s2501_s30 + $0xb0] sm:$0xf]  ;;  %v2031_v51 = vld [vmem:[%s2501_s30 + $0xb8] sm:$0xf0] }
  0x2a   : > { %874 = vmatpush.bf16.msra.mxu2 %v2493_v17  ;;  %v1778_v55 = vor.u32 %v2031_v51, %v1777_v50  ;;  %v2037_v24 = vld [vmem:[%s2501_s30 + $0xe8] sm:$0xf0]  ;;  %v2039_v50 = vld [vmem:[%s2501_s30 + $0xf8] sm:$0xf0]  ;;  %v2038_v51 = vld [vmem:[%s2501_s30 + $0xf4] sm:$0xf] }
  0x2c   : > { %697 = vmatpush.bf16.msra.mxu0 %v2057_v18  ;;  %2087 = vmatpush.bf16.msra.mxu3 %v2057_v18 }
  0x2d   : > { %786 = vmatpush.bf16.msra.mxu1 %v2065_v19 }
  0x2e   : > { %875 = vmatpush.bf16.msra.mxu2 %v2510_v20 }
  0x30   : > { %698 = vmatpush.bf16.msra.mxu0 %v2056_v21  ;;  %2088 = vmatpush.bf16.msra.mxu3 %v2056_v21  ;;  %v2024_v21 = vld [vmem:[%s2501_s30 + $0x80] sm:$0xf0] }
  0x31   : > { %787 = vmatpush.bf16.msra.mxu1 %v2064_v22 }
  0x32   : > { %876 = vmatpush.bf16.msra.mxu2 %v2521_v23 }
  0x33   : > { %699 = vmatmul.bf16.vlgmr.msra.gmra.mxu0 %v1686_v32  ;;  %759 = vmatmul.bf16.vlgmr.msra.gmra.mxu3 %v1830_v33  ;;  %v1757_v32 = vld [vmem:[%s2501_s30 + $0x90] sm:$0xf]  ;;  %v2027_v33 = vld [vmem:[%s2501_s30 + $0x98] sm:$0xf0] }
  0x34   : > { %2089 = vmatpush.bf16.msrb.mxu3 %v2417_v1  ;;  %788 = vmatmul.bf16.vlgmr.msra.gmra.mxu1 %v1690_v34  ;;  %v1723_v1 = vld [vmem:[%s2501_s30 + $0x54] sm:$0xf0]  ;;  %v2026_v34 = vld [vmem:[%s2501_s30 + $0x94] sm:$0xf]  ;;  %v1758_v40 = vor.u32 %v2027_v33, %v1757_v32 }
  0x35   : > { %877 = vmatmul.bf16.vlgmr.msra.gmra.mxu2 %v1694_v35  ;;  %v1726_v6 = vor.u32 %v2017_v0, %v1723_v1  ;;  %v2050_v35 = vld [vmem:[%s2501_s30 + $0x154] sm:$0xf]  ;;  %v1762_v42 = vor.u32 %v2026_v34, %v1759_v37 }
  0x36   : > { %v1858_v41 = vor.u32 %v2050_v35, %v1855_v36  ;;  %v2034_v0 = vld [vmem:[%s2501_s30 + $0xd0] sm:$0xf0] }
  0x38   : > { %2090 = vmatpush.bf16.msrb.mxu3 %v2432_v4  ;;  %v1722_v4 = vor.u32 %v2018_v61, %v1721_v60  ;;  %v1837_v60 = vld [vmem:[%s2501_s30 + $0x128] sm:$0xf]  ;;  %v2046_v61 = vld [vmem:[%s2501_s30 + $0x130] sm:$0xf0] }
  0x3c   : > { %2091 = vmatpush.bf16.msrb.mxu3 %v2447_v7 }
  0x40   : > { %2092 = vmatpush.bf16.msrb.mxu3 %v2463_v10  ;;  %v2020_v10 = vld [vmem:[%s2501_s30 + $0x64] sm:$0xf] }
  0x43   : > { %704 = vmatmul.bf16.gmra.mxu0 %v1698_v44  ;;  %764 = vmatmul.bf16.gmra.mxu3 %v1842_v45  ;;  %v1769_v44 = vld [vmem:[%s2501_s30 + $0xa8] sm:$0xf]  ;;  %v2030_v45 = vld [vmem:[%s2501_s30 + $0xb0] sm:$0xf0] }
  0x44   : > { %2093 = vmatpush.bf16.msrb.mxu3 %v2067_v13  ;;  %793 = vmatmul.bf16.gmra.mxu1 %v1702_v46  ;;  %v1735_v13 = vld [vmem:[%s2501_s30 + $0x6c] sm:$0xf0]  ;;  %v2029_v46 = vld [vmem:[%s2501_s30 + $0xac] sm:$0xf]  ;;  %v1770_v52 = vor.u32 %v2030_v45, %v1769_v44 }
  0x45   : > { %882 = vmatmul.bf16.gmra.mxu2 %v1706_v47  ;;  %v1738_v18 = vor.u32 %v2020_v10, %v1735_v13  ;;  %v2053_v47 = vld [vmem:[%s2501_s30 + $0x16c] sm:$0xf]  ;;  %v1774_v54 = vor.u32 %v2029_v46, %v1771_v49 }
  0x46   : > { %v1870_v53 = vor.u32 %v2053_v47, %v1867_v48  ;;  %v1805_v47 = vld [vmem:[%s2501_s30 + $0xf0] sm:$0xf] }
  0x48   : > { %2094 = vmatpush.bf16.msrb.mxu3 %v2066_v16 }
  0x4c   : > { %2095 = vmatpush.bf16.msrb.mxu3 %v2065_v19 }
  0x50   : > { %2096 = vmatpush.bf16.msrb.mxu3 %v2064_v22  ;;  %v2023_v22 = vld [vmem:[%s2501_s30 + $0x7c] sm:$0xf] }
  0x53   : > { %709 = vmatmul.bf16.gmra.mxu0 %v1710_v56  ;;  %769 = vmatmul.bf16.gmra.mxu3 %v1854_v57  ;;  %v2604_v56 = vld [vmem:[%s2992_s2] ss:$0 sm:$0xff] }
  0x54   : > { %2097 = vmatpush.bf16.msra.mxu3 %v2422_v2  ;;  %798 = vmatmul.bf16.gmra.mxu1 %v1714_v58  ;;  %v1729_v2 = vld [vmem:[%s2501_s30 + $0x50] sm:$0xf]  ;;  %v1781_v57 = vld [vmem:[%s2501_s30 + $0xc0] sm:$0xf]  ;;  %v2033_v58 = vld [vmem:[%s2501_s30 + $0xc8] sm:$0xf0] }
  0x55   : > { %887 = vmatmul.bf16.gmra.mxu2 %v1718_v59  ;;  %v1730_v7 = vor.u32 %v2019_v3, %v1729_v2  ;;  %v2032_v59 = vld [vmem:[%s2501_s30 + $0xc4] sm:$0xf]  ;;  %v1782_v1 = vor.u32 %v2033_v58, %v1781_v57  ;;  %v1838_v2 = vor.u32 %v2046_v61, %v1837_v60  ;;  %v1813_v57 = vld [vmem:[%s2501_s30 + $0xf8] sm:$0xf] }
  0x56   : > { %v2040_v58 = vld [vmem:[%s2501_s30 + $0x100] sm:$0xf0] }
  0x58   : > { %2098 = vmatpush.bf16.msra.mxu3 %v2437_v5  ;;  %v1866_v5 = vor.u32 %v2054_v63, %v1865_v62  ;;  %v1783_v62 = vld [vmem:[%s2501_s30 + $0xcc] sm:$0xf0]  ;;  %v1789_v63 = vld [vmem:[%s2501_s30 + $0xc8] sm:$0xf] }
  0x5c   : > { %2099 = vmatpush.bf16.msra.mxu3 %v2452_v8  ;;  %v1733_v8 = vld [vmem:[%s2501_s30 + $0x60] sm:$0xf] }
  0x5d   : > { %v1734_v16 = vor.u32 %v2021_v9, %v1733_v8 }
  0x60   : > { %2100 = vmatpush.bf16.msra.mxu3 %v2468_v11  ;;  %v2044_v11 = vld [vmem:[%s2501_s30 + $0x124] sm:$0xf] }
  0x63   : > { %714 = vmatmul.bf16.gmra.mxu0 %v1722_v4  ;;  %774 = vmatmul.bf16.gmra.mxu3 %v1866_v5  ;;  %v1786_v4 = vor.u32 %v2032_v59, %v1783_v62  ;;  %v1790_v5 = vor.u32 %v2034_v0, %v1789_v63  ;;  %v1806_v62 = vor.u32 %v2039_v50, %v1805_v47 }
  0x64   : > { %2101 = vmatpush.bf16.msra.mxu3 %v2481_v14  ;;  %803 = vmatmul.bf16.gmra.mxu1 %v1726_v6  ;;  %v1741_v14 = vld [vmem:[%s2501_s30 + $0x68] sm:$0xf] }
  0x65   : > { %892 = vmatmul.bf16.gmra.mxu2 %v1730_v7  ;;  %v1742_v19 = vor.u32 %v2022_v15, %v1741_v14 }
  0x68   : > { %2102 = vmatpush.bf16.msra.mxu3 %v2493_v17  ;;  %v1834_v17 = vor.u32 %v2044_v11, %v1831_v12 }
  0x6c   : > { %2103 = vmatpush.bf16.msra.mxu3 %v2510_v20  ;;  %v1745_v20 = vld [vmem:[%s2501_s30 + $0x78] sm:$0xf] }
  0x6d   : > { %v1746_v28 = vor.u32 %v2024_v21, %v1745_v20  ;;  %v2049_v20 = vld [vmem:[%s2501_s30 + $0x148] sm:$0xf0]  ;;  %v1795_v21 = vld [vmem:[%s2501_s30 + $0xe4] sm:$0xf0] }
  0x70   : > { %2104 = vmatpush.bf16.msra.mxu3 %v2521_v23  ;;  %v1747_v23 = vld [vmem:[%s2501_s30 + $0x84] sm:$0xf0] }
  0x71   : > { %v1750_v30 = vor.u32 %v2023_v22, %v1747_v23  ;;  %v1801_v22 = vld [vmem:[%s2501_s30 + $0xe0] sm:$0xf] }
  0x72   : > { %v1802_v32 = vor.u32 %v2037_v24, %v1801_v22 }
  0x73   : > { %719 = vmatmul.bf16.gmra.mxu0 %v1734_v16  ;;  %848 = vmatmul.bf16.vlgmr.msrb.gmra.mxu3 %v1834_v17  ;;  %v1793_v16 = vld [vmem:[%s2501_s30 + $0xd8] sm:$0xf]  ;;  %v2036_v17 = vld [vmem:[%s2501_s30 + $0xe0] sm:$0xf0] }
  0x74   : > { %808 = vmatmul.bf16.gmra.mxu1 %v1738_v18  ;;  %v2035_v18 = vld [vmem:[%s2501_s30 + $0xdc] sm:$0xf]  ;;  %v1794_v27 = vor.u32 %v2036_v17, %v1793_v16 }
  0x75   : > { %897 = vmatmul.bf16.gmra.mxu2 %v1742_v19  ;;  %v1849_v19 = vld [vmem:[%s2501_s30 + $0x140] sm:$0xf] }
  0x83   : > { %724 = vmatmul.bf16.gmra.mxu0 %v1746_v28  ;;  %853 = vmatmul.bf16.gmra.mxu3 %v1846_v29  ;;  %v1850_v28 = vor.u32 %v2049_v20, %v1849_v19 }
  0x84   : > { %813 = vmatmul.bf16.gmra.mxu1 %v1750_v30 }
  0x85   : > { %902 = vmatmul.bf16.gmra.mxu2 %v1754_v31  ;;  %v1798_v31 = vor.u32 %v2035_v18, %v1795_v21 }
  0x93   : > { %729 = vmatmul.bf16.gmra.mxu0 %v1758_v40  ;;  %858 = vmatmul.bf16.gmra.mxu3 %v1858_v41 }
  0x94   : > { %818 = vmatmul.bf16.gmra.mxu1 %v1762_v42 }
  0x95   : > { %907 = vmatmul.bf16.gmra.mxu2 %v1766_v43 }
  0xa3   : > { %734 = vmatmul.bf16.gmra.mxu0 %v1770_v52  ;;  %863 = vmatmul.bf16.gmra.mxu3 %v1870_v53  ;;  %v1807_v53 = vld [vmem:[%s2501_s30 + $0xfc] sm:$0xf0] }
  0xa4   : > { %823 = vmatmul.bf16.gmra.mxu1 %v1774_v54  ;;  %v1861_v54 = vld [vmem:[%s2501_s30 + $0x158] sm:$0xf] }
  0xa5   : > { %912 = vmatmul.bf16.gmra.mxu2 %v1778_v55  ;;  %v2052_v55 = vld [vmem:[%s2501_s30 + $0x160] sm:$0xf0] }
  0xb0   : > { %v700_v3 = vpop.f32.mrf.mxu0 }
  0xb1   : > { %v701_v6 = vadd.f32 %v2604_v56, %v700_v3  ;;  %v789_v7 = vpop.f32.mrf.mxu1  ;;  %v1862_v3 = vor.u32 %v2052_v55, %v1861_v54 }
  0xb3   : > { %739 = vmatmul.bf16.gmra.mxu0 %v1782_v1  ;;  %937 = vmatmul.bf16.vlgmr.msra.gmra.mxu3 %v1838_v2  ;;  %v790_v8 = vadd.f32 %v789_v7, %v701_v6  ;;  %v1810_v2 = vor.u32 %v2038_v51, %v1807_v53  ;;  %v1814_v7 = vor.u32 %v2040_v58, %v1813_v57 }
  0xb4   : > { %828 = vmatmul.bf16.gmra.mxu1 %v1786_v4 }
  0xb5   : > { %917 = vmatmul.bf16.gmra.mxu2 %v1790_v5 }
  0xb6   : > { %v2615_v9 = vpop.f32.mrf.mxu3 }
  0xb8   : > { %v878_v10 = vpop.f32.mrf.mxu2  ;;  %v702_v12 = vpop.f32.mrf.mxu0 }
  0xb9   : > { %v879_v11 = vadd.f32 %v878_v10, %v790_v8  ;;  %v791_v13 = vpop.f32.mrf.mxu1  ;;  %v703_v15 = vadd.f32 %v2604_v56, %v702_v12 }
  0xbb   : > { %v1971_v14 = vmul.f32 -1.442695, %v879_v11  ;;  %v792_v25 = vadd.f32 %v791_v13, %v703_v15 }
  0xbd   : > { %2148 = vpow2.f32 %v1971_v14 }
  0xbe   : > { %v2626_v23 = vpop.f32.mrf.mxu3 }
  0xc0   : > { %v880_v26 = vpop.f32.mrf.mxu2  ;;  %v705_v30 = vpop.f32.mrf.mxu0 }
  0xc1   : > { %v881_v29 = vadd.f32 %v880_v26, %v792_v25  ;;  %v706_v33 = vadd.f32 %v2604_v56, %v705_v30  ;;  %v794_v34 = vpop.f32.mrf.mxu1 }
  0xc3   : > { %v2149_v35 = vpop.eup %2148  ;;  %v1972_v36 = vmul.f32 -1.442695, %v881_v29  ;;  %744 = vmatmul.bf16.gmra.mxu0 %v1794_v27  ;;  %942 = vmatmul.bf16.gmra.mxu3 %v1850_v28  ;;  %v795_v38 = vadd.f32 %v794_v34, %v706_v33 }
  0xc4   : > { %v1054_v37 = vadd.f32 1.0, %v2149_v35  ;;  %833 = vmatmul.bf16.gmra.mxu1 %v1798_v31  ;;  %v1817_v35 = vld [vmem:[%s2501_s30 + $0x108] sm:$0xf] }
  0xc5   : > { %2150 = vpow2.f32 %v1972_v36  ;;  %922 = vmatmul.bf16.gmra.mxu2 %v1802_v32  ;;  %v2042_v36 = vld [vmem:[%s2501_s30 + $0x110] sm:$0xf0] }
  0xc6   : > { %2152 = vrcp.f32 %v1054_v37  ;;  %v2629_v39 = vpop.f32.mrf.mxu3  ;;  %v1095_v63 = vand.u32 2147483647, %v1054_v37  ;;  %v1097_v0 = vand.u32 2147483648, %v1054_v37  ;;  %vm1091_vm1 = vweird.f32 %v1054_v37 }
  0xc7   : > { %v1818_v53 = vor.u32 %v2042_v36, %v1817_v35 }
  0xc8   : > { %v883_v40 = vpop.f32.mrf.mxu2  ;;  %v707_v42 = vpop.f32.mrf.mxu0  ;;  %vm1096_vm3 = vcmp.eq.f32.partialorder %v1095_v63, 8.507059e+37  ;;  %v1098_v15 = vor.u32 1.1754944e-38, %v1097_v0 }
  0xc9   : > { %v884_v41 = vadd.f32 %v883_v40, %v795_v38  ;;  %v796_v43 = vpop.f32.mrf.mxu1  ;;  %v708_v46 = vadd.f32 %v2604_v56, %v707_v42  ;;  %v1819_v42 = vld [vmem:[%s2501_s30 + $0x114] sm:$0xf0] }
  0xcb   : > { %v2151_v44 = vpop.eup %2150  ;;  %v1973_v45 = vmul.f32 -1.442695, %v884_v41  ;;  %v797_v60 = vadd.f32 %v796_v43, %v708_v46  ;;  %v2041_v41 = vld [vmem:[%s2501_s30 + $0x10c] sm:$0xf]  ;;  %v2055_v46 = vld [vmem:[%s2501_s30 + $0x178] sm:$0xf0] }
  0xcc   : > { %v2153_v48 = vpop.eup %2152  ;;  %v2633_v49 = vadd.f32 1.0, %v2151_v44  ;;  %v1822_v58 = vor.u32 %v2041_v41, %v1819_v42 }
  0xcd   : > { %v1087_v52 = vmul.f32 %v2153_v48, %v1054_v37  ;;  %2154 = vpow2.f32 %v1973_v45  ;;  %vm1092_vm0 = vweird.f32 %v2153_v48  ;;  %v1873_v45 = vld [vmem:[%s2501_s30 + $0x170] sm:$0xf] }
  0xce   : > { %2156 = vrcp.f32 %v2633_v49  ;;  %v2644_v61 = vpop.f32.mrf.mxu3  ;;  %vm1093_vm2 = vmor %vm1091_vm1, %vm1092_vm0  ;;  %v1112_v24 = vand.u32 2147483648, %v2633_v49  ;;  %v1110_v27 = vand.u32 2147483647, %v2633_v49  ;;  %vm1106_vm5 = vweird.f32 %v2633_v49 }
  0xcf   : > { %v1088_v59 = vsub.f32 1.0, %v1087_v52 }
  0xd0   : > { %v885_v1 = vpop.f32.mrf.mxu2  ;;  %v710_v6 = vpop.f32.mrf.mxu0  ;;  %v1113_v38 = vor.u32 1.1754944e-38, %v1112_v24  ;;  %vm1111_vm7 = vcmp.eq.f32.partialorder %v1110_v27, 8.507059e+37 }
  0xd1   : > { %v1089_v4 = vmul.f32 %v2153_v48, %v1088_v59  ;;  %v886_v5 = vadd.f32 %v885_v1, %v797_v60  ;;  %v711_v8 = vadd.f32 %v2604_v56, %v710_v6  ;;  %v799_v10 = vpop.f32.mrf.mxu1  ;;  %v1874_v59 = vor.u32 %v2055_v46, %v1873_v45 }
  0xd3   : > { %v2155_v11 = vpop.eup %2154  ;;  %v1090_v12 = vadd.f32 %v2153_v48, %v1089_v4  ;;  %v1974_v13 = vmul.f32 -1.442695, %v886_v5  ;;  %749 = vmatmul.bf16.gmra.mxu0 %v1806_v62  ;;  %947 = vmatmul.bf16.gmra.mxu3 %v1862_v3  ;;  %v800_v19 = vadd.f32 %v799_v10, %v711_v8 }
  0xd4   : > { %v2157_v14 = vpop.eup %2156  ;;  %v2649_v16 = vadd.f32 1.0, %v2155_v11  ;;  %838 = vmatmul.bf16.gmra.mxu1 %v1810_v2 }
  0xd5   : > { %v1094_v17 = vsel %vm1093_vm2, %v2153_v48, %v1090_v12  ;;  %v1102_v18 = vmul.f32 %v2157_v14, %v2633_v49  ;;  %2158 = vpow2.f32 %v1974_v13  ;;  %927 = vmatmul.bf16.gmra.mxu2 %v1814_v7  ;;  %vm1107_vm4 = vweird.f32 %v2157_v14  ;;  %v1825_v48 = vld [vmem:[%s2501_s30 + $0x110] sm:$0xf]  ;;  %v2043_v49 = vld [vmem:[%s2501_s30 + $0x118] sm:$0xf0]  ;;  %s2080_s30 = sshll.u32 %s2384_s16, 8 }
  0xd6   : > { %v1099_v20 = vsel %vm1096_vm3, %v1098_v15, %v1094_v17  ;;  %2160 = vrcp.f32 %v2649_v16  ;;  %v2656_v22 = vpop.f32.mrf.mxu3  ;;  %vm1108_vm6 = vmor %vm1106_vm5, %vm1107_vm4  ;;  %v1125_v54 = vand.u32 2147483647, %v2649_v16  ;;  %v1127_v55 = vand.u32 2147483648, %v2649_v16  ;;  %s1610_s5 = scalar_lea.hbm %s2993_s3, %s2080_s30 }
  0xd7   : > { %1566 = vst [vmem:[%s2653_s28] sm:$0xff] %v1099_v20  ;;  %v1103_v21 = vsub.f32 1.0, %v1102_v18  ;;  %v1826_v0 = vor.u32 %v2043_v49, %v1825_v48  ;;  %vm1121_vm9 = vweird.f32 %v2649_v16  ;;  %s1613_s7 = sshll.u32 %s1610_s5, 4  ;;  %s1614_s7 = int_to_ptr.hbm [resolvable:$true] %s1613_s7 }
  0xd8   : > { %v888_v25 = vpop.f32.mrf.mxu2  ;;  %v712_v29 = vpop.f32.mrf.mxu0  ;;  %vm1126_vm11 = vcmp.eq.f32.partialorder %v1125_v54, 8.507059e+37  ;;  %v1128_v7 = vor.u32 1.1754944e-38, %v1127_v55  ;;  %s2291_s9 = sshra.s32 %s1614_s7, 4  ;;  %s2292_s9 = int_to_ptr.hbm [resolvable:$true] %s2291_s9 }
  0xd9   : > { %v1104_v26 = vmul.f32 %v2157_v14, %v1103_v21  ;;  %v889_v28 = vadd.f32 %v888_v25, %v800_v19  ;;  %v801_v30 = vpop.f32.mrf.mxu1  ;;  %v713_v34 = vadd.f32 %v2604_v56, %v712_v29  ;;  %s2293_s10 = scalar_lea.hbm %s2292_s9, 256  ;;  %p2298_p0 = scmp.lt.s32.totalorder %s2292_s9, %s2993_s3 }
  0xda   : > { %p2294_p11 = scmp.ne.s32.totalorder %s2292_s9, %s2293_s10  ;;  %p2299_p1 = scmp.lt.s32.totalorder %s2297_s19, %s2293_s10 }
  0xdb   : > { %v2159_v31 = vpop.eup %2158  ;;  %v1105_v32 = vadd.f32 %v2157_v14, %v1104_v26  ;;  %v1975_v33 = vmul.f32 -1.442695, %v889_v28  ;;  %v802_v51 = vadd.f32 %v801_v30, %v713_v34 }
  0xdc   : > { %v2161_v37 = vpop.eup %2160  ;;  %v2664_v40 = vadd.f32 1.0, %v2159_v31  ;;  %p2295_p12 = pnand %p2294_p11, %p2401_p5  ;;  %p2300_p2 = por %p2299_p1, %p2298_p0 }
  0xdd   : > { %v1109_v43 = vsel %vm1108_vm6, %v2157_v14, %v1105_v32  ;;  %v1117_v44 = vmul.f32 %v2161_v37, %v2649_v16  ;;  %2162 = vpow2.f32 %v1975_v33  ;;  %vm1122_vm8 = vweird.f32 %v2161_v37 }
  0xde   : > { %v1114_v47 = vsel %vm1111_vm7, %v1113_v38, %v1109_v43  ;;  %2164 = vrcp.f32 %v2664_v40  ;;  %v2675_v52 = vpop.f32.mrf.mxu3  ;;  %vm1123_vm10 = vmor %vm1121_vm9, %vm1122_vm8  ;;  %v1142_v16 = vand.u32 2147483648, %v2664_v40  ;;  %v1140_v19 = vand.u32 2147483647, %v2664_v40  ;;  %p2296_p13 = pneg %p2295_p12 }
  0xdf   : > { %1567 = vst [vmem:[%s2653_s28 + $0x8] sm:$0xff] %v1114_v47  ;;  %v1118_v50 = vsub.f32 1.0, %v1117_v44  ;;  %vm1136_vm13 = vweird.f32 %v2664_v40 }
  0xe0   : > { %v890_v57 = vpop.f32.mrf.mxu2  ;;  %v715_v63 = vpop.f32.mrf.mxu0  ;;  %v1143_v30 = vor.u32 1.1754944e-38, %v1142_v16  ;;  %vm1141_vm15 = vcmp.eq.f32.partialorder %v1140_v19, 8.507059e+37  ;;  %p2301_p3 = pnand %p2300_p2, %p2296_p13 }
  0xe1   : > { %v1119_v60 = vmul.f32 %v2161_v37, %v1118_v50  ;;  %v891_v62 = vadd.f32 %v890_v57, %v802_v51  ;;  %v716_v1 = vadd.f32 %v2604_v56, %v715_v63  ;;  %v804_v2 = vpop.f32.mrf.mxu1 }
  0xe3   : > { %v2163_v3 = vpop.eup %2162  ;;  %v1120_v4 = vadd.f32 %v2161_v37, %v1119_v60  ;;  %v1976_v5 = vmul.f32 -1.442695, %v891_v62  ;;  %754 = vmatmul.bf16.gmra.mxu0 %v1818_v53  ;;  %952 = vmatmul.bf16.gmra.mxu3 %v1874_v59  ;;  %v805_v12 = vadd.f32 %v804_v2, %v716_v1 }
  0xe4   : > { %v2165_v6 = vpop.eup %2164  ;;  %v1058_v8 = vadd.f32 1.0, %v2163_v3  ;;  %843 = vmatmul.bf16.gmra.mxu1 %v1822_v58 }
  0xe5   : > { %v1124_v10 = vsel %vm1123_vm10, %v2161_v37, %v1120_v4  ;;  %v1132_v11 = vmul.f32 %v2165_v6, %v2664_v40  ;;  %2166 = vpow2.f32 %v1976_v5  ;;  %932 = vmatmul.bf16.gmra.mxu2 %v1826_v0  ;;  %vm1137_vm12 = vweird.f32 %v2165_v6 }
  0xe6   : > { %v1129_v13 = vsel %vm1126_vm11, %v1128_v7, %v1124_v10  ;;  %2168 = vrcp.f32 %v1058_v8  ;;  %v2683_v15 = vpop.f32.mrf.mxu3  ;;  %vm1138_vm14 = vmor %vm1136_vm13, %vm1137_vm12  ;;  %v1155_v38 = vand.u32 2147483647, %v1058_v8  ;;  %v1157_v40 = vand.u32 2147483648, %v1058_v8 }
  0xe7   : > { %1568 = vst [vmem:[%s2653_s28 + $0x10] sm:$0xff] %v1129_v13  ;;  %v1133_v14 = vsub.f32 1.0, %v1132_v11  ;;  %vm1151_vm1 = vweird.f32 %v1058_v8 }
  0xe8   : > { %v893_v17 = vpop.f32.mrf.mxu2  ;;  %v717_v21 = vpop.f32.mrf.mxu0  ;;  %vm1156_vm3 = vcmp.eq.f32.partialorder %v1155_v38, 8.507059e+37  ;;  %v1158_v51 = vor.u32 1.1754944e-38, %v1157_v40 }
  0xe9   : > { %v1134_v18 = vmul.f32 %v2165_v6, %v1133_v14  ;;  %v894_v20 = vadd.f32 %v893_v17, %v805_v12  ;;  %v806_v24 = vpop.f32.mrf.mxu1  ;;  %v718_v28 = vadd.f32 %v2604_v56, %v717_v21 }
  0xeb   : > { %v2167_v25 = vpop.eup %2166  ;;  %v1135_v26 = vadd.f32 %v2165_v6, %v1134_v18  ;;  %v1977_v27 = vmul.f32 -1.442695, %v894_v20  ;;  %v807_v36 = vadd.f32 %v806_v24, %v718_v28 }
  0xec   : > { %v2169_v29 = vpop.eup %2168  ;;  %v1059_v31 = vadd.f32 1.0, %v2167_v25 }
  0xed   : > { %v1139_v32 = vsel %vm1138_vm14, %v2165_v6, %v1135_v26  ;;  %v1147_v33 = vmul.f32 %v2169_v29, %v1058_v8  ;;  %2170 = vpow2.f32 %v1977_v27  ;;  %vm1152_vm0 = vweird.f32 %v2169_v29 }
  0xee   : > { %v1144_v34 = vsel %vm1141_vm15, %v1143_v30, %v1139_v32  ;;  %2172 = vrcp.f32 %v1059_v31  ;;  %v2690_v37 = vpop.f32.mrf.mxu3  ;;  %vm1153_vm2 = vmor %vm1151_vm1, %vm1152_vm0  ;;  %v1172_v62 = vand.u32 2147483648, %v1059_v31  ;;  %v1170_v1 = vand.u32 2147483647, %v1059_v31 }
  0xef   : > { %1569 = vst [vmem:[%s2653_s28 + $0x18] sm:$0xff] %v1144_v34  ;;  %v1148_v35 = vsub.f32 1.0, %v1147_v33  ;;  %vm1166_vm5 = vweird.f32 %v1059_v31 }
  0xf0   : > { %v895_v41 = vpop.f32.mrf.mxu2  ;;  %v720_v44 = vpop.f32.mrf.mxu0  ;;  %v1173_v11 = vor.u32 1.1754944e-38, %v1172_v62  ;;  %vm1171_vm7 = vcmp.eq.f32.partialorder %v1170_v1, 8.507059e+37 }
  0xf1   : > { %v1149_v42 = vmul.f32 %v2169_v29, %v1148_v35  ;;  %v896_v43 = vadd.f32 %v895_v41, %v807_v36  ;;  %v721_v45 = vadd.f32 %v2604_v56, %v720_v44  ;;  %v809_v46 = vpop.f32.mrf.mxu1 }
  0xf3   : > { %v2171_v47 = vpop.eup %2170  ;;  %v1150_v48 = vadd.f32 %v2169_v29, %v1149_v42  ;;  %v1978_v49 = vmul.f32 -1.442695, %v896_v43  ;;  %v810_v57 = vadd.f32 %v809_v46, %v721_v45 }
  0xf4   : > { %v2173_v50 = vpop.eup %2172  ;;  %v1060_v53 = vadd.f32 1.0, %v2171_v47 }
  0xf5   : > { %v1154_v54 = vsel %vm1153_vm2, %v2169_v29, %v1150_v48  ;;  %v1162_v55 = vmul.f32 %v2173_v50, %v1059_v31  ;;  %2174 = vpow2.f32 %v1978_v49  ;;  %vm1167_vm4 = vweird.f32 %v2173_v50 }
  0xf6   : > { %v1159_v58 = vsel %vm1156_vm3, %v1158_v51, %v1154_v54  ;;  %2176 = vrcp.f32 %v1060_v53  ;;  %v2694_v60 = vpop.f32.mrf.mxu3  ;;  %vm1168_vm6 = vmor %vm1166_vm5, %vm1167_vm4  ;;  %v1185_v20 = vand.u32 2147483647, %v1060_v53  ;;  %v1187_v21 = vand.u32 2147483648, %v1060_v53 }
  0xf7   : > { %1570 = vst [vmem:[%s2653_s28 + $0x20] sm:$0xff] %v1159_v58  ;;  %v1163_v59 = vsub.f32 1.0, %v1162_v55  ;;  %vm1181_vm9 = vweird.f32 %v1060_v53 }
  0xf8   : > { %v898_v63 = vpop.f32.mrf.mxu2  ;;  %v722_v3 = vpop.f32.mrf.mxu0  ;;  %vm1186_vm11 = vcmp.eq.f32.partialorder %v1185_v20, 8.507059e+37  ;;  %v1188_v34 = vor.u32 1.1754944e-38, %v1187_v21 }
  0xf9   : > { %v1164_v0 = vmul.f32 %v2173_v50, %v1163_v59  ;;  %v899_v2 = vadd.f32 %v898_v63, %v810_v57  ;;  %v811_v4 = vpop.f32.mrf.mxu1  ;;  %v723_v8 = vadd.f32 %v2604_v56, %v722_v3 }
  0xfb   : > { %v2175_v5 = vpop.eup %2174  ;;  %v1165_v6 = vadd.f32 %v2173_v50, %v1164_v0  ;;  %v1979_v7 = vmul.f32 -1.442695, %v899_v2  ;;  %v812_v18 = vadd.f32 %v811_v4, %v723_v8  ;;  %v768_v0 = vadd.f32 %v2604_v56, %v2644_v61 }
  0xfc   : > { %v2177_v10 = vpop.eup %2176  ;;  %v1061_v12 = vadd.f32 1.0, %v2175_v5 }
  0xfd   : > { %v1169_v13 = vsel %vm1168_vm6, %v2173_v50, %v1165_v6  ;;  %v1177_v14 = vmul.f32 %v2177_v10, %v1060_v53  ;;  %2178 = vpow2.f32 %v1979_v7  ;;  %vm1182_vm8 = vweird.f32 %v2177_v10 }
  0xfe   : > { %v1174_v16 = vsel %vm1171_vm7, %v1173_v11, %v1169_v13  ;;  %2180 = vrcp.f32 %v1061_v12  ;;  %v2698_v19 = vpop.f32.mrf.mxu3  ;;  %vm1183_vm10 = vmor %vm1181_vm9, %vm1182_vm8  ;;  %v1202_v44 = vand.u32 2147483648, %v1061_v12  ;;  %v1200_v47 = vand.u32 2147483647, %v1061_v12 }
  0xff   : > { %1571 = vst [vmem:[%s2653_s28 + $0x28] sm:$0xff] %v1174_v16  ;;  %v1178_v17 = vsub.f32 1.0, %v1177_v14  ;;  %vm1196_vm13 = vweird.f32 %v1061_v12 }
 0x100   : > { %v900_v24 = vpop.f32.mrf.mxu2  ;;  %v725_v27 = vpop.f32.mrf.mxu0  ;;  %v1203_v58 = vor.u32 1.1754944e-38, %v1202_v44  ;;  %vm1201_vm15 = vcmp.eq.f32.partialorder %v1200_v47, 8.507059e+37 }
 0x101   : > { %v1179_v25 = vmul.f32 %v2177_v10, %v1178_v17  ;;  %v901_v26 = vadd.f32 %v900_v24, %v812_v18  ;;  %v726_v28 = vadd.f32 %v2604_v56, %v725_v27  ;;  %v814_v29 = vpop.f32.mrf.mxu1  ;;  %v771_v27 = vadd.f32 %v2604_v56, %v2656_v22 }
 0x103   : > { %v2179_v30 = vpop.eup %2178  ;;  %v1180_v31 = vadd.f32 %v2177_v10, %v1179_v25  ;;  %v1980_v32 = vmul.f32 -1.442695, %v901_v26  ;;  %v815_v40 = vadd.f32 %v814_v29, %v726_v28 }
 0x104   : > { %v2181_v33 = vpop.eup %2180  ;;  %v1062_v35 = vadd.f32 1.0, %v2179_v30 }
 0x105   : > { %v1184_v36 = vsel %vm1183_vm10, %v2177_v10, %v1180_v31  ;;  %v1192_v38 = vmul.f32 %v2181_v33, %v1061_v12  ;;  %2182 = vpow2.f32 %v1980_v32  ;;  %vm1197_vm12 = vweird.f32 %v2181_v33 }
 0x106   : > { %v1189_v41 = vsel %vm1186_vm11, %v1188_v34, %v1184_v36  ;;  %2184 = vrcp.f32 %v1062_v35  ;;  %v2702_v43 = vpop.f32.mrf.mxu3  ;;  %vm1198_vm14 = vmor %vm1196_vm13, %vm1197_vm12  ;;  %v1215_v5 = vand.u32 2147483647, %v1062_v35  ;;  %v1217_v6 = vand.u32 2147483648, %v1062_v35 }
 0x107   : > { %1572 = vst [vmem:[%s2653_s28 + $0x30] sm:$0xff] %v1189_v41  ;;  %v1193_v42 = vsub.f32 1.0, %v1192_v38  ;;  %vm1211_vm1 = vweird.f32 %v1062_v35 }
 0x108   : > { %v903_v45 = vpop.f32.mrf.mxu2  ;;  %v727_v49 = vpop.f32.mrf.mxu0  ;;  %vm1216_vm3 = vcmp.eq.f32.partialorder %v1215_v5, 8.507059e+37  ;;  %v1218_v20 = vor.u32 1.1754944e-38, %v1217_v6 }
 0x109   : > { %v1194_v46 = vmul.f32 %v2181_v33, %v1193_v42  ;;  %v904_v48 = vadd.f32 %v903_v45, %v815_v40  ;;  %v816_v50 = vpop.f32.mrf.mxu1  ;;  %v728_v55 = vadd.f32 %v2604_v56, %v727_v49 }
 0x10b   : > { %v2183_v51 = vpop.eup %2182  ;;  %v1195_v53 = vadd.f32 %v2181_v33, %v1194_v46  ;;  %v1981_v54 = vmul.f32 -1.442695, %v904_v48  ;;  %v817_v3 = vadd.f32 %v816_v50, %v728_v55  ;;  %v773_v50 = vadd.f32 %v2604_v56, %v2675_v52 }
 0x10c   : > { %v2185_v57 = vpop.eup %2184  ;;  %v1063_v59 = vadd.f32 1.0, %v2183_v51 }
 0x10d   : > { %v1199_v62 = vsel %vm1198_vm14, %v2181_v33, %v1195_v53  ;;  %v1207_v63 = vmul.f32 %v2185_v57, %v1062_v35  ;;  %2186 = vpow2.f32 %v1981_v54  ;;  %vm1212_vm0 = vweird.f32 %v2185_v57 }
 0x10e   : > { %v1204_v1 = vsel %vm1201_vm15, %v1203_v58, %v1199_v62  ;;  %2188 = vrcp.f32 %v1063_v59  ;;  %v856_v4 = vpop.f32.mrf.mxu3  ;;  %vm1213_vm2 = vmor %vm1211_vm1, %vm1212_vm0  ;;  %v1232_v31 = vand.u32 2147483648, %v1063_v59  ;;  %v1230_v35 = vand.u32 2147483647, %v1063_v59 }
 0x10f   : > { %1573 = vst [vmem:[%s2653_s28 + $0x38] sm:$0xff] %v1204_v1  ;;  %v1208_v2 = vsub.f32 1.0, %v1207_v63  ;;  %v2708_v7 = vadd.f32 %v856_v4, %v768_v0  ;;  %vm1226_vm5 = vweird.f32 %v1063_v59 }
 0x110   : > { %v905_v8 = vpop.f32.mrf.mxu2  ;;  %v730_v12 = vpop.f32.mrf.mxu0  ;;  %v1233_v46 = vor.u32 1.1754944e-38, %v1232_v31  ;;  %vm1231_vm7 = vcmp.eq.f32.partialorder %v1230_v35, 8.507059e+37 }
 0x111   : > { %v1209_v10 = vmul.f32 %v2185_v57, %v1208_v2  ;;  %v906_v11 = vadd.f32 %v905_v8, %v817_v3  ;;  %v731_v13 = vadd.f32 %v2604_v56, %v730_v12  ;;  %v819_v14 = vpop.f32.mrf.mxu1 }
 0x113   : > { %v2187_v16 = vpop.eup %2186  ;;  %v1210_v61 = vadd.f32 %v2185_v57, %v1209_v10  ;;  %v1982_v17 = vmul.f32 -1.442695, %v906_v11  ;;  %v820_v26 = vadd.f32 %v819_v14, %v731_v13  ;;  %v776_v14 = vadd.f32 %v2604_v56, %v2683_v15 }
 0x114   : > { %v2189_v18 = vpop.eup %2188  ;;  %v1064_v21 = vadd.f32 1.0, %v2187_v16 }
 0x115   : > { %v1214_v24 = vsel %vm1213_vm2, %v2185_v57, %v1210_v61  ;;  %v1222_v25 = vmul.f32 %v2189_v18, %v1063_v59  ;;  %2190 = vpow2.f32 %v1982_v17  ;;  %vm1227_vm4 = vweird.f32 %v2189_v18 }
 0x116   : > { %v1219_v28 = vsel %vm1216_vm3, %v1218_v20, %v1214_v24  ;;  %2192 = vrcp.f32 %v1064_v21  ;;  %v859_v30 = vpop.f32.mrf.mxu3  ;;  %vm1228_vm6 = vmor %vm1226_vm5, %vm1227_vm4  ;;  %v1245_v57 = vand.u32 2147483647, %v1064_v21  ;;  %v1247_v58 = vand.u32 2147483648, %v1064_v21 }
 0x117   : > { %1574 = vst [vmem:[%s2653_s28 + $0x40] sm:$0xff] %v1219_v28  ;;  %v1223_v29 = vsub.f32 1.0, %v1222_v25  ;;  %v2714_v32 = vadd.f32 %v859_v30, %v771_v27  ;;  %vm1241_vm9 = vweird.f32 %v1064_v21 }
 0x118   : > { %v908_v33 = vpop.f32.mrf.mxu2  ;;  %v732_v38 = vpop.f32.mrf.mxu0  ;;  %vm1246_vm11 = vcmp.eq.f32.partialorder %v1245_v57, 8.507059e+37  ;;  %v1248_v8 = vor.u32 1.1754944e-38, %v1247_v58 }
 0x119   : > { %v1224_v34 = vmul.f32 %v2189_v18, %v1223_v29  ;;  %v909_v36 = vadd.f32 %v908_v33, %v820_v26  ;;  %v821_v40 = vpop.f32.mrf.mxu1  ;;  %v733_v44 = vadd.f32 %v2604_v56, %v732_v38 }
 0x11b   : > { %v2191_v41 = vpop.eup %2190  ;;  %v1225_v42 = vadd.f32 %v2189_v18, %v1224_v34  ;;  %v1983_v22 = vmul.f32 -1.442695, %v909_v36  ;;  %v822_v54 = vadd.f32 %v821_v40, %v733_v44  ;;  %v778_v40 = vadd.f32 %v2604_v56, %v2690_v37 }
 0x11c   : > { %v2193_v45 = vpop.eup %2192  ;;  %v1065_v47 = vadd.f32 1.0, %v2191_v41 }
 0x11d   : > { %v1229_v48 = vsel %vm1228_vm6, %v2189_v18, %v1225_v42  ;;  %v1237_v49 = vmul.f32 %v2193_v45, %v1064_v21  ;;  %2194 = vpow2.f32 %v1983_v22  ;;  %vm1242_vm8 = vweird.f32 %v2193_v45 }
 0x11e   : > { %v1234_v51 = vsel %vm1231_vm7, %v1233_v46, %v1229_v48  ;;  %2196 = vrcp.f32 %v1065_v47  ;;  %v861_v55 = vpop.f32.mrf.mxu3  ;;  %vm1243_vm10 = vmor %vm1241_vm9, %vm1242_vm8  ;;  %v1262_v18 = vand.u32 2147483648, %v1065_v47  ;;  %v1260_v25 = vand.u32 2147483647, %v1065_v47 }
 0x11f   : > { %1575 = vst [vmem:[%s2653_s28 + $0x48] sm:$0xff] %v1234_v51  ;;  %v1238_v53 = vsub.f32 1.0, %v1237_v49  ;;  %v2720_v59 = vadd.f32 %v861_v55, %v773_v50  ;;  %vm1256_vm13 = vweird.f32 %v1065_v47 }
 0x120   : > { %v910_v62 = vpop.f32.mrf.mxu2  ;;  %v735_v1 = vpop.f32.mrf.mxu0  ;;  %v1263_v34 = vor.u32 1.1754944e-38, %v1262_v18  ;;  %vm1261_vm15 = vcmp.eq.f32.partialorder %v1260_v25, 8.507059e+37  ;;  %v763_v25 = vadd.f32 %v2604_v56, %v2626_v23 }
 0x121   : > { %v1239_v63 = vmul.f32 %v2193_v45, %v1238_v53  ;;  %v911_v0 = vadd.f32 %v910_v62, %v822_v54  ;;  %v736_v2 = vadd.f32 %v2604_v56, %v735_v1  ;;  %v824_v3 = vpop.f32.mrf.mxu1  ;;  %v761_v62 = vadd.f32 %v2604_v56, %v2615_v9 }
 0x123   : > { %v2195_v4 = vpop.eup %2194  ;;  %v1240_v52 = vadd.f32 %v2193_v45, %v1239_v63  ;;  %v1984_v5 = vmul.f32 -1.442695, %v911_v0  ;;  %v825_v13 = vadd.f32 %v824_v3, %v736_v2 }
 0x124   : > { %v2197_v6 = vpop.eup %2196  ;;  %v1066_v10 = vadd.f32 1.0, %v2195_v4  ;;  %v850_v4 = vadd.f32 %v2694_v60, %v761_v62 }
 0x125   : > { %v1244_v11 = vsel %vm1243_vm10, %v2193_v45, %v1240_v52  ;;  %v1252_v12 = vmul.f32 %v2197_v6, %v1065_v47  ;;  %2198 = vpow2.f32 %v1984_v5  ;;  %vm1257_vm12 = vweird.f32 %v2197_v6 }
 0x126   : > { %v1249_v16 = vsel %vm1246_vm11, %v1248_v8, %v1244_v11  ;;  %2200 = vrcp.f32 %v1066_v10  ;;  %v864_v17 = vpop.f32.mrf.mxu3  ;;  %vm1258_vm14 = vmor %vm1256_vm13, %vm1257_vm12  ;;  %v1275_v45 = vand.u32 2147483647, %v1066_v10  ;;  %v1277_v46 = vand.u32 2147483648, %v1066_v10 }
 0x127   : > { %1576 = vst [vmem:[%s2653_s28 + $0x50] sm:$0xff] %v1249_v16  ;;  %v1253_v61 = vsub.f32 1.0, %v1252_v12  ;;  %v2726_v20 = vadd.f32 %v864_v17, %v776_v14  ;;  %vm1271_vm1 = vweird.f32 %v1066_v10 }
 0x128   : > { %v913_v21 = vpop.f32.mrf.mxu2  ;;  %v737_v27 = vpop.f32.mrf.mxu0  ;;  %vm1276_vm3 = vcmp.eq.f32.partialorder %v1275_v45, 8.507059e+37  ;;  %v1278_v63 = vor.u32 1.1754944e-38, %v1277_v46 }
 0x129   : > { %v1254_v24 = vmul.f32 %v2197_v6, %v1253_v61  ;;  %v914_v26 = vadd.f32 %v913_v21, %v825_v13  ;;  %v826_v28 = vpop.f32.mrf.mxu1  ;;  %v738_v31 = vadd.f32 %v2604_v56, %v737_v27 }
 0x12b   : > { %v2199_v29 = vpop.eup %2198  ;;  %v1255_v30 = vadd.f32 %v2197_v6, %v1254_v24  ;;  %v1985_v15 = vmul.f32 -1.442695, %v914_v26  ;;  %v827_v22 = vadd.f32 %v826_v28, %v738_v31 }
 0x12c   : > { %v2201_v33 = vpop.eup %2200  ;;  %v2729_v35 = vadd.f32 1.0, %v2199_v29 }
 0x12d   : > { %v1259_v36 = vsel %vm1258_vm14, %v2197_v6, %v1255_v30  ;;  %v1267_v38 = vmul.f32 %v2201_v33, %v1066_v10  ;;  %2202 = vpow2.f32 %v1985_v15  ;;  %vm1272_vm0 = vweird.f32 %v2201_v33 }
 0x12e   : > { %v1264_v41 = vsel %vm1261_vm15, %v1263_v34, %v1259_v36  ;;  %2204 = vrcp.f32 %v2729_v35  ;;  %v866_v44 = vpop.f32.mrf.mxu3  ;;  %vm1273_vm2 = vmor %vm1271_vm1, %vm1272_vm0  ;;  %v1292_v9 = vand.u32 2147483648, %v2729_v35  ;;  %v1290_v12 = vand.u32 2147483647, %v2729_v35 }
 0x12f   : > { %1577 = vst [vmem:[%s2653_s28 + $0x58] sm:$0xff] %v1264_v41  ;;  %v1268_v42 = vsub.f32 1.0, %v1267_v38  ;;  %v2735_v47 = vadd.f32 %v866_v44, %v778_v40  ;;  %vm1286_vm5 = vweird.f32 %v2729_v35  ;;  %v852_v30 = vadd.f32 %v2698_v19, %v763_v25  ;;  %v2763_v19 = vld [vmem:[%s2992_s2] ss:$0 sm:$0xff] }
 0x130   : > { %v915_v48 = vpop.f32.mrf.mxu2  ;;  %v740_v51 = vpop.f32.mrf.mxu0  ;;  %v1293_v26 = vor.u32 1.1754944e-38, %v1292_v9  ;;  %vm1291_vm7 = vcmp.eq.f32.partialorder %v1290_v12, 8.507059e+37 }
 0x131   : > { %v1269_v49 = vmul.f32 %v2201_v33, %v1268_v42  ;;  %v916_v50 = vadd.f32 %v915_v48, %v827_v22  ;;  %v741_v53 = vadd.f32 %v2604_v56, %v740_v51  ;;  %v829_v54 = vpop.f32.mrf.mxu1  ;;  %v766_v22 = vadd.f32 %v2763_v19, %v2629_v39 }
 0x133   : > { %v2203_v37 = vpop.eup %2202  ;;  %v1270_v55 = vadd.f32 %v2201_v33, %v1269_v49  ;;  %v1986_v57 = vmul.f32 -1.442695, %v916_v50  ;;  %v830_v3 = vadd.f32 %v829_v54, %v741_v53 }
 0x134   : > { %v2205_v58 = vpop.eup %2204  ;;  %v2740_v0 = vadd.f32 1.0, %v2203_v37 }
 0x135   : > { %v1274_v1 = vsel %vm1273_vm2, %v2201_v33, %v1270_v55  ;;  %v1282_v2 = vmul.f32 %v2205_v58, %v2729_v35  ;;  %2206 = vpow2.f32 %v1986_v57  ;;  %vm1287_vm4 = vweird.f32 %v2205_v58 }
 0x136   : > { %v1279_v52 = vsel %vm1276_vm3, %v1278_v63, %v1274_v1  ;;  %2208 = vrcp.f32 %v2740_v0  ;;  %v938_v6 = vpop.f32.mrf.mxu3  ;;  %vm1288_vm6 = vmor %vm1286_vm5, %vm1287_vm4  ;;  %v1305_v33 = vand.u32 2147483647, %v2740_v0  ;;  %v1307_v34 = vand.u32 2147483648, %v2740_v0 }
 0x137   : > { %1578 = vst [vmem:[%s2653_s28 + $0x60] sm:$0xff] %v1279_v52  ;;  %v1283_v5 = vsub.f32 1.0, %v1282_v2  ;;  %v939_v10 = vadd.f32 %v938_v6, %v850_v4  ;;  %vm1301_vm9 = vweird.f32 %v2740_v0 }
 0x138   : > { %v918_v8 = vpop.f32.mrf.mxu2  ;;  %v742_v14 = vpop.f32.mrf.mxu0  ;;  %vm1306_vm10 = vcmp.eq.f32.partialorder %v1305_v33, 8.507059e+37  ;;  %v1308_v53 = vor.u32 1.1754944e-38, %v1307_v34 }
 0x139   : > { %v1284_v11 = vmul.f32 %v2205_v58, %v1283_v5  ;;  %v919_v13 = vadd.f32 %v918_v8, %v830_v3  ;;  %v1995_v16 = vmul.f32 -1.442695, %v939_v10  ;;  %v831_v61 = vpop.f32.mrf.mxu1  ;;  %v743_v21 = vadd.f32 %v2604_v56, %v742_v14 }
 0x13b   : > { %v2207_v17 = vpop.eup %2206  ;;  %v1285_v60 = vadd.f32 %v2205_v58, %v1284_v11  ;;  %v1987_v18 = vmul.f32 -1.442695, %v919_v13  ;;  %2210 = vpow2.f32 %v1995_v16  ;;  %v832_v56 = vadd.f32 %v831_v61, %v743_v21 }
 0x13c   : > { %v2209_v24 = vpop.eup %2208  ;;  %v2752_v27 = vadd.f32 1.0, %v2207_v17 }
 0x13d   : > { %v1289_v28 = vsel %vm1288_vm6, %v2205_v58, %v1285_v60  ;;  %v1297_v29 = vmul.f32 %v2209_v24, %v2740_v0  ;;  %2212 = vpow2.f32 %v1987_v18  ;;  %vm1302_vm8 = vweird.f32 %v2209_v24 }
 0x13e   : > { %v1294_v15 = vsel %vm1291_vm7, %v1293_v26, %v1289_v28  ;;  %2214 = vrcp.f32 %v2752_v27  ;;  %v940_v23 = vpop.f32.mrf.mxu3  ;;  %vm1303_vm11 = vmor %vm1301_vm9, %vm1302_vm8  ;;  %v855_v58 = vadd.f32 %v2702_v43, %v766_v22  ;;  %v1320_v63 = vand.u32 2147483647, %v2752_v27 }
 0x13f   : > { %1579 = vst [vmem:[%s2653_s28 + $0x68] sm:$0xff] %v1294_v15  ;;  %v1298_v31 = vsub.f32 1.0, %v1297_v29  ;;  %v941_v36 = vadd.f32 %v940_v23, %v852_v30  ;;  %v1322_v1 = vand.u32 2147483648, %v2752_v27  ;;  %vm1316_vm13 = vweird.f32 %v2752_v27 }
 0x140   : > { %v920_v35 = vpop.f32.mrf.mxu2  ;;  %v745_v41 = vpop.f32.mrf.mxu0  ;;  %vm2782_vm14 = vcmp.eq.f32.partialorder %v1320_v63, 8.507059e+37 }
 0x141   : > { %v1299_v38 = vmul.f32 %v2209_v24, %v1298_v31  ;;  %v921_v40 = vadd.f32 %v920_v35, %v832_v56  ;;  %v2211_v42 = vpop.eup %2210  ;;  %v1996_v44 = vmul.f32 -1.442695, %v941_v36  ;;  %v746_v45 = vadd.f32 %v2763_v19, %v745_v41  ;;  %v834_v46 = vpop.f32.mrf.mxu1 }
 0x142   : > { %v2769_v50 = vadd.f32 1.0, %v2211_v42  ;;  %v1323_v13 = vor.u32 1.1754944e-38, %v1322_v1 }
 0x143   : > { %v2213_v48 = vpop.eup %2212  ;;  %v1300_v49 = vadd.f32 %v2209_v24, %v1299_v38  ;;  %v1988_v37 = vmul.f32 -1.442695, %v921_v40  ;;  %2216 = vpow2.f32 %v1996_v44  ;;  %v835_v57 = vadd.f32 %v834_v46, %v746_v45 }
 0x144   : > { %v2215_v51 = vpop.eup %2214  ;;  %v2772_v54 = vadd.f32 1.0, %v2213_v48  ;;  %2218 = vrcp.f32 %v2769_v50  ;;  %v1457_v29 = vand.u32 2147483648, %v2769_v50  ;;  %vm1451_vm1 = vweird.f32 %v2769_v50 }
 0x145   : > { %v1304_v39 = vsel %vm1303_vm11, %v2209_v24, %v1300_v49  ;;  %v1312_v55 = vmul.f32 %v2215_v51, %v2752_v27  ;;  %vm1317_vm12 = vweird.f32 %v2215_v51  ;;  %v1455_v56 = vand.u32 2147483647, %v2769_v50 }
 0x146   : > { %v1309_v62 = vsel %vm1306_vm10, %v1308_v53, %v1304_v39  ;;  %2220 = vrcp.f32 %v2772_v54  ;;  %v943_v2 = vpop.f32.mrf.mxu3  ;;  %vm1318_vm15 = vmor %vm1316_vm13, %vm1317_vm12  ;;  %vm1331_vm0 = vweird.f32 %v2772_v54  ;;  %v1335_v17 = vand.u32 2147483647, %v2772_v54 }
 0x147   : > { %1580 = vst [vmem:[%s2653_s28 + $0x70] sm:$0xff] %v1309_v62  ;;  %v1313_v0 = vsub.f32 1.0, %v1312_v55  ;;  %2222 = vpow2.f32 %v1988_v37  ;;  %v944_v4 = vadd.f32 %v943_v2, %v855_v58  ;;  %v1337_v27 = vand.u32 2147483648, %v2772_v54 }
 0x148   : > { %v923_v3 = vpop.f32.mrf.mxu2  ;;  %v747_v6 = vpop.f32.mrf.mxu0  ;;  %vm2805_vm4 = vcmp.eq.f32.partialorder %v1335_v17, 8.507059e+37  ;;  %v1458_v44 = vor.u32 1.1754944e-38, %v1457_v29  ;;  %vm1456_vm7 = vcmp.eq.f32.partialorder %v1455_v56, 8.507059e+37 }
 0x149   : > { %v1314_v52 = vmul.f32 %v2215_v51, %v1313_v0  ;;  %v924_v5 = vadd.f32 %v923_v3, %v835_v57  ;;  %v2217_v9 = vpop.eup %2216  ;;  %v1997_v8 = vmul.f32 -1.442695, %v944_v4  ;;  %v836_v10 = vpop.f32.mrf.mxu1  ;;  %v748_v24 = vadd.f32 %v2763_v19, %v747_v6 }
 0x14a   : > { %v2219_v11 = vpop.eup %2218  ;;  %v2786_v14 = vadd.f32 1.0, %v2217_v9  ;;  %v1338_v42 = vor.u32 1.1754944e-38, %v1337_v27 }
 0x14b   : > { %v1315_v12 = vadd.f32 %v2215_v51, %v1314_v52  ;;  %v1989_v16 = vmul.f32 -1.442695, %v924_v5  ;;  %v1447_v60 = vmul.f32 %v2219_v11, %v2769_v50  ;;  %2224 = vpow2.f32 %v1997_v8 }
 0x14c   : > { %v2221_v61 = vpop.eup %2220  ;;  %2226 = vrcp.f32 %v2786_v14  ;;  %vm1452_vm2 = vweird.f32 %v2219_v11  ;;  %v837_v36 = vadd.f32 %v836_v10, %v748_v24  ;;  %v1470_v37 = vand.u32 2147483647, %v2786_v14 }
 0x14d   : > { %v1319_v18 = vsel %vm1318_vm15, %v2215_v51, %v1315_v12  ;;  %v1327_v21 = vmul.f32 %v2221_v61, %v2772_v54  ;;  %v2223_v25 = vpop.eup %2222  ;;  %v1448_v28 = vsub.f32 1.0, %v1447_v60  ;;  %2228 = vpow2.f32 %v1989_v16  ;;  %vm1453_vm5 = vmor %vm1451_vm1, %vm1452_vm2 }
 0x14e   : > { %v1324_v26 = vsel %vm2782_vm14, %v1323_v13, %v1319_v18  ;;  %v2800_v15 = vadd.f32 1.0, %v2223_v25  ;;  %v945_v31 = vpop.f32.mrf.mxu3  ;;  %vm1332_vm3 = vweird.f32 %v2221_v61  ;;  %v1472_v58 = vand.u32 2147483648, %v2786_v14 }
 0x14f   : > { %1581 = vst [vmem:[%s2653_s28 + $0x78] sm:$0xff] %v1324_v26  ;;  %v1328_v30 = vsub.f32 1.0, %v1327_v21  ;;  %v1449_v33 = vmul.f32 %v2219_v11, %v1448_v28  ;;  %v946_v34 = vadd.f32 %v945_v31, %v2708_v7  ;;  %vm1333_vm6 = vmor %vm1331_vm0, %vm1332_vm3  ;;  %vm1466_vm10 = vweird.f32 %v2786_v14 }
 0x150   : > { %v925_v23 = vpop.f32.mrf.mxu2  ;;  %2230 = vrcp.f32 %v2800_v15  ;;  %v750_v38 = vpop.f32.mrf.mxu0  ;;  %v1350_v54 = vand.u32 2147483647, %v2800_v15  ;;  %v1352_v2 = vand.u32 2147483648, %v2800_v15  ;;  %vm1346_vm9 = vweird.f32 %v2800_v15 }
 0x151   : > { %v1329_v35 = vmul.f32 %v2221_v61, %v1328_v30  ;;  %v2225_v40 = vpop.eup %2224  ;;  %v1450_v22 = vadd.f32 %v2219_v11, %v1449_v33  ;;  %v926_v48 = vadd.f32 %v925_v23, %v837_v36  ;;  %v1998_v49 = vmul.f32 -1.442695, %v946_v34  ;;  %v839_v39 = vpop.f32.mrf.mxu1 }
 0x152   : > { %v2227_v45 = vpop.eup %2226  ;;  %v2812_v7 = vadd.f32 1.0, %v2225_v40  ;;  %v751_v4 = vadd.f32 %v2763_v19, %v750_v38  ;;  %vm2834_vm11 = vcmp.eq.f32.partialorder %v1470_v37, 8.507059e+37  ;;  %v1473_v8 = vor.u32 1.1754944e-38, %v1472_v58 }
 0x153   : > { %v1330_v46 = vadd.f32 %v2221_v61, %v1329_v35  ;;  %v1454_v51 = vsel %vm1453_vm5, %v2219_v11, %v1450_v22  ;;  %v1462_v53 = vmul.f32 %v2227_v45, %v2786_v14  ;;  %v2229_v55 = vpop.eup %2228  ;;  %v1990_v3 = vmul.f32 -1.442695, %v926_v48 }
 0x154   : > { %v1459_v57 = vsel %vm1456_vm7, %v1458_v44, %v1454_v51  ;;  %2232 = vrcp.f32 %v2812_v7  ;;  %v2825_v0 = vadd.f32 1.0, %v2229_v55  ;;  %vm1467_vm8 = vweird.f32 %v2227_v45 }
 0x155   : > { %v1334_v50 = vsel %vm1333_vm6, %v2221_v61, %v1330_v46  ;;  %1590 = vst [vmem:[%s2653_s28 + $0xc0] sm:$0xff] %v1459_v57  ;;  %v1463_v63 = vsub.f32 1.0, %v1462_v53  ;;  %2234 = vpow2.f32 %v1998_v49  ;;  %vm2838_vm12 = vcmp.eq.f32.partialorder %v1350_v54, 8.507059e+37  ;;  %vm1468_vm13 = vmor %vm1466_vm10, %vm1467_vm8 }
 0x156   : > { %v1339_v62 = vsel %vm2805_vm4, %v1338_v42, %v1334_v50  ;;  %v2231_v1 = vpop.eup %2230  ;;  %v948_v52 = vpop.f32.mrf.mxu3  ;;  %2236 = vrcp.f32 %v2825_v0  ;;  %v1353_v61 = vor.u32 1.1754944e-38, %v1352_v2  ;;  %vm1481_vm14 = vweird.f32 %v2812_v7 }
 0x157   : > { %1582 = vst [vmem:[%s2653_s28 + $0x80] sm:$0xff] %v1339_v62  ;;  %v1342_v5 = vmul.f32 %v2231_v1, %v2800_v15  ;;  %v1464_v6 = vmul.f32 %v2227_v45, %v1463_v63  ;;  %2238 = vpow2.f32 %v1990_v3  ;;  %v840_v14 = vadd.f32 %v839_v39, %v751_v4 }
 0x158   : > { %v928_v9 = vpop.f32.mrf.mxu2  ;;  %v752_v10 = vpop.f32.mrf.mxu0  ;;  %v949_v17 = vadd.f32 %v948_v52, %v2714_v32  ;;  %vm1347_vm15 = vweird.f32 %v2231_v1  ;;  %v1485_v26 = vand.u32 2147483647, %v2812_v7  ;;  %v1487_v33 = vand.u32 2147483648, %v2812_v7 }
 0x159   : > { %v1343_v11 = vsub.f32 1.0, %v1342_v5  ;;  %v1465_v13 = vadd.f32 %v2227_v45, %v1464_v6  ;;  %v929_v27 = vadd.f32 %v928_v9, %v840_v14  ;;  %v841_v56 = vpop.f32.mrf.mxu1  ;;  %vm1348_vm0 = vmor %vm1346_vm9, %vm1347_vm15  ;;  %v753_v35 = vadd.f32 %v2763_v19, %v752_v10 }
 0x15a   : > { %v2233_v16 = vpop.eup %2232  ;;  %v1999_v28 = vmul.f32 -1.442695, %v949_v17  ;;  %v1365_v44 = vand.u32 2147483647, %v2825_v0  ;;  %v1367_v46 = vand.u32 2147483648, %v2825_v0  ;;  %v1488_v49 = vor.u32 1.1754944e-38, %v1487_v33 }
 0x15b   : > { %v1344_v60 = vmul.f32 %v2231_v1, %v1343_v11  ;;  %v1469_v18 = vsel %vm1468_vm13, %v2227_v45, %v1465_v13  ;;  %v1477_v21 = vmul.f32 %v2233_v16, %v2812_v7  ;;  %v2235_v24 = vpop.eup %2234  ;;  %v1991_v34 = vmul.f32 -1.442695, %v929_v27 }
 0x15c   : > { %v1474_v25 = vsel %vm2834_vm11, %v1473_v8, %v1469_v18  ;;  %v2237_v29 = vpop.eup %2236  ;;  %v2850_v32 = vadd.f32 1.0, %v2235_v24  ;;  %2240 = vpow2.f32 %v1999_v28  ;;  %vm1482_vm1 = vweird.f32 %v2233_v16 }
 0x15d   : > { %v1345_v30 = vadd.f32 %v2231_v1, %v1344_v60  ;;  %1591 = vst [vmem:[%s2653_s28 + $0xc8] sm:$0xff] %v1474_v25  ;;  %v1478_v31 = vsub.f32 1.0, %v1477_v21  ;;  %v1357_v23 = vmul.f32 %v2237_v29, %v2825_v0  ;;  %v2239_v38 = vpop.eup %2238  ;;  %vm1362_vm2 = vweird.f32 %v2237_v29  ;;  %vm1483_vm3 = vmor %vm1481_vm14, %vm1482_vm1 }
 0x15e   : > { %v950_v36 = vpop.f32.mrf.mxu3  ;;  %2242 = vrcp.f32 %v2850_v32  ;;  %v2861_v45 = vadd.f32 1.0, %v2239_v38  ;;  %v842_v37 = vadd.f32 %v841_v56, %v753_v35  ;;  %vm1486_vm4 = vcmp.eq.f32.partialorder %v1485_v26, 8.507059e+37 }
 0x15f   : > { %v1349_v40 = vsel %vm1348_vm0, %v2231_v1, %v1345_v30  ;;  %v1479_v41 = vmul.f32 %v2233_v16, %v1478_v31  ;;  %v1358_v15 = vsub.f32 1.0, %v1357_v23  ;;  %2244 = vpow2.f32 %v1991_v34 }
 0x160   : > { %v930_v42 = vpop.f32.mrf.mxu2  ;;  %v1354_v22 = vsel %vm2838_vm12, %v1353_v61, %v1349_v40  ;;  %v755_v51 = vpop.f32.mrf.mxu0  ;;  %2246 = vrcp.f32 %v2861_v45  ;;  %vm1361_vm5 = vweird.f32 %v2825_v0  ;;  %vm1366_vm7 = vcmp.eq.f32.partialorder %v1365_v44, 8.507059e+37 }
 0x161   : > { %1583 = vst [vmem:[%s2653_s28 + $0x88] sm:$0xff] %v1354_v22  ;;  %v1480_v48 = vadd.f32 %v2233_v16, %v1479_v41  ;;  %v1359_v53 = vmul.f32 %v2237_v29, %v1358_v15  ;;  %v931_v58 = vadd.f32 %v930_v42, %v842_v37  ;;  %vm1363_vm6 = vmor %vm1361_vm5, %vm1362_vm2  ;;  %v1368_v54 = vor.u32 1.1754944e-38, %v1367_v46  ;;  %v844_v43 = vpop.f32.mrf.mxu1 }
 0x162   : > { %v2241_v55 = vpop.eup %2240  ;;  %v951_v7 = vadd.f32 %v950_v36, %v2720_v59  ;;  %v1500_v3 = vand.u32 2147483647, %v2850_v32  ;;  %v1380_v6 = vand.u32 2147483647, %v2861_v45  ;;  %v1502_v9 = vand.u32 2147483648, %v2850_v32 }
 0x163   : > { %v1484_v39 = vsel %vm1483_vm3, %v2233_v16, %v1480_v48  ;;  %v1360_v50 = vadd.f32 %v2237_v29, %v1359_v53  ;;  %v2871_v63 = vadd.f32 1.0, %v2241_v55  ;;  %v1992_v4 = vmul.f32 -1.442695, %v931_v58 }
 0x164   : > { %v1489_v57 = vsel %vm1486_vm4, %v1488_v49, %v1484_v39  ;;  %v2243_v62 = vpop.eup %2242  ;;  %v756_v12 = vadd.f32 %v2763_v19, %v755_v51  ;;  %v1382_v16 = vand.u32 2147483648, %v2861_v45  ;;  %vm1496_vm8 = vweird.f32 %v2850_v32 }
 0x165   : > { %1592 = vst [vmem:[%s2653_s28 + $0xd0] sm:$0xff] %v1489_v57  ;;  %v1364_v1 = vsel %vm1363_vm6, %v2237_v29, %v1360_v50  ;;  %v1492_v2 = vmul.f32 %v2243_v62, %v2850_v32  ;;  %v2245_v0 = vpop.eup %2244  ;;  %2248 = vrcp.f32 %v2871_v63  ;;  %v2000_v61 = vmul.f32 -1.442695, %v951_v7 }
 0x166   : > { %v953_v52 = vpop.f32.mrf.mxu3  ;;  %v1369_v5 = vsel %vm1366_vm7, %v1368_v54, %v1364_v1  ;;  %v2247_v10 = vpop.eup %2246  ;;  %v2880_v11 = vadd.f32 1.0, %v2245_v0  ;;  %2250 = vpow2.f32 %v1992_v4  ;;  %vm1376_vm9 = vweird.f32 %v2861_v45 }
 0x167   : > { %1584 = vst [vmem:[%s2653_s28 + $0x90] sm:$0xff] %v1369_v5  ;;  %v1493_v59 = vsub.f32 1.0, %v1492_v2  ;;  %v1372_v13 = vmul.f32 %v2247_v10, %v2861_v45  ;;  %vm1497_vm10 = vweird.f32 %v2243_v62  ;;  %vm2888_vm11 = vcmp.eq.f32.partialorder %v1500_v3, 8.507059e+37 }
 0x168   : > { %v933_v8 = vpop.f32.mrf.mxu2  ;;  %2252 = vrcp.f32 %v2880_v11  ;;  %v1503_v18 = vor.u32 1.1754944e-38, %v1502_v9  ;;  %v757_v21 = vpop.f32.mrf.mxu0  ;;  %vm2892_vm12 = vcmp.eq.f32.partialorder %v1380_v6, 8.507059e+37  ;;  %v845_v26 = vadd.f32 %v844_v43, %v756_v12  ;;  %vm1498_vm14 = vmor %vm1496_vm8, %vm1497_vm10 }
 0x169   : > { %v1494_v14 = vmul.f32 %v2243_v62, %v1493_v59  ;;  %v1373_v17 = vsub.f32 1.0, %v1372_v13  ;;  %2254 = vpow2.f32 %v2000_v61  ;;  %v954_v27 = vadd.f32 %v953_v52, %v2726_v20  ;;  %v846_v49 = vpop.f32.mrf.mxu1 }
 0x16a   : > { %vm1377_vm13 = vweird.f32 %v2247_v10  ;;  %v1383_v30 = vor.u32 1.1754944e-38, %v1382_v16  ;;  %v1515_v31 = vand.u32 2147483647, %v2871_v63  ;;  %v934_v34 = vadd.f32 %v933_v8, %v845_v26 }
 0x16b   : > { %v1495_v25 = vadd.f32 %v2243_v62, %v1494_v14  ;;  %v2249_v28 = vpop.eup %2248  ;;  %v1374_v29 = vmul.f32 %v2247_v10, %v1373_v17  ;;  %v758_v35 = vadd.f32 %v2763_v19, %v757_v21  ;;  %v1517_v38 = vand.u32 2147483648, %v2871_v63  ;;  %vm1378_vm15 = vmor %vm1376_vm9, %vm1377_vm13 }
 0x16c   : > { %v2251_v33 = vpop.eup %2250  ;;  %v1507_v23 = vmul.f32 %v2249_v28, %v2871_v63  ;;  %vm1511_vm0 = vweird.f32 %v2871_v63  ;;  %v1993_v42 = vmul.f32 -1.442695, %v934_v34  ;;  %v2001_v22 = vmul.f32 -1.442695, %v954_v27 }
 0x16d   : > { %v1499_v56 = vsel %vm1498_vm14, %v2243_v62, %v1495_v25  ;;  %v1375_v36 = vadd.f32 %v2247_v10, %v1374_v29  ;;  %v2906_v40 = vadd.f32 1.0, %v2251_v33  ;;  %v1395_v48 = vand.u32 2147483647, %v2880_v11 }
 0x16e   : > { %v1504_v20 = vsel %vm2888_vm11, %v1503_v18, %v1499_v56  ;;  %v2253_v41 = vpop.eup %2252  ;;  %v1508_v32 = vsub.f32 1.0, %v1507_v23  ;;  %v955_v19 = vpop.f32.mrf.mxu3  ;;  %vm1512_vm1 = vweird.f32 %v2249_v28  ;;  %v847_v37 = vadd.f32 %v846_v49, %v758_v35 }
 0x16f   : > { %1593 = vst [vmem:[%s2653_s28 + $0xd8] sm:$0xff] %v1504_v20  ;;  %v2255_v15 = vpop.eup %2254  ;;  %v1379_v44 = vsel %vm1378_vm15, %v2247_v10, %v1375_v36  ;;  %v1387_v46 = vmul.f32 %v2253_v41, %v2880_v11  ;;  %2256 = vrcp.f32 %v2906_v40  ;;  %v956_v50 = vadd.f32 %v955_v19, %v2735_v47  ;;  %vm1513_vm3 = vmor %vm1511_vm0, %vm1512_vm1 }
 0x170   : > { %v935_v51 = vpop.f32.mrf.mxu2  ;;  %v1384_v45 = vsel %vm2892_vm12, %v1383_v30, %v1379_v44  ;;  %v1509_v53 = vmul.f32 %v2249_v28, %v1508_v32  ;;  %v2918_v55 = vadd.f32 1.0, %v2255_v15  ;;  %2258 = vpow2.f32 %v1993_v42 }
 0x171   : > { %1585 = vst [vmem:[%s2653_s28 + $0x98] sm:$0xff] %v1384_v45  ;;  %v1388_v39 = vsub.f32 1.0, %v1387_v46  ;;  %v1397_v57 = vand.u32 2147483648, %v2880_v11  ;;  %2260 = vpow2.f32 %v2001_v22  ;;  %v936_v62 = vadd.f32 %v935_v51, %v847_v37 }
 0x172   : > { %v1510_v58 = vadd.f32 %v2249_v28, %v1509_v53  ;;  %vm1392_vm2 = vweird.f32 %v2253_v41  ;;  %v1518_v7 = vor.u32 1.1754944e-38, %v1517_v38  ;;  %2262 = vrcp.f32 %v2918_v55 }
 0x173   : > { %v1389_v54 = vmul.f32 %v2253_v41, %v1388_v39  ;;  %vm1516_vm4 = vcmp.eq.f32.partialorder %v1515_v31, 8.507059e+37  ;;  %v1994_v2 = vmul.f32 -1.442695, %v936_v62  ;;  %vm1391_vm5 = vweird.f32 %v2880_v11 }
 0x174   : > { %v1514_v1 = vsel %vm1513_vm3, %v2249_v28, %v1510_v58  ;;  %v2002_v52 = vmul.f32 -1.442695, %v956_v50  ;;  %vm1393_vm6 = vmor %vm1391_vm5, %vm1392_vm2  ;;  %v1398_v0 = vor.u32 1.1754944e-38, %v1397_v57  ;;  %vm1396_vm7 = vcmp.eq.f32.partialorder %v1395_v48, 8.507059e+37 }
 0x175   : > { %v2257_v3 = vpop.eup %2256  ;;  %v1390_v4 = vadd.f32 %v2253_v41, %v1389_v54  ;;  %v1519_v47 = vsel %vm1516_vm4, %v1518_v7, %v1514_v1  ;;  %2264 = vpow2.f32 %v1994_v2  ;;  %v1410_v11 = vand.u32 2147483647, %v2906_v40 }
 0x176   : > { %1594 = vst [vmem:[%s2653_s28 + $0xe0] sm:$0xff] %v1519_v47  ;;  %v1402_v5 = vmul.f32 %v2257_v3, %v2906_v40  ;;  %v2259_v63 = vpop.eup %2258  ;;  %2266 = vpow2.f32 %v2002_v52  ;;  %v1412_v12 = vand.u32 2147483648, %v2906_v40  ;;  %vm1407_vm8 = vweird.f32 %v2257_v3 }
 0x177   : > { %v1394_v6 = vsel %vm1393_vm6, %v2253_v41, %v1390_v4  ;;  %v2261_v9 = vpop.eup %2260  ;;  %v1076_v10 = vadd.f32 1.0, %v2259_v63  ;;  %vm1406_vm9 = vweird.f32 %v2906_v40  ;;  %vm1411_vm11 = vcmp.eq.f32.partialorder %v1410_v11, 8.507059e+37 }
 0x178   : > { %v1399_v43 = vsel %vm1396_vm7, %v1398_v0, %v1394_v6  ;;  %v1403_v8 = vsub.f32 1.0, %v1402_v5  ;;  %v2263_v59 = vpop.eup %2262  ;;  %v1084_v13 = vadd.f32 1.0, %v2261_v9  ;;  %vm1408_vm10 = vmor %vm1406_vm9, %vm1407_vm8  ;;  %v1413_v18 = vor.u32 1.1754944e-38, %v1412_v12 }
 0x179   : > { %1586 = vst [vmem:[%s2653_s28 + $0xa0] sm:$0xff] %v1399_v43  ;;  %v1522_v61 = vmul.f32 %v2263_v59, %v2918_v55  ;;  %2268 = vrcp.f32 %v1076_v10  ;;  %v1530_v21 = vand.u32 2147483647, %v2918_v55  ;;  %v1532_v24 = vand.u32 2147483648, %v2918_v55 }
 0x17a   : > { %v1404_v16 = vmul.f32 %v2257_v3, %v1403_v8  ;;  %2270 = vrcp.f32 %v1084_v13  ;;  %vm1527_vm12 = vweird.f32 %v2263_v59  ;;  %vm1526_vm13 = vweird.f32 %v2918_v55 }
 0x17b   : > { %v1523_v17 = vsub.f32 1.0, %v1522_v61  ;;  %v2265_v60 = vpop.eup %2264  ;;  %vm1528_vm14 = vmor %vm1526_vm13, %vm1527_vm12  ;;  %v1533_v23 = vor.u32 1.1754944e-38, %v1532_v24  ;;  %vm1531_vm15 = vcmp.eq.f32.partialorder %v1530_v21, 8.507059e+37  ;;  %v1425_v40 = vand.u32 2147483647, %v1076_v10 }
 0x17c   : > { %v1405_v14 = vadd.f32 %v2257_v3, %v1404_v16  ;;  %v2267_v25 = vpop.eup %2266  ;;  %v2935_v28 = vadd.f32 1.0, %v2265_v60  ;;  %v1427_v41 = vand.u32 2147483648, %v1076_v10  ;;  %v1545_v42 = vand.u32 2147483647, %v1084_v13 }
 0x17d   : > { %v1524_v27 = vmul.f32 %v2263_v59, %v1523_v17  ;;  %v2937_v30 = vadd.f32 1.0, %v2267_v25  ;;  %v1547_v19 = vand.u32 2147483648, %v1084_v13  ;;  %vm1421_vm1 = vweird.f32 %v1076_v10 }
 0x17e   : > { %v1409_v26 = vsel %vm1408_vm10, %v2257_v3, %v1405_v14  ;;  %2272 = vrcp.f32 %v2935_v28  ;;  %vm1426_vm3 = vcmp.eq.f32.partialorder %v1425_v40, 8.507059e+37  ;;  %vm1541_vm4 = vweird.f32 %v1084_v13 }
 0x17f   : > { %v1414_v29 = vsel %vm1411_vm11, %v1413_v18, %v1409_v26  ;;  %v2269_v31 = vpop.eup %2268  ;;  %v1525_v33 = vadd.f32 %v2263_v59, %v1524_v27  ;;  %2274 = vrcp.f32 %v2937_v30  ;;  %v1428_v51 = vor.u32 1.1754944e-38, %v1427_v41 }
 0x180   : > { %1587 = vst [vmem:[%s2653_s28 + $0xa8] sm:$0xff] %v1414_v29  ;;  %v2271_v56 = vpop.eup %2270  ;;  %v1417_v34 = vmul.f32 %v2269_v31, %v1076_v10  ;;  %vm1422_vm0 = vweird.f32 %v2269_v31  ;;  %vm1546_vm6 = vcmp.eq.f32.partialorder %v1545_v42, 8.507059e+37  ;;  %v1548_v39 = vor.u32 1.1754944e-38, %v1547_v19 }
 0x181   : > { %v1529_v35 = vsel %vm1528_vm14, %v2263_v59, %v1525_v33  ;;  %v1537_v36 = vmul.f32 %v2271_v56, %v1084_v13  ;;  %vm1542_vm2 = vweird.f32 %v2271_v56  ;;  %vm1423_vm5 = vmor %vm1421_vm1, %vm1422_vm0  ;;  %v1440_v50 = vand.u32 2147483647, %v2935_v28 }
 0x182   : > { %v1534_v20 = vsel %vm1531_vm15, %v1533_v23, %v1529_v35  ;;  %v1418_v38 = vsub.f32 1.0, %v1417_v34  ;;  %vm1543_vm7 = vmor %vm1541_vm4, %vm1542_vm2  ;;  %v1442_v62 = vand.u32 2147483648, %v2935_v28  ;;  %v1562_v2 = vand.u32 2147483648, %v2937_v30 }
 0x183   : > { %1595 = vst [vmem:[%s2653_s28 + $0xe8] sm:$0xff] %v1534_v20  ;;  %v1538_v32 = vsub.f32 1.0, %v1537_v36  ;;  %v1560_v4 = vand.u32 2147483647, %v2937_v30  ;;  %vm1436_vm10 = vweird.f32 %v2935_v28  ;;  %vm1556_vm12 = vweird.f32 %v2937_v30 }
 0x184   : > { %v1419_v22 = vmul.f32 %v2269_v31, %v1418_v38  ;;  %v2273_v15 = vpop.eup %2272  ;;  %v1443_v52 = vor.u32 1.1754944e-38, %v1442_v62  ;;  %vm1441_vm13 = vcmp.eq.f32.partialorder %v1440_v50, 8.507059e+37  ;;  %v1563_v63 = vor.u32 1.1754944e-38, %v1562_v2 }
 0x185   : > { %v1539_v44 = vmul.f32 %v2271_v56, %v1538_v32  ;;  %v2275_v46 = vpop.eup %2274  ;;  %v1432_v49 = vmul.f32 %v2273_v15, %v2935_v28  ;;  %vm1437_vm8 = vweird.f32 %v2273_v15  ;;  %vm1561_vm15 = vcmp.eq.f32.partialorder %v1560_v4, 8.507059e+37 }
 0x186   : > { %v1420_v48 = vadd.f32 %v2269_v31, %v1419_v22  ;;  %v1552_v53 = vmul.f32 %v2275_v46, %v2937_v30  ;;  %vm1557_vm9 = vweird.f32 %v2275_v46  ;;  %vm1438_vm11 = vmor %vm1436_vm10, %vm1437_vm8 }
 0x187   : > { %v1540_v45 = vadd.f32 %v2271_v56, %v1539_v44  ;;  %v1433_v55 = vsub.f32 1.0, %v1432_v49  ;;  %vm1558_vm14 = vmor %vm1556_vm12, %vm1557_vm9 }
 0x188   : > { %v1424_v37 = vsel %vm1423_vm5, %v2269_v31, %v1420_v48  ;;  %v1553_v54 = vsub.f32 1.0, %v1552_v53 }
 0x189   : > { %v1429_v57 = vsel %vm1426_vm3, %v1428_v51, %v1424_v37  ;;  %v1544_v58 = vsel %vm1543_vm7, %v2271_v56, %v1540_v45  ;;  %v1434_v1 = vmul.f32 %v2273_v15, %v1433_v55 }
 0x18a   : > { %1588 = vst [vmem:[%s2653_s28 + $0xb0] sm:$0xff] %v1429_v57  ;;  %v1549_v7 = vsel %vm1546_vm6, %v1548_v39, %v1544_v58  ;;  %v1554_v3 = vmul.f32 %v2275_v46, %v1553_v54 }
 0x18b   : > { %1596 = vst [vmem:[%s2653_s28 + $0xf0] sm:$0xff] %v1549_v7  ;;  %v1435_v47 = vadd.f32 %v2273_v15, %v1434_v1 }
 0x18c   : > { %v1555_v0 = vadd.f32 %v2275_v46, %v1554_v3 }
 0x18d   : > { %v1439_v5 = vsel %vm1438_vm11, %v2273_v15, %v1435_v47 }
 0x18e   : > { %v1444_v6 = vsel %vm1441_vm13, %v1443_v52, %v1439_v5  ;;  %v1559_v9 = vsel %vm1558_vm14, %v2275_v46, %v1555_v0 }
 0x18f   : > { %1589 = vst [vmem:[%s2653_s28 + $0xb8] sm:$0xff] %v1444_v6  ;;  %v1564_v43 = vsel %vm1561_vm15, %v1563_v63, %v1559_v9 }
 0x190   : > { %1597 = vst [vmem:[%s2653_s28 + $0xf8] sm:$0xff] %v1564_v43 }
 0x191   : > { %2304 = shalt.err (!%p2301_p3)
}
 0x192   : > { %s2341_s26 = smov 128   ;;  %s2342_s27 = smov 8  }
 0x193   : > { %2106 = dma.vmem_to_hbm [thread:$0]  (%p2401_p5), %s1612_s6, 4096, %s1614_s7, %s1599_s8, %s2341_s26, %s2341_s26, %s2342_s27  }
 0x194 PF: > { %p2112_p4 = scmp.ge.s32.totalorder %s2339_s15, 2  ;;  %s1628_s28 = sand.u32 1, %s2327_s12  }
 0x195   : > { %s1629_s29 = scalar_lea.sflag [#allocation3], %s1628_s28 }
 0x196   : > { %p2109_p7 = pnand %p2112_p4, %p2405_p6 }
 0x198   : > { %p2110_p8 = pneg %p2109_p7 }
 0x19a   : > { %2322 = dma.done.wait (%p2110_p8), %s1629_s29, 4096  }
 0x19b   : > { %2324 = vsyncadd (%p2110_p8), %s1629_s29, 4294963200  ;;  %p13_p9 = scmp.ge.s32.totalorder %s2388_s18, 4   ;;  %s3008_s12 = smov %s2331_s13 }
 0x19c   : > { %s3009_s13 = smov %s2335_s14  ;;  %s3010_s14 = smov %s2399_s21 }
 0x19d   : > { %s3011_s15 = smov %s2388_s18  ;;  %15 = sbr.rel (!%p13_p9) target bundleno = 3 (0x3), region = 67 }
 0x1a2   :  { %1635 = vsyncpa [#allocation3], 1 }
 0x1a3   :  { %1637 = vsyncpa [#allocation3 + $0x1], 1 }

// kernel: crosslevel_net3_forward.8
= control target key start
LH: loop header
LB: loop body
LE: loop exit
PB: predicated region body
PF: predicated region fallthrough
CT: control target
= control target key end

     0   :  { %s1577_s12 = smov 0   ;;  %s1935_s0 = inlined_call_operand.vmem [shape: bf16[512,384], index: 0, kind: input, shape index: {}]   ;;  %s1936_s1 = inlined_call_operand.vmem [shape: bf16[384,128], index: 1, kind: input, shape index: {}]   ;;  %s1937_s2 = inlined_call_operand.vmem [shape: f32[1,128], index: 2, kind: input, shape index: {}]   ;;  %s1938_s3 = inlined_call_operand.vmem [shape: f32[512,128], index: 3, kind: output, shape index: {}]  }
   0x1 LB: > { %s1080_s13 = sadd.s32 4294967295, %s1555_s12   ;;  %p1084_p0 = scmp.ge.s32.totalorder %s1555_s12, 1  ;;  %s1555_s12 = sphi %s1577_s12, %s13_s12  }
   0x2   : > { %p139_p1 = scmp.lt.s32.totalorder %s1555_s12, 3 }
   0x4   : > { %p140_p2 = pnand %p1084_p0, %p139_p1 }
   0x5   : > { %s1085_s5 = sshll.u32 (!%p140_p2), %s1080_s13, 5 }
   0x6   : > { %143 = sbr.rel (%p140_p2) target bundleno = 371 (0x173), region = 32  ;;  %p165_p3 = scmp.lt.s32.totalorder (!%p140_p2), %s1085_s5, 63 }
   0xb   : > { %v1434_v0 = vld [vmem:[%s1936_s1 + $0x38] sm:$0xff]  ;;  %v1433_v3 = vld [vmem:[%s1936_s1 + $0x30] sm:$0xff]  ;;  %v1432_v6 = vld [vmem:[%s1936_s1 + $0x28] sm:$0xff]  ;;  %s1940_s5 = smov (!%p165_p3, %s1085_s5), 63 }
   0xc   : > { %v1591_v1 = vld [vmem:[%s1936_s1 + $0x78] sm:$0xff]  ;;  %693 = vmatpush.bf16.msra.mxu0 %v1434_v0  ;;  %1451 = vmatpush.bf16.msra.mxu3 %v1434_v0  ;;  %v1606_v4 = vld [vmem:[%s1936_s1 + $0x70] sm:$0xff]  ;;  %v1621_v7 = vld [vmem:[%s1936_s1 + $0x68] sm:$0xff]  ;;  %s1475_s21 = smul.u32 12, %s1940_s5  ;;  %s1088_s18 = sshll.u32 %s1940_s5, 3 }
   0xd   : > { %v1596_v2 = vld [vmem:[%s1936_s1 + $0xb8] sm:$0xff]  ;;  %782 = vmatpush.bf16.msra.mxu1 %v1591_v1  ;;  %v1611_v5 = vld [vmem:[%s1936_s1 + $0xb0] sm:$0xff]  ;;  %v1626_v8 = vld [vmem:[%s1936_s1 + $0xa8] sm:$0xff] }
   0xe   : > { %871 = vmatpush.bf16.msra.mxu2 %v1596_v2  ;;  %v1431_v9 = vld [vmem:[%s1936_s1 + $0x20] sm:$0xff]  ;;  %v1430_v12 = vld [vmem:[%s1936_s1 + $0x18] sm:$0xff]  ;;  %v1429_v15 = vld [vmem:[%s1936_s1 + $0x10] sm:$0xff]  ;;  %s1677_s30 = scalar_lea.vmem %s1935_s0, %s1475_s21  ;;  %s1806_s21 = scalar_lea.vmem %s1938_s3, %s1088_s18 }
   0xf   : > { %v1636_v10 = vld [vmem:[%s1936_s1 + $0x60] sm:$0xff]  ;;  %v1438_v13 = vld [vmem:[%s1936_s1 + $0x58] sm:$0xff]  ;;  %v1437_v16 = vld [vmem:[%s1936_s1 + $0x50] sm:$0xff] }
  0x10   : > { %694 = vmatpush.bf16.msra.mxu0 %v1433_v3  ;;  %1452 = vmatpush.bf16.msra.mxu3 %v1433_v3  ;;  %v1641_v11 = vld [vmem:[%s1936_s1 + $0xa0] sm:$0xff]  ;;  %v1656_v14 = vld [vmem:[%s1936_s1 + $0x98] sm:$0xff]  ;;  %v1669_v17 = vld [vmem:[%s1936_s1 + $0x90] sm:$0xff] }
  0x11   : > { %783 = vmatpush.bf16.msra.mxu1 %v1606_v4  ;;  %v1428_v18 = vld [vmem:[%s1936_s1 + $0x8] sm:$0xff]  ;;  %v1427_v21 = vld [vmem:[%s1936_s1] sm:$0xff]  ;;  %v1093_v29 = vld [vmem:[%s1677_s30 + $0xc] sm:$0xf0] }
  0x12   : > { %872 = vmatpush.bf16.msra.mxu2 %v1611_v5  ;;  %v1436_v19 = vld [vmem:[%s1936_s1 + $0x48] sm:$0xff]  ;;  %v1435_v22 = vld [vmem:[%s1936_s1 + $0x40] sm:$0xff]  ;;  %v1381_v31 = vld [vmem:[%s1677_s30 + $0x10] sm:$0xf0] }
  0x13   : > { %v1686_v20 = vld [vmem:[%s1936_s1 + $0x88] sm:$0xff]  ;;  %v1697_v23 = vld [vmem:[%s1936_s1 + $0x80] sm:$0xff]  ;;  %v1103_v36 = vld [vmem:[%s1677_s30 + $0x18] sm:$0xf] }
  0x14   : > { %695 = vmatpush.bf16.msra.mxu0 %v1432_v6  ;;  %1453 = vmatpush.bf16.msra.mxu3 %v1432_v6  ;;  %v1091_v24 = vld [vmem:[%s1677_s30] sm:$0xf]  ;;  %v1380_v25 = vld [vmem:[%s1677_s30 + $0x8] sm:$0xf0]  ;;  %v1379_v28 = vld [vmem:[%s1677_s30 + $0x4] sm:$0xf] }
  0x15   : > { %784 = vmatpush.bf16.msra.mxu1 %v1621_v7  ;;  %v1235_v26 = vld [vmem:[%s1677_s30 + $0x120] sm:$0xf]  ;;  %v1416_v27 = vld [vmem:[%s1677_s30 + $0x128] sm:$0xf0]  ;;  %v1099_v30 = vld [vmem:[%s1677_s30 + $0x8] sm:$0xf]  ;;  %v1092_v32 = vor.u32 %v1380_v25, %v1091_v24  ;;  %v1096_v34 = vor.u32 %v1379_v28, %v1093_v29 }
  0x16   : > { %873 = vmatpush.bf16.msra.mxu2 %v1626_v8  ;;  %v1236_v33 = vor.u32 %v1416_v27, %v1235_v26  ;;  %v1100_v35 = vor.u32 %v1381_v31, %v1099_v30  ;;  %v1383_v37 = vld [vmem:[%s1677_s30 + $0x20] sm:$0xf0]  ;;  %v1247_v38 = vld [vmem:[%s1677_s30 + $0x138] sm:$0xf]  ;;  %v1382_v40 = vld [vmem:[%s1677_s30 + $0x1c] sm:$0xf] }
  0x17   : > { %v1419_v39 = vld [vmem:[%s1677_s30 + $0x140] sm:$0xf0]  ;;  %v1105_v41 = vld [vmem:[%s1677_s30 + $0x24] sm:$0xf0]  ;;  %v1111_v42 = vld [vmem:[%s1677_s30 + $0x20] sm:$0xf]  ;;  %v1104_v44 = vor.u32 %v1383_v37, %v1103_v36 }
  0x18   : > { %696 = vmatpush.bf16.msra.mxu0 %v1431_v9  ;;  %1454 = vmatpush.bf16.msra.mxu3 %v1431_v9  ;;  %v1384_v43 = vld [vmem:[%s1677_s30 + $0x28] sm:$0xf0]  ;;  %v1248_v45 = vor.u32 %v1419_v39, %v1247_v38  ;;  %v1108_v46 = vor.u32 %v1382_v40, %v1105_v41  ;;  %v1115_v48 = vld [vmem:[%s1677_s30 + $0x30] sm:$0xf]  ;;  %v1386_v49 = vld [vmem:[%s1677_s30 + $0x38] sm:$0xf0] }
  0x19   : > { %785 = vmatpush.bf16.msra.mxu1 %v1636_v10  ;;  %v1112_v47 = vor.u32 %v1384_v43, %v1111_v42  ;;  %v1259_v50 = vld [vmem:[%s1677_s30 + $0x150] sm:$0xf]  ;;  %v1422_v51 = vld [vmem:[%s1677_s30 + $0x158] sm:$0xf0]  ;;  %v1385_v52 = vld [vmem:[%s1677_s30 + $0x34] sm:$0xf]  ;;  %v1116_v56 = vor.u32 %v1386_v49, %v1115_v48 }
  0x1a   : > { %874 = vmatpush.bf16.msra.mxu2 %v1641_v11  ;;  %v1117_v53 = vld [vmem:[%s1677_s30 + $0x3c] sm:$0xf0]  ;;  %v1123_v54 = vld [vmem:[%s1677_s30 + $0x38] sm:$0xf]  ;;  %v1387_v55 = vld [vmem:[%s1677_s30 + $0x40] sm:$0xf0]  ;;  %v1260_v57 = vor.u32 %v1422_v51, %v1259_v50 }
  0x1b   : > { %v1120_v58 = vor.u32 %v1385_v52, %v1117_v53  ;;  %v1124_v59 = vor.u32 %v1387_v55, %v1123_v54  ;;  %v1127_v60 = vld [vmem:[%s1677_s30 + $0x48] sm:$0xf]  ;;  %v1389_v61 = vld [vmem:[%s1677_s30 + $0x50] sm:$0xf0]  ;;  %v1388_v0 = vld [vmem:[%s1677_s30 + $0x4c] sm:$0xf] }
  0x1c   : > { %697 = vmatpush.bf16.msra.mxu0 %v1430_v12  ;;  %1455 = vmatpush.bf16.msra.mxu3 %v1430_v12  ;;  %v1271_v62 = vld [vmem:[%s1677_s30 + $0x168] sm:$0xf]  ;;  %v1425_v63 = vld [vmem:[%s1677_s30 + $0x170] sm:$0xf0]  ;;  %v1390_v3 = vld [vmem:[%s1677_s30 + $0x58] sm:$0xf0] }
  0x1d   : > { %786 = vmatpush.bf16.msra.mxu1 %v1438_v13  ;;  %v1392_v9 = vld [vmem:[%s1677_s30 + $0x68] sm:$0xf0]  ;;  %v1237_v12 = vld [vmem:[%s1677_s30 + $0x12c] sm:$0xf0]  ;;  %v1418_v24 = vld [vmem:[%s1677_s30 + $0x13c] sm:$0xf] }
  0x1e   : > { %875 = vmatpush.bf16.msra.mxu2 %v1656_v14  ;;  %v1249_v25 = vld [vmem:[%s1677_s30 + $0x144] sm:$0xf0]  ;;  %v1159_v26 = vld [vmem:[%s1677_s30 + $0x80] sm:$0xf]  ;;  %v1396_v27 = vld [vmem:[%s1677_s30 + $0x88] sm:$0xf0] }
  0x1f   : > { %v1252_v29 = vor.u32 %v1418_v24, %v1249_v25  ;;  %v1160_v31 = vor.u32 %v1396_v27, %v1159_v26  ;;  %v1261_v36 = vld [vmem:[%s1677_s30 + $0x15c] sm:$0xf0]  ;;  %v1171_v38 = vld [vmem:[%s1677_s30 + $0x98] sm:$0xf]  ;;  %v1399_v39 = vld [vmem:[%s1677_s30 + $0xa0] sm:$0xf0] }
  0x20   : > { %698 = vmatpush.bf16.msra.mxu0 %v1429_v15  ;;  %1456 = vmatpush.bf16.msra.mxu3 %v1429_v15  ;;  %v1393_v15 = vld [vmem:[%s1677_s30 + $0x70] sm:$0xf0]  ;;  %v1165_v37 = vld [vmem:[%s1677_s30 + $0x9c] sm:$0xf0]  ;;  %v1172_v43 = vor.u32 %v1399_v39, %v1171_v38  ;;  %v1273_v48 = vld [vmem:[%s1677_s30 + $0x174] sm:$0xf0] }
  0x21   : > { %787 = vmatpush.bf16.msra.mxu1 %v1437_v16  ;;  %v1177_v49 = vld [vmem:[%s1677_s30 + $0xb4] sm:$0xf0]  ;;  %v1183_v50 = vld [vmem:[%s1677_s30 + $0xb0] sm:$0xf]  ;;  %v1402_v51 = vld [vmem:[%s1677_s30 + $0xb8] sm:$0xf0] }
  0x22   : > { %876 = vmatpush.bf16.msra.mxu2 %v1669_v17  ;;  %v1184_v55 = vor.u32 %v1402_v51, %v1183_v50  ;;  %v1411_v50 = vld [vmem:[%s1677_s30 + $0x100] sm:$0xf0] }
  0x24   : > { %699 = vmatpush.bf16.msra.mxu0 %v1428_v18  ;;  %1457 = vmatpush.bf16.msra.mxu3 %v1428_v18 }
  0x25   : > { %788 = vmatpush.bf16.msra.mxu1 %v1436_v19 }
  0x26   : > { %877 = vmatpush.bf16.msra.mxu2 %v1686_v20 }
  0x28   : > { %700 = vmatpush.bf16.msra.mxu0 %v1427_v21  ;;  %1458 = vmatpush.bf16.msra.mxu3 %v1427_v21  ;;  %v1395_v21 = vld [vmem:[%s1677_s30 + $0x80] sm:$0xf0] }
  0x29   : > { %789 = vmatpush.bf16.msra.mxu1 %v1435_v22 }
  0x2a   : > { %878 = vmatpush.bf16.msra.mxu2 %v1697_v23 }
  0x2b   : > { %701 = vmatmul.bf16.vlgmr.msra.gmra.mxu0 %v1092_v32  ;;  %761 = vmatmul.bf16.vlgmr.msra.gmra.mxu3 %v1236_v33  ;;  %v1163_v32 = vld [vmem:[%s1677_s30 + $0x90] sm:$0xf]  ;;  %v1398_v33 = vld [vmem:[%s1677_s30 + $0x98] sm:$0xf0] }
  0x2c   : > { %1459 = vmatpush.bf16.msrb.mxu3 %v1591_v1  ;;  %790 = vmatmul.bf16.vlgmr.msra.gmra.mxu1 %v1096_v34  ;;  %v1129_v1 = vld [vmem:[%s1677_s30 + $0x54] sm:$0xf0]  ;;  %v1397_v34 = vld [vmem:[%s1677_s30 + $0x94] sm:$0xf]  ;;  %v1164_v40 = vor.u32 %v1398_v33, %v1163_v32 }
  0x2d   : > { %879 = vmatmul.bf16.vlgmr.msra.gmra.mxu2 %v1100_v35  ;;  %v1132_v6 = vor.u32 %v1388_v0, %v1129_v1  ;;  %v1421_v35 = vld [vmem:[%s1677_s30 + $0x154] sm:$0xf]  ;;  %v1168_v42 = vor.u32 %v1397_v34, %v1165_v37 }
  0x2e   : > { %v1264_v41 = vor.u32 %v1421_v35, %v1261_v36  ;;  %v1405_v0 = vld [vmem:[%s1677_s30 + $0xd0] sm:$0xf0] }
  0x30   : > { %1460 = vmatpush.bf16.msrb.mxu3 %v1606_v4  ;;  %v1128_v4 = vor.u32 %v1389_v61, %v1127_v60  ;;  %v1243_v60 = vld [vmem:[%s1677_s30 + $0x128] sm:$0xf]  ;;  %v1417_v61 = vld [vmem:[%s1677_s30 + $0x130] sm:$0xf0] }
  0x34   : > { %1461 = vmatpush.bf16.msrb.mxu3 %v1621_v7 }
  0x38   : > { %1462 = vmatpush.bf16.msrb.mxu3 %v1636_v10  ;;  %v1391_v10 = vld [vmem:[%s1677_s30 + $0x64] sm:$0xf] }
  0x3b   : > { %706 = vmatmul.bf16.gmra.mxu0 %v1104_v44  ;;  %766 = vmatmul.bf16.gmra.mxu3 %v1248_v45  ;;  %v1175_v44 = vld [vmem:[%s1677_s30 + $0xa8] sm:$0xf]  ;;  %v1401_v45 = vld [vmem:[%s1677_s30 + $0xb0] sm:$0xf0] }
  0x3c   : > { %1463 = vmatpush.bf16.msrb.mxu3 %v1438_v13  ;;  %795 = vmatmul.bf16.gmra.mxu1 %v1108_v46  ;;  %v1141_v13 = vld [vmem:[%s1677_s30 + $0x6c] sm:$0xf0]  ;;  %v1400_v46 = vld [vmem:[%s1677_s30 + $0xac] sm:$0xf]  ;;  %v1176_v52 = vor.u32 %v1401_v45, %v1175_v44  ;;  %v1410_v44 = vld [vmem:[%s1677_s30 + $0xf8] sm:$0xf0] }
  0x3d   : > { %884 = vmatmul.bf16.gmra.mxu2 %v1112_v47  ;;  %v1144_v18 = vor.u32 %v1391_v10, %v1141_v13  ;;  %v1424_v47 = vld [vmem:[%s1677_s30 + $0x16c] sm:$0xf]  ;;  %v1180_v54 = vor.u32 %v1400_v46, %v1177_v49  ;;  %v1409_v45 = vld [vmem:[%s1677_s30 + $0xf4] sm:$0xf]  ;;  %v1267_v46 = vld [vmem:[%s1677_s30 + $0x158] sm:$0xf] }
  0x3e   : > { %v1276_v53 = vor.u32 %v1424_v47, %v1273_v48  ;;  %v1423_v47 = vld [vmem:[%s1677_s30 + $0x160] sm:$0xf0]  ;;  %v1213_v48 = vld [vmem:[%s1677_s30 + $0xfc] sm:$0xf0]  ;;  %v1219_v49 = vld [vmem:[%s1677_s30 + $0xf8] sm:$0xf] }
  0x40   : > { %1464 = vmatpush.bf16.msrb.mxu3 %v1437_v16 }
  0x44   : > { %1465 = vmatpush.bf16.msrb.mxu3 %v1436_v19 }
  0x48   : > { %1466 = vmatpush.bf16.msrb.mxu3 %v1435_v22  ;;  %v1394_v22 = vld [vmem:[%s1677_s30 + $0x7c] sm:$0xf] }
  0x4b   : > { %711 = vmatmul.bf16.gmra.mxu0 %v1116_v56  ;;  %771 = vmatmul.bf16.gmra.mxu3 %v1260_v57  ;;  %v1780_v56 = vld [vmem:[%s1937_s2] ss:$0 sm:$0xff] }
  0x4c   : > { %1467 = vmatpush.bf16.msra.mxu3 %v1596_v2  ;;  %800 = vmatmul.bf16.gmra.mxu1 %v1120_v58  ;;  %v1135_v2 = vld [vmem:[%s1677_s30 + $0x50] sm:$0xf]  ;;  %v1187_v57 = vld [vmem:[%s1677_s30 + $0xc0] sm:$0xf]  ;;  %v1404_v58 = vld [vmem:[%s1677_s30 + $0xc8] sm:$0xf0] }
  0x4d   : > { %889 = vmatmul.bf16.gmra.mxu2 %v1124_v59  ;;  %v1136_v7 = vor.u32 %v1390_v3, %v1135_v2  ;;  %v1403_v59 = vld [vmem:[%s1677_s30 + $0xc4] sm:$0xf]  ;;  %v1188_v1 = vor.u32 %v1404_v58, %v1187_v57  ;;  %v1244_v2 = vor.u32 %v1417_v61, %v1243_v60  ;;  %v1216_v60 = vor.u32 %v1409_v45, %v1213_v48 }
  0x4e   : > { %v1220_v61 = vor.u32 %v1411_v50, %v1219_v49 }
  0x50   : > { %1468 = vmatpush.bf16.msra.mxu3 %v1611_v5  ;;  %v1272_v5 = vor.u32 %v1425_v63, %v1271_v62  ;;  %v1189_v62 = vld [vmem:[%s1677_s30 + $0xcc] sm:$0xf0]  ;;  %v1195_v63 = vld [vmem:[%s1677_s30 + $0xc8] sm:$0xf] }
  0x54   : > { %1469 = vmatpush.bf16.msra.mxu3 %v1626_v8  ;;  %v1139_v8 = vld [vmem:[%s1677_s30 + $0x60] sm:$0xf] }
  0x55   : > { %v1140_v16 = vor.u32 %v1392_v9, %v1139_v8 }
  0x58   : > { %1470 = vmatpush.bf16.msra.mxu3 %v1641_v11  ;;  %v1415_v11 = vld [vmem:[%s1677_s30 + $0x124] sm:$0xf] }
  0x5b   : > { %716 = vmatmul.bf16.gmra.mxu0 %v1128_v4  ;;  %776 = vmatmul.bf16.gmra.mxu3 %v1272_v5  ;;  %v1192_v4 = vor.u32 %v1403_v59, %v1189_v62  ;;  %v1196_v5 = vor.u32 %v1405_v0, %v1195_v63 }
  0x5c   : > { %1471 = vmatpush.bf16.msra.mxu3 %v1656_v14  ;;  %805 = vmatmul.bf16.gmra.mxu1 %v1132_v6  ;;  %v1147_v14 = vld [vmem:[%s1677_s30 + $0x68] sm:$0xf] }
  0x5d   : > { %894 = vmatmul.bf16.gmra.mxu2 %v1136_v7  ;;  %v1148_v19 = vor.u32 %v1393_v15, %v1147_v14  ;;  %v1199_v15 = vld [vmem:[%s1677_s30 + $0xd8] sm:$0xf] }
  0x60   : > { %1472 = vmatpush.bf16.msra.mxu3 %v1669_v17  ;;  %v1240_v17 = vor.u32 %v1415_v11, %v1237_v12 }
  0x64   : > { %1473 = vmatpush.bf16.msra.mxu3 %v1686_v20  ;;  %v1151_v20 = vld [vmem:[%s1677_s30 + $0x78] sm:$0xf] }
  0x65   : > { %v1152_v28 = vor.u32 %v1395_v21, %v1151_v20  ;;  %v1201_v20 = vld [vmem:[%s1677_s30 + $0xe4] sm:$0xf0]  ;;  %v1207_v21 = vld [vmem:[%s1677_s30 + $0xe0] sm:$0xf] }
  0x68   : > { %1474 = vmatpush.bf16.msra.mxu3 %v1697_v23  ;;  %v1153_v23 = vld [vmem:[%s1677_s30 + $0x84] sm:$0xf0] }
  0x69   : > { %v1156_v30 = vor.u32 %v1394_v22, %v1153_v23  ;;  %v1408_v22 = vld [vmem:[%s1677_s30 + $0xe8] sm:$0xf0] }
  0x6a   : > { %v1208_v32 = vor.u32 %v1408_v22, %v1207_v21 }
  0x6b   : > { %721 = vmatmul.bf16.gmra.mxu0 %v1140_v16  ;;  %850 = vmatmul.bf16.vlgmr.msrb.gmra.mxu3 %v1240_v17  ;;  %v1407_v16 = vld [vmem:[%s1677_s30 + $0xe0] sm:$0xf0]  ;;  %v1406_v17 = vld [vmem:[%s1677_s30 + $0xdc] sm:$0xf] }
  0x6c   : > { %810 = vmatmul.bf16.gmra.mxu1 %v1144_v18  ;;  %v1255_v18 = vld [vmem:[%s1677_s30 + $0x140] sm:$0xf]  ;;  %v1200_v26 = vor.u32 %v1407_v16, %v1199_v15  ;;  %v1231_v15 = vld [vmem:[%s1677_s30 + $0x110] sm:$0xf]  ;;  %v1414_v16 = vld [vmem:[%s1677_s30 + $0x118] sm:$0xf0] }
  0x6d   : > { %899 = vmatmul.bf16.gmra.mxu2 %v1148_v19  ;;  %v1420_v19 = vld [vmem:[%s1677_s30 + $0x148] sm:$0xf0] }
  0x6e   : > { %v1256_v27 = vor.u32 %v1420_v19, %v1255_v18 }
  0x7b   : > { %726 = vmatmul.bf16.gmra.mxu0 %v1152_v28  ;;  %855 = vmatmul.bf16.gmra.mxu3 %v1252_v29 }
  0x7c   : > { %815 = vmatmul.bf16.gmra.mxu1 %v1156_v30 }
  0x7d   : > { %904 = vmatmul.bf16.gmra.mxu2 %v1160_v31  ;;  %v1204_v31 = vor.u32 %v1406_v17, %v1201_v20 }
  0x8b   : > { %731 = vmatmul.bf16.gmra.mxu0 %v1164_v40  ;;  %860 = vmatmul.bf16.gmra.mxu3 %v1264_v41 }
  0x8c   : > { %820 = vmatmul.bf16.gmra.mxu1 %v1168_v42 }
  0x8d   : > { %909 = vmatmul.bf16.gmra.mxu2 %v1172_v43  ;;  %v1211_v43 = vld [vmem:[%s1677_s30 + $0xf0] sm:$0xf] }
  0x9b   : > { %736 = vmatmul.bf16.gmra.mxu0 %v1176_v52  ;;  %865 = vmatmul.bf16.gmra.mxu3 %v1276_v53 }
  0x9c   : > { %825 = vmatmul.bf16.gmra.mxu1 %v1180_v54  ;;  %v1212_v54 = vor.u32 %v1410_v44, %v1211_v43 }
  0x9d   : > { %914 = vmatmul.bf16.gmra.mxu2 %v1184_v55  ;;  %v1268_v55 = vor.u32 %v1423_v47, %v1267_v46 }
  0xa8   : > { %v702_v3 = vpop.f32.mrf.mxu0 }
  0xa9   : > { %v703_v6 = vadd.f32 %v1780_v56, %v702_v3  ;;  %v791_v7 = vpop.f32.mrf.mxu1 }
  0xab   : > { %741 = vmatmul.bf16.gmra.mxu0 %v1188_v1  ;;  %939 = vmatmul.bf16.vlgmr.msra.gmra.mxu3 %v1244_v2  ;;  %v792_v8 = vadd.f32 %v791_v7, %v703_v6 }
  0xac   : > { %830 = vmatmul.bf16.gmra.mxu1 %v1192_v4 }
  0xad   : > { %919 = vmatmul.bf16.gmra.mxu2 %v1196_v5 }
  0xae   : > { %v1791_v9 = vpop.f32.mrf.mxu3 }
  0xb0   : > { %v880_v10 = vpop.f32.mrf.mxu2  ;;  %v704_v12 = vpop.f32.mrf.mxu0 }
  0xb1   : > { %v881_v11 = vadd.f32 %v880_v10, %v792_v8  ;;  %v793_v13 = vpop.f32.mrf.mxu1  ;;  %v705_v14 = vadd.f32 %v1780_v56, %v704_v12  ;;  %v1223_v8 = vld [vmem:[%s1677_s30 + $0x108] sm:$0xf]  ;;  %v1413_v10 = vld [vmem:[%s1677_s30 + $0x110] sm:$0xf0]  ;;  %v1279_v12 = vld [vmem:[%s1677_s30 + $0x170] sm:$0xf] }
  0xb2   : > { %v1224_v20 = vor.u32 %v1413_v10, %v1223_v8 }
  0xb3   : > { %1485 = vtanh.f32 %v881_v11  ;;  %v794_v24 = vadd.f32 %v793_v13, %v705_v14  ;;  %v1412_v11 = vld [vmem:[%s1677_s30 + $0x10c] sm:$0xf]  ;;  %v1426_v13 = vld [vmem:[%s1677_s30 + $0x178] sm:$0xf0]  ;;  %v1225_v14 = vld [vmem:[%s1677_s30 + $0x114] sm:$0xf0] }
  0xb4   : > { %v1280_v21 = vor.u32 %v1426_v13, %v1279_v12 }
  0xb6   : > { %v1808_v25 = vpop.f32.mrf.mxu3 }
  0xb8   : > { %v882_v23 = vpop.f32.mrf.mxu2  ;;  %v707_v30 = vpop.f32.mrf.mxu0 }
  0xb9   : > { %v1486_v28 = vpop.eup %1485  ;;  %v883_v29 = vadd.f32 %v882_v23, %v794_v24  ;;  %v708_v33 = vadd.f32 %v1780_v56, %v707_v30  ;;  %v796_v34 = vpop.f32.mrf.mxu1 }
  0xba   : > { %992 = vst [vmem:[%s1806_s21] sm:$0xff] %v1486_v28 }
  0xbb   : > { %1487 = vtanh.f32 %v883_v29  ;;  %746 = vmatmul.bf16.gmra.mxu0 %v1200_v26  ;;  %944 = vmatmul.bf16.gmra.mxu3 %v1256_v27  ;;  %v797_v35 = vadd.f32 %v796_v34, %v708_v33  ;;  %v1228_v26 = vor.u32 %v1412_v11, %v1225_v14  ;;  %v1232_v27 = vor.u32 %v1414_v16, %v1231_v15 }
  0xbc   : > { %835 = vmatmul.bf16.gmra.mxu1 %v1204_v31 }
  0xbd   : > { %924 = vmatmul.bf16.gmra.mxu2 %v1208_v32 }
  0xbe   : > { %v1812_v36 = vpop.f32.mrf.mxu3 }
  0xc0   : > { %v885_v37 = vpop.f32.mrf.mxu2  ;;  %v709_v40 = vpop.f32.mrf.mxu0 }
  0xc1   : > { %v1488_v38 = vpop.eup %1487  ;;  %v886_v39 = vadd.f32 %v885_v37, %v797_v35  ;;  %v798_v41 = vpop.f32.mrf.mxu1  ;;  %v710_v42 = vadd.f32 %v1780_v56, %v709_v40 }
  0xc2   : > { %993 = vst [vmem:[%s1806_s21 + $0x8] sm:$0xff] %v1488_v38 }
  0xc3   : > { %1489 = vtanh.f32 %v886_v39  ;;  %v799_v51 = vadd.f32 %v798_v41, %v710_v42 }
  0xc6   : > { %v1824_v52 = vpop.f32.mrf.mxu3 }
  0xc8   : > { %v887_v53 = vpop.f32.mrf.mxu2  ;;  %v712_v59 = vpop.f32.mrf.mxu0 }
  0xc9   : > { %v1490_v57 = vpop.eup %1489  ;;  %v888_v58 = vadd.f32 %v887_v53, %v799_v51  ;;  %v713_v62 = vadd.f32 %v1780_v56, %v712_v59  ;;  %v801_v63 = vpop.f32.mrf.mxu1 }
  0xca   : > { %994 = vst [vmem:[%s1806_s21 + $0x10] sm:$0xff] %v1490_v57 }
  0xcb   : > { %1491 = vtanh.f32 %v888_v58  ;;  %751 = vmatmul.bf16.gmra.mxu0 %v1212_v54  ;;  %949 = vmatmul.bf16.gmra.mxu3 %v1268_v55  ;;  %v802_v0 = vadd.f32 %v801_v63, %v713_v62 }
  0xcc   : > { %840 = vmatmul.bf16.gmra.mxu1 %v1216_v60 }
  0xcd   : > { %929 = vmatmul.bf16.gmra.mxu2 %v1220_v61 }
  0xce   : > { %v1828_v1 = vpop.f32.mrf.mxu3 }
  0xd0   : > { %v890_v2 = vpop.f32.mrf.mxu2  ;;  %v714_v5 = vpop.f32.mrf.mxu0 }
  0xd1   : > { %v1492_v3 = vpop.eup %1491  ;;  %v891_v4 = vadd.f32 %v890_v2, %v802_v0  ;;  %v803_v6 = vpop.f32.mrf.mxu1  ;;  %v715_v7 = vadd.f32 %v1780_v56, %v714_v5 }
  0xd2   : > { %995 = vst [vmem:[%s1806_s21 + $0x18] sm:$0xff] %v1492_v3 }
  0xd3   : > { %1493 = vtanh.f32 %v891_v4  ;;  %v804_v17 = vadd.f32 %v803_v6, %v715_v7 }
  0xd6   : > { %v1840_v18 = vpop.f32.mrf.mxu3 }
  0xd8   : > { %v892_v19 = vpop.f32.mrf.mxu2  ;;  %v717_v23 = vpop.f32.mrf.mxu0 }
  0xd9   : > { %v1494_v22 = vpop.eup %1493  ;;  %v893_v24 = vadd.f32 %v892_v19, %v804_v17  ;;  %v718_v28 = vadd.f32 %v1780_v56, %v717_v23  ;;  %v806_v29 = vpop.f32.mrf.mxu1 }
  0xda   : > { %996 = vst [vmem:[%s1806_s21 + $0x20] sm:$0xff] %v1494_v22 }
  0xdb   : > { %1495 = vtanh.f32 %v893_v24  ;;  %756 = vmatmul.bf16.gmra.mxu0 %v1224_v20  ;;  %954 = vmatmul.bf16.gmra.mxu3 %v1280_v21  ;;  %v807_v30 = vadd.f32 %v806_v29, %v718_v28 }
  0xdc   : > { %845 = vmatmul.bf16.gmra.mxu1 %v1228_v26 }
  0xdd   : > { %934 = vmatmul.bf16.gmra.mxu2 %v1232_v27 }
  0xde   : > { %v1844_v31 = vpop.f32.mrf.mxu3 }
  0xe0   : > { %v895_v32 = vpop.f32.mrf.mxu2  ;;  %v719_v35 = vpop.f32.mrf.mxu0 }
  0xe1   : > { %v1496_v33 = vpop.eup %1495  ;;  %v896_v34 = vadd.f32 %v895_v32, %v807_v30  ;;  %v808_v37 = vpop.f32.mrf.mxu1  ;;  %v720_v38 = vadd.f32 %v1780_v56, %v719_v35 }
  0xe2   : > { %997 = vst [vmem:[%s1806_s21 + $0x28] sm:$0xff] %v1496_v33 }
  0xe3   : > { %1497 = vtanh.f32 %v896_v34  ;;  %v809_v39 = vadd.f32 %v808_v37, %v720_v38 }
  0xe6   : > { %v1848_v40 = vpop.f32.mrf.mxu3 }
  0xe8   : > { %v897_v41 = vpop.f32.mrf.mxu2  ;;  %v722_v44 = vpop.f32.mrf.mxu0 }
  0xe9   : > { %v1498_v42 = vpop.eup %1497  ;;  %v898_v43 = vadd.f32 %v897_v41, %v809_v39  ;;  %v723_v45 = vadd.f32 %v1780_v56, %v722_v44  ;;  %v811_v46 = vpop.f32.mrf.mxu1 }
  0xea   : > { %998 = vst [vmem:[%s1806_s21 + $0x30] sm:$0xff] %v1498_v42 }
  0xeb   : > { %1499 = vtanh.f32 %v898_v43  ;;  %v812_v47 = vadd.f32 %v811_v46, %v723_v45 }
  0xee   : > { %v1852_v48 = vpop.f32.mrf.mxu3 }
  0xf0   : > { %v900_v49 = vpop.f32.mrf.mxu2  ;;  %v724_v53 = vpop.f32.mrf.mxu0 }
  0xf1   : > { %v1500_v50 = vpop.eup %1499  ;;  %v901_v51 = vadd.f32 %v900_v49, %v812_v47  ;;  %v813_v54 = vpop.f32.mrf.mxu1  ;;  %v725_v55 = vadd.f32 %v1780_v56, %v724_v53 }
  0xf2   : > { %999 = vst [vmem:[%s1806_s21 + $0x38] sm:$0xff] %v1500_v50 }
  0xf3   : > { %1501 = vtanh.f32 %v901_v51  ;;  %v814_v57 = vadd.f32 %v813_v54, %v725_v55 }
  0xf6   : > { %v1856_v58 = vpop.f32.mrf.mxu3 }
  0xf8   : > { %v902_v59 = vpop.f32.mrf.mxu2  ;;  %v727_v62 = vpop.f32.mrf.mxu0 }
  0xf9   : > { %v1502_v60 = vpop.eup %1501  ;;  %v903_v61 = vadd.f32 %v902_v59, %v814_v57  ;;  %v728_v63 = vadd.f32 %v1780_v56, %v727_v62  ;;  %v816_v0 = vpop.f32.mrf.mxu1 }
  0xfa   : > { %1000 = vst [vmem:[%s1806_s21 + $0x40] sm:$0xff] %v1502_v60  ;;  %v763_v60 = vadd.f32 %v1780_v56, %v1791_v9  ;;  %v765_v9 = vadd.f32 %v1780_v56, %v1808_v25  ;;  %v768_v25 = vadd.f32 %v1780_v56, %v1812_v36  ;;  %v770_v36 = vadd.f32 %v1780_v56, %v1824_v52 }
  0xfb   : > { %1503 = vtanh.f32 %v903_v61  ;;  %v817_v2 = vadd.f32 %v816_v0, %v728_v63  ;;  %v773_v52 = vadd.f32 %v1780_v56, %v1828_v1  ;;  %v775_v1 = vadd.f32 %v1780_v56, %v1840_v18 }
  0xfc   : > { %v852_v62 = vadd.f32 %v1852_v48, %v763_v60  ;;  %v778_v18 = vadd.f32 %v1780_v56, %v1844_v31  ;;  %v780_v31 = vadd.f32 %v1780_v56, %v1848_v40 }
  0xfe   : > { %v1860_v3 = vpop.f32.mrf.mxu3 }
 0x100   : > { %v905_v4 = vpop.f32.mrf.mxu2  ;;  %v729_v7 = vpop.f32.mrf.mxu0 }
 0x101   : > { %v1504_v5 = vpop.eup %1503  ;;  %v906_v6 = vadd.f32 %v905_v4, %v817_v2  ;;  %v818_v8 = vpop.f32.mrf.mxu1  ;;  %v730_v10 = vadd.f32 %v1780_v56, %v729_v7 }
 0x102   : > { %1001 = vst [vmem:[%s1806_s21 + $0x48] sm:$0xff] %v1504_v5 }
 0x103   : > { %1505 = vtanh.f32 %v906_v6  ;;  %v819_v11 = vadd.f32 %v818_v8, %v730_v10  ;;  %v854_v10 = vadd.f32 %v1856_v58, %v765_v9 }
 0x106   : > { %v1864_v12 = vpop.f32.mrf.mxu3 }
 0x108   : > { %v907_v13 = vpop.f32.mrf.mxu2  ;;  %v732_v16 = vpop.f32.mrf.mxu0 }
 0x109   : > { %v1506_v14 = vpop.eup %1505  ;;  %v908_v15 = vadd.f32 %v907_v13, %v819_v11  ;;  %v733_v17 = vadd.f32 %v1780_v56, %v732_v16  ;;  %v821_v19 = vpop.f32.mrf.mxu1 }
 0x10a   : > { %1002 = vst [vmem:[%s1806_s21 + $0x50] sm:$0xff] %v1506_v14 }
 0x10b   : > { %1507 = vtanh.f32 %v908_v15  ;;  %v822_v20 = vadd.f32 %v821_v19, %v733_v17 }
 0x10e   : > { %v1868_v21 = vpop.f32.mrf.mxu3 }
 0x110   : > { %v910_v22 = vpop.f32.mrf.mxu2  ;;  %v734_v26 = vpop.f32.mrf.mxu0 }
 0x111   : > { %v1508_v24 = vpop.eup %1507  ;;  %v911_v23 = vadd.f32 %v910_v22, %v822_v20  ;;  %v823_v27 = vpop.f32.mrf.mxu1  ;;  %v735_v28 = vadd.f32 %v1780_v56, %v734_v26 }
 0x112   : > { %1003 = vst [vmem:[%s1806_s21 + $0x58] sm:$0xff] %v1508_v24  ;;  %v857_v24 = vadd.f32 %v1860_v3, %v768_v25  ;;  %v859_v3 = vadd.f32 %v1864_v12, %v770_v36 }
 0x113   : > { %1509 = vtanh.f32 %v911_v23  ;;  %v824_v29 = vadd.f32 %v823_v27, %v735_v28 }
 0x116   : > { %v1872_v30 = vpop.f32.mrf.mxu3 }
 0x118   : > { %v912_v32 = vpop.f32.mrf.mxu2  ;;  %v737_v35 = vpop.f32.mrf.mxu0 }
 0x119   : > { %v1510_v33 = vpop.eup %1509  ;;  %v913_v34 = vadd.f32 %v912_v32, %v824_v29  ;;  %v738_v37 = vadd.f32 %v1780_v56, %v737_v35  ;;  %v826_v38 = vpop.f32.mrf.mxu1 }
 0x11a   : > { %1004 = vst [vmem:[%s1806_s21 + $0x60] sm:$0xff] %v1510_v33 }
 0x11b   : > { %1511 = vtanh.f32 %v913_v34  ;;  %v827_v39 = vadd.f32 %v826_v38, %v738_v37 }
 0x11e   : > { %v1876_v41 = vpop.f32.mrf.mxu3 }
 0x120   : > { %v915_v42 = vpop.f32.mrf.mxu2  ;;  %v739_v45 = vpop.f32.mrf.mxu0 }
 0x121   : > { %v1512_v43 = vpop.eup %1511  ;;  %v916_v44 = vadd.f32 %v915_v42, %v827_v39  ;;  %v828_v46 = vpop.f32.mrf.mxu1  ;;  %v740_v47 = vadd.f32 %v1780_v56, %v739_v45 }
 0x122   : > { %1005 = vst [vmem:[%s1806_s21 + $0x68] sm:$0xff] %v1512_v43 }
 0x123   : > { %1513 = vtanh.f32 %v916_v44  ;;  %v829_v49 = vadd.f32 %v828_v46, %v740_v47 }
 0x126   : > { %v1880_v50 = vpop.f32.mrf.mxu3 }
 0x128   : > { %v917_v51 = vpop.f32.mrf.mxu2  ;;  %v742_v55 = vpop.f32.mrf.mxu0 }
 0x129   : > { %v1514_v53 = vpop.eup %1513  ;;  %v918_v54 = vadd.f32 %v917_v51, %v829_v49  ;;  %v743_v57 = vadd.f32 %v1780_v56, %v742_v55  ;;  %v831_v59 = vpop.f32.mrf.mxu1  ;;  %v862_v51 = vadd.f32 %v1868_v21, %v773_v52  ;;  %v864_v21 = vadd.f32 %v1872_v30, %v775_v1 }
 0x12a   : > { %1006 = vst [vmem:[%s1806_s21 + $0x70] sm:$0xff] %v1514_v53 }
 0x12b   : > { %1515 = vtanh.f32 %v918_v54  ;;  %v832_v61 = vadd.f32 %v831_v59, %v743_v57 }
 0x12e   : > { %v940_v63 = vpop.f32.mrf.mxu3 }
 0x12f   : > { %v941_v2 = vadd.f32 %v940_v63, %v852_v62 }
 0x130   : > { %v920_v0 = vpop.f32.mrf.mxu2  ;;  %v744_v6 = vpop.f32.mrf.mxu0 }
 0x131   : > { %v1516_v4 = vpop.eup %1515  ;;  %v921_v5 = vadd.f32 %v920_v0, %v832_v61  ;;  %1517 = vtanh.f32 %v941_v2  ;;  %v833_v7 = vpop.f32.mrf.mxu1  ;;  %v745_v8 = vadd.f32 %v1780_v56, %v744_v6 }
 0x132   : > { %1007 = vst [vmem:[%s1806_s21 + $0x78] sm:$0xff] %v1516_v4 }
 0x133   : > { %1519 = vtanh.f32 %v921_v5  ;;  %v834_v48 = vadd.f32 %v833_v7, %v745_v8 }
 0x136   : > { %v942_v11 = vpop.f32.mrf.mxu3 }
 0x137   : > { %v1518_v13 = vpop.eup %1517  ;;  %v943_v15 = vadd.f32 %v942_v11, %v854_v10  ;;  %v867_v11 = vadd.f32 %v1876_v41, %v778_v18  ;;  %v869_v41 = vadd.f32 %v1880_v50, %v780_v31 }
 0x138   : > { %v922_v14 = vpop.f32.mrf.mxu2  ;;  %1016 = vst [vmem:[%s1806_s21 + $0xc0] sm:$0xff] %v1518_v13  ;;  %v747_v19 = vpop.f32.mrf.mxu0 }
 0x139   : > { %v1520_v16 = vpop.eup %1519  ;;  %v923_v17 = vadd.f32 %v922_v14, %v834_v48  ;;  %1521 = vtanh.f32 %v943_v15  ;;  %v748_v20 = vadd.f32 %v1780_v56, %v747_v19  ;;  %v836_v22 = vpop.f32.mrf.mxu1 }
 0x13a   : > { %1008 = vst [vmem:[%s1806_s21 + $0x80] sm:$0xff] %v1520_v16 }
 0x13b   : > { %1523 = vtanh.f32 %v923_v17  ;;  %v837_v58 = vadd.f32 %v836_v22, %v748_v20 }
 0x13e   : > { %v945_v23 = vpop.f32.mrf.mxu3 }
 0x13f   : > { %v1522_v26 = vpop.eup %1521  ;;  %v946_v28 = vadd.f32 %v945_v23, %v857_v24 }
 0x140   : > { %v925_v27 = vpop.f32.mrf.mxu2  ;;  %1017 = vst [vmem:[%s1806_s21 + $0xc8] sm:$0xff] %v1522_v26  ;;  %v749_v33 = vpop.f32.mrf.mxu0 }
 0x141   : > { %v1524_v29 = vpop.eup %1523  ;;  %v926_v32 = vadd.f32 %v925_v27, %v837_v58  ;;  %1525 = vtanh.f32 %v946_v28  ;;  %v838_v34 = vpop.f32.mrf.mxu1  ;;  %v750_v35 = vadd.f32 %v1780_v56, %v749_v33 }
 0x142   : > { %1009 = vst [vmem:[%s1806_s21 + $0x88] sm:$0xff] %v1524_v29 }
 0x143   : > { %1527 = vtanh.f32 %v926_v32  ;;  %v839_v37 = vadd.f32 %v838_v34, %v750_v35 }
 0x146   : > { %v947_v38 = vpop.f32.mrf.mxu3 }
 0x147   : > { %v1526_v39 = vpop.eup %1525  ;;  %v948_v43 = vadd.f32 %v947_v38, %v859_v3 }
 0x148   : > { %v927_v42 = vpop.f32.mrf.mxu2  ;;  %1018 = vst [vmem:[%s1806_s21 + $0xd0] sm:$0xff] %v1526_v39  ;;  %v752_v46 = vpop.f32.mrf.mxu0 }
 0x149   : > { %v1528_v44 = vpop.eup %1527  ;;  %v928_v45 = vadd.f32 %v927_v42, %v839_v37  ;;  %1529 = vtanh.f32 %v948_v43  ;;  %v753_v47 = vadd.f32 %v1780_v56, %v752_v46  ;;  %v841_v49 = vpop.f32.mrf.mxu1 }
 0x14a   : > { %1010 = vst [vmem:[%s1806_s21 + $0x90] sm:$0xff] %v1528_v44 }
 0x14b   : > { %1531 = vtanh.f32 %v928_v45  ;;  %v842_v12 = vadd.f32 %v841_v49, %v753_v47 }
 0x14e   : > { %v950_v53 = vpop.f32.mrf.mxu3 }
 0x14f   : > { %v1530_v54 = vpop.eup %1529  ;;  %v951_v57 = vadd.f32 %v950_v53, %v862_v51 }
 0x150   : > { %v930_v55 = vpop.f32.mrf.mxu2  ;;  %1019 = vst [vmem:[%s1806_s21 + $0xd8] sm:$0xff] %v1530_v54  ;;  %v754_v61 = vpop.f32.mrf.mxu0 }
 0x151   : > { %v1532_v59 = vpop.eup %1531  ;;  %v931_v60 = vadd.f32 %v930_v55, %v842_v12  ;;  %1533 = vtanh.f32 %v951_v57  ;;  %v843_v62 = vpop.f32.mrf.mxu1  ;;  %v755_v63 = vadd.f32 %v1780_v56, %v754_v61 }
 0x152   : > { %1011 = vst [vmem:[%s1806_s21 + $0x98] sm:$0xff] %v1532_v59 }
 0x153   : > { %1535 = vtanh.f32 %v931_v60  ;;  %v844_v0 = vadd.f32 %v843_v62, %v755_v63 }
 0x156   : > { %v952_v2 = vpop.f32.mrf.mxu3 }
 0x157   : > { %v1534_v4 = vpop.eup %1533  ;;  %v953_v6 = vadd.f32 %v952_v2, %v864_v21 }
 0x158   : > { %v932_v5 = vpop.f32.mrf.mxu2  ;;  %1020 = vst [vmem:[%s1806_s21 + $0xe0] sm:$0xff] %v1534_v4  ;;  %v757_v9 = vpop.f32.mrf.mxu0 }
 0x159   : > { %v1536_v7 = vpop.eup %1535  ;;  %v933_v8 = vadd.f32 %v932_v5, %v844_v0  ;;  %1537 = vtanh.f32 %v953_v6  ;;  %v758_v10 = vadd.f32 %v1780_v56, %v757_v9  ;;  %v846_v30 = vpop.f32.mrf.mxu1 }
 0x15a   : > { %1012 = vst [vmem:[%s1806_s21 + $0xa0] sm:$0xff] %v1536_v7 }
 0x15b   : > { %1539 = vtanh.f32 %v933_v8  ;;  %v847_v48 = vadd.f32 %v846_v30, %v758_v10 }
 0x15e   : > { %v955_v13 = vpop.f32.mrf.mxu3 }
 0x15f   : > { %v1538_v14 = vpop.eup %1537  ;;  %v956_v16 = vadd.f32 %v955_v13, %v867_v11 }
 0x160   : > { %v935_v15 = vpop.f32.mrf.mxu2  ;;  %1021 = vst [vmem:[%s1806_s21 + $0xe8] sm:$0xff] %v1538_v14  ;;  %v759_v20 = vpop.f32.mrf.mxu0 }
 0x161   : > { %v1540_v17 = vpop.eup %1539  ;;  %v936_v19 = vadd.f32 %v935_v15, %v847_v48  ;;  %1541 = vtanh.f32 %v956_v16  ;;  %v760_v22 = vadd.f32 %v1780_v56, %v759_v20  ;;  %v848_v25 = vpop.f32.mrf.mxu1 }
 0x162   : > { %1013 = vst [vmem:[%s1806_s21 + $0xa8] sm:$0xff] %v1540_v17 }
 0x163   : > { %1543 = vtanh.f32 %v936_v19  ;;  %v849_v58 = vadd.f32 %v848_v25, %v760_v22 }
 0x166   : > { %v957_v24 = vpop.f32.mrf.mxu3 }
 0x167   : > { %v1542_v23 = vpop.eup %1541  ;;  %v958_v27 = vadd.f32 %v957_v24, %v869_v41 }
 0x168   : > { %v937_v26 = vpop.f32.mrf.mxu2  ;;  %1022 = vst [vmem:[%s1806_s21 + $0xf0] sm:$0xff] %v1542_v23 }
 0x169   : > { %v1544_v28 = vpop.eup %1543  ;;  %v938_v29 = vadd.f32 %v937_v26, %v849_v58  ;;  %1545 = vtanh.f32 %v958_v27 }
 0x16a   : > { %1014 = vst [vmem:[%s1806_s21 + $0xb0] sm:$0xff] %v1544_v28 }
 0x16b   : > { %1547 = vtanh.f32 %v938_v29 }
 0x16f   : > { %v1546_v32 = vpop.eup %1545 }
 0x170   : > { %1023 = vst [vmem:[%s1806_s21 + $0xf8] sm:$0xff] %v1546_v32 }
 0x171   : > { %v1548_v33 = vpop.eup %1547 }
 0x172   : > { %1015 = vst [vmem:[%s1806_s21 + $0xb8] sm:$0xff] %v1548_v33 }
 0x173 PF: > { %s13_s12 = sadd.s32 1, %s1555_s12  }
 0x174   : > { %p10_p4 = scmp.ge.s32.totalorder %s13_s12, 4  }
 0x176   :  { %12 = sbr.rel (!%p10_p4) target bundleno = 1 (0x1), region = 62 }

</bundles_post_ra>
